<compile_context>
chip_gen: v5e
topology: v5e:2x2
jax: 0.10.0
libtpu: 0.0.40
codegen_flags: <defaults>
</compile_context>

<pallas_src>
import functools

import jax
import jax.numpy as jnp
import numpy as np
from jax.experimental import pallas as pl
from jax.experimental.pallas import tpu as pltpu

SEQ_LEN = 128          # input length so that 32 * 122 matches Linear(32*122, 128)
KSIZE = 3
T1, T2, T3 = 126, 124, 122
FC_HID = 128
LANES = 128            # logits padded to a full lane tile
EPS = 1e-5             # BatchNorm1d default eps


def _round_up(n, m):
    return (n + m - 1) // m * m


# ---------------------------------------------------------------------------
# Fused Pallas kernel: conv stack + FC1 + FC2 for one batch tile of `tb` samples
# ---------------------------------------------------------------------------
def fused_kernel(x_ref,
                 w1_ref, s1_ref, w2_ref, s2_ref, w3_ref, s3_ref,
                 wf1_ref, bf1_ref, wf2_ref, bf2_ref,
                 out_ref, fc_ref, *, tb):
    """Activations are 2D slabs (time*tb, channels); row index = t*tb + b_local.

    All matmul operands are bf16 (f32 accumulation); BN scale is folded into the
    conv weights host-side so each conv epilogue is just max(acc + shift, 0) in f32.
    """

    # conv1: the wrapper already delivered the 3-tap im2col slab (T1*tb, 3) bf16.
    acc = jnp.dot(x_ref[...], w1_ref[...], preferred_element_type=jnp.float32)
    y = jnp.maximum(acc + s1_ref[...], 0.0).astype(jnp.bfloat16)         # (T1*tb, 8)

    def conv_bn_relu(y_bf, t_in, w_ref, sh_ref):
        # y_bf: (t_in*tb, Cin) bf16; w_ref: (3*Cin, Cout) bf16 with BN scale folded.
        cin = y_bf.shape[1]
        taps = w_ref.shape[0] // cin
        t_out = t_in - taps + 1
        m = t_out * tb
        # im2col: one MXU matmul per layer instead of 3 matmuls + 2 f32 adds.
        lhs = jnp.concatenate([y_bf[k * tb:k * tb + m, :] for k in range(taps)],
                              axis=1)                                     # (m, 3*Cin)
        acc = jnp.dot(lhs, w_ref[...], preferred_element_type=jnp.float32)
        return jnp.maximum(acc + sh_ref[...], 0.0).astype(jnp.bfloat16), t_out

    y, t_len = conv_bn_relu(y, T1, w2_ref, s2_ref)                        # (T2*tb, 16)
    y, t_len = conv_bn_relu(y, t_len, w3_ref, s3_ref)                     # (T3*tb, 32)
    cout = y.shape[1]                                                     # 32

    # FC1: scatter each per-timestep (tb, 32) tile into lane offset t*32 of the
    # (tb, 3904) bf16 scratch (fc1 weight rows were pre-permuted to t*32 + c),
    # then contract everything with ONE large-K MXU matmul (no per-chunk concats).
    for t in range(t_len):
        fc_ref[:, t * cout:(t + 1) * cout] = y[t * tb:(t + 1) * tb, :]
    h = (jnp.dot(fc_ref[...], wf1_ref[...], preferred_element_type=jnp.float32)
         + bf1_ref[...])                                                  # (tb, 128) f32

    # TODO(synk): Dropout(0.5) is identity in eval mode; training-mode stochastic
    # dropout is not implemented here.
    out_ref[...] = (jnp.dot(h.astype(jnp.bfloat16), wf2_ref[...],
                            preferred_element_type=jnp.float32)
                    + bf2_ref[...])                                       # (tb, 128) lane-dense


# ---------------------------------------------------------------------------
# One-time host-side parameter prep (BN fold into weights, im2col weight stack,
# fc1 row permutation, fc2 lane pad; all matmul operands cast to bf16)
# ---------------------------------------------------------------------------
def prepare_params(params, nb_classes):
    def prep_conv(w, b, gamma, beta, mean, var):
        cout, cin, k = w.shape
        scale = gamma / jnp.sqrt(var + EPS)                               # (Cout,)
        shift = (beta + (b - mean) * scale).astype(jnp.float32)           # bias folded in
        wk = jnp.transpose(w, (2, 1, 0)) * scale[None, None, :]           # (K, Cin, Cout), BN-scaled
        wk = wk.reshape(k * cin, cout).astype(jnp.bfloat16)               # row = k*Cin + ci
        return wk, shift.reshape(1, cout)

    c1 = prep_conv(*params["conv1"])
    c2 = prep_conv(*params["conv2"])
    c3 = prep_conv(*params["conv3"])

    # PyTorch flatten index is c*122 + t; kernel flatten index is t*32 + c.
    wf1, bf1 = params["fc1"]                                              # (128, 3904), (128,)
    wk1 = jnp.transpose(wf1.reshape(FC_HID, 32, T3), (2, 1, 0))           # (122, 32, 128)
    wk1 = wk1.reshape(T3 * 32, FC_HID).astype(jnp.bfloat16)               # (3904, 128)
    bk1 = bf1.reshape(1, FC_HID).astype(jnp.float32)

    wf2, bf2 = params["fc2"]                                              # (nb, 128), (nb,)
    wk2 = (jnp.zeros((FC_HID, LANES), jnp.bfloat16)
           .at[:, :nb_classes].set(wf2.T.astype(jnp.bfloat16)))
    bk2 = jnp.zeros((1, LANES), jnp.float32).at[0, :nb_classes].set(bf2)

    return c1 + c2 + c3 + (wk1, bk1, wk2, bk2)


# ---------------------------------------------------------------------------
# Forward wrapper: input layout prep + single fused pallas_call + final slice
# ---------------------------------------------------------------------------
def pallas_forward(x_ncw, kparams, nb_classes):
    B = x_ncw.shape[0]
    tb = min(64, _round_up(B, 8))        # batch tile; <=64 keeps VMEM modest on v7x
    bp = _round_up(B, tb)
    g = bp // tb

    # NCW -> per-tile conv1 im2col slabs in bf16: xt[i, t*tb + b, k] = x[i*tb+b, 0, t+k].
    # Dense in HBM (no 8x channel zero-pad); one pad + one stack + one transpose.
    x2 = jnp.pad(x_ncw[:, 0, :].astype(jnp.bfloat16), ((0, bp - B), (0, 0)))     # (bp, 128)
    cols = jnp.stack([x2[:, k:k + T1] for k in range(KSIZE)], axis=-1)           # (bp, T1, 3)
    xt = cols.reshape(g, tb, T1, KSIZE).transpose(0, 2, 1, 3)                    # (g, T1, tb, 3)
    xt = xt.reshape(g, T1 * tb, KSIZE)

    def const_spec(a):
        return pl.BlockSpec(a.shape, lambda i, _n=a.ndim: (0,) * _n)

    flops = 2 * bp * (T1 * KSIZE * 1 * 8 + T2 * KSIZE * 8 * 16 + T3 * KSIZE * 16 * 32
                      + T3 * 32 * FC_HID + FC_HID * LANES)
    bytes_accessed = int(sum(a.size * a.dtype.itemsize for a in (xt,) + tuple(kparams))
                         + bp * LANES * 4)

    out = pl.pallas_call(
        functools.partial(fused_kernel, tb=tb),
        out_shape=jax.ShapeDtypeStruct((bp, LANES), jnp.float32),
        grid=(g,),
        in_specs=[pl.BlockSpec((None, T1 * tb, KSIZE), lambda i: (i, 0, 0))]
                 + [const_spec(a) for a in kparams],
        out_specs=pl.BlockSpec((tb, LANES), lambda i: (i, 0)),
        scratch_shapes=[pltpu.VMEM((tb, T3 * 32), jnp.bfloat16)],
        compiler_params=pltpu.CompilerParams(
            dimension_semantics=("parallel",),
            vmem_limit_bytes=64 * 1024 * 1024),
        cost_estimate=pl.CostEstimate(flops=flops, transcendentals=0,
                                      bytes_accessed=bytes_accessed),
    )(xt, *kparams)                                                       # (bp, 128)

    return out[:B, :nb_classes]


# ---------------------------------------------------------------------------
# Deterministic parameter init (PyTorch shapes) and pure-JAX f32 reference
# ---------------------------------------------------------------------------
def init_params(key, nb_classes):
    keys = iter(jax.random.split(key, 24))

    def normal(shape, scale=0.1):
        return scale * jax.random.normal(next(keys), shape, jnp.float32)

    def conv_bn(cout, cin, k=3):
        return (normal((cout, cin, k)),                 # conv weight
                normal((cout,)),                        # conv bias
                1.0 + normal((cout,), 0.05),            # bn gamma
                normal((cout,), 0.05),                  # bn beta
                normal((cout,), 0.05),                  # bn running_mean
                1.0 + jnp.abs(normal((cout,), 0.05)))   # bn running_var (>0)

    return {
        "conv1": conv_bn(8, 1),
        "conv2": conv_bn(16, 8),
        "conv3": conv_bn(32, 16),
        "fc1": (normal((FC_HID, 32 * T3), 0.02), normal((FC_HID,), 0.02)),
        "fc2": (normal((nb_classes, FC_HID), 0.02), normal((nb_classes,), 0.02)),
    }


def ref_forward(x_ncw, params):
    """Pure-JAX NCW reference matching the PyTorch forward (eval mode)."""
    y = x_ncw
    for name in ("conv1", "conv2", "conv3"):
        w, b, gamma, beta, mean, var = params[name]
        K = w.shape[2]
        t_out = y.shape[2] - K + 1
        acc = jnp.zeros((y.shape[0], w.shape[0], t_out), jnp.float32)
        for k in range(K):
            acc = acc + jnp.einsum("bct,oc->bot", y[:, :, k:k + t_out], w[:, :, k])
        acc = acc + b[None, :, None]
        acc = ((acc - mean[None, :, None]) / jnp.sqrt(var[None, :, None] + EPS)
               * gamma[None, :, None] + beta[None, :, None])
        y = jnp.maximum(acc, 0.0)
    f = y.reshape(y.shape[0], -1)
    wf1, bf1 = params["fc1"]
    wf2, bf2 = params["fc2"]
    return (f @ wf1.T + bf1) @ wf2.T + bf2


if __name__ == "__main__":
    B, nb_classes = 4, 6
    key = jax.random.PRNGKey(0)
    kx, kp = jax.random.split(key)
    x = jax.random.normal(kx, (B, 1, SEQ_LEN), jnp.float32)   # PyTorch NCW input
    params = init_params(kp, nb_classes)

    kparams = prepare_params(params, nb_classes)              # one-time weight prep
    fwd = jax.jit(functools.partial(pallas_forward, nb_classes=nb_classes))

    out = jax.block_until_ready(fwd(x, kparams))
    assert out.shape == (B, nb_classes)

    ref = ref_forward(x, params)
    # bf16 matmul operands (f32 accumulation): slightly looser tolerance than f32.
    np.testing.assert_allclose(np.asarray(out), np.asarray(ref), rtol=1.5e-2, atol=5e-3)
    print("KERNEL_OK")
</pallas_src>

<mosaic_0001>
module attributes {stable_mosaic.version = 11 : i64} {
  func.func @fused_kernel(%arg0: i32, %arg1: memref<1x1008x3xbf16, #tpu.memory_space<vmem>>, %arg2: memref<3x8xbf16, #tpu.memory_space<vmem>>, %arg3: memref<1x8xf32, #tpu.memory_space<vmem>>, %arg4: memref<24x16xbf16, #tpu.memory_space<vmem>>, %arg5: memref<1x16xf32, #tpu.memory_space<vmem>>, %arg6: memref<48x32xbf16, #tpu.memory_space<vmem>>, %arg7: memref<1x32xf32, #tpu.memory_space<vmem>>, %arg8: memref<3904x128xbf16, #tpu.memory_space<vmem>>, %arg9: memref<1x128xf32, #tpu.memory_space<vmem>>, %arg10: memref<128x128xbf16, #tpu.memory_space<vmem>>, %arg11: memref<1x128xf32, #tpu.memory_space<vmem>>, %arg12: memref<8x128xf32, #tpu.memory_space<vmem>>, %arg13: memref<8x3904xbf16, #tpu.memory_space<vmem>>) attributes {dimension_semantics = [#tpu.dimension_semantics<parallel>], iteration_bounds = array<i64: 1>, scalar_prefetch = 0 : i64, scratch_operands = 1 : i64, tpu.core_type = #tpu.core_type<tc>, window_params = [{transform_indices = @transform_0, window_bounds = array<i64: 1, 1008, 3>}, {pipeline_mode = #tpu.pipeline_mode<synchronous>, transform_indices = @transform_1, window_bounds = array<i64: 3, 8>}, {pipeline_mode = #tpu.pipeline_mode<synchronous>, transform_indices = @transform_2, window_bounds = array<i64: 1, 8>}, {pipeline_mode = #tpu.pipeline_mode<synchronous>, transform_indices = @transform_3, window_bounds = array<i64: 24, 16>}, {pipeline_mode = #tpu.pipeline_mode<synchronous>, transform_indices = @transform_4, window_bounds = array<i64: 1, 16>}, {pipeline_mode = #tpu.pipeline_mode<synchronous>, transform_indices = @transform_5, window_bounds = array<i64: 48, 32>}, {pipeline_mode = #tpu.pipeline_mode<synchronous>, transform_indices = @transform_6, window_bounds = array<i64: 1, 32>}, {pipeline_mode = #tpu.pipeline_mode<synchronous>, transform_indices = @transform_7, window_bounds = array<i64: 3904, 128>}, {pipeline_mode = #tpu.pipeline_mode<synchronous>, transform_indices = @transform_8, window_bounds = array<i64: 1, 128>}, {pipeline_mode = #tpu.pipeline_mode<synchronous>, transform_indices = @transform_9, window_bounds = array<i64: 128, 128>}, {pipeline_mode = #tpu.pipeline_mode<synchronous>, transform_indices = @transform_10, window_bounds = array<i64: 1, 128>}, {transform_indices = @transform_11, window_bounds = array<i64: 8, 128>}]} {
    %c0 = arith.constant 0 : index
    %c0_0 = arith.constant 0 : index
    %c0_1 = arith.constant 0 : index
    %0 = vector.load %arg1[%c0, %c0_0, %c0_1] : memref<1x1008x3xbf16, #tpu.memory_space<vmem>>, vector<1x1008x3xbf16>
    %1 = vector.shape_cast %0 : vector<1x1008x3xbf16> to vector<1008x3xbf16>
    %c0_2 = arith.constant 0 : index
    %c0_3 = arith.constant 0 : index
    %2 = vector.load %arg2[%c0_2, %c0_3] : memref<3x8xbf16, #tpu.memory_space<vmem>>, vector<3x8xbf16>
    %cst = arith.constant dense<0.000000e+00> : vector<1008x8xf32>
    %3 = tpu.matmul %1, %2, %cst {dimension_numbers = #tpu.dot_dimension_numbers<[1], [0], [0], [1], [0, 0, 1, 1], [], []>} : vector<1008x3xbf16>, vector<3x8xbf16>, vector<1008x8xf32> -> vector<1008x8xf32>
    %c0_4 = arith.constant 0 : index
    %c0_5 = arith.constant 0 : index
    %4 = vector.load %arg3[%c0_4, %c0_5] : memref<1x8xf32, #tpu.memory_space<vmem>>, vector<1x8xf32>
    %5 = vector.broadcast %4 : vector<1x8xf32> to vector<1008x8xf32>
    %6 = arith.addf %3, %5 : vector<1008x8xf32>
    %cst_6 = arith.constant 0.000000e+00 : f32
    %7 = vector.broadcast %cst_6 : f32 to vector<1008x8xf32>
    %8 = arith.maximumf %6, %7 : vector<1008x8xf32>
    %9 = arith.truncf %8 : vector<1008x8xf32> to vector<1008x8xbf16>
    %10 = vector.extract_strided_slice %9 {offsets = [0, 0], sizes = [992, 8], strides = [1, 1]} : vector<1008x8xbf16> to vector<992x8xbf16>
    %11 = vector.extract_strided_slice %9 {offsets = [8, 0], sizes = [992, 8], strides = [1, 1]} : vector<1008x8xbf16> to vector<992x8xbf16>
    %12 = vector.extract_strided_slice %9 {offsets = [16, 0], sizes = [992, 8], strides = [1, 1]} : vector<1008x8xbf16> to vector<992x8xbf16>
    %13 = tpu.concatenate %10, %11, %12 in 1 : vector<992x8xbf16>, vector<992x8xbf16>, vector<992x8xbf16> -> vector<992x24xbf16>
    %c0_7 = arith.constant 0 : index
    %c0_8 = arith.constant 0 : index
    %14 = vector.load %arg4[%c0_7, %c0_8] : memref<24x16xbf16, #tpu.memory_space<vmem>>, vector<24x16xbf16>
    %cst_9 = arith.constant dense<0.000000e+00> : vector<992x16xf32>
    %15 = tpu.matmul %13, %14, %cst_9 {dimension_numbers = #tpu.dot_dimension_numbers<[1], [0], [0], [1], [0, 0, 1, 1], [], []>} : vector<992x24xbf16>, vector<24x16xbf16>, vector<992x16xf32> -> vector<992x16xf32>
    %c0_10 = arith.constant 0 : index
    %c0_11 = arith.constant 0 : index
    %16 = vector.load %arg5[%c0_10, %c0_11] : memref<1x16xf32, #tpu.memory_space<vmem>>, vector<1x16xf32>
    %17 = vector.broadcast %16 : vector<1x16xf32> to vector<992x16xf32>
    %18 = arith.addf %15, %17 : vector<992x16xf32>
    %cst_12 = arith.constant 0.000000e+00 : f32
    %19 = vector.broadcast %cst_12 : f32 to vector<992x16xf32>
    %20 = arith.maximumf %18, %19 : vector<992x16xf32>
    %21 = arith.truncf %20 : vector<992x16xf32> to vector<992x16xbf16>
    %22 = vector.extract_strided_slice %21 {offsets = [0, 0], sizes = [976, 16], strides = [1, 1]} : vector<992x16xbf16> to vector<976x16xbf16>
    %23 = vector.extract_strided_slice %21 {offsets = [8, 0], sizes = [976, 16], strides = [1, 1]} : vector<992x16xbf16> to vector<976x16xbf16>
    %24 = vector.extract_strided_slice %21 {offsets = [16, 0], sizes = [976, 16], strides = [1, 1]} : vector<992x16xbf16> to vector<976x16xbf16>
    %25 = tpu.concatenate %22, %23, %24 in 1 : vector<976x16xbf16>, vector<976x16xbf16>, vector<976x16xbf16> -> vector<976x48xbf16>
    %c0_13 = arith.constant 0 : index
    %c0_14 = arith.constant 0 : index
    %26 = vector.load %arg6[%c0_13, %c0_14] : memref<48x32xbf16, #tpu.memory_space<vmem>>, vector<48x32xbf16>
    %cst_15 = arith.constant dense<0.000000e+00> : vector<976x32xf32>
    %27 = tpu.matmul %25, %26, %cst_15 {dimension_numbers = #tpu.dot_dimension_numbers<[1], [0], [0], [1], [0, 0, 1, 1], [], []>} : vector<976x48xbf16>, vector<48x32xbf16>, vector<976x32xf32> -> vector<976x32xf32>
    %c0_16 = arith.constant 0 : index
    %c0_17 = arith.constant 0 : index
    %28 = vector.load %arg7[%c0_16, %c0_17] : memref<1x32xf32, #tpu.memory_space<vmem>>, vector<1x32xf32>
    %29 = vector.broadcast %28 : vector<1x32xf32> to vector<976x32xf32>
    %30 = arith.addf %27, %29 : vector<976x32xf32>
    %cst_18 = arith.constant 0.000000e+00 : f32
    %31 = vector.broadcast %cst_18 : f32 to vector<976x32xf32>
    %32 = arith.maximumf %30, %31 : vector<976x32xf32>
    %33 = arith.truncf %32 : vector<976x32xf32> to vector<976x32xbf16>
    %34 = vector.extract_strided_slice %33 {offsets = [0, 0], sizes = [8, 32], strides = [1, 1]} : vector<976x32xbf16> to vector<8x32xbf16>
    %c0_19 = arith.constant 0 : index
    %c0_20 = arith.constant 0 : index
    %35 = vector.load %arg13[%c0_19, %c0_20] : memref<8x3904xbf16, #tpu.memory_space<vmem>>, vector<8x32xbf16>
    tpu.vector_store %arg13[%c0_19, %c0_20], %34 {strides = array<i32>} : memref<8x3904xbf16, #tpu.memory_space<vmem>>, vector<8x32xbf16>,
    %36 = vector.extract_strided_slice %33 {offsets = [8, 0], sizes = [8, 32], strides = [1, 1]} : vector<976x32xbf16> to vector<8x32xbf16>
    %c0_21 = arith.constant 0 : index
    %c32 = arith.constant 32 : index
    %37 = vector.load %arg13[%c0_21, %c32] : memref<8x3904xbf16, #tpu.memory_space<vmem>>, vector<8x32xbf16>
    tpu.vector_store %arg13[%c0_21, %c32], %36 {strides = array<i32>} : memref<8x3904xbf16, #tpu.memory_space<vmem>>, vector<8x32xbf16>,
    %38 = vector.extract_strided_slice %33 {offsets = [16, 0], sizes = [8, 32], strides = [1, 1]} : vector<976x32xbf16> to vector<8x32xbf16>
    %c0_22 = arith.constant 0 : index
    %c64 = arith.constant 64 : index
    %39 = vector.load %arg13[%c0_22, %c64] : memref<8x3904xbf16, #tpu.memory_space<vmem>>, vector<8x32xbf16>
    tpu.vector_store %arg13[%c0_22, %c64], %38 {strides = array<i32>} : memref<8x3904xbf16, #tpu.memory_space<vmem>>, vector<8x32xbf16>,
    %40 = vector.extract_strided_slice %33 {offsets = [24, 0], sizes = [8, 32], strides = [1, 1]} : vector<976x32xbf16> to vector<8x32xbf16>
    %c0_23 = arith.constant 0 : index
    %c96 = arith.constant 96 : index
    %41 = vector.load %arg13[%c0_23, %c96] : memref<8x3904xbf16, #tpu.memory_space<vmem>>, vector<8x32xbf16>
    tpu.vector_store %arg13[%c0_23, %c96], %40 {strides = array<i32>} : memref<8x3904xbf16, #tpu.memory_space<vmem>>, vector<8x32xbf16>,
    %42 = vector.extract_strided_slice %33 {offsets = [32, 0], sizes = [8, 32], strides = [1, 1]} : vector<976x32xbf16> to vector<8x32xbf16>
    %c0_24 = arith.constant 0 : index
    %c128 = arith.constant 128 : index
    %43 = vector.load %arg13[%c0_24, %c128] : memref<8x3904xbf16, #tpu.memory_space<vmem>>, vector<8x32xbf16>
    tpu.vector_store %arg13[%c0_24, %c128], %42 {strides = array<i32>} : memref<8x3904xbf16, #tpu.memory_space<vmem>>, vector<8x32xbf16>,
    %44 = vector.extract_strided_slice %33 {offsets = [40, 0], sizes = [8, 32], strides = [1, 1]} : vector<976x32xbf16> to vector<8x32xbf16>
    %c0_25 = arith.constant 0 : index
    %c160 = arith.constant 160 : index
    %45 = vector.load %arg13[%c0_25, %c160] : memref<8x3904xbf16, #tpu.memory_space<vmem>>, vector<8x32xbf16>
    tpu.vector_store %arg13[%c0_25, %c160], %44 {strides = array<i32>} : memref<8x3904xbf16, #tpu.memory_space<vmem>>, vector<8x32xbf16>,
    %46 = vector.extract_strided_slice %33 {offsets = [48, 0], sizes = [8, 32], strides = [1, 1]} : vector<976x32xbf16> to vector<8x32xbf16>
    %c0_26 = arith.constant 0 : index
    %c192 = arith.constant 192 : index
    %47 = vector.load %arg13[%c0_26, %c192] : memref<8x3904xbf16, #tpu.memory_space<vmem>>, vector<8x32xbf16>
    tpu.vector_store %arg13[%c0_26, %c192], %46 {strides = array<i32>} : memref<8x3904xbf16, #tpu.memory_space<vmem>>, vector<8x32xbf16>,
    %48 = vector.extract_strided_slice %33 {offsets = [56, 0], sizes = [8, 32], strides = [1, 1]} : vector<976x32xbf16> to vector<8x32xbf16>
    %c0_27 = arith.constant 0 : index
    %c224 = arith.constant 224 : index
    %49 = vector.load %arg13[%c0_27, %c224] : memref<8x3904xbf16, #tpu.memory_space<vmem>>, vector<8x32xbf16>
    tpu.vector_store %arg13[%c0_27, %c224], %48 {strides = array<i32>} : memref<8x3904xbf16, #tpu.memory_space<vmem>>, vector<8x32xbf16>,
    %50 = vector.extract_strided_slice %33 {offsets = [64, 0], sizes = [8, 32], strides = [1, 1]} : vector<976x32xbf16> to vector<8x32xbf16>
    %c0_28 = arith.constant 0 : index
    %c256 = arith.constant 256 : index
    %51 = vector.load %arg13[%c0_28, %c256] : memref<8x3904xbf16, #tpu.memory_space<vmem>>, vector<8x32xbf16>
    tpu.vector_store %arg13[%c0_28, %c256], %50 {strides = array<i32>} : memref<8x3904xbf16, #tpu.memory_space<vmem>>, vector<8x32xbf16>,
    %52 = vector.extract_strided_slice %33 {offsets = [72, 0], sizes = [8, 32], strides = [1, 1]} : vector<976x32xbf16> to vector<8x32xbf16>
    %c0_29 = arith.constant 0 : index
    %c288 = arith.constant 288 : index
    %53 = vector.load %arg13[%c0_29, %c288] : memref<8x3904xbf16, #tpu.memory_space<vmem>>, vector<8x32xbf16>
    tpu.vector_store %arg13[%c0_29, %c288], %52 {strides = array<i32>} : memref<8x3904xbf16, #tpu.memory_space<vmem>>, vector<8x32xbf16>,
    %54 = vector.extract_strided_slice %33 {offsets = [80, 0], sizes = [8, 32], strides = [1, 1]} : vector<976x32xbf16> to vector<8x32xbf16>
    %c0_30 = arith.constant 0 : index
    %c320 = arith.constant 320 : index
    %55 = vector.load %arg13[%c0_30, %c320] : memref<8x3904xbf16, #tpu.memory_space<vmem>>, vector<8x32xbf16>
    tpu.vector_store %arg13[%c0_30, %c320], %54 {strides = array<i32>} : memref<8x3904xbf16, #tpu.memory_space<vmem>>, vector<8x32xbf16>,
    %56 = vector.extract_strided_slice %33 {offsets = [88, 0], sizes = [8, 32], strides = [1, 1]} : vector<976x32xbf16> to vector<8x32xbf16>
    %c0_31 = arith.constant 0 : index
    %c352 = arith.constant 352 : index
    %57 = vector.load %arg13[%c0_31, %c352] : memref<8x3904xbf16, #tpu.memory_space<vmem>>, vector<8x32xbf16>
    tpu.vector_store %arg13[%c0_31, %c352], %56 {strides = array<i32>} : memref<8x3904xbf16, #tpu.memory_space<vmem>>, vector<8x32xbf16>,
    %58 = vector.extract_strided_slice %33 {offsets = [96, 0], sizes = [8, 32], strides = [1, 1]} : vector<976x32xbf16> to vector<8x32xbf16>
    %c0_32 = arith.constant 0 : index
    %c384 = arith.constant 384 : index
    %59 = vector.load %arg13[%c0_32, %c384] : memref<8x3904xbf16, #tpu.memory_space<vmem>>, vector<8x32xbf16>
    tpu.vector_store %arg13[%c0_32, %c384], %58 {strides = array<i32>} : memref<8x3904xbf16, #tpu.memory_space<vmem>>, vector<8x32xbf16>,
    %60 = vector.extract_strided_slice %33 {offsets = [104, 0], sizes = [8, 32], strides = [1, 1]} : vector<976x32xbf16> to vector<8x32xbf16>
    %c0_33 = arith.constant 0 : index
    %c416 = arith.constant 416 : index
    %61 = vector.load %arg13[%c0_33, %c416] : memref<8x3904xbf16, #tpu.memory_space<vmem>>, vector<8x32xbf16>
    tpu.vector_store %arg13[%c0_33, %c416], %60 {strides = array<i32>} : memref<8x3904xbf16, #tpu.memory_space<vmem>>, vector<8x32xbf16>,
    %62 = vector.extract_strided_slice %33 {offsets = [112, 0], sizes = [8, 32], strides = [1, 1]} : vector<976x32xbf16> to vector<8x32xbf16>
    %c0_34 = arith.constant 0 : index
    %c448 = arith.constant 448 : index
    %63 = vector.load %arg13[%c0_34, %c448] : memref<8x3904xbf16, #tpu.memory_space<vmem>>, vector<8x32xbf16>
    tpu.vector_store %arg13[%c0_34, %c448], %62 {strides = array<i32>} : memref<8x3904xbf16, #tpu.memory_space<vmem>>, vector<8x32xbf16>,
    %64 = vector.extract_strided_slice %33 {offsets = [120, 0], sizes = [8, 32], strides = [1, 1]} : vector<976x32xbf16> to vector<8x32xbf16>
    %c0_35 = arith.constant 0 : index
    %c480 = arith.constant 480 : index
    %65 = vector.load %arg13[%c0_35, %c480] : memref<8x3904xbf16, #tpu.memory_space<vmem>>, vector<8x32xbf16>
    tpu.vector_store %arg13[%c0_35, %c480], %64 {strides = array<i32>} : memref<8x3904xbf16, #tpu.memory_space<vmem>>, vector<8x32xbf16>,
    %66 = vector.extract_strided_slice %33 {offsets = [128, 0], sizes = [8, 32], strides = [1, 1]} : vector<976x32xbf16> to vector<8x32xbf16>
    %c0_36 = arith.constant 0 : index
    %c512 = arith.constant 512 : index
    %67 = vector.load %arg13[%c0_36, %c512] : memref<8x3904xbf16, #tpu.memory_space<vmem>>, vector<8x32xbf16>
    tpu.vector_store %arg13[%c0_36, %c512], %66 {strides = array<i32>} : memref<8x3904xbf16, #tpu.memory_space<vmem>>, vector<8x32xbf16>,
    %68 = vector.extract_strided_slice %33 {offsets = [136, 0], sizes = [8, 32], strides = [1, 1]} : vector<976x32xbf16> to vector<8x32xbf16>
    %c0_37 = arith.constant 0 : index
    %c544 = arith.constant 544 : index
    %69 = vector.load %arg13[%c0_37, %c544] : memref<8x3904xbf16, #tpu.memory_space<vmem>>, vector<8x32xbf16>
    tpu.vector_store %arg13[%c0_37, %c544], %68 {strides = array<i32>} : memref<8x3904xbf16, #tpu.memory_space<vmem>>, vector<8x32xbf16>,
    %70 = vector.extract_strided_slice %33 {offsets = [144, 0], sizes = [8, 32], strides = [1, 1]} : vector<976x32xbf16> to vector<8x32xbf16>
    %c0_38 = arith.constant 0 : index
    %c576 = arith.constant 576 : index
    %71 = vector.load %arg13[%c0_38, %c576] : memref<8x3904xbf16, #tpu.memory_space<vmem>>, vector<8x32xbf16>
    tpu.vector_store %arg13[%c0_38, %c576], %70 {strides = array<i32>} : memref<8x3904xbf16, #tpu.memory_space<vmem>>, vector<8x32xbf16>,
    %72 = vector.extract_strided_slice %33 {offsets = [152, 0], sizes = [8, 32], strides = [1, 1]} : vector<976x32xbf16> to vector<8x32xbf16>
    %c0_39 = arith.constant 0 : index
    %c608 = arith.constant 608 : index
    %73 = vector.load %arg13[%c0_39, %c608] : memref<8x3904xbf16, #tpu.memory_space<vmem>>, vector<8x32xbf16>
    tpu.vector_store %arg13[%c0_39, %c608], %72 {strides = array<i32>} : memref<8x3904xbf16, #tpu.memory_space<vmem>>, vector<8x32xbf16>,
    %74 = vector.extract_strided_slice %33 {offsets = [160, 0], sizes = [8, 32], strides = [1, 1]} : vector<976x32xbf16> to vector<8x32xbf16>
    %c0_40 = arith.constant 0 : index
    %c640 = arith.constant 640 : index
    %75 = vector.load %arg13[%c0_40, %c640] : memref<8x3904xbf16, #tpu.memory_space<vmem>>, vector<8x32xbf16>
    tpu.vector_store %arg13[%c0_40, %c640], %74 {strides = array<i32>} : memref<8x3904xbf16, #tpu.memory_space<vmem>>, vector<8x32xbf16>,
    %76 = vector.extract_strided_slice %33 {offsets = [168, 0], sizes = [8, 32], strides = [1, 1]} : vector<976x32xbf16> to vector<8x32xbf16>
    %c0_41 = arith.constant 0 : index
    %c672 = arith.constant 672 : index
    %77 = vector.load %arg13[%c0_41, %c672] : memref<8x3904xbf16, #tpu.memory_space<vmem>>, vector<8x32xbf16>
    tpu.vector_store %arg13[%c0_41, %c672], %76 {strides = array<i32>} : memref<8x3904xbf16, #tpu.memory_space<vmem>>, vector<8x32xbf16>,
    %78 = vector.extract_strided_slice %33 {offsets = [176, 0], sizes = [8, 32], strides = [1, 1]} : vector<976x32xbf16> to vector<8x32xbf16>
    %c0_42 = arith.constant 0 : index
    %c704 = arith.constant 704 : index
    %79 = vector.load %arg13[%c0_42, %c704] : memref<8x3904xbf16, #tpu.memory_space<vmem>>, vector<8x32xbf16>
    tpu.vector_store %arg13[%c0_42, %c704], %78 {strides = array<i32>} : memref<8x3904xbf16, #tpu.memory_space<vmem>>, vector<8x32xbf16>,
    %80 = vector.extract_strided_slice %33 {offsets = [184, 0], sizes = [8, 32], strides = [1, 1]} : vector<976x32xbf16> to vector<8x32xbf16>
    %c0_43 = arith.constant 0 : index
    %c736 = arith.constant 736 : index
    %81 = vector.load %arg13[%c0_43, %c736] : memref<8x3904xbf16, #tpu.memory_space<vmem>>, vector<8x32xbf16>
    tpu.vector_store %arg13[%c0_43, %c736], %80 {strides = array<i32>} : memref<8x3904xbf16, #tpu.memory_space<vmem>>, vector<8x32xbf16>,
    %82 = vector.extract_strided_slice %33 {offsets = [192, 0], sizes = [8, 32], strides = [1, 1]} : vector<976x32xbf16> to vector<8x32xbf16>
    %c0_44 = arith.constant 0 : index
    %c768 = arith.constant 768 : index
    %83 = vector.load %arg13[%c0_44, %c768] : memref<8x3904xbf16, #tpu.memory_space<vmem>>, vector<8x32xbf16>
    tpu.vector_store %arg13[%c0_44, %c768], %82 {strides = array<i32>} : memref<8x3904xbf16, #tpu.memory_space<vmem>>, vector<8x32xbf16>,
    %84 = vector.extract_strided_slice %33 {offsets = [200, 0], sizes = [8, 32], strides = [1, 1]} : vector<976x32xbf16> to vector<8x32xbf16>
    %c0_45 = arith.constant 0 : index
    %c800 = arith.constant 800 : index
    %85 = vector.load %arg13[%c0_45, %c800] : memref<8x3904xbf16, #tpu.memory_space<vmem>>, vector<8x32xbf16>
    tpu.vector_store %arg13[%c0_45, %c800], %84 {strides = array<i32>} : memref<8x3904xbf16, #tpu.memory_space<vmem>>, vector<8x32xbf16>,
    %86 = vector.extract_strided_slice %33 {offsets = [208, 0], sizes = [8, 32], strides = [1, 1]} : vector<976x32xbf16> to vector<8x32xbf16>
    %c0_46 = arith.constant 0 : index
    %c832 = arith.constant 832 : index
    %87 = vector.load %arg13[%c0_46, %c832] : memref<8x3904xbf16, #tpu.memory_space<vmem>>, vector<8x32xbf16>
    tpu.vector_store %arg13[%c0_46, %c832], %86 {strides = array<i32>} : memref<8x3904xbf16, #tpu.memory_space<vmem>>, vector<8x32xbf16>,
    %88 = vector.extract_strided_slice %33 {offsets = [216, 0], sizes = [8, 32], strides = [1, 1]} : vector<976x32xbf16> to vector<8x32xbf16>
    %c0_47 = arith.constant 0 : index
    %c864 = arith.constant 864 : index
    %89 = vector.load %arg13[%c0_47, %c864] : memref<8x3904xbf16, #tpu.memory_space<vmem>>, vector<8x32xbf16>
    tpu.vector_store %arg13[%c0_47, %c864], %88 {strides = array<i32>} : memref<8x3904xbf16, #tpu.memory_space<vmem>>, vector<8x32xbf16>,
    %90 = vector.extract_strided_slice %33 {offsets = [224, 0], sizes = [8, 32], strides = [1, 1]} : vector<976x32xbf16> to vector<8x32xbf16>
    %c0_48 = arith.constant 0 : index
    %c896 = arith.constant 896 : index
    %91 = vector.load %arg13[%c0_48, %c896] : memref<8x3904xbf16, #tpu.memory_space<vmem>>, vector<8x32xbf16>
    tpu.vector_store %arg13[%c0_48, %c896], %90 {strides = array<i32>} : memref<8x3904xbf16, #tpu.memory_space<vmem>>, vector<8x32xbf16>,
    %92 = vector.extract_strided_slice %33 {offsets = [232, 0], sizes = [8, 32], strides = [1, 1]} : vector<976x32xbf16> to vector<8x32xbf16>
    %c0_49 = arith.constant 0 : index
    %c928 = arith.constant 928 : index
    %93 = vector.load %arg13[%c0_49, %c928] : memref<8x3904xbf16, #tpu.memory_space<vmem>>, vector<8x32xbf16>
    tpu.vector_store %arg13[%c0_49, %c928], %92 {strides = array<i32>} : memref<8x3904xbf16, #tpu.memory_space<vmem>>, vector<8x32xbf16>,
    %94 = vector.extract_strided_slice %33 {offsets = [240, 0], sizes = [8, 32], strides = [1, 1]} : vector<976x32xbf16> to vector<8x32xbf16>
    %c0_50 = arith.constant 0 : index
    %c960 = arith.constant 960 : index
    %95 = vector.load %arg13[%c0_50, %c960] : memref<8x3904xbf16, #tpu.memory_space<vmem>>, vector<8x32xbf16>
    tpu.vector_store %arg13[%c0_50, %c960], %94 {strides = array<i32>} : memref<8x3904xbf16, #tpu.memory_space<vmem>>, vector<8x32xbf16>,
    %96 = vector.extract_strided_slice %33 {offsets = [248, 0], sizes = [8, 32], strides = [1, 1]} : vector<976x32xbf16> to vector<8x32xbf16>
    %c0_51 = arith.constant 0 : index
    %c992 = arith.constant 992 : index
    %97 = vector.load %arg13[%c0_51, %c992] : memref<8x3904xbf16, #tpu.memory_space<vmem>>, vector<8x32xbf16>
    tpu.vector_store %arg13[%c0_51, %c992], %96 {strides = array<i32>} : memref<8x3904xbf16, #tpu.memory_space<vmem>>, vector<8x32xbf16>,
    %98 = vector.extract_strided_slice %33 {offsets = [256, 0], sizes = [8, 32], strides = [1, 1]} : vector<976x32xbf16> to vector<8x32xbf16>
    %c0_52 = arith.constant 0 : index
    %c1024 = arith.constant 1024 : index
    %99 = vector.load %arg13[%c0_52, %c1024] : memref<8x3904xbf16, #tpu.memory_space<vmem>>, vector<8x32xbf16>
    tpu.vector_store %arg13[%c0_52, %c1024], %98 {strides = array<i32>} : memref<8x3904xbf16, #tpu.memory_space<vmem>>, vector<8x32xbf16>,
    %100 = vector.extract_strided_slice %33 {offsets = [264, 0], sizes = [8, 32], strides = [1, 1]} : vector<976x32xbf16> to vector<8x32xbf16>
    %c0_53 = arith.constant 0 : index
    %c1056 = arith.constant 1056 : index
    %101 = vector.load %arg13[%c0_53, %c1056] : memref<8x3904xbf16, #tpu.memory_space<vmem>>, vector<8x32xbf16>
    tpu.vector_store %arg13[%c0_53, %c1056], %100 {strides = array<i32>} : memref<8x3904xbf16, #tpu.memory_space<vmem>>, vector<8x32xbf16>,
    %102 = vector.extract_strided_slice %33 {offsets = [272, 0], sizes = [8, 32], strides = [1, 1]} : vector<976x32xbf16> to vector<8x32xbf16>
    %c0_54 = arith.constant 0 : index
    %c1088 = arith.constant 1088 : index
    %103 = vector.load %arg13[%c0_54, %c1088] : memref<8x3904xbf16, #tpu.memory_space<vmem>>, vector<8x32xbf16>
    tpu.vector_store %arg13[%c0_54, %c1088], %102 {strides = array<i32>} : memref<8x3904xbf16, #tpu.memory_space<vmem>>, vector<8x32xbf16>,
    %104 = vector.extract_strided_slice %33 {offsets = [280, 0], sizes = [8, 32], strides = [1, 1]} : vector<976x32xbf16> to vector<8x32xbf16>
    %c0_55 = arith.constant 0 : index
    %c1120 = arith.constant 1120 : index
    %105 = vector.load %arg13[%c0_55, %c1120] : memref<8x3904xbf16, #tpu.memory_space<vmem>>, vector<8x32xbf16>
    tpu.vector_store %arg13[%c0_55, %c1120], %104 {strides = array<i32>} : memref<8x3904xbf16, #tpu.memory_space<vmem>>, vector<8x32xbf16>,
    %106 = vector.extract_strided_slice %33 {offsets = [288, 0], sizes = [8, 32], strides = [1, 1]} : vector<976x32xbf16> to vector<8x32xbf16>
    %c0_56 = arith.constant 0 : index
    %c1152 = arith.constant 1152 : index
    %107 = vector.load %arg13[%c0_56, %c1152] : memref<8x3904xbf16, #tpu.memory_space<vmem>>, vector<8x32xbf16>
    tpu.vector_store %arg13[%c0_56, %c1152], %106 {strides = array<i32>} : memref<8x3904xbf16, #tpu.memory_space<vmem>>, vector<8x32xbf16>,
    %108 = vector.extract_strided_slice %33 {offsets = [296, 0], sizes = [8, 32], strides = [1, 1]} : vector<976x32xbf16> to vector<8x32xbf16>
    %c0_57 = arith.constant 0 : index
    %c1184 = arith.constant 1184 : index
    %109 = vector.load %arg13[%c0_57, %c1184] : memref<8x3904xbf16, #tpu.memory_space<vmem>>, vector<8x32xbf16>
    tpu.vector_store %arg13[%c0_57, %c1184], %108 {strides = array<i32>} : memref<8x3904xbf16, #tpu.memory_space<vmem>>, vector<8x32xbf16>,
    %110 = vector.extract_strided_slice %33 {offsets = [304, 0], sizes = [8, 32], strides = [1, 1]} : vector<976x32xbf16> to vector<8x32xbf16>
    %c0_58 = arith.constant 0 : index
    %c1216 = arith.constant 1216 : index
    %111 = vector.load %arg13[%c0_58, %c1216] : memref<8x3904xbf16, #tpu.memory_space<vmem>>, vector<8x32xbf16>
    tpu.vector_store %arg13[%c0_58, %c1216], %110 {strides = array<i32>} : memref<8x3904xbf16, #tpu.memory_space<vmem>>, vector<8x32xbf16>,
    %112 = vector.extract_strided_slice %33 {offsets = [312, 0], sizes = [8, 32], strides = [1, 1]} : vector<976x32xbf16> to vector<8x32xbf16>
    %c0_59 = arith.constant 0 : index
    %c1248 = arith.constant 1248 : index
    %113 = vector.load %arg13[%c0_59, %c1248] : memref<8x3904xbf16, #tpu.memory_space<vmem>>, vector<8x32xbf16>
    tpu.vector_store %arg13[%c0_59, %c1248], %112 {strides = array<i32>} : memref<8x3904xbf16, #tpu.memory_space<vmem>>, vector<8x32xbf16>,
    %114 = vector.extract_strided_slice %33 {offsets = [320, 0], sizes = [8, 32], strides = [1, 1]} : vector<976x32xbf16> to vector<8x32xbf16>
    %c0_60 = arith.constant 0 : index
    %c1280 = arith.constant 1280 : index
    %115 = vector.load %arg13[%c0_60, %c1280] : memref<8x3904xbf16, #tpu.memory_space<vmem>>, vector<8x32xbf16>
    tpu.vector_store %arg13[%c0_60, %c1280], %114 {strides = array<i32>} : memref<8x3904xbf16, #tpu.memory_space<vmem>>, vector<8x32xbf16>,
    %116 = vector.extract_strided_slice %33 {offsets = [328, 0], sizes = [8, 32], strides = [1, 1]} : vector<976x32xbf16> to vector<8x32xbf16>
    %c0_61 = arith.constant 0 : index
    %c1312 = arith.constant 1312 : index
    %117 = vector.load %arg13[%c0_61, %c1312] : memref<8x3904xbf16, #tpu.memory_space<vmem>>, vector<8x32xbf16>
    tpu.vector_store %arg13[%c0_61, %c1312], %116 {strides = array<i32>} : memref<8x3904xbf16, #tpu.memory_space<vmem>>, vector<8x32xbf16>,
    %118 = vector.extract_strided_slice %33 {offsets = [336, 0], sizes = [8, 32], strides = [1, 1]} : vector<976x32xbf16> to vector<8x32xbf16>
    %c0_62 = arith.constant 0 : index
    %c1344 = arith.constant 1344 : index
    %119 = vector.load %arg13[%c0_62, %c1344] : memref<8x3904xbf16, #tpu.memory_space<vmem>>, vector<8x32xbf16>
    tpu.vector_store %arg13[%c0_62, %c1344], %118 {strides = array<i32>} : memref<8x3904xbf16, #tpu.memory_space<vmem>>, vector<8x32xbf16>,
    %120 = vector.extract_strided_slice %33 {offsets = [344, 0], sizes = [8, 32], strides = [1, 1]} : vector<976x32xbf16> to vector<8x32xbf16>
    %c0_63 = arith.constant 0 : index
    %c1376 = arith.constant 1376 : index
    %121 = vector.load %arg13[%c0_63, %c1376] : memref<8x3904xbf16, #tpu.memory_space<vmem>>, vector<8x32xbf16>
    tpu.vector_store %arg13[%c0_63, %c1376], %120 {strides = array<i32>} : memref<8x3904xbf16, #tpu.memory_space<vmem>>, vector<8x32xbf16>,
    %122 = vector.extract_strided_slice %33 {offsets = [352, 0], sizes = [8, 32], strides = [1, 1]} : vector<976x32xbf16> to vector<8x32xbf16>
    %c0_64 = arith.constant 0 : index
    %c1408 = arith.constant 1408 : index
    %123 = vector.load %arg13[%c0_64, %c1408] : memref<8x3904xbf16, #tpu.memory_space<vmem>>, vector<8x32xbf16>
    tpu.vector_store %arg13[%c0_64, %c1408], %122 {strides = array<i32>} : memref<8x3904xbf16, #tpu.memory_space<vmem>>, vector<8x32xbf16>,
    %124 = vector.extract_strided_slice %33 {offsets = [360, 0], sizes = [8, 32], strides = [1, 1]} : vector<976x32xbf16> to vector<8x32xbf16>
    %c0_65 = arith.constant 0 : index
    %c1440 = arith.constant 1440 : index
    %125 = vector.load %arg13[%c0_65, %c1440] : memref<8x3904xbf16, #tpu.memory_space<vmem>>, vector<8x32xbf16>
    tpu.vector_store %arg13[%c0_65, %c1440], %124 {strides = array<i32>} : memref<8x3904xbf16, #tpu.memory_space<vmem>>, vector<8x32xbf16>,
    %126 = vector.extract_strided_slice %33 {offsets = [368, 0], sizes = [8, 32], strides = [1, 1]} : vector<976x32xbf16> to vector<8x32xbf16>
    %c0_66 = arith.constant 0 : index
    %c1472 = arith.constant 1472 : index
    %127 = vector.load %arg13[%c0_66, %c1472] : memref<8x3904xbf16, #tpu.memory_space<vmem>>, vector<8x32xbf16>
    tpu.vector_store %arg13[%c0_66, %c1472], %126 {strides = array<i32>} : memref<8x3904xbf16, #tpu.memory_space<vmem>>, vector<8x32xbf16>,
    %128 = vector.extract_strided_slice %33 {offsets = [376, 0], sizes = [8, 32], strides = [1, 1]} : vector<976x32xbf16> to vector<8x32xbf16>
    %c0_67 = arith.constant 0 : index
    %c1504 = arith.constant 1504 : index
    %129 = vector.load %arg13[%c0_67, %c1504] : memref<8x3904xbf16, #tpu.memory_space<vmem>>, vector<8x32xbf16>
    tpu.vector_store %arg13[%c0_67, %c1504], %128 {strides = array<i32>} : memref<8x3904xbf16, #tpu.memory_space<vmem>>, vector<8x32xbf16>,
    %130 = vector.extract_strided_slice %33 {offsets = [384, 0], sizes = [8, 32], strides = [1, 1]} : vector<976x32xbf16> to vector<8x32xbf16>
    %c0_68 = arith.constant 0 : index
    %c1536 = arith.constant 1536 : index
    %131 = vector.load %arg13[%c0_68, %c1536] : memref<8x3904xbf16, #tpu.memory_space<vmem>>, vector<8x32xbf16>
    tpu.vector_store %arg13[%c0_68, %c1536], %130 {strides = array<i32>} : memref<8x3904xbf16, #tpu.memory_space<vmem>>, vector<8x32xbf16>,
    %132 = vector.extract_strided_slice %33 {offsets = [392, 0], sizes = [8, 32], strides = [1, 1]} : vector<976x32xbf16> to vector<8x32xbf16>
    %c0_69 = arith.constant 0 : index
    %c1568 = arith.constant 1568 : index
    %133 = vector.load %arg13[%c0_69, %c1568] : memref<8x3904xbf16, #tpu.memory_space<vmem>>, vector<8x32xbf16>
    tpu.vector_store %arg13[%c0_69, %c1568], %132 {strides = array<i32>} : memref<8x3904xbf16, #tpu.memory_space<vmem>>, vector<8x32xbf16>,
    %134 = vector.extract_strided_slice %33 {offsets = [400, 0], sizes = [8, 32], strides = [1, 1]} : vector<976x32xbf16> to vector<8x32xbf16>
    %c0_70 = arith.constant 0 : index
    %c1600 = arith.constant 1600 : index
    %135 = vector.load %arg13[%c0_70, %c1600] : memref<8x3904xbf16, #tpu.memory_space<vmem>>, vector<8x32xbf16>
    tpu.vector_store %arg13[%c0_70, %c1600], %134 {strides = array<i32>} : memref<8x3904xbf16, #tpu.memory_space<vmem>>, vector<8x32xbf16>,
    %136 = vector.extract_strided_slice %33 {offsets = [408, 0], sizes = [8, 32], strides = [1, 1]} : vector<976x32xbf16> to vector<8x32xbf16>
    %c0_71 = arith.constant 0 : index
    %c1632 = arith.constant 1632 : index
    %137 = vector.load %arg13[%c0_71, %c1632] : memref<8x3904xbf16, #tpu.memory_space<vmem>>, vector<8x32xbf16>
    tpu.vector_store %arg13[%c0_71, %c1632], %136 {strides = array<i32>} : memref<8x3904xbf16, #tpu.memory_space<vmem>>, vector<8x32xbf16>,
    %138 = vector.extract_strided_slice %33 {offsets = [416, 0], sizes = [8, 32], strides = [1, 1]} : vector<976x32xbf16> to vector<8x32xbf16>
    %c0_72 = arith.constant 0 : index
    %c1664 = arith.constant 1664 : index
    %139 = vector.load %arg13[%c0_72, %c1664] : memref<8x3904xbf16, #tpu.memory_space<vmem>>, vector<8x32xbf16>
    tpu.vector_store %arg13[%c0_72, %c1664], %138 {strides = array<i32>} : memref<8x3904xbf16, #tpu.memory_space<vmem>>, vector<8x32xbf16>,
    %140 = vector.extract_strided_slice %33 {offsets = [424, 0], sizes = [8, 32], strides = [1, 1]} : vector<976x32xbf16> to vector<8x32xbf16>
    %c0_73 = arith.constant 0 : index
    %c1696 = arith.constant 1696 : index
    %141 = vector.load %arg13[%c0_73, %c1696] : memref<8x3904xbf16, #tpu.memory_space<vmem>>, vector<8x32xbf16>
    tpu.vector_store %arg13[%c0_73, %c1696], %140 {strides = array<i32>} : memref<8x3904xbf16, #tpu.memory_space<vmem>>, vector<8x32xbf16>,
    %142 = vector.extract_strided_slice %33 {offsets = [432, 0], sizes = [8, 32], strides = [1, 1]} : vector<976x32xbf16> to vector<8x32xbf16>
    %c0_74 = arith.constant 0 : index
    %c1728 = arith.constant 1728 : index
    %143 = vector.load %arg13[%c0_74, %c1728] : memref<8x3904xbf16, #tpu.memory_space<vmem>>, vector<8x32xbf16>
    tpu.vector_store %arg13[%c0_74, %c1728], %142 {strides = array<i32>} : memref<8x3904xbf16, #tpu.memory_space<vmem>>, vector<8x32xbf16>,
    %144 = vector.extract_strided_slice %33 {offsets = [440, 0], sizes = [8, 32], strides = [1, 1]} : vector<976x32xbf16> to vector<8x32xbf16>
    %c0_75 = arith.constant 0 : index
    %c1760 = arith.constant 1760 : index
    %145 = vector.load %arg13[%c0_75, %c1760] : memref<8x3904xbf16, #tpu.memory_space<vmem>>, vector<8x32xbf16>
    tpu.vector_store %arg13[%c0_75, %c1760], %144 {strides = array<i32>} : memref<8x3904xbf16, #tpu.memory_space<vmem>>, vector<8x32xbf16>,
    %146 = vector.extract_strided_slice %33 {offsets = [448, 0], sizes = [8, 32], strides = [1, 1]} : vector<976x32xbf16> to vector<8x32xbf16>
    %c0_76 = arith.constant 0 : index
    %c1792 = arith.constant 1792 : index
    %147 = vector.load %arg13[%c0_76, %c1792] : memref<8x3904xbf16, #tpu.memory_space<vmem>>, vector<8x32xbf16>
    tpu.vector_store %arg13[%c0_76, %c1792], %146 {strides = array<i32>} : memref<8x3904xbf16, #tpu.memory_space<vmem>>, vector<8x32xbf16>,
    %148 = vector.extract_strided_slice %33 {offsets = [456, 0], sizes = [8, 32], strides = [1, 1]} : vector<976x32xbf16> to vector<8x32xbf16>
    %c0_77 = arith.constant 0 : index
    %c1824 = arith.constant 1824 : index
    %149 = vector.load %arg13[%c0_77, %c1824] : memref<8x3904xbf16, #tpu.memory_space<vmem>>, vector<8x32xbf16>
    tpu.vector_store %arg13[%c0_77, %c1824], %148 {strides = array<i32>} : memref<8x3904xbf16, #tpu.memory_space<vmem>>, vector<8x32xbf16>,
    %150 = vector.extract_strided_slice %33 {offsets = [464, 0], sizes = [8, 32], strides = [1, 1]} : vector<976x32xbf16> to vector<8x32xbf16>
    %c0_78 = arith.constant 0 : index
    %c1856 = arith.constant 1856 : index
    %151 = vector.load %arg13[%c0_78, %c1856] : memref<8x3904xbf16, #tpu.memory_space<vmem>>, vector<8x32xbf16>
    tpu.vector_store %arg13[%c0_78, %c1856], %150 {strides = array<i32>} : memref<8x3904xbf16, #tpu.memory_space<vmem>>, vector<8x32xbf16>,
    %152 = vector.extract_strided_slice %33 {offsets = [472, 0], sizes = [8, 32], strides = [1, 1]} : vector<976x32xbf16> to vector<8x32xbf16>
    %c0_79 = arith.constant 0 : index
    %c1888 = arith.constant 1888 : index
    %153 = vector.load %arg13[%c0_79, %c1888] : memref<8x3904xbf16, #tpu.memory_space<vmem>>, vector<8x32xbf16>
    tpu.vector_store %arg13[%c0_79, %c1888], %152 {strides = array<i32>} : memref<8x3904xbf16, #tpu.memory_space<vmem>>, vector<8x32xbf16>,
    %154 = vector.extract_strided_slice %33 {offsets = [480, 0], sizes = [8, 32], strides = [1, 1]} : vector<976x32xbf16> to vector<8x32xbf16>
    %c0_80 = arith.constant 0 : index
    %c1920 = arith.constant 1920 : index
    %155 = vector.load %arg13[%c0_80, %c1920] : memref<8x3904xbf16, #tpu.memory_space<vmem>>, vector<8x32xbf16>
    tpu.vector_store %arg13[%c0_80, %c1920], %154 {strides = array<i32>} : memref<8x3904xbf16, #tpu.memory_space<vmem>>, vector<8x32xbf16>,
    %156 = vector.extract_strided_slice %33 {offsets = [488, 0], sizes = [8, 32], strides = [1, 1]} : vector<976x32xbf16> to vector<8x32xbf16>
    %c0_81 = arith.constant 0 : index
    %c1952 = arith.constant 1952 : index
    %157 = vector.load %arg13[%c0_81, %c1952] : memref<8x3904xbf16, #tpu.memory_space<vmem>>, vector<8x32xbf16>
    tpu.vector_store %arg13[%c0_81, %c1952], %156 {strides = array<i32>} : memref<8x3904xbf16, #tpu.memory_space<vmem>>, vector<8x32xbf16>,
    %158 = vector.extract_strided_slice %33 {offsets = [496, 0], sizes = [8, 32], strides = [1, 1]} : vector<976x32xbf16> to vector<8x32xbf16>
    %c0_82 = arith.constant 0 : index
    %c1984 = arith.constant 1984 : index
    %159 = vector.load %arg13[%c0_82, %c1984] : memref<8x3904xbf16, #tpu.memory_space<vmem>>, vector<8x32xbf16>
    tpu.vector_store %arg13[%c0_82, %c1984], %158 {strides = array<i32>} : memref<8x3904xbf16, #tpu.memory_space<vmem>>, vector<8x32xbf16>,
    %160 = vector.extract_strided_slice %33 {offsets = [504, 0], sizes = [8, 32], strides = [1, 1]} : vector<976x32xbf16> to vector<8x32xbf16>
    %c0_83 = arith.constant 0 : index
    %c2016 = arith.constant 2016 : index
    %161 = vector.load %arg13[%c0_83, %c2016] : memref<8x3904xbf16, #tpu.memory_space<vmem>>, vector<8x32xbf16>
    tpu.vector_store %arg13[%c0_83, %c2016], %160 {strides = array<i32>} : memref<8x3904xbf16, #tpu.memory_space<vmem>>, vector<8x32xbf16>,
    %162 = vector.extract_strided_slice %33 {offsets = [512, 0], sizes = [8, 32], strides = [1, 1]} : vector<976x32xbf16> to vector<8x32xbf16>
    %c0_84 = arith.constant 0 : index
    %c2048 = arith.constant 2048 : index
    %163 = vector.load %arg13[%c0_84, %c2048] : memref<8x3904xbf16, #tpu.memory_space<vmem>>, vector<8x32xbf16>
    tpu.vector_store %arg13[%c0_84, %c2048], %162 {strides = array<i32>} : memref<8x3904xbf16, #tpu.memory_space<vmem>>, vector<8x32xbf16>,
    %164 = vector.extract_strided_slice %33 {offsets = [520, 0], sizes = [8, 32], strides = [1, 1]} : vector<976x32xbf16> to vector<8x32xbf16>
    %c0_85 = arith.constant 0 : index
    %c2080 = arith.constant 2080 : index
    %165 = vector.load %arg13[%c0_85, %c2080] : memref<8x3904xbf16, #tpu.memory_space<vmem>>, vector<8x32xbf16>
    tpu.vector_store %arg13[%c0_85, %c2080], %164 {strides = array<i32>} : memref<8x3904xbf16, #tpu.memory_space<vmem>>, vector<8x32xbf16>,
    %166 = vector.extract_strided_slice %33 {offsets = [528, 0], sizes = [8, 32], strides = [1, 1]} : vector<976x32xbf16> to vector<8x32xbf16>
    %c0_86 = arith.constant 0 : index
    %c2112 = arith.constant 2112 : index
    %167 = vector.load %arg13[%c0_86, %c2112] : memref<8x3904xbf16, #tpu.memory_space<vmem>>, vector<8x32xbf16>
    tpu.vector_store %arg13[%c0_86, %c2112], %166 {strides = array<i32>} : memref<8x3904xbf16, #tpu.memory_space<vmem>>, vector<8x32xbf16>,
    %168 = vector.extract_strided_slice %33 {offsets = [536, 0], sizes = [8, 32], strides = [1, 1]} : vector<976x32xbf16> to vector<8x32xbf16>
    %c0_87 = arith.constant 0 : index
    %c2144 = arith.constant 2144 : index
    %169 = vector.load %arg13[%c0_87, %c2144] : memref<8x3904xbf16, #tpu.memory_space<vmem>>, vector<8x32xbf16>
    tpu.vector_store %arg13[%c0_87, %c2144], %168 {strides = array<i32>} : memref<8x3904xbf16, #tpu.memory_space<vmem>>, vector<8x32xbf16>,
    %170 = vector.extract_strided_slice %33 {offsets = [544, 0], sizes = [8, 32], strides = [1, 1]} : vector<976x32xbf16> to vector<8x32xbf16>
    %c0_88 = arith.constant 0 : index
    %c2176 = arith.constant 2176 : index
    %171 = vector.load %arg13[%c0_88, %c2176] : memref<8x3904xbf16, #tpu.memory_space<vmem>>, vector<8x32xbf16>
    tpu.vector_store %arg13[%c0_88, %c2176], %170 {strides = array<i32>} : memref<8x3904xbf16, #tpu.memory_space<vmem>>, vector<8x32xbf16>,
    %172 = vector.extract_strided_slice %33 {offsets = [552, 0], sizes = [8, 32], strides = [1, 1]} : vector<976x32xbf16> to vector<8x32xbf16>
    %c0_89 = arith.constant 0 : index
    %c2208 = arith.constant 2208 : index
    %173 = vector.load %arg13[%c0_89, %c2208] : memref<8x3904xbf16, #tpu.memory_space<vmem>>, vector<8x32xbf16>
    tpu.vector_store %arg13[%c0_89, %c2208], %172 {strides = array<i32>} : memref<8x3904xbf16, #tpu.memory_space<vmem>>, vector<8x32xbf16>,
    %174 = vector.extract_strided_slice %33 {offsets = [560, 0], sizes = [8, 32], strides = [1, 1]} : vector<976x32xbf16> to vector<8x32xbf16>
    %c0_90 = arith.constant 0 : index
    %c2240 = arith.constant 2240 : index
    %175 = vector.load %arg13[%c0_90, %c2240] : memref<8x3904xbf16, #tpu.memory_space<vmem>>, vector<8x32xbf16>
    tpu.vector_store %arg13[%c0_90, %c2240], %174 {strides = array<i32>} : memref<8x3904xbf16, #tpu.memory_space<vmem>>, vector<8x32xbf16>,
    %176 = vector.extract_strided_slice %33 {offsets = [568, 0], sizes = [8, 32], strides = [1, 1]} : vector<976x32xbf16> to vector<8x32xbf16>
    %c0_91 = arith.constant 0 : index
    %c2272 = arith.constant 2272 : index
    %177 = vector.load %arg13[%c0_91, %c2272] : memref<8x3904xbf16, #tpu.memory_space<vmem>>, vector<8x32xbf16>
    tpu.vector_store %arg13[%c0_91, %c2272], %176 {strides = array<i32>} : memref<8x3904xbf16, #tpu.memory_space<vmem>>, vector<8x32xbf16>,
    %178 = vector.extract_strided_slice %33 {offsets = [576, 0], sizes = [8, 32], strides = [1, 1]} : vector<976x32xbf16> to vector<8x32xbf16>
    %c0_92 = arith.constant 0 : index
    %c2304 = arith.constant 2304 : index
    %179 = vector.load %arg13[%c0_92, %c2304] : memref<8x3904xbf16, #tpu.memory_space<vmem>>, vector<8x32xbf16>
    tpu.vector_store %arg13[%c0_92, %c2304], %178 {strides = array<i32>} : memref<8x3904xbf16, #tpu.memory_space<vmem>>, vector<8x32xbf16>,
    %180 = vector.extract_strided_slice %33 {offsets = [584, 0], sizes = [8, 32], strides = [1, 1]} : vector<976x32xbf16> to vector<8x32xbf16>
    %c0_93 = arith.constant 0 : index
    %c2336 = arith.constant 2336 : index
    %181 = vector.load %arg13[%c0_93, %c2336] : memref<8x3904xbf16, #tpu.memory_space<vmem>>, vector<8x32xbf16>
    tpu.vector_store %arg13[%c0_93, %c2336], %180 {strides = array<i32>} : memref<8x3904xbf16, #tpu.memory_space<vmem>>, vector<8x32xbf16>,
    %182 = vector.extract_strided_slice %33 {offsets = [592, 0], sizes = [8, 32], strides = [1, 1]} : vector<976x32xbf16> to vector<8x32xbf16>
    %c0_94 = arith.constant 0 : index
    %c2368 = arith.constant 2368 : index
    %183 = vector.load %arg13[%c0_94, %c2368] : memref<8x3904xbf16, #tpu.memory_space<vmem>>, vector<8x32xbf16>
    tpu.vector_store %arg13[%c0_94, %c2368], %182 {strides = array<i32>} : memref<8x3904xbf16, #tpu.memory_space<vmem>>, vector<8x32xbf16>,
    %184 = vector.extract_strided_slice %33 {offsets = [600, 0], sizes = [8, 32], strides = [1, 1]} : vector<976x32xbf16> to vector<8x32xbf16>
    %c0_95 = arith.constant 0 : index
    %c2400 = arith.constant 2400 : index
    %185 = vector.load %arg13[%c0_95, %c2400] : memref<8x3904xbf16, #tpu.memory_space<vmem>>, vector<8x32xbf16>
    tpu.vector_store %arg13[%c0_95, %c2400], %184 {strides = array<i32>} : memref<8x3904xbf16, #tpu.memory_space<vmem>>, vector<8x32xbf16>,
    %186 = vector.extract_strided_slice %33 {offsets = [608, 0], sizes = [8, 32], strides = [1, 1]} : vector<976x32xbf16> to vector<8x32xbf16>
    %c0_96 = arith.constant 0 : index
    %c2432 = arith.constant 2432 : index
    %187 = vector.load %arg13[%c0_96, %c2432] : memref<8x3904xbf16, #tpu.memory_space<vmem>>, vector<8x32xbf16>
    tpu.vector_store %arg13[%c0_96, %c2432], %186 {strides = array<i32>} : memref<8x3904xbf16, #tpu.memory_space<vmem>>, vector<8x32xbf16>,
    %188 = vector.extract_strided_slice %33 {offsets = [616, 0], sizes = [8, 32], strides = [1, 1]} : vector<976x32xbf16> to vector<8x32xbf16>
    %c0_97 = arith.constant 0 : index
    %c2464 = arith.constant 2464 : index
    %189 = vector.load %arg13[%c0_97, %c2464] : memref<8x3904xbf16, #tpu.memory_space<vmem>>, vector<8x32xbf16>
    tpu.vector_store %arg13[%c0_97, %c2464], %188 {strides = array<i32>} : memref<8x3904xbf16, #tpu.memory_space<vmem>>, vector<8x32xbf16>,
    %190 = vector.extract_strided_slice %33 {offsets = [624, 0], sizes = [8, 32], strides = [1, 1]} : vector<976x32xbf16> to vector<8x32xbf16>
    %c0_98 = arith.constant 0 : index
    %c2496 = arith.constant 2496 : index
    %191 = vector.load %arg13[%c0_98, %c2496] : memref<8x3904xbf16, #tpu.memory_space<vmem>>, vector<8x32xbf16>
    tpu.vector_store %arg13[%c0_98, %c2496], %190 {strides = array<i32>} : memref<8x3904xbf16, #tpu.memory_space<vmem>>, vector<8x32xbf16>,
    %192 = vector.extract_strided_slice %33 {offsets = [632, 0], sizes = [8, 32], strides = [1, 1]} : vector<976x32xbf16> to vector<8x32xbf16>
    %c0_99 = arith.constant 0 : index
    %c2528 = arith.constant 2528 : index
    %193 = vector.load %arg13[%c0_99, %c2528] : memref<8x3904xbf16, #tpu.memory_space<vmem>>, vector<8x32xbf16>
    tpu.vector_store %arg13[%c0_99, %c2528], %192 {strides = array<i32>} : memref<8x3904xbf16, #tpu.memory_space<vmem>>, vector<8x32xbf16>,
    %194 = vector.extract_strided_slice %33 {offsets = [640, 0], sizes = [8, 32], strides = [1, 1]} : vector<976x32xbf16> to vector<8x32xbf16>
    %c0_100 = arith.constant 0 : index
    %c2560 = arith.constant 2560 : index
    %195 = vector.load %arg13[%c0_100, %c2560] : memref<8x3904xbf16, #tpu.memory_space<vmem>>, vector<8x32xbf16>
    tpu.vector_store %arg13[%c0_100, %c2560], %194 {strides = array<i32>} : memref<8x3904xbf16, #tpu.memory_space<vmem>>, vector<8x32xbf16>,
    %196 = vector.extract_strided_slice %33 {offsets = [648, 0], sizes = [8, 32], strides = [1, 1]} : vector<976x32xbf16> to vector<8x32xbf16>
    %c0_101 = arith.constant 0 : index
    %c2592 = arith.constant 2592 : index
    %197 = vector.load %arg13[%c0_101, %c2592] : memref<8x3904xbf16, #tpu.memory_space<vmem>>, vector<8x32xbf16>
    tpu.vector_store %arg13[%c0_101, %c2592], %196 {strides = array<i32>} : memref<8x3904xbf16, #tpu.memory_space<vmem>>, vector<8x32xbf16>,
    %198 = vector.extract_strided_slice %33 {offsets = [656, 0], sizes = [8, 32], strides = [1, 1]} : vector<976x32xbf16> to vector<8x32xbf16>
    %c0_102 = arith.constant 0 : index
    %c2624 = arith.constant 2624 : index
    %199 = vector.load %arg13[%c0_102, %c2624] : memref<8x3904xbf16, #tpu.memory_space<vmem>>, vector<8x32xbf16>
    tpu.vector_store %arg13[%c0_102, %c2624], %198 {strides = array<i32>} : memref<8x3904xbf16, #tpu.memory_space<vmem>>, vector<8x32xbf16>,
    %200 = vector.extract_strided_slice %33 {offsets = [664, 0], sizes = [8, 32], strides = [1, 1]} : vector<976x32xbf16> to vector<8x32xbf16>
    %c0_103 = arith.constant 0 : index
    %c2656 = arith.constant 2656 : index
    %201 = vector.load %arg13[%c0_103, %c2656] : memref<8x3904xbf16, #tpu.memory_space<vmem>>, vector<8x32xbf16>
    tpu.vector_store %arg13[%c0_103, %c2656], %200 {strides = array<i32>} : memref<8x3904xbf16, #tpu.memory_space<vmem>>, vector<8x32xbf16>,
    %202 = vector.extract_strided_slice %33 {offsets = [672, 0], sizes = [8, 32], strides = [1, 1]} : vector<976x32xbf16> to vector<8x32xbf16>
    %c0_104 = arith.constant 0 : index
    %c2688 = arith.constant 2688 : index
    %203 = vector.load %arg13[%c0_104, %c2688] : memref<8x3904xbf16, #tpu.memory_space<vmem>>, vector<8x32xbf16>
    tpu.vector_store %arg13[%c0_104, %c2688], %202 {strides = array<i32>} : memref<8x3904xbf16, #tpu.memory_space<vmem>>, vector<8x32xbf16>,
    %204 = vector.extract_strided_slice %33 {offsets = [680, 0], sizes = [8, 32], strides = [1, 1]} : vector<976x32xbf16> to vector<8x32xbf16>
    %c0_105 = arith.constant 0 : index
    %c2720 = arith.constant 2720 : index
    %205 = vector.load %arg13[%c0_105, %c2720] : memref<8x3904xbf16, #tpu.memory_space<vmem>>, vector<8x32xbf16>
    tpu.vector_store %arg13[%c0_105, %c2720], %204 {strides = array<i32>} : memref<8x3904xbf16, #tpu.memory_space<vmem>>, vector<8x32xbf16>,
    %206 = vector.extract_strided_slice %33 {offsets = [688, 0], sizes = [8, 32], strides = [1, 1]} : vector<976x32xbf16> to vector<8x32xbf16>
    %c0_106 = arith.constant 0 : index
    %c2752 = arith.constant 2752 : index
    %207 = vector.load %arg13[%c0_106, %c2752] : memref<8x3904xbf16, #tpu.memory_space<vmem>>, vector<8x32xbf16>
    tpu.vector_store %arg13[%c0_106, %c2752], %206 {strides = array<i32>} : memref<8x3904xbf16, #tpu.memory_space<vmem>>, vector<8x32xbf16>,
    %208 = vector.extract_strided_slice %33 {offsets = [696, 0], sizes = [8, 32], strides = [1, 1]} : vector<976x32xbf16> to vector<8x32xbf16>
    %c0_107 = arith.constant 0 : index
    %c2784 = arith.constant 2784 : index
    %209 = vector.load %arg13[%c0_107, %c2784] : memref<8x3904xbf16, #tpu.memory_space<vmem>>, vector<8x32xbf16>
    tpu.vector_store %arg13[%c0_107, %c2784], %208 {strides = array<i32>} : memref<8x3904xbf16, #tpu.memory_space<vmem>>, vector<8x32xbf16>,
    %210 = vector.extract_strided_slice %33 {offsets = [704, 0], sizes = [8, 32], strides = [1, 1]} : vector<976x32xbf16> to vector<8x32xbf16>
    %c0_108 = arith.constant 0 : index
    %c2816 = arith.constant 2816 : index
    %211 = vector.load %arg13[%c0_108, %c2816] : memref<8x3904xbf16, #tpu.memory_space<vmem>>, vector<8x32xbf16>
    tpu.vector_store %arg13[%c0_108, %c2816], %210 {strides = array<i32>} : memref<8x3904xbf16, #tpu.memory_space<vmem>>, vector<8x32xbf16>,
    %212 = vector.extract_strided_slice %33 {offsets = [712, 0], sizes = [8, 32], strides = [1, 1]} : vector<976x32xbf16> to vector<8x32xbf16>
    %c0_109 = arith.constant 0 : index
    %c2848 = arith.constant 2848 : index
    %213 = vector.load %arg13[%c0_109, %c2848] : memref<8x3904xbf16, #tpu.memory_space<vmem>>, vector<8x32xbf16>
    tpu.vector_store %arg13[%c0_109, %c2848], %212 {strides = array<i32>} : memref<8x3904xbf16, #tpu.memory_space<vmem>>, vector<8x32xbf16>,
    %214 = vector.extract_strided_slice %33 {offsets = [720, 0], sizes = [8, 32], strides = [1, 1]} : vector<976x32xbf16> to vector<8x32xbf16>
    %c0_110 = arith.constant 0 : index
    %c2880 = arith.constant 2880 : index
    %215 = vector.load %arg13[%c0_110, %c2880] : memref<8x3904xbf16, #tpu.memory_space<vmem>>, vector<8x32xbf16>
    tpu.vector_store %arg13[%c0_110, %c2880], %214 {strides = array<i32>} : memref<8x3904xbf16, #tpu.memory_space<vmem>>, vector<8x32xbf16>,
    %216 = vector.extract_strided_slice %33 {offsets = [728, 0], sizes = [8, 32], strides = [1, 1]} : vector<976x32xbf16> to vector<8x32xbf16>
    %c0_111 = arith.constant 0 : index
    %c2912 = arith.constant 2912 : index
    %217 = vector.load %arg13[%c0_111, %c2912] : memref<8x3904xbf16, #tpu.memory_space<vmem>>, vector<8x32xbf16>
    tpu.vector_store %arg13[%c0_111, %c2912], %216 {strides = array<i32>} : memref<8x3904xbf16, #tpu.memory_space<vmem>>, vector<8x32xbf16>,
    %218 = vector.extract_strided_slice %33 {offsets = [736, 0], sizes = [8, 32], strides = [1, 1]} : vector<976x32xbf16> to vector<8x32xbf16>
    %c0_112 = arith.constant 0 : index
    %c2944 = arith.constant 2944 : index
    %219 = vector.load %arg13[%c0_112, %c2944] : memref<8x3904xbf16, #tpu.memory_space<vmem>>, vector<8x32xbf16>
    tpu.vector_store %arg13[%c0_112, %c2944], %218 {strides = array<i32>} : memref<8x3904xbf16, #tpu.memory_space<vmem>>, vector<8x32xbf16>,
    %220 = vector.extract_strided_slice %33 {offsets = [744, 0], sizes = [8, 32], strides = [1, 1]} : vector<976x32xbf16> to vector<8x32xbf16>
    %c0_113 = arith.constant 0 : index
    %c2976 = arith.constant 2976 : index
    %221 = vector.load %arg13[%c0_113, %c2976] : memref<8x3904xbf16, #tpu.memory_space<vmem>>, vector<8x32xbf16>
    tpu.vector_store %arg13[%c0_113, %c2976], %220 {strides = array<i32>} : memref<8x3904xbf16, #tpu.memory_space<vmem>>, vector<8x32xbf16>,
    %222 = vector.extract_strided_slice %33 {offsets = [752, 0], sizes = [8, 32], strides = [1, 1]} : vector<976x32xbf16> to vector<8x32xbf16>
    %c0_114 = arith.constant 0 : index
    %c3008 = arith.constant 3008 : index
    %223 = vector.load %arg13[%c0_114, %c3008] : memref<8x3904xbf16, #tpu.memory_space<vmem>>, vector<8x32xbf16>
    tpu.vector_store %arg13[%c0_114, %c3008], %222 {strides = array<i32>} : memref<8x3904xbf16, #tpu.memory_space<vmem>>, vector<8x32xbf16>,
    %224 = vector.extract_strided_slice %33 {offsets = [760, 0], sizes = [8, 32], strides = [1, 1]} : vector<976x32xbf16> to vector<8x32xbf16>
    %c0_115 = arith.constant 0 : index
    %c3040 = arith.constant 3040 : index
    %225 = vector.load %arg13[%c0_115, %c3040] : memref<8x3904xbf16, #tpu.memory_space<vmem>>, vector<8x32xbf16>
    tpu.vector_store %arg13[%c0_115, %c3040], %224 {strides = array<i32>} : memref<8x3904xbf16, #tpu.memory_space<vmem>>, vector<8x32xbf16>,
    %226 = vector.extract_strided_slice %33 {offsets = [768, 0], sizes = [8, 32], strides = [1, 1]} : vector<976x32xbf16> to vector<8x32xbf16>
    %c0_116 = arith.constant 0 : index
    %c3072 = arith.constant 3072 : index
    %227 = vector.load %arg13[%c0_116, %c3072] : memref<8x3904xbf16, #tpu.memory_space<vmem>>, vector<8x32xbf16>
    tpu.vector_store %arg13[%c0_116, %c3072], %226 {strides = array<i32>} : memref<8x3904xbf16, #tpu.memory_space<vmem>>, vector<8x32xbf16>,
    %228 = vector.extract_strided_slice %33 {offsets = [776, 0], sizes = [8, 32], strides = [1, 1]} : vector<976x32xbf16> to vector<8x32xbf16>
    %c0_117 = arith.constant 0 : index
    %c3104 = arith.constant 3104 : index
    %229 = vector.load %arg13[%c0_117, %c3104] : memref<8x3904xbf16, #tpu.memory_space<vmem>>, vector<8x32xbf16>
    tpu.vector_store %arg13[%c0_117, %c3104], %228 {strides = array<i32>} : memref<8x3904xbf16, #tpu.memory_space<vmem>>, vector<8x32xbf16>,
    %230 = vector.extract_strided_slice %33 {offsets = [784, 0], sizes = [8, 32], strides = [1, 1]} : vector<976x32xbf16> to vector<8x32xbf16>
    %c0_118 = arith.constant 0 : index
    %c3136 = arith.constant 3136 : index
    %231 = vector.load %arg13[%c0_118, %c3136] : memref<8x3904xbf16, #tpu.memory_space<vmem>>, vector<8x32xbf16>
    tpu.vector_store %arg13[%c0_118, %c3136], %230 {strides = array<i32>} : memref<8x3904xbf16, #tpu.memory_space<vmem>>, vector<8x32xbf16>,
    %232 = vector.extract_strided_slice %33 {offsets = [792, 0], sizes = [8, 32], strides = [1, 1]} : vector<976x32xbf16> to vector<8x32xbf16>
    %c0_119 = arith.constant 0 : index
    %c3168 = arith.constant 3168 : index
    %233 = vector.load %arg13[%c0_119, %c3168] : memref<8x3904xbf16, #tpu.memory_space<vmem>>, vector<8x32xbf16>
    tpu.vector_store %arg13[%c0_119, %c3168], %232 {strides = array<i32>} : memref<8x3904xbf16, #tpu.memory_space<vmem>>, vector<8x32xbf16>,
    %234 = vector.extract_strided_slice %33 {offsets = [800, 0], sizes = [8, 32], strides = [1, 1]} : vector<976x32xbf16> to vector<8x32xbf16>
    %c0_120 = arith.constant 0 : index
    %c3200 = arith.constant 3200 : index
    %235 = vector.load %arg13[%c0_120, %c3200] : memref<8x3904xbf16, #tpu.memory_space<vmem>>, vector<8x32xbf16>
    tpu.vector_store %arg13[%c0_120, %c3200], %234 {strides = array<i32>} : memref<8x3904xbf16, #tpu.memory_space<vmem>>, vector<8x32xbf16>,
    %236 = vector.extract_strided_slice %33 {offsets = [808, 0], sizes = [8, 32], strides = [1, 1]} : vector<976x32xbf16> to vector<8x32xbf16>
    %c0_121 = arith.constant 0 : index
    %c3232 = arith.constant 3232 : index
    %237 = vector.load %arg13[%c0_121, %c3232] : memref<8x3904xbf16, #tpu.memory_space<vmem>>, vector<8x32xbf16>
    tpu.vector_store %arg13[%c0_121, %c3232], %236 {strides = array<i32>} : memref<8x3904xbf16, #tpu.memory_space<vmem>>, vector<8x32xbf16>,
    %238 = vector.extract_strided_slice %33 {offsets = [816, 0], sizes = [8, 32], strides = [1, 1]} : vector<976x32xbf16> to vector<8x32xbf16>
    %c0_122 = arith.constant 0 : index
    %c3264 = arith.constant 3264 : index
    %239 = vector.load %arg13[%c0_122, %c3264] : memref<8x3904xbf16, #tpu.memory_space<vmem>>, vector<8x32xbf16>
    tpu.vector_store %arg13[%c0_122, %c3264], %238 {strides = array<i32>} : memref<8x3904xbf16, #tpu.memory_space<vmem>>, vector<8x32xbf16>,
    %240 = vector.extract_strided_slice %33 {offsets = [824, 0], sizes = [8, 32], strides = [1, 1]} : vector<976x32xbf16> to vector<8x32xbf16>
    %c0_123 = arith.constant 0 : index
    %c3296 = arith.constant 3296 : index
    %241 = vector.load %arg13[%c0_123, %c3296] : memref<8x3904xbf16, #tpu.memory_space<vmem>>, vector<8x32xbf16>
    tpu.vector_store %arg13[%c0_123, %c3296], %240 {strides = array<i32>} : memref<8x3904xbf16, #tpu.memory_space<vmem>>, vector<8x32xbf16>,
    %242 = vector.extract_strided_slice %33 {offsets = [832, 0], sizes = [8, 32], strides = [1, 1]} : vector<976x32xbf16> to vector<8x32xbf16>
    %c0_124 = arith.constant 0 : index
    %c3328 = arith.constant 3328 : index
    %243 = vector.load %arg13[%c0_124, %c3328] : memref<8x3904xbf16, #tpu.memory_space<vmem>>, vector<8x32xbf16>
    tpu.vector_store %arg13[%c0_124, %c3328], %242 {strides = array<i32>} : memref<8x3904xbf16, #tpu.memory_space<vmem>>, vector<8x32xbf16>,
    %244 = vector.extract_strided_slice %33 {offsets = [840, 0], sizes = [8, 32], strides = [1, 1]} : vector<976x32xbf16> to vector<8x32xbf16>
    %c0_125 = arith.constant 0 : index
    %c3360 = arith.constant 3360 : index
    %245 = vector.load %arg13[%c0_125, %c3360] : memref<8x3904xbf16, #tpu.memory_space<vmem>>, vector<8x32xbf16>
    tpu.vector_store %arg13[%c0_125, %c3360], %244 {strides = array<i32>} : memref<8x3904xbf16, #tpu.memory_space<vmem>>, vector<8x32xbf16>,
    %246 = vector.extract_strided_slice %33 {offsets = [848, 0], sizes = [8, 32], strides = [1, 1]} : vector<976x32xbf16> to vector<8x32xbf16>
    %c0_126 = arith.constant 0 : index
    %c3392 = arith.constant 3392 : index
    %247 = vector.load %arg13[%c0_126, %c3392] : memref<8x3904xbf16, #tpu.memory_space<vmem>>, vector<8x32xbf16>
    tpu.vector_store %arg13[%c0_126, %c3392], %246 {strides = array<i32>} : memref<8x3904xbf16, #tpu.memory_space<vmem>>, vector<8x32xbf16>,
    %248 = vector.extract_strided_slice %33 {offsets = [856, 0], sizes = [8, 32], strides = [1, 1]} : vector<976x32xbf16> to vector<8x32xbf16>
    %c0_127 = arith.constant 0 : index
    %c3424 = arith.constant 3424 : index
    %249 = vector.load %arg13[%c0_127, %c3424] : memref<8x3904xbf16, #tpu.memory_space<vmem>>, vector<8x32xbf16>
    tpu.vector_store %arg13[%c0_127, %c3424], %248 {strides = array<i32>} : memref<8x3904xbf16, #tpu.memory_space<vmem>>, vector<8x32xbf16>,
    %250 = vector.extract_strided_slice %33 {offsets = [864, 0], sizes = [8, 32], strides = [1, 1]} : vector<976x32xbf16> to vector<8x32xbf16>
    %c0_128 = arith.constant 0 : index
    %c3456 = arith.constant 3456 : index
    %251 = vector.load %arg13[%c0_128, %c3456] : memref<8x3904xbf16, #tpu.memory_space<vmem>>, vector<8x32xbf16>
    tpu.vector_store %arg13[%c0_128, %c3456], %250 {strides = array<i32>} : memref<8x3904xbf16, #tpu.memory_space<vmem>>, vector<8x32xbf16>,
    %252 = vector.extract_strided_slice %33 {offsets = [872, 0], sizes = [8, 32], strides = [1, 1]} : vector<976x32xbf16> to vector<8x32xbf16>
    %c0_129 = arith.constant 0 : index
    %c3488 = arith.constant 3488 : index
    %253 = vector.load %arg13[%c0_129, %c3488] : memref<8x3904xbf16, #tpu.memory_space<vmem>>, vector<8x32xbf16>
    tpu.vector_store %arg13[%c0_129, %c3488], %252 {strides = array<i32>} : memref<8x3904xbf16, #tpu.memory_space<vmem>>, vector<8x32xbf16>,
    %254 = vector.extract_strided_slice %33 {offsets = [880, 0], sizes = [8, 32], strides = [1, 1]} : vector<976x32xbf16> to vector<8x32xbf16>
    %c0_130 = arith.constant 0 : index
    %c3520 = arith.constant 3520 : index
    %255 = vector.load %arg13[%c0_130, %c3520] : memref<8x3904xbf16, #tpu.memory_space<vmem>>, vector<8x32xbf16>
    tpu.vector_store %arg13[%c0_130, %c3520], %254 {strides = array<i32>} : memref<8x3904xbf16, #tpu.memory_space<vmem>>, vector<8x32xbf16>,
    %256 = vector.extract_strided_slice %33 {offsets = [888, 0], sizes = [8, 32], strides = [1, 1]} : vector<976x32xbf16> to vector<8x32xbf16>
    %c0_131 = arith.constant 0 : index
    %c3552 = arith.constant 3552 : index
    %257 = vector.load %arg13[%c0_131, %c3552] : memref<8x3904xbf16, #tpu.memory_space<vmem>>, vector<8x32xbf16>
    tpu.vector_store %arg13[%c0_131, %c3552], %256 {strides = array<i32>} : memref<8x3904xbf16, #tpu.memory_space<vmem>>, vector<8x32xbf16>,
    %258 = vector.extract_strided_slice %33 {offsets = [896, 0], sizes = [8, 32], strides = [1, 1]} : vector<976x32xbf16> to vector<8x32xbf16>
    %c0_132 = arith.constant 0 : index
    %c3584 = arith.constant 3584 : index
    %259 = vector.load %arg13[%c0_132, %c3584] : memref<8x3904xbf16, #tpu.memory_space<vmem>>, vector<8x32xbf16>
    tpu.vector_store %arg13[%c0_132, %c3584], %258 {strides = array<i32>} : memref<8x3904xbf16, #tpu.memory_space<vmem>>, vector<8x32xbf16>,
    %260 = vector.extract_strided_slice %33 {offsets = [904, 0], sizes = [8, 32], strides = [1, 1]} : vector<976x32xbf16> to vector<8x32xbf16>
    %c0_133 = arith.constant 0 : index
    %c3616 = arith.constant 3616 : index
    %261 = vector.load %arg13[%c0_133, %c3616] : memref<8x3904xbf16, #tpu.memory_space<vmem>>, vector<8x32xbf16>
    tpu.vector_store %arg13[%c0_133, %c3616], %260 {strides = array<i32>} : memref<8x3904xbf16, #tpu.memory_space<vmem>>, vector<8x32xbf16>,
    %262 = vector.extract_strided_slice %33 {offsets = [912, 0], sizes = [8, 32], strides = [1, 1]} : vector<976x32xbf16> to vector<8x32xbf16>
    %c0_134 = arith.constant 0 : index
    %c3648 = arith.constant 3648 : index
    %263 = vector.load %arg13[%c0_134, %c3648] : memref<8x3904xbf16, #tpu.memory_space<vmem>>, vector<8x32xbf16>
    tpu.vector_store %arg13[%c0_134, %c3648], %262 {strides = array<i32>} : memref<8x3904xbf16, #tpu.memory_space<vmem>>, vector<8x32xbf16>,
    %264 = vector.extract_strided_slice %33 {offsets = [920, 0], sizes = [8, 32], strides = [1, 1]} : vector<976x32xbf16> to vector<8x32xbf16>
    %c0_135 = arith.constant 0 : index
    %c3680 = arith.constant 3680 : index
    %265 = vector.load %arg13[%c0_135, %c3680] : memref<8x3904xbf16, #tpu.memory_space<vmem>>, vector<8x32xbf16>
    tpu.vector_store %arg13[%c0_135, %c3680], %264 {strides = array<i32>} : memref<8x3904xbf16, #tpu.memory_space<vmem>>, vector<8x32xbf16>,
    %266 = vector.extract_strided_slice %33 {offsets = [928, 0], sizes = [8, 32], strides = [1, 1]} : vector<976x32xbf16> to vector<8x32xbf16>
    %c0_136 = arith.constant 0 : index
    %c3712 = arith.constant 3712 : index
    %267 = vector.load %arg13[%c0_136, %c3712] : memref<8x3904xbf16, #tpu.memory_space<vmem>>, vector<8x32xbf16>
    tpu.vector_store %arg13[%c0_136, %c3712], %266 {strides = array<i32>} : memref<8x3904xbf16, #tpu.memory_space<vmem>>, vector<8x32xbf16>,
    %268 = vector.extract_strided_slice %33 {offsets = [936, 0], sizes = [8, 32], strides = [1, 1]} : vector<976x32xbf16> to vector<8x32xbf16>
    %c0_137 = arith.constant 0 : index
    %c3744 = arith.constant 3744 : index
    %269 = vector.load %arg13[%c0_137, %c3744] : memref<8x3904xbf16, #tpu.memory_space<vmem>>, vector<8x32xbf16>
    tpu.vector_store %arg13[%c0_137, %c3744], %268 {strides = array<i32>} : memref<8x3904xbf16, #tpu.memory_space<vmem>>, vector<8x32xbf16>,
    %270 = vector.extract_strided_slice %33 {offsets = [944, 0], sizes = [8, 32], strides = [1, 1]} : vector<976x32xbf16> to vector<8x32xbf16>
    %c0_138 = arith.constant 0 : index
    %c3776 = arith.constant 3776 : index
    %271 = vector.load %arg13[%c0_138, %c3776] : memref<8x3904xbf16, #tpu.memory_space<vmem>>, vector<8x32xbf16>
    tpu.vector_store %arg13[%c0_138, %c3776], %270 {strides = array<i32>} : memref<8x3904xbf16, #tpu.memory_space<vmem>>, vector<8x32xbf16>,
    %272 = vector.extract_strided_slice %33 {offsets = [952, 0], sizes = [8, 32], strides = [1, 1]} : vector<976x32xbf16> to vector<8x32xbf16>
    %c0_139 = arith.constant 0 : index
    %c3808 = arith.constant 3808 : index
    %273 = vector.load %arg13[%c0_139, %c3808] : memref<8x3904xbf16, #tpu.memory_space<vmem>>, vector<8x32xbf16>
    tpu.vector_store %arg13[%c0_139, %c3808], %272 {strides = array<i32>} : memref<8x3904xbf16, #tpu.memory_space<vmem>>, vector<8x32xbf16>,
    %274 = vector.extract_strided_slice %33 {offsets = [960, 0], sizes = [8, 32], strides = [1, 1]} : vector<976x32xbf16> to vector<8x32xbf16>
    %c0_140 = arith.constant 0 : index
    %c3840 = arith.constant 3840 : index
    %275 = vector.load %arg13[%c0_140, %c3840] : memref<8x3904xbf16, #tpu.memory_space<vmem>>, vector<8x32xbf16>
    tpu.vector_store %arg13[%c0_140, %c3840], %274 {strides = array<i32>} : memref<8x3904xbf16, #tpu.memory_space<vmem>>, vector<8x32xbf16>,
    %276 = vector.extract_strided_slice %33 {offsets = [968, 0], sizes = [8, 32], strides = [1, 1]} : vector<976x32xbf16> to vector<8x32xbf16>
    %c0_141 = arith.constant 0 : index
    %c3872 = arith.constant 3872 : index
    %277 = vector.load %arg13[%c0_141, %c3872] : memref<8x3904xbf16, #tpu.memory_space<vmem>>, vector<8x32xbf16>
    tpu.vector_store %arg13[%c0_141, %c3872], %276 {strides = array<i32>} : memref<8x3904xbf16, #tpu.memory_space<vmem>>, vector<8x32xbf16>,
    %c0_142 = arith.constant 0 : index
    %c0_143 = arith.constant 0 : index
    %278 = vector.load %arg13[%c0_142, %c0_143] : memref<8x3904xbf16, #tpu.memory_space<vmem>>, vector<8x3904xbf16>
    %c0_144 = arith.constant 0 : index
    %c0_145 = arith.constant 0 : index
    %279 = vector.load %arg8[%c0_144, %c0_145] : memref<3904x128xbf16, #tpu.memory_space<vmem>>, vector<3904x128xbf16>
    %cst_146 = arith.constant dense<0.000000e+00> : vector<8x128xf32>
    %280 = tpu.matmul %278, %279, %cst_146 {dimension_numbers = #tpu.dot_dimension_numbers<[1], [0], [0], [1], [0, 0, 1, 1], [], []>} : vector<8x3904xbf16>, vector<3904x128xbf16>, vector<8x128xf32> -> vector<8x128xf32>
    %c0_147 = arith.constant 0 : index
    %c0_148 = arith.constant 0 : index
    %281 = vector.load %arg9[%c0_147, %c0_148] : memref<1x128xf32, #tpu.memory_space<vmem>>, vector<1x128xf32>
    %282 = vector.broadcast %281 : vector<1x128xf32> to vector<8x128xf32>
    %283 = arith.addf %280, %282 : vector<8x128xf32>
    %284 = arith.truncf %283 : vector<8x128xf32> to vector<8x128xbf16>
    %c0_149 = arith.constant 0 : index
    %c0_150 = arith.constant 0 : index
    %285 = vector.load %arg10[%c0_149, %c0_150] : memref<128x128xbf16, #tpu.memory_space<vmem>>, vector<128x128xbf16>
    %cst_151 = arith.constant dense<0.000000e+00> : vector<8x128xf32>
    %286 = tpu.matmul %284, %285, %cst_151 {dimension_numbers = #tpu.dot_dimension_numbers<[1], [0], [0], [1], [0, 0, 1, 1], [], []>} : vector<8x128xbf16>, vector<128x128xbf16>, vector<8x128xf32> -> vector<8x128xf32>
    %c0_152 = arith.constant 0 : index
    %c0_153 = arith.constant 0 : index
    %287 = vector.load %arg11[%c0_152, %c0_153] : memref<1x128xf32, #tpu.memory_space<vmem>>, vector<1x128xf32>
    %288 = vector.broadcast %287 : vector<1x128xf32> to vector<8x128xf32>
    %289 = arith.addf %286, %288 : vector<8x128xf32>
    %c0_154 = arith.constant 0 : index
    %c0_155 = arith.constant 0 : index
    %290 = vector.load %arg12[%c0_154, %c0_155] : memref<8x128xf32, #tpu.memory_space<vmem>>, vector<8x128xf32>
    tpu.vector_store %arg12[%c0_154, %c0_155], %289 {strides = array<i32>} : memref<8x128xf32, #tpu.memory_space<vmem>>, vector<8x128xf32>,
    return
  }
  func.func @transform_0(%arg0: i32) -> (i32, i32, i32) {
    %c0_i32 = arith.constant 0 : i32
    %c0_i32_0 = arith.constant 0 : i32
    %c0_i32_1 = arith.constant 0 : i32
    return %arg0, %c0_i32, %c0_i32_0 : i32, i32, i32
  }
  func.func @transform_1(%arg0: i32) -> (i32, i32) {
    %c0_i32 = arith.constant 0 : i32
    %c0_i32_0 = arith.constant 0 : i32
    %c0_i32_1 = arith.constant 0 : i32
    return %c0_i32, %c0_i32_0 : i32, i32
  }
  func.func @transform_2(%arg0: i32) -> (i32, i32) {
    %c0_i32 = arith.constant 0 : i32
    %c0_i32_0 = arith.constant 0 : i32
    %c0_i32_1 = arith.constant 0 : i32
    return %c0_i32, %c0_i32_0 : i32, i32
  }
  func.func @transform_3(%arg0: i32) -> (i32, i32) {
    %c0_i32 = arith.constant 0 : i32
    %c0_i32_0 = arith.constant 0 : i32
    %c0_i32_1 = arith.constant 0 : i32
    return %c0_i32, %c0_i32_0 : i32, i32
  }
  func.func @transform_4(%arg0: i32) -> (i32, i32) {
    %c0_i32 = arith.constant 0 : i32
    %c0_i32_0 = arith.constant 0 : i32
    %c0_i32_1 = arith.constant 0 : i32
    return %c0_i32, %c0_i32_0 : i32, i32
  }
  func.func @transform_5(%arg0: i32) -> (i32, i32) {
    %c0_i32 = arith.constant 0 : i32
    %c0_i32_0 = arith.constant 0 : i32
    %c0_i32_1 = arith.constant 0 : i32
    return %c0_i32, %c0_i32_0 : i32, i32
  }
  func.func @transform_6(%arg0: i32) -> (i32, i32) {
    %c0_i32 = arith.constant 0 : i32
    %c0_i32_0 = arith.constant 0 : i32
    %c0_i32_1 = arith.constant 0 : i32
    return %c0_i32, %c0_i32_0 : i32, i32
  }
  func.func @transform_7(%arg0: i32) -> (i32, i32) {
    %c0_i32 = arith.constant 0 : i32
    %c0_i32_0 = arith.constant 0 : i32
    %c0_i32_1 = arith.constant 0 : i32
    return %c0_i32, %c0_i32_0 : i32, i32
  }
  func.func @transform_8(%arg0: i32) -> (i32, i32) {
    %c0_i32 = arith.constant 0 : i32
    %c0_i32_0 = arith.constant 0 : i32
    %c0_i32_1 = arith.constant 0 : i32
    return %c0_i32, %c0_i32_0 : i32, i32
  }
  func.func @transform_9(%arg0: i32) -> (i32, i32) {
    %c0_i32 = arith.constant 0 : i32
    %c0_i32_0 = arith.constant 0 : i32
    %c0_i32_1 = arith.constant 0 : i32
    return %c0_i32, %c0_i32_0 : i32, i32
  }
  func.func @transform_10(%arg0: i32) -> (i32, i32) {
    %c0_i32 = arith.constant 0 : i32
    %c0_i32_0 = arith.constant 0 : i32
    %c0_i32_1 = arith.constant 0 : i32
    return %c0_i32, %c0_i32_0 : i32, i32
  }
  func.func @transform_11(%arg0: i32) -> (i32, i32) {
    %c0_i32 = arith.constant 0 : i32
    %c0_i32_0 = arith.constant 0 : i32
    return %arg0, %c0_i32 : i32, i32
  }
}

</mosaic_0001>

<bundles_post_ra>
// kernel: pallas_forward.1
= control target key start
LH: loop header
LB: loop body
LE: loop exit
PB: predicated region body
PF: predicated region fallthrough
CT: control target
= control target key end

     0   :  { %16 = vsyncpa [#allocation4], 0  ;;  %s9453_s20 = smov [#allocation3]   ;;  %s9454_s22 = smov 64   ;;  %s12128_s0 = inlined_call_operand.vmem [shape: bf16[1,1008,3], index: 0, kind: input, shape index: {}]   ;;  %s12129_s1 = inlined_call_operand.vmem [shape: bf16[3,8], index: 1, kind: input, shape index: {}]   ;;  %s12130_s2 = inlined_call_operand.vmem [shape: f32[1,8], index: 2, kind: input, shape index: {}]   ;;  %s12131_s3 = inlined_call_operand.vmem [shape: bf16[24,16], index: 3, kind: input, shape index: {}]   ;;  %s12132_s4 = inlined_call_operand.vmem [shape: f32[1,16], index: 4, kind: input, shape index: {}]   ;;  %s12133_s5 = inlined_call_operand.vmem [shape: bf16[48,32], index: 5, kind: input, shape index: {}]   ;;  %s12134_s6 = inlined_call_operand.vmem [shape: f32[1,32], index: 6, kind: input, shape index: {}]   ;;  %s12135_s7 = inlined_call_operand.hbm [shape: bf16[3904,128], index: 7, kind: input, shape index: {}]   ;;  %s12136_s8 = inlined_call_operand.vmem [shape: f32[1,128], index: 8, kind: input, shape index: {}]   ;;  %s12137_s9 = inlined_call_operand.vmem [shape: bf16[128,128], index: 9, kind: input, shape index: {}]   ;;  %s12138_s10 = inlined_call_operand.vmem [shape: f32[1,128], index: 10, kind: input, shape index: {}]   ;;  %s12139_s11 = inlined_call_operand.vmem [shape: f32[8,128], index: 11, kind: output, shape index: {}]  }
   0x1   :  { %s35_s19 = sshll.u32 %s12135_s7, 4  ;;  %s37_s21 = sshll.u32 %s9453_s20, 4  ;;  %s36_s19 = int_to_ptr.hbm [resolvable:$true] %s35_s19  ;;  %s38_s21 = int_to_ptr.vmem [resolvable:$true] %s37_s21 }
   0x2   :  { %s9455_s23 = smov 4  }
   0x3   :  { %43 = dma.hbm_to_vmem [thread:$0]  %s36_s19, 31232, %s38_s21, [#allocation4], %s9454_s22, %s9454_s22, %s9455_s23  }
   0x4   :  { %9451 = dma.done.wait [#allocation4], 31232  }
   0x5   :  { %9452 = vsyncadd [#allocation4], 4294936064  ;;  %vm691_vm0 = vcmask 1040384   ;;  %vm692_vm1 = vcmask 1041408   ;;  %v9456_v0 = vmov 65535   ;;  %v9081_v5 = vld [vmem:[%s12128_s0] sm:$0xff] }
   0x6   :  { %v693_v1 = vsel %vm691_vm0, 4294967295, %v9456_v0  ;;  %v181_v3 = vld [vmem:[%s12129_s1] sm:$0x3]  ;;  %vm501_vm2 = vcmask 23552   ;;  %v9082_v6 = vld [vmem:[%s12128_s0 + $0x8] sm:$0xff]  ;;  %v9083_v7 = vld [vmem:[%s12128_s0 + $0x10] sm:$0xff] }
   0x7   :  { %v694_v2 = vsel %vm692_vm1, %v693_v1, 0  ;;  %v9084_v8 = vld [vmem:[%s12128_s0 + $0x18] sm:$0xff]  ;;  %v9085_v9 = vld [vmem:[%s12128_s0 + $0x20] sm:$0xff]  ;;  %v9086_v10 = vld [vmem:[%s12128_s0 + $0x28] sm:$0xff]  ;;  %s9457_s27 = smov 8   ;;  %s9458_s30 = smov 16  }
   0x8   :  { %v696_v4 = vand.u32 %v694_v2, %v181_v3  ;;  %v9087_v11 = vld [vmem:[%s12128_s0 + $0x30] sm:$0xff]  ;;  %v9088_v12 = vld [vmem:[%s12128_s0 + $0x38] sm:$0xff]  ;;  %v9564_v13 = vld [vmem:[%s12130_s2] ss:$0 sm:$0xff]  ;;  %vm2352_vm3 = vcmask 1043456   ;;  %vm1899_vm4 = vcmask 64512  }
   0x9   :  { %v9089_v14 = vld [vmem:[%s12128_s0 + $0x40] sm:$0xff]  ;;  %v9090_v25 = vld [vmem:[%s12128_s0 + $0x48] sm:$0xff]  ;;  %v9091_v38 = vld [vmem:[%s12128_s0 + $0x50] sm:$0xff]  ;;  %vm2086_vm5 = vcmask 130048   ;;  %vm2227_vm6 = vcmask 195584   ;;  %s9459_s28 = smov 32  }
   0xa   :  { %705 = vmatpush.bf16.msra.mxu0 %v696_v4  ;;  %v9092_v51 = vld [vmem:[%s12128_s0 + $0x58] sm:$0xff]  ;;  %v9093_v0 = vld [vmem:[%s12128_s0 + $0x60] sm:$0xff]  ;;  %vm3721_vm7 = vcmask 261120   ;;  %vm3872_vm8 = vcmask 392192   ;;  %vm4553_vm9 = vcmask 257024   ;;  %vm4559_vm10 = vcmask 519424  }
   0xb   :  { %vm4565_vm11 = vcmask 781824   ;;  %vm4571_vm12 = vcmask 1044224   ;;  %vm7123_vm13 = vcmask 523264  }
   0xd   :  { %7870 = vmatmul.msk.bf16.vlgmr.msra.gmra.mxu0 %vm501_vm2, %v9081_v5 }
  0x1d   :  { %7871 = vmatmul.msk.bf16.gmra.mxu0 %vm501_vm2, %v9082_v6 }
  0x2d   :  { %7872 = vmatmul.msk.bf16.gmra.mxu0 %vm501_vm2, %v9083_v7 }
  0x3d   :  { %7873 = vmatmul.msk.bf16.gmra.mxu0 %vm501_vm2, %v9084_v8 }
  0x4d   :  { %7874 = vmatmul.msk.bf16.gmra.mxu0 %vm501_vm2, %v9085_v9 }
  0x5d   :  { %7875 = vmatmul.msk.bf16.gmra.mxu0 %vm501_vm2, %v9086_v10 }
  0x6d   :  { %7876 = vmatmul.msk.bf16.gmra.mxu0 %vm501_vm2, %v9087_v11 }
  0x7d   :  { %7877 = vmatmul.msk.bf16.gmra.mxu0 %vm501_vm2, %v9088_v12 }
  0x8a   :  { %v707_v15 = vpop.f32.mrf.mxu0 }
  0x8b   :  { %v708_v16 = vadd.f32 %v9564_v13, %v707_v15 }
  0x8d   :  { %7878 = vmatmul.msk.bf16.gmra.mxu0 %vm501_vm2, %v9089_v14  ;;  %v1022_v17 = vmax.f32 %v708_v16, 0.0  ;;  %v9094_v14 = vld [vmem:[%s12128_s0 + $0x68] sm:$0xff] }
  0x8f   :  { %v1148_v20 = vpack.c.bf16 %v1022_v17, %v1022_v17 }
  0x91   :  { %v1398_v23 = vunpack.c.l.b16 %v1148_v20 }
  0x92   :  { %v709_v18 = vpop.f32.mrf.mxu0 }
  0x93   :  { %v710_v19 = vadd.f32 %v9564_v13, %v709_v18 }
  0x95   :  { %v1023_v21 = vmax.f32 %v710_v19, 0.0 }
  0x97   :  { %v1149_v22 = vpack.c.bf16 %v1023_v21, %v1023_v21 }
  0x99   :  { %v1399_v24 = vunpack.c.l.b16 %v1149_v22 }
  0x9a   :  { %v712_v26 = vpop.f32.mrf.mxu0 }
  0x9b   :  { %v9575_v27 = vpack.c.b16 %v1399_v24, %v1398_v23  ;;  %v713_v28 = vadd.f32 %v9564_v13, %v712_v26 }
  0x9d   :  { %v1024_v29 = vmax.f32 %v713_v28, 0.0  ;;  %7879 = vmatmul.msk.bf16.gmra.mxu0 %vm501_vm2, %v9090_v25  ;;  %v9095_v28 = vld [vmem:[%s12128_s0 + $0x70] sm:$0xff] }
  0x9f   :  { %v1150_v30 = vpack.c.bf16 %v1024_v29, %v1024_v29 }
  0xa1   :  { %v1400_v31 = vunpack.c.l.b16 %v1150_v30 }
  0xa2   :  { %v714_v32 = vpop.f32.mrf.mxu0 }
  0xa3   :  { %v715_v33 = vadd.f32 %v9564_v13, %v714_v32  ;;  %v1586_v34 = vpack.c.b16 %v1400_v31, %v1399_v24 }
  0xa5   :  { %v1025_v35 = vmax.f32 %v715_v33, 0.0  ;;  %1648 = vrot.lane.b32.xlu0 %v1586_v34, %s9457_s27 }
  0xa7   :  { %v1151_v36 = vpack.c.bf16 %v1025_v35, %v1025_v35 }
  0xa9   :  { %v1401_v37 = vunpack.c.l.b16 %v1151_v36 }
  0xaa   :  { %v717_v39 = vpop.f32.mrf.mxu0 }
  0xab   :  { %v718_v40 = vadd.f32 %v9564_v13, %v717_v39  ;;  %v9585_v41 = vpack.c.b16 %v1401_v37, %v1400_v31 }
  0xad   :  { %v1026_v42 = vmax.f32 %v718_v40, 0.0  ;;  %7880 = vmatmul.msk.bf16.gmra.mxu0 %vm501_vm2, %v9091_v38  ;;  %1775 = vrot.lane.b32.xlu0 %v9585_v41, %s9458_s30  ;;  %v2213_v38 = vld [vmem:[%s12131_s3 + $0x8] sm:$0xf] }
  0xae   :  { %v2223_v40 = vunpack.c.l.b16 %v2213_v38  ;;  %v9098_v38 = vld [vmem:[%s12128_s0 + $0x88] sm:$0xff] }
  0xaf   :  { %v1152_v43 = vpack.c.bf16 %v1026_v42, %v1026_v42 }
  0xb1   :  { %v1402_v44 = vunpack.c.l.b16 %v1152_v43  ;;  %v2225_v43 = vpack.c.b16 %v2223_v40, %v2223_v40 }
  0xb2   :  { %v719_v45 = vpop.f32.mrf.mxu0 }
  0xb3   :  { %v720_v46 = vadd.f32 %v9564_v13, %v719_v45  ;;  %v1587_v47 = vpack.c.b16 %v1402_v44, %v1401_v37  ;;  %v2354_v45 = vsel %vm2352_vm3, %v2225_v43, 0 }
  0xb4   :  { %2362 = vmatpush.bf16.msra.mxu1 %v2354_v45 }
  0xb5   :  { %v1027_v48 = vmax.f32 %v720_v46, 0.0  ;;  %1650 = vrot.lane.b32.xlu1 %v1587_v47, %s9457_s27 }
  0xb7   :  { %v1153_v49 = vpack.c.bf16 %v1027_v48, %v1027_v48 }
  0xb9   :  { %v1403_v50 = vunpack.c.l.b16 %v1153_v49  ;;  %v9144_v49 = vld [vmem:[%s12131_s3] sm:$0xff] }
  0xba   :  { %v722_v52 = vpop.f32.mrf.mxu0  ;;  %2363 = vmatpush.bf16.msra.mxu1 %v9144_v49 }
  0xbb   :  { %v723_v53 = vadd.f32 %v9564_v13, %v722_v52  ;;  %v9596_v54 = vpack.c.b16 %v1403_v50, %v1402_v44 }
  0xbd   :  { %v1028_v55 = vmax.f32 %v723_v53, 0.0  ;;  %7881 = vmatmul.msk.bf16.gmra.mxu0 %vm501_vm2, %v9092_v51  ;;  %1777 = vrot.lane.b32.xlu1 %v9596_v54, %s9458_s30 }
  0xbf   :  { %v1154_v56 = vpack.c.bf16 %v1028_v55, %v1028_v55 }
  0xc1   :  { %v1404_v57 = vunpack.c.l.b16 %v1154_v56 }
  0xc2   :  { %v724_v58 = vpop.f32.mrf.mxu0 }
  0xc3   :  { %v725_v59 = vadd.f32 %v9564_v13, %v724_v58  ;;  %v1588_v60 = vpack.c.b16 %v1404_v57, %v1403_v50 }
  0xc5   :  { %v1029_v61 = vmax.f32 %v725_v59, 0.0  ;;  %1652 = vrot.lane.b32.xlu2 %v1588_v60, %s9457_s27 }
  0xc7   :  { %v1155_v62 = vpack.c.bf16 %v1029_v61, %v1029_v61 }
  0xc9   :  { %v1405_v63 = vunpack.c.l.b16 %v1155_v62 }
  0xca   :  { %v727_v1 = vpop.f32.mrf.mxu0 }
  0xcb   :  { %v728_v2 = vadd.f32 %v9564_v13, %v727_v1  ;;  %v9607_v3 = vpack.c.b16 %v1405_v63, %v1404_v57  ;;  %v9096_v1 = vld [vmem:[%s12128_s0 + $0x78] sm:$0xff] }
  0xcd   :  { %v1030_v4 = vmax.f32 %v728_v2, 0.0  ;;  %7882 = vmatmul.msk.bf16.gmra.mxu0 %vm501_vm2, %v9093_v0  ;;  %1779 = vrot.lane.b32.xlu2 %v9607_v3, %s9458_s30 }
  0xcf   :  { %v1156_v5 = vpack.c.bf16 %v1030_v4, %v1030_v4 }
  0xd1   :  { %v1406_v6 = vunpack.c.l.b16 %v1156_v5 }
  0xd2   :  { %v729_v7 = vpop.f32.mrf.mxu0 }
  0xd3   :  { %v730_v8 = vadd.f32 %v9564_v13, %v729_v7  ;;  %v1589_v9 = vpack.c.b16 %v1406_v6, %v1405_v63 }
  0xd5   :  { %v1031_v10 = vmax.f32 %v730_v8, 0.0  ;;  %1654 = vrot.lane.b32.xlu0 %v1589_v9, %s9457_s27 }
  0xd7   :  { %v1157_v11 = vpack.c.bf16 %v1031_v10, %v1031_v10 }
  0xd9   :  { %v1407_v12 = vunpack.c.l.b16 %v1157_v11 }
  0xda   :  { %v732_v15 = vpop.f32.mrf.mxu0 }
  0xdb   :  { %v733_v16 = vadd.f32 %v9564_v13, %v732_v15  ;;  %v9618_v17 = vpack.c.b16 %v1407_v12, %v1406_v6 }
  0xdd   :  { %v1032_v18 = vmax.f32 %v733_v16, 0.0  ;;  %7883 = vmatmul.msk.bf16.gmra.mxu0 %vm501_vm2, %v9094_v14  ;;  %1781 = vrot.lane.b32.xlu1 %v9618_v17, %s9458_s30 }
  0xdf   :  { %v1158_v19 = vpack.c.bf16 %v1032_v18, %v1032_v18 }
  0xe1   :  { %v1408_v20 = vunpack.c.l.b16 %v1158_v19 }
  0xe2   :  { %v734_v21 = vpop.f32.mrf.mxu0 }
  0xe3   :  { %v735_v22 = vadd.f32 %v9564_v13, %v734_v21  ;;  %v1590_v23 = vpack.c.b16 %v1408_v20, %v1407_v12 }
  0xe5   :  { %v1033_v24 = vmax.f32 %v735_v22, 0.0  ;;  %1656 = vrot.lane.b32.xlu2 %v1590_v23, %s9457_s27 }
  0xe7   :  { %v1159_v25 = vpack.c.bf16 %v1033_v24, %v1033_v24 }
  0xe9   :  { %v1409_v26 = vunpack.c.l.b16 %v1159_v25 }
  0xea   :  { %v737_v29 = vpop.f32.mrf.mxu0 }
  0xeb   :  { %v738_v30 = vadd.f32 %v9564_v13, %v737_v29  ;;  %v9629_v31 = vpack.c.b16 %v1409_v26, %v1408_v20  ;;  %v9097_v20 = vld [vmem:[%s12128_s0 + $0x80] sm:$0xff] }
  0xed   :  { %v1034_v32 = vmax.f32 %v738_v30, 0.0  ;;  %7884 = vmatmul.msk.bf16.gmra.mxu0 %vm501_vm2, %v9095_v28  ;;  %1783 = vrot.lane.b32.xlu0 %v9629_v31, %s9458_s30 }
  0xef   :  { %v1160_v33 = vpack.c.bf16 %v1034_v32, %v1034_v32 }
  0xf1   :  { %v1410_v34 = vunpack.c.l.b16 %v1160_v33 }
  0xf2   :  { %v739_v35 = vpop.f32.mrf.mxu0 }
  0xf3   :  { %v740_v36 = vadd.f32 %v9564_v13, %v739_v35  ;;  %v1591_v37 = vpack.c.b16 %v1410_v34, %v1409_v26 }
  0xf5   :  { %v1035_v39 = vmax.f32 %v740_v36, 0.0  ;;  %1658 = vrot.lane.b32.xlu1 %v1591_v37, %s9457_s27 }
  0xf7   :  { %v1161_v42 = vpack.c.bf16 %v1035_v39, %v1035_v39 }
  0xf9   :  { %v1411_v44 = vunpack.c.l.b16 %v1161_v42 }
  0xfa   :  { %v742_v46 = vpop.f32.mrf.mxu0 }
  0xfb   :  { %v743_v47 = vadd.f32 %v9564_v13, %v742_v46  ;;  %v9640_v48 = vpack.c.b16 %v1411_v44, %v1410_v34 }
  0xfd   :  { %v1036_v50 = vmax.f32 %v743_v47, 0.0  ;;  %1785 = vrot.lane.b32.xlu2 %v9640_v48, %s9458_s30  ;;  %7885 = vmatmul.msk.bf16.gmra.mxu0 %vm501_vm2, %v9096_v1 }
  0xff   :  { %v1162_v51 = vpack.c.bf16 %v1036_v50, %v1036_v50 }
 0x101   :  { %v1412_v52 = vunpack.c.l.b16 %v1162_v51 }
 0x102   :  { %v744_v53 = vpop.f32.mrf.mxu0 }
 0x103   :  { %v745_v55 = vadd.f32 %v9564_v13, %v744_v53  ;;  %v1592_v56 = vpack.c.b16 %v1412_v52, %v1411_v44 }
 0x105   :  { %v1037_v57 = vmax.f32 %v745_v55, 0.0  ;;  %1660 = vrot.lane.b32.xlu0 %v1592_v56, %s9457_s27 }
 0x107   :  { %v1163_v58 = vpack.c.bf16 %v1037_v57, %v1037_v57  ;;  %v9099_v57 = vld [vmem:[%s12128_s0 + $0x90] sm:$0xff] }
 0x109   :  { %v1413_v59 = vunpack.c.l.b16 %v1163_v58 }
 0x10a   :  { %v747_v60 = vpop.f32.mrf.mxu0 }
 0x10b   :  { %v748_v61 = vadd.f32 %v9564_v13, %v747_v60  ;;  %v9650_v62 = vpack.c.b16 %v1413_v59, %v1412_v52 }
 0x10d   :  { %v1038_v63 = vmax.f32 %v748_v61, 0.0  ;;  %1787 = vrot.lane.b32.xlu1 %v9650_v62, %s9458_s30  ;;  %7886 = vmatmul.msk.bf16.gmra.mxu0 %vm501_vm2, %v9097_v20 }
 0x10f   :  { %v1164_v0 = vpack.c.bf16 %v1038_v63, %v1038_v63 }
 0x111   :  { %v1414_v2 = vunpack.c.l.b16 %v1164_v0 }
 0x112   :  { %v749_v4 = vpop.f32.mrf.mxu0 }
 0x113   :  { %v750_v5 = vadd.f32 %v9564_v13, %v749_v4  ;;  %v1593_v6 = vpack.c.b16 %v1414_v2, %v1413_v59 }
 0x115   :  { %v1039_v7 = vmax.f32 %v750_v5, 0.0  ;;  %1662 = vrot.lane.b32.xlu2 %v1593_v6, %s9457_s27 }
 0x117   :  { %v1165_v8 = vpack.c.bf16 %v1039_v7, %v1039_v7  ;;  %v1649_v9 = vpop.permute.xlu0 %1648 }
 0x118   :  { %v1902_v16 = vsel %vm1899_vm4, %v9575_v27, %v1649_v9 }
 0x119   :  { %v1415_v10 = vunpack.c.l.b16 %v1165_v8 }
 0x11a   :  { %v752_v11 = vpop.f32.mrf.mxu0 }
 0x11b   :  { %v753_v12 = vadd.f32 %v9564_v13, %v752_v11  ;;  %v9661_v14 = vpack.c.b16 %v1415_v10, %v1414_v2  ;;  %v9100_v11 = vld [vmem:[%s12128_s0 + $0x98] sm:$0xff] }
 0x11d   :  { %v1040_v15 = vmax.f32 %v753_v12, 0.0  ;;  %1789 = vrot.lane.b32.xlu0 %v9661_v14, %s9458_s30  ;;  %7887 = vmatmul.msk.bf16.gmra.mxu0 %vm501_vm2, %v9098_v38 }
 0x11f   :  { %v1166_v18 = vpack.c.bf16 %v1040_v15, %v1040_v15  ;;  %v1776_v19 = vpop.permute.xlu0 %1775  ;;  %v1653_v43 = vpop.permute.xlu2 %1652 }
 0x120   :  { %v2088_v21 = vsel %vm2086_vm5, %v1902_v16, %v1776_v19  ;;  %v1908_v55 = vsel %vm1899_vm4, %v9596_v54, %v1653_v43 }
 0x121   :  { %v1416_v22 = vunpack.c.l.b16 %v1166_v18  ;;  %7937 = vmatmul.msk.bf16.vlgmr.msra.gmra.mxu1 %vm2227_vm6, %v2088_v21 }
 0x122   :  { %v754_v23 = vpop.f32.mrf.mxu0 }
 0x123   :  { %v755_v24 = vadd.f32 %v9564_v13, %v754_v23  ;;  %v1594_v25 = vpack.c.b16 %v1416_v22, %v1415_v10 }
 0x125   :  { %v1041_v26 = vmax.f32 %v755_v24, 0.0  ;;  %1664 = vrot.lane.b32.xlu1 %v1594_v25, %s9457_s27 }
 0x127   :  { %v1167_v27 = vpack.c.bf16 %v1041_v26, %v1041_v26  ;;  %v1651_v28 = vpop.permute.xlu1 %1650  ;;  %v1780_v52 = vpop.permute.xlu2 %1779 }
 0x128   :  { %v1905_v35 = vsel %vm1899_vm4, %v9585_v41, %v1651_v28  ;;  %v2092_v58 = vsel %vm2086_vm5, %v1908_v55, %v1780_v52 }
 0x129   :  { %v1417_v29 = vunpack.c.l.b16 %v1167_v27 }
 0x12a   :  { %v757_v30 = vpop.f32.mrf.mxu0 }
 0x12b   :  { %v758_v32 = vadd.f32 %v9564_v13, %v757_v30  ;;  %v9676_v33 = vpack.c.b16 %v1417_v29, %v1416_v22 }
 0x12d   :  { %v1042_v34 = vmax.f32 %v758_v32, 0.0  ;;  %1791 = vrot.lane.b32.xlu2 %v9676_v33, %s9458_s30  ;;  %7888 = vmatmul.msk.bf16.gmra.mxu0 %vm501_vm2, %v9099_v57 }
 0x12f   :  { %v1168_v36 = vpack.c.bf16 %v1042_v34, %v1042_v34  ;;  %v1778_v37 = vpop.permute.xlu1 %1777  ;;  %v9101_v34 = vld [vmem:[%s12128_s0 + $0xa0] sm:$0xff] }
 0x130   :  { %v2090_v39 = vsel %vm2086_vm5, %v1905_v35, %v1778_v37 }
 0x131   :  { %v1418_v40 = vunpack.c.l.b16 %v1168_v36  ;;  %7938 = vmatmul.msk.bf16.gmra.mxu1 %vm2227_vm6, %v2090_v39 }
 0x132   :  { %v759_v42 = vpop.f32.mrf.mxu0 }
 0x133   :  { %v760_v44 = vadd.f32 %v9564_v13, %v759_v42  ;;  %v1595_v45 = vpack.c.b16 %v1418_v40, %v1417_v29 }
 0x135   :  { %v1043_v46 = vmax.f32 %v760_v44, 0.0  ;;  %1666 = vrot.lane.b32.xlu0 %v1595_v45, %s9457_s27 }
 0x137   :  { %v1169_v41 = vpack.c.bf16 %v1043_v46, %v1043_v46 }
 0x139   :  { %v1419_v47 = vunpack.c.l.b16 %v1169_v41 }
 0x13a   :  { %v762_v49 = vpop.f32.mrf.mxu0 }
 0x13b   :  { %v763_v50 = vadd.f32 %v9564_v13, %v762_v49  ;;  %v9691_v51 = vpack.c.b16 %v1419_v47, %v1418_v40 }
 0x13d   :  { %v1044_v53 = vmax.f32 %v763_v50, 0.0  ;;  %1793 = vrot.lane.b32.xlu1 %v9691_v51, %s9458_s30  ;;  %7889 = vmatmul.msk.bf16.gmra.mxu0 %vm501_vm2, %v9100_v11 }
 0x13f   :  { %v1170_v56 = vpack.c.bf16 %v1044_v53, %v1044_v53  ;;  %v1657_v25 = vpop.permute.xlu2 %1656 }
 0x140   :  { %v1914_v27 = vsel %vm1899_vm4, %v9618_v17, %v1657_v25 }
 0x141   :  { %v1420_v59 = vunpack.c.l.b16 %v1170_v56  ;;  %7939 = vmatmul.msk.bf16.gmra.mxu1 %vm2227_vm6, %v2092_v58  ;;  %v9102_v56 = vld [vmem:[%s12128_s0 + $0xa8] sm:$0xff] }
 0x142   :  { %v764_v60 = vpop.f32.mrf.mxu0 }
 0x143   :  { %v765_v61 = vadd.f32 %v9564_v13, %v764_v60  ;;  %v1596_v63 = vpack.c.b16 %v1420_v59, %v1419_v47 }
 0x145   :  { %v1045_v0 = vmax.f32 %v765_v61, 0.0  ;;  %1668 = vrot.lane.b32.xlu2 %v1596_v63, %s9457_s27 }
 0x147   :  { %v1171_v54 = vpack.c.bf16 %v1045_v0, %v1045_v0  ;;  %v1655_v6 = vpop.permute.xlu0 %1654 }
 0x148   :  { %v1911_v8 = vsel %vm1899_vm4, %v9607_v3, %v1655_v6 }
 0x149   :  { %v1421_v1 = vunpack.c.l.b16 %v1171_v54 }
 0x14a   :  { %v767_v2 = vpop.f32.mrf.mxu0 }
 0x14b   :  { %v768_v4 = vadd.f32 %v9564_v13, %v767_v2  ;;  %v9706_v5 = vpack.c.b16 %v1421_v1, %v1420_v59 }
 0x14d   :  { %v1046_v7 = vmax.f32 %v768_v4, 0.0  ;;  %1795 = vrot.lane.b32.xlu0 %v9706_v5, %s9458_s30  ;;  %7890 = vmatmul.msk.bf16.gmra.mxu0 %vm501_vm2, %v9101_v34 }
 0x14f   :  { %v1172_v9 = vpack.c.bf16 %v1046_v7, %v1046_v7  ;;  %v1782_v10 = vpop.permute.xlu1 %1781 }
 0x150   :  { %v2094_v12 = vsel %vm2086_vm5, %v1911_v8, %v1782_v10  ;;  %v9104_v8 = vld [vmem:[%s12128_s0 + $0xb8] sm:$0xff] }
 0x151   :  { %v1422_v15 = vunpack.c.l.b16 %v1172_v9  ;;  %7940 = vmatmul.msk.bf16.gmra.mxu1 %vm2227_vm6, %v2094_v12 }
 0x152   :  { %v769_v16 = vpop.f32.mrf.mxu0 }
 0x153   :  { %v770_v18 = vadd.f32 %v9564_v13, %v769_v16  ;;  %v1597_v19 = vpack.c.b16 %v1422_v15, %v1421_v1 }
 0x155   :  { %v1047_v20 = vmax.f32 %v770_v18, 0.0  ;;  %1670 = vrot.lane.b32.xlu1 %v1597_v19, %s9457_s27 }
 0x157   :  { %v1173_v3 = vpack.c.bf16 %v1047_v20, %v1047_v20  ;;  %v1786_v41 = vpop.permute.xlu2 %1785 }
 0x159   :  { %v1423_v21 = vunpack.c.l.b16 %v1173_v3 }
 0x15a   :  { %v772_v22 = vpop.f32.mrf.mxu0 }
 0x15b   :  { %v773_v23 = vadd.f32 %v9564_v13, %v772_v22  ;;  %v9721_v24 = vpack.c.b16 %v1423_v21, %v1422_v15 }
 0x15d   :  { %v1048_v26 = vmax.f32 %v773_v23, 0.0  ;;  %1797 = vrot.lane.b32.xlu2 %v9721_v24, %s9458_s30  ;;  %7891 = vmatmul.msk.bf16.gmra.mxu0 %vm501_vm2, %v9102_v56 }
 0x15f   :  { %v1174_v28 = vpack.c.bf16 %v1048_v26, %v1048_v26  ;;  %v1784_v29 = vpop.permute.xlu0 %1783 }
 0x160   :  { %v2096_v30 = vsel %vm2086_vm5, %v1914_v27, %v1784_v29 }
 0x161   :  { %v1424_v32 = vunpack.c.l.b16 %v1174_v28  ;;  %7941 = vmatmul.msk.bf16.gmra.mxu1 %vm2227_vm6, %v2096_v30  ;;  %v9105_v30 = vld [vmem:[%s12128_s0 + $0xc0] sm:$0xff] }
 0x162   :  { %v774_v35 = vpop.f32.mrf.mxu0 }
 0x163   :  { %v775_v36 = vadd.f32 %v9564_v13, %v774_v35  ;;  %v1598_v37 = vpack.c.b16 %v1424_v32, %v1423_v21 }
 0x165   :  { %v1049_v38 = vmax.f32 %v775_v36, 0.0  ;;  %1672 = vrot.lane.b32.xlu0 %v1598_v37, %s9457_s27 }
 0x167   :  { %v1175_v17 = vpack.c.bf16 %v1049_v38, %v1049_v38  ;;  %v1659_v40 = vpop.permute.xlu1 %1658 }
 0x168   :  { %v1917_v45 = vsel %vm1899_vm4, %v9629_v31, %v1659_v40 }
 0x169   :  { %v1425_v39 = vunpack.c.l.b16 %v1175_v17  ;;  %v2098_v49 = vsel %vm2086_vm5, %v1917_v45, %v1786_v41 }
 0x16a   :  { %v777_v42 = vpop.f32.mrf.mxu0 }
 0x16b   :  { %v778_v43 = vadd.f32 %v9564_v13, %v777_v42  ;;  %v9736_v44 = vpack.c.b16 %v1425_v39, %v1424_v32 }
 0x16d   :  { %v1050_v46 = vmax.f32 %v778_v43, 0.0  ;;  %1799 = vrot.lane.b32.xlu1 %v9736_v44, %s9458_s30 }
 0x16f   :  { %v9742_v47 = vpack.c.bf16 %v1050_v46, %v1050_v46  ;;  %v1663_v59 = vpop.permute.xlu2 %1662 }
 0x170   :  { %v1923_v61 = vsel %vm1899_vm4, %v9650_v62, %v1663_v59  ;;  %v9771_v62 = vld [vmem:[%s12132_s4] ss:$0 sm:$0xff] }
 0x171   :  { %v1426_v50 = vunpack.c.l.b16 %v9742_v47  ;;  %7942 = vmatmul.msk.bf16.gmra.mxu1 %vm2227_vm6, %v2098_v49 }
 0x172   :  { %v779_v58 = vpop.f32.mrf.mxu0 }
 0x173   :  { %v1599_v52 = vpack.c.b16 %v1426_v50, %v1425_v39  ;;  %v780_v28 = vadd.f32 %v9564_v13, %v779_v58 }
 0x175   :  { %1674 = vrot.lane.b32.xlu1 %v1599_v52, %s9457_s27 }
 0x177   :  { %v1661_v53 = vpop.permute.xlu0 %1660 }
 0x178   :  { %v1920_v31 = vsel %vm1899_vm4, %v9640_v48, %v1661_v53  ;;  %v9103_v48 = vld [vmem:[%s12128_s0 + $0xb0] sm:$0xff] }
 0x179   :  { %7892 = vmatmul.msk.bf16.gmra.mxu0 %vm501_vm2, %v9103_v48 }
 0x17a   :  { %v782_v60 = vpop.f32.mrf.mxu0 }
 0x17b   :  { %v783_v40 = vadd.f32 %v9564_v13, %v782_v60 }
 0x17d   :  { %v1052_v41 = vmax.f32 %v783_v40, 0.0 }
 0x17f   :  { %v1788_v55 = vpop.permute.xlu1 %1787  ;;  %v1178_v58 = vpack.c.bf16 %v1052_v41, %v1052_v41 }
 0x180   :  { %v2100_v57 = vsel %vm2086_vm5, %v1920_v31, %v1788_v55 }
 0x181   :  { %7943 = vmatmul.msk.bf16.gmra.mxu1 %vm2227_vm6, %v2100_v57  ;;  %v1428_v47 = vunpack.c.l.b16 %v1178_v58 }
 0x182   :  { %v784_v54 = vpop.f32.mrf.mxu0 }
 0x183   :  { %v785_v59 = vadd.f32 %v9564_v13, %v784_v54 }
 0x187   :  { %v1792_v2 = vpop.permute.xlu2 %1791 }
 0x189   :  { %7893 = vmatmul.msk.bf16.gmra.mxu0 %vm501_vm2, %v9104_v8 }
 0x18a   :  { %v9773_v7 = vpop.f32.mrf.mxu0 }
 0x18b   :  { %v788_v8 = vadd.f32 %v9564_v13, %v9773_v7 }
 0x18f   :  { %v1790_v63 = vpop.permute.xlu0 %1789 }
 0x190   :  { %v2102_v0 = vsel %vm2086_vm5, %v1923_v61, %v1790_v63  ;;  %v9106_v63 = vld [vmem:[%s12128_s0 + $0xc8] sm:$0xff] }
 0x191   :  { %7944 = vmatmul.msk.bf16.gmra.mxu1 %vm2227_vm6, %v2102_v0 }
 0x192   :  { %v9783_v18 = vpop.f32.mrf.mxu0 }
 0x197   :  { %v1665_v1 = vpop.permute.xlu1 %1664 }
 0x198   :  { %v1926_v4 = vsel %vm1899_vm4, %v9661_v14, %v1665_v1 }
 0x199   :  { %v2104_v9 = vsel %vm2086_vm5, %v1926_v4, %v1792_v2  ;;  %7894 = vmatmul.msk.bf16.gmra.mxu0 %vm501_vm2, %v9105_v30 }
 0x19a   :  { %v9797_v35 = vpop.f32.mrf.mxu0 }
 0x19e   :  { %v2365_v6 = vpop.f32.mrf.mxu1 }
 0x19f   :  { %v2366_v10 = vadd.f32 %v9771_v62, %v2365_v6  ;;  %v1669_v45 = vpop.permute.xlu2 %1668 }
 0x1a0   :  { %v1932_v31 = vsel %vm1899_vm4, %v9691_v51, %v1669_v45 }
 0x1a1   :  { %7945 = vmatmul.msk.bf16.gmra.mxu1 %vm2227_vm6, %v2104_v9  ;;  %v2675_v14 = vmax.f32 %v2366_v10, 0.0 }
 0x1a2   :  { %v9802_v52 = vpop.f32.mrf.mxu0 }
 0x1a3   :  { %v2799_v15 = vpack.c.bf16 %v2675_v14, %v2675_v14 }
 0x1a5   :  { %v3045_v3 = vunpack.c.l.b16 %v2799_v15  ;;  %v1054_v15 = vmax.f32 %v788_v8, 0.0 }
 0x1a6   :  { %v2367_v11 = vpop.f32.mrf.mxu1 }
 0x1a7   :  { %v2368_v12 = vadd.f32 %v9771_v62, %v2367_v11  ;;  %v1667_v20 = vpop.permute.xlu0 %1666 }
 0x1a8   :  { %v1929_v25 = vsel %vm1899_vm4, %v9676_v33, %v1667_v20  ;;  %v1051_v33 = vmax.f32 %v780_v28, 0.0  ;;  %v9107_v28 = vld [vmem:[%s12128_s0 + $0xd0] sm:$0xff] }
 0x1a9   :  { %v2676_v16 = vmax.f32 %v2368_v12, 0.0  ;;  %7895 = vmatmul.msk.bf16.gmra.mxu0 %vm501_vm2, %v9106_v63 }
 0x1aa   :  { %v1177_v39 = vpack.c.bf16 %v1051_v33, %v1051_v33  ;;  %v9825_v4 = vpop.f32.mrf.mxu0  ;;  %v793_v33 = vadd.f32 %v9564_v13, %v9797_v35 }
 0x1ab   :  { %v2800_v19 = vpack.c.bf16 %v2676_v16, %v2676_v16  ;;  %v798_v8 = vadd.f32 %v9564_v13, %v9825_v4 }
 0x1ac   :  { %v1427_v46 = vunpack.c.l.b16 %v1177_v39 }
 0x1ad   :  { %v3046_v21 = vunpack.c.l.b16 %v2800_v19 }
 0x1ae   :  { %v2370_v22 = vpop.f32.mrf.mxu1  ;;  %v9813_v61 = vpack.c.b16 %v1427_v46, %v1426_v50  ;;  %v1053_v50 = vmax.f32 %v785_v59, 0.0  ;;  %v1600_v9 = vpack.c.b16 %v1428_v47, %v1427_v46 }
 0x1af   :  { %v9785_v23 = vpack.c.b16 %v3046_v21, %v3045_v3  ;;  %v2371_v26 = vadd.f32 %v9771_v62, %v2370_v22  ;;  %v1794_v27 = vpop.permute.xlu1 %1793 }
 0x1b0   :  { %v2106_v29 = vsel %vm2086_vm5, %v1929_v25, %v1794_v27  ;;  %v1179_v6 = vpack.c.bf16 %v1053_v50, %v1053_v50  ;;  %v1180_v25 = vpack.c.bf16 %v1054_v15, %v1054_v15 }
 0x1b1   :  { %v2677_v32 = vmax.f32 %v2371_v26, 0.0  ;;  %7946 = vmatmul.msk.bf16.gmra.mxu1 %vm2227_vm6, %v2106_v29 }
 0x1b2   :  { %v1429_v12 = vunpack.c.l.b16 %v1179_v6 }
 0x1b3   :  { %v2801_v34 = vpack.c.bf16 %v2677_v32, %v2677_v32  ;;  %v1430_v32 = vunpack.c.l.b16 %v1180_v25 }
 0x1b4   :  { %v9839_v27 = vpack.c.b16 %v1429_v12, %v1428_v47 }
 0x1b5   :  { %v3047_v36 = vunpack.c.l.b16 %v2801_v34  ;;  %v1601_v39 = vpack.c.b16 %v1430_v32, %v1429_v12 }
 0x1b6   :  { %v2372_v37 = vpop.f32.mrf.mxu1 }
 0x1b7   :  { %v2373_v38 = vadd.f32 %v9771_v62, %v2372_v37  ;;  %v3230_v17 = vpack.c.b16 %v3047_v36, %v3046_v21  ;;  %v1798_v20 = vpop.permute.xlu2 %1797  ;;  %v790_v21 = vadd.f32 %v9564_v13, %v9783_v18 }
 0x1b9   :  { %v2678_v42 = vmax.f32 %v2373_v38, 0.0  ;;  %3291 = vrot.lane.b32.xlu2 %v3230_v17, %s9458_s30  ;;  %7896 = vmatmul.msk.bf16.gmra.mxu0 %vm501_vm2, %v9107_v28  ;;  %v1055_v18 = vmax.f32 %v790_v21, 0.0 }
 0x1bb   :  { %v2802_v43 = vpack.c.bf16 %v2678_v42, %v2678_v42  ;;  %v1181_v37 = vpack.c.bf16 %v1055_v18, %v1055_v18  ;;  %v1056_v42 = vmax.f32 %v793_v33, 0.0 }
 0x1bd   :  { %v3048_v49 = vunpack.c.l.b16 %v2802_v43  ;;  %v1431_v43 = vunpack.c.l.b16 %v1181_v37 }
 0x1be   :  { %v2375_v53 = vpop.f32.mrf.mxu1 }
 0x1bf   :  { %v2376_v55 = vadd.f32 %v9771_v62, %v2375_v53  ;;  %v1796_v56 = vpop.permute.xlu0 %1795  ;;  %v9807_v57 = vpack.c.b16 %v3048_v49, %v3047_v36  ;;  %v1182_v53 = vpack.c.bf16 %v1056_v42, %v1056_v42  ;;  %v9858_v58 = vpack.c.b16 %v1431_v43, %v1430_v32 }
 0x1c0   :  { %v2108_v60 = vsel %vm2086_vm5, %v1932_v31, %v1796_v56 }
 0x1c1   :  { %v2679_v48 = vmax.f32 %v2376_v55, 0.0  ;;  %7947 = vmatmul.msk.bf16.gmra.mxu1 %vm2227_vm6, %v2108_v60  ;;  %3416 = vrot.lane.b32.xlu0 %v9807_v57, %s9459_s28  ;;  %v795_v60 = vadd.f32 %v9564_v13, %v9802_v52 }
 0x1c2   :  { %1801 = vrot.lane.b32.xlu2 %v9813_v61, %s9458_s30 }
 0x1c3   :  { %v2803_v51 = vpack.c.bf16 %v2679_v48, %v2679_v48  ;;  %v1057_v50 = vmax.f32 %v795_v60, 0.0 }
 0x1c5   :  { %v3049_v0 = vunpack.c.l.b16 %v2803_v51  ;;  %v1183_v6 = vpack.c.bf16 %v1057_v50, %v1057_v50 }
 0x1c6   :  { %v2377_v54 = vpop.f32.mrf.mxu1 }
 0x1c7   :  { %v2378_v1 = vadd.f32 %v9771_v62, %v2377_v54  ;;  %v3231_v2 = vpack.c.b16 %v3049_v0, %v3048_v49  ;;  %v1671_v14 = vpop.permute.xlu1 %1670 }
 0x1c8   :  { %v1935_v19 = vsel %vm1899_vm4, %v9706_v5, %v1671_v14  ;;  %v799_v5 = vpop.f32.mrf.mxu0  ;;  %v1433_v14 = vunpack.c.l.b16 %v1183_v6 }
 0x1c9   :  { %v2680_v10 = vmax.f32 %v2378_v1, 0.0  ;;  %3293 = vrot.lane.b32.xlu0 %v3231_v2, %s9458_s30  ;;  %v2110_v26 = vsel %vm2086_vm5, %v1935_v19, %v1798_v20  ;;  %v800_v19 = vadd.f32 %v9564_v13, %v799_v5 }
 0x1ca   :  { %1676 = vrot.lane.b32.xlu2 %v1600_v9, %s9457_s27 }
 0x1cb   :  { %v2804_v11 = vpack.c.bf16 %v2680_v10, %v2680_v10  ;;  %v1059_v25 = vmax.f32 %v800_v19, 0.0 }
 0x1cd   :  { %v3050_v16 = vunpack.c.l.b16 %v2804_v11  ;;  %v1058_v11 = vmax.f32 %v798_v8, 0.0 }
 0x1ce   :  { %v2380_v3 = vpop.f32.mrf.mxu1 }
 0x1cf   :  { %v2381_v7 = vadd.f32 %v9771_v62, %v2380_v3  ;;  %v9836_v22 = vpack.c.b16 %v3050_v16, %v3049_v0  ;;  %v1184_v21 = vpack.c.bf16 %v1058_v11, %v1058_v11  ;;  %v9146_v11 = vld [vmem:[%s12133_s5 + $0x8] sm:$0xff] }
 0x1d0   :  { %v802_v46 = vpop.f32.mrf.mxu0 }
 0x1d1   :  { %v2681_v29 = vmax.f32 %v2381_v7, 0.0  ;;  %7948 = vmatmul.msk.bf16.gmra.mxu1 %vm2227_vm6, %v2110_v26  ;;  %3418 = vrot.lane.b32.xlu1 %v9836_v22, %s9459_s28  ;;  %v1434_v28 = vunpack.c.l.b16 %v1184_v21  ;;  %v803_v32 = vadd.f32 %v9564_v13, %v802_v46  ;;  %v9145_v21 = vld [vmem:[%s12133_s5] sm:$0xff] }
 0x1d2   :  { %1803 = vrot.lane.b32.xlu0 %v9839_v27, %s9458_s30 }
 0x1d3   :  { %v2805_v30 = vpack.c.bf16 %v2681_v29, %v2681_v29 }
 0x1d5   :  { %v3051_v34 = vunpack.c.l.b16 %v2805_v30  ;;  %v1185_v30 = vpack.c.bf16 %v1059_v25, %v1059_v25 }
 0x1d6   :  { %v2382_v36 = vpop.f32.mrf.mxu1 }
 0x1d7   :  { %v2383_v38 = vadd.f32 %v9771_v62, %v2382_v36  ;;  %v3232_v17 = vpack.c.b16 %v3051_v34, %v3050_v16  ;;  %v1673_v41 = vpop.permute.xlu0 %1672  ;;  %v1603_v36 = vpack.c.b16 %v1434_v28, %v1433_v14 }
 0x1d8   :  { %v1938_v35 = vsel %vm1899_vm4, %v9721_v24, %v1673_v41  ;;  %v1432_v24 = vunpack.c.l.b16 %v1182_v53  ;;  %v804_v47 = vpop.f32.mrf.mxu0 }
 0x1d9   :  { %v2682_v40 = vmax.f32 %v2383_v38, 0.0  ;;  %3295 = vrot.lane.b32.xlu1 %v3232_v17, %s9458_s30  ;;  %v1435_v38 = vunpack.c.l.b16 %v1185_v30  ;;  %v1060_v17 = vmax.f32 %v803_v32, 0.0  ;;  %v805_v42 = vadd.f32 %v9564_v13, %v804_v47 }
 0x1da   :  { %1678 = vrot.lane.b32.xlu0 %v1601_v39, %s9457_s27  ;;  %v1602_v52 = vpack.c.b16 %v1432_v24, %v1431_v43  ;;  %v9879_v7 = vpack.c.b16 %v1433_v14, %v1432_v24 }
 0x1db   :  { %v2806_v45 = vpack.c.bf16 %v2682_v40, %v2682_v40  ;;  %v1186_v41 = vpack.c.bf16 %v1060_v17, %v1060_v17  ;;  %v9893_v53 = vpack.c.b16 %v1435_v38, %v1434_v28 }
 0x1dd   :  { %v3052_v49 = vunpack.c.l.b16 %v2806_v45 }
 0x1de   :  { %v2385_v31 = vpop.f32.mrf.mxu1 }
 0x1df   :  { %v2386_v55 = vadd.f32 %v9771_v62, %v2385_v31  ;;  %v1800_v56 = vpop.permute.xlu1 %1799  ;;  %v9860_v59 = vpack.c.b16 %v3052_v49, %v3051_v34  ;;  %v1061_v31 = vmax.f32 %v805_v42, 0.0 }
 0x1e0   :  { %v2112_v63 = vsel %vm2086_vm5, %v1938_v35, %v1800_v56  ;;  %v807_v15 = vpop.f32.mrf.mxu0 }
 0x1e1   :  { %v2683_v48 = vmax.f32 %v2386_v55, 0.0  ;;  %7949 = vmatmul.msk.bf16.gmra.mxu1 %vm2227_vm6, %v2112_v63  ;;  %1805 = vrot.lane.b32.xlu1 %v9858_v58, %s9458_s30  ;;  %v1436_v55 = vunpack.c.l.b16 %v1186_v41  ;;  %v1187_v60 = vpack.c.bf16 %v1061_v31, %v1061_v31  ;;  %v808_v24 = vadd.f32 %v9564_v13, %v807_v15 }
 0x1e2   :  { %3420 = vrot.lane.b32.xlu2 %v9860_v59, %s9459_s28 }
 0x1e3   :  { %v2807_v51 = vpack.c.bf16 %v2683_v48, %v2683_v48  ;;  %v1604_v50 = vpack.c.b16 %v1436_v55, %v1435_v38 }
 0x1e5   :  { %v3053_v0 = vunpack.c.l.b16 %v2807_v51 }
 0x1e6   :  { %v2387_v54 = vpop.f32.mrf.mxu1 }
 0x1e7   :  { %v2388_v1 = vadd.f32 %v9771_v62, %v2387_v54  ;;  %v3233_v2 = vpack.c.b16 %v3053_v0, %v3052_v49  ;;  %v1437_v54 = vunpack.c.l.b16 %v1187_v60  ;;  %v1675_v38 = vpop.permute.xlu1 %1674 }
 0x1e8   :  { %v809_v18 = vpop.f32.mrf.mxu0  ;;  %v1941_v42 = vsel %vm1899_vm4, %v9736_v44, %v1675_v38  ;;  %v9110_v38 = vld [vmem:[%s12128_s0 + $0xe8] sm:$0xff] }
 0x1e9   :  { %v2684_v9 = vmax.f32 %v2388_v1, 0.0  ;;  %1680 = vrot.lane.b32.xlu1 %v1602_v52, %s9457_s27  ;;  %v9147_v52 = vld [vmem:[%s12133_s5 + $0x10] sm:$0xff]  ;;  %v810_v8 = vadd.f32 %v9564_v13, %v809_v18  ;;  %v9910_v14 = vpack.c.b16 %v1437_v54, %v1436_v55 }
 0x1ea   :  { %3297 = vrot.lane.b32.xlu2 %v3233_v2, %s9458_s30  ;;  %v1062_v2 = vmax.f32 %v808_v24, 0.0  ;;  %4000 = vmatpush.bf16.msra.mxu2 %v9147_v52 }
 0x1eb   :  { %v2808_v10 = vpack.c.bf16 %v2684_v9, %v2684_v9  ;;  %v9108_v9 = vld [vmem:[%s12128_s0 + $0xd8] sm:$0xff]  ;;  %v1063_v13 = vmax.f32 %v810_v8, 0.0 }
 0x1ec   :  { %7897 = vmatmul.msk.bf16.gmra.mxu0 %vm501_vm2, %v9108_v9  ;;  %v1188_v15 = vpack.c.bf16 %v1062_v2, %v1062_v2 }
 0x1ed   :  { %v3054_v12 = vunpack.c.l.b16 %v2808_v10 }
 0x1ee   :  { %v2390_v16 = vpop.f32.mrf.mxu1  ;;  %4001 = vmatpush.bf16.msra.mxu2 %v9146_v11  ;;  %v1438_v25 = vunpack.c.l.b16 %v1188_v15 }
 0x1ef   :  { %v2391_v20 = vadd.f32 %v9771_v62, %v2390_v16  ;;  %v9877_v3 = vpack.c.b16 %v3054_v12, %v3053_v0 }
 0x1f0   :  { %v812_v45 = vpop.f32.mrf.mxu0 }
 0x1f1   :  { %v2685_v4 = vmax.f32 %v2391_v20, 0.0  ;;  %3422 = vrot.lane.b32.xlu0 %v9877_v3, %s9459_s28 }
 0x1f2   :  { %1807 = vrot.lane.b32.xlu2 %v9879_v7, %s9458_s30  ;;  %4002 = vmatpush.bf16.msra.mxu2 %v9145_v21 }
 0x1f3   :  { %v2809_v26 = vpack.c.bf16 %v2685_v4, %v2685_v4 }
 0x1f5   :  { %v3055_v29 = vunpack.c.l.b16 %v2809_v26 }
 0x1f6   :  { %v2392_v5 = vpop.f32.mrf.mxu1 }
 0x1f7   :  { %v2393_v34 = vadd.f32 %v9771_v62, %v2392_v5  ;;  %v3234_v33 = vpack.c.b16 %v3055_v29, %v3054_v12  ;;  %v9931_v5 = vld [vmem:[%s12130_s2] ss:$0 sm:$0xff] }
 0x1f8   :  { %v814_v0 = vpop.f32.mrf.mxu0  ;;  %v813_v30 = vadd.f32 %v9931_v5, %v812_v45 }
 0x1f9   :  { %v2686_v37 = vmax.f32 %v2393_v34, 0.0  ;;  %3299 = vrot.lane.b32.xlu0 %v3234_v33, %s9458_s30  ;;  %v1605_v33 = vpack.c.b16 %v1438_v25, %v1437_v54  ;;  %v815_v55 = vadd.f32 %v9931_v5, %v814_v0 }
 0x1fa   :  { %1682 = vrot.lane.b32.xlu2 %v1603_v36, %s9457_s27 }
 0x1fb   :  { %v2810_v39 = vpack.c.bf16 %v2686_v37, %v2686_v37  ;;  %v1065_v44 = vmax.f32 %v815_v55, 0.0 }
 0x1fd   :  { %v3056_v40 = vunpack.c.l.b16 %v2810_v39  ;;  %v1064_v39 = vmax.f32 %v813_v30, 0.0  ;;  %v1191_v0 = vpack.c.bf16 %v1065_v44, %v1065_v44 }
 0x1fe   :  { %v2395_v43 = vpop.f32.mrf.mxu1 }
 0x1ff   :  { %v2396_v46 = vadd.f32 %v9771_v62, %v2395_v43  ;;  %v9891_v49 = vpack.c.b16 %v3056_v40, %v3055_v29  ;;  %v1189_v29 = vpack.c.bf16 %v1063_v13, %v1063_v13  ;;  %v1441_v9 = vunpack.c.l.b16 %v1191_v0 }
 0x200   :  { %v817_v4 = vpop.f32.mrf.mxu0 }
 0x201   :  { %v2687_v35 = vmax.f32 %v2396_v46, 0.0  ;;  %3424 = vrot.lane.b32.xlu1 %v9891_v49, %s9459_s28  ;;  %1809 = vrot.lane.b32.xlu0 %v9893_v53, %s9458_s30  ;;  %v1439_v37 = vunpack.c.l.b16 %v1189_v29 }
 0x203   :  { %v2811_v56 = vpack.c.bf16 %v2687_v35, %v2687_v35  ;;  %v9939_v41 = vpack.c.b16 %v1439_v37, %v1438_v25  ;;  %v1190_v35 = vpack.c.bf16 %v1064_v39, %v1064_v39 }
 0x205   :  { %v3057_v63 = vunpack.c.l.b16 %v2811_v56 }
 0x206   :  { %v2397_v48 = vpop.f32.mrf.mxu1 }
 0x207   :  { %v2398_v51 = vadd.f32 %v9771_v62, %v2397_v48  ;;  %v3235_v47 = vpack.c.b16 %v3057_v63, %v3056_v40  ;;  %v1440_v48 = vunpack.c.l.b16 %v1190_v35 }
 0x208   :  { %v819_v45 = vpop.f32.mrf.mxu0 }
 0x209   :  { %v2688_v1 = vmax.f32 %v2398_v51, 0.0  ;;  %3301 = vrot.lane.b32.xlu1 %v3235_v47, %s9458_s30  ;;  %1684 = vrot.lane.b32.xlu0 %v1604_v50, %s9457_s27  ;;  %v9109_v47 = vld [vmem:[%s12128_s0 + $0xe0] sm:$0xff]  ;;  %v1606_v54 = vpack.c.b16 %v1440_v48, %v1439_v37  ;;  %v9959_v13 = vpack.c.b16 %v1441_v9, %v1440_v48 }
 0x20a   :  { %7898 = vmatmul.msk.bf16.gmra.mxu0 %vm501_vm2, %v9109_v47 }
 0x20b   :  { %v2812_v6 = vpack.c.bf16 %v2688_v1, %v2688_v1  ;;  %v818_v1 = vadd.f32 %v9931_v5, %v817_v4 }
 0x20d   :  { %v3058_v10 = vunpack.c.l.b16 %v2812_v6  ;;  %v1066_v11 = vmax.f32 %v818_v1, 0.0 }
 0x20e   :  { %v2400_v12 = vpop.f32.mrf.mxu1 }
 0x20f   :  { %v2401_v16 = vadd.f32 %v9771_v62, %v2400_v12  ;;  %v9917_v19 = vpack.c.b16 %v3058_v10, %v3057_v63 }
 0x210   :  { %v822_v2 = vpop.f32.mrf.mxu0 }
 0x211   :  { %v2689_v20 = vmax.f32 %v2401_v16, 0.0  ;;  %1811 = vrot.lane.b32.xlu1 %v9910_v14, %s9458_s30  ;;  %3426 = vrot.lane.b32.xlu2 %v9917_v19, %s9459_s28  ;;  %v1192_v16 = vpack.c.bf16 %v1066_v11, %v1066_v11  ;;  %v823_v37 = vadd.f32 %v9931_v5, %v822_v2 }
 0x213   :  { %v2813_v26 = vpack.c.bf16 %v2689_v20, %v2689_v20  ;;  %v9926_v28 = vpop.permute.xlu2 %3291  ;;  %v820_v20 = vadd.f32 %v9931_v5, %v819_v45  ;;  %v1442_v29 = vunpack.c.l.b16 %v1192_v16 }
 0x215   :  { %v3059_v18 = vunpack.c.l.b16 %v2813_v26  ;;  %v1067_v30 = vmax.f32 %v820_v20, 0.0 }
 0x216   :  { %v2402_v32 = vpop.f32.mrf.mxu1 }
 0x217   :  { %v2403_v34 = vadd.f32 %v9771_v62, %v2402_v32  ;;  %v3236_v36 = vpack.c.b16 %v3059_v18, %v3058_v10  ;;  %v3540_v32 = vsel %vm2086_vm5, %v9785_v23, %v9926_v28  ;;  %v1193_v39 = vpack.c.bf16 %v1067_v30, %v1067_v30 }
 0x218   :  { %v824_v26 = vpop.f32.mrf.mxu0 }
 0x219   :  { %v2690_v17 = vmax.f32 %v2403_v34, 0.0  ;;  %1686 = vrot.lane.b32.xlu1 %v1605_v33, %s9457_s27  ;;  %3303 = vrot.lane.b32.xlu2 %v3236_v36, %s9458_s30  ;;  %v1443_v45 = vunpack.c.l.b16 %v1193_v39 }
 0x21a   :  { %7899 = vmatmul.msk.bf16.gmra.mxu0 %vm501_vm2, %v9110_v38 }
 0x21b   :  { %v2814_v40 = vpack.c.bf16 %v2690_v17, %v2690_v17  ;;  %v9982_v48 = vpack.c.b16 %v1443_v45, %v1442_v29 }
 0x21c   :  { %v1802_v43 = vpop.permute.xlu2 %1801 }
 0x21d   :  { %v3060_v46 = vunpack.c.l.b16 %v2814_v40  ;;  %v2114_v31 = vsel %vm2086_vm5, %v1941_v42, %v1802_v43  ;;  %v1607_v40 = vpack.c.b16 %v1442_v29, %v1441_v9  ;;  %v1068_v43 = vmax.f32 %v823_v37, 0.0 }
 0x21e   :  { %7950 = vmatmul.msk.bf16.gmra.mxu1 %vm2227_vm6, %v2114_v31  ;;  %v2405_v56 = vpop.f32.mrf.mxu1 }
 0x21f   :  { %v2406_v60 = vadd.f32 %v9771_v62, %v2405_v56  ;;  %v9945_v63 = vpack.c.b16 %v3060_v46, %v3059_v18  ;;  %v1194_v56 = vpack.c.bf16 %v1068_v43, %v1068_v43 }
 0x220   :  { %v827_v31 = vpop.f32.mrf.mxu0 }
 0x221   :  { %v2691_v24 = vmax.f32 %v2406_v60, 0.0  ;;  %3428 = vrot.lane.b32.xlu0 %v9945_v63, %s9459_s28  ;;  %1813 = vrot.lane.b32.xlu2 %v9939_v41, %s9458_s30 }
 0x223   :  { %v2815_v51 = vpack.c.bf16 %v2691_v24, %v2691_v24  ;;  %v825_v24 = vadd.f32 %v9931_v5, %v824_v26 }
 0x224   :  { %v1677_v0 = vpop.permute.xlu2 %1676 }
 0x225   :  { %v3061_v50 = vunpack.c.l.b16 %v2815_v51  ;;  %v1069_v1 = vmax.f32 %v825_v24, 0.0 }
 0x226   :  { %v2407_v52 = vpop.f32.mrf.mxu1 }
 0x227   :  { %v2408_v6 = vadd.f32 %v9771_v62, %v2407_v52  ;;  %v3237_v8 = vpack.c.b16 %v3061_v50, %v3060_v46 }
 0x229   :  { %v2692_v10 = vmax.f32 %v2408_v6, 0.0  ;;  %3305 = vrot.lane.b32.xlu0 %v3237_v8, %s9458_s30  ;;  %1688 = vrot.lane.b32.xlu2 %v1606_v54, %s9457_s27  ;;  %v1944_v8 = vsel %vm1899_vm4, %v9813_v61, %v1677_v0 }
 0x22b   :  { %v2816_v12 = vpack.c.bf16 %v2692_v10, %v2692_v10 }
 0x22d   :  { %v3062_v15 = vunpack.c.l.b16 %v2816_v12  ;;  %v829_v12 = vpop.f32.mrf.mxu0 }
 0x22e   :  { %v2410_v21 = vpop.f32.mrf.mxu1  ;;  %v830_v38 = vadd.f32 %v9931_v5, %v829_v12 }
 0x22f   :  { %v2411_v4 = vadd.f32 %v9771_v62, %v2410_v21  ;;  %v9963_v25 = vpack.c.b16 %v3062_v15, %v3061_v50  ;;  %v1444_v50 = vunpack.c.l.b16 %v1194_v56  ;;  %v828_v21 = vadd.f32 %v9931_v5, %v827_v31 }
 0x230   :  { %v1071_v31 = vmax.f32 %v830_v38, 0.0 }
 0x231   :  { %v2693_v18 = vmax.f32 %v2411_v4, 0.0  ;;  %3430 = vrot.lane.b32.xlu1 %v9963_v25, %s9459_s28  ;;  %1815 = vrot.lane.b32.xlu0 %v9959_v13, %s9458_s30  ;;  %v1608_v11 = vpack.c.b16 %v1444_v50, %v1443_v45  ;;  %v1070_v30 = vmax.f32 %v828_v21, 0.0 }
 0x233   :  { %v2817_v34 = vpack.c.bf16 %v2693_v18, %v2693_v18  ;;  %v3417_v33 = vpop.permute.xlu0 %3416 }
 0x234   :  { %v3723_v36 = vsel %vm3721_vm7, %v3540_v32, %v3417_v33 }
 0x235   :  { %v3063_v17 = vunpack.c.l.b16 %v2817_v34  ;;  %8011 = vmatmul.msk.bf16.vlgmr.msra.gmra.mxu2 %vm3872_vm8, %v3723_v36  ;;  %v1196_v36 = vpack.c.bf16 %v1070_v30, %v1070_v30  ;;  %v832_v39 = vpop.f32.mrf.mxu0 }
 0x236   :  { %v2412_v42 = vpop.f32.mrf.mxu1 }
 0x237   :  { %v2413_v23 = vadd.f32 %v9771_v62, %v2412_v42  ;;  %v3238_v28 = vpack.c.b16 %v3063_v17, %v3062_v15  ;;  %v9111_v15 = vld [vmem:[%s12128_s0 + $0xf0] sm:$0xff]  ;;  %v1446_v45 = vunpack.c.l.b16 %v1196_v36 }
 0x238   :  { %7900 = vmatmul.msk.bf16.gmra.mxu0 %vm501_vm2, %v9111_v15 }
 0x239   :  { %v2694_v46 = vmax.f32 %v2413_v23, 0.0  ;;  %3307 = vrot.lane.b32.xlu1 %v3238_v28, %s9458_s30  ;;  %1690 = vrot.lane.b32.xlu0 %v1607_v40, %s9457_s27 }
 0x23b   :  { %v2818_v35 = vpack.c.bf16 %v2694_v46, %v2694_v46  ;;  %v3294_v55 = vpop.permute.xlu0 %3293 }
 0x23c   :  { %v3543_v52 = vsel %vm2086_vm5, %v9807_v57, %v3294_v55  ;;  %v1195_v57 = vpack.c.bf16 %v1069_v1, %v1069_v1  ;;  %v3421_v23 = vpop.permute.xlu2 %3420 }
 0x23d   :  { %v3064_v60 = vunpack.c.l.b16 %v2818_v35 }
 0x23e   :  { %v2415_v44 = vpop.f32.mrf.mxu1  ;;  %v1445_v29 = vunpack.c.l.b16 %v1195_v57 }
 0x23f   :  { %v2416_v51 = vadd.f32 %v9771_v62, %v2415_v44  ;;  %v9986_v47 = vpack.c.b16 %v3064_v60, %v3063_v17  ;;  %v9112_v44 = vld [vmem:[%s12128_s0 + $0xf8] sm:$0xff] }
 0x240   :  { %v10008_v37 = vpack.c.b16 %v1445_v29, %v1444_v50  ;;  %v1197_v50 = vpack.c.bf16 %v1071_v31, %v1071_v31  ;;  %v1609_v0 = vpack.c.b16 %v1446_v45, %v1445_v29 }
 0x241   :  { %v2695_v54 = vmax.f32 %v2416_v51, 0.0  ;;  %1817 = vrot.lane.b32.xlu1 %v9982_v48, %s9458_s30  ;;  %3432 = vrot.lane.b32.xlu2 %v9986_v47, %s9459_s28 }
 0x243   :  { %v2819_v2 = vpack.c.bf16 %v2695_v54, %v2695_v54  ;;  %v3419_v6 = vpop.permute.xlu1 %3418 }
 0x244   :  { %v1804_v9 = vpop.permute.xlu0 %1803  ;;  %v3725_v10 = vsel %vm3721_vm7, %v3543_v52, %v3419_v6  ;;  %v1447_v6 = vunpack.c.l.b16 %v1197_v50 }
 0x245   :  { %v3065_v16 = vunpack.c.l.b16 %v2819_v2  ;;  %v2116_v20 = vsel %vm2086_vm5, %v1944_v8, %v1804_v9  ;;  %8012 = vmatmul.msk.bf16.gmra.mxu2 %vm3872_vm8, %v3725_v10  ;;  %v834_v2 = vpop.f32.mrf.mxu0  ;;  %v3298_v9 = vpop.permute.xlu2 %3297 }
 0x246   :  { %7951 = vmatmul.msk.bf16.gmra.mxu1 %vm2227_vm6, %v2116_v20  ;;  %v2417_v61 = vpop.f32.mrf.mxu1  ;;  %v10034_v15 = vpack.c.b16 %v1447_v6, %v1446_v45 }
 0x247   :  { %v2418_v4 = vadd.f32 %v9771_v62, %v2417_v61  ;;  %v3239_v26 = vpack.c.b16 %v3065_v16, %v3064_v60 }
 0x248   :  { %7901 = vmatmul.msk.bf16.gmra.mxu0 %vm501_vm2, %v9112_v44 }
 0x249   :  { %v2696_v18 = vmax.f32 %v2418_v4, 0.0  ;;  %1692 = vrot.lane.b32.xlu1 %v1608_v11, %s9457_s27  ;;  %3309 = vrot.lane.b32.xlu2 %v3239_v26, %s9458_s30 }
 0x24b   :  { %v2820_v32 = vpack.c.bf16 %v2696_v18, %v2696_v18  ;;  %v3296_v34 = vpop.permute.xlu1 %3295 }
 0x24c   :  { %v1679_v28 = vpop.permute.xlu0 %1678  ;;  %v3546_v43 = vsel %vm2086_vm5, %v9836_v22, %v3296_v34  ;;  %v833_v22 = vadd.f32 %v9931_v5, %v832_v39 }
 0x24d   :  { %v3066_v33 = vunpack.c.l.b16 %v2820_v32  ;;  %v1947_v35 = vsel %vm1899_vm4, %v9839_v27, %v1679_v28  ;;  %v3727_v24 = vsel %vm3721_vm7, %v3546_v43, %v3421_v23  ;;  %v837_v30 = vpop.f32.mrf.mxu0  ;;  %v3549_v32 = vsel %vm2086_vm5, %v9860_v59, %v3298_v9  ;;  %v1808_v36 = vpop.permute.xlu2 %1807 }
 0x24e   :  { %v2420_v17 = vpop.f32.mrf.mxu1  ;;  %v1072_v52 = vmax.f32 %v833_v22, 0.0  ;;  %v838_v28 = vadd.f32 %v9931_v5, %v837_v30 }
 0x24f   :  { %v2421_v40 = vadd.f32 %v9771_v62, %v2420_v17  ;;  %v10012_v42 = vpack.c.b16 %v3066_v33, %v3065_v16  ;;  %v835_v16 = vadd.f32 %v9931_v5, %v834_v2 }
 0x250   :  { %v1198_v11 = vpack.c.bf16 %v1072_v52, %v1072_v52  ;;  %v1074_v31 = vmax.f32 %v838_v28, 0.0 }
 0x251   :  { %v2697_v46 = vmax.f32 %v2421_v40, 0.0  ;;  %3434 = vrot.lane.b32.xlu0 %v10012_v42, %s9459_s28  ;;  %1819 = vrot.lane.b32.xlu2 %v10008_v37, %s9458_s30  ;;  %v1073_v29 = vmax.f32 %v835_v16, 0.0 }
 0x252   :  { %v1448_v4 = vunpack.c.l.b16 %v1198_v11 }
 0x253   :  { %v2821_v55 = vpack.c.bf16 %v2697_v46, %v2697_v46  ;;  %v1806_v56 = vpop.permute.xlu1 %1805  ;;  %v1199_v23 = vpack.c.bf16 %v1073_v29, %v1073_v29 }
 0x254   :  { %v2118_v60 = vsel %vm2086_vm5, %v1947_v35, %v1806_v56  ;;  %v1610_v17 = vpack.c.b16 %v1448_v4, %v1447_v6  ;;  %v9113_v56 = vld [vmem:[%s12128_s0 + $0x100] sm:$0xff] }
 0x255   :  { %v3067_v51 = vunpack.c.l.b16 %v2821_v55  ;;  %8013 = vmatmul.msk.bf16.gmra.mxu2 %vm3872_vm8, %v3727_v24  ;;  %v1449_v45 = vunpack.c.l.b16 %v1199_v23  ;;  %v10062_v24 = vpack.c.bf16 %v1074_v31, %v1074_v31 }
 0x256   :  { %7952 = vmatmul.msk.bf16.gmra.mxu1 %vm2227_vm6, %v2118_v60  ;;  %v2422_v27 = vpop.f32.mrf.mxu1 }
 0x257   :  { %v2423_v54 = vadd.f32 %v9771_v62, %v2422_v27  ;;  %v3240_v1 = vpack.c.b16 %v3067_v51, %v3066_v33  ;;  %v10064_v22 = vpack.c.b16 %v1449_v45, %v1448_v4  ;;  %v1450_v50 = vunpack.c.l.b16 %v10062_v24 }
 0x258   :  { %7902 = vmatmul.msk.bf16.gmra.mxu0 %vm501_vm2, %v9113_v56 }
 0x259   :  { %v2698_v8 = vmax.f32 %v2423_v54, 0.0  ;;  %3311 = vrot.lane.b32.xlu0 %v3240_v1, %s9458_s30  ;;  %1694 = vrot.lane.b32.xlu2 %v1609_v0, %s9457_s27  ;;  %v1611_v6 = vpack.c.b16 %v1450_v50, %v1449_v45 }
 0x25b   :  { %v2822_v10 = vpack.c.bf16 %v2698_v8, %v2698_v8  ;;  %v1681_v57 = vpop.permute.xlu1 %1680 }
 0x25c   :  { %v1950_v18 = vsel %vm1899_vm4, %v9858_v58, %v1681_v57 }
 0x25d   :  { %v3068_v12 = vunpack.c.l.b16 %v2822_v10  ;;  %v2120_v40 = vsel %vm2086_vm5, %v1950_v18, %v1808_v36 }
 0x25e   :  { %v2425_v20 = vpop.f32.mrf.mxu1 }
 0x25f   :  { %v2426_v21 = vadd.f32 %v9771_v62, %v2425_v20  ;;  %v10038_v61 = vpack.c.b16 %v3068_v12, %v3067_v51  ;;  %v1683_v51 = vpop.permute.xlu2 %1682  ;;  %v9114_v20 = vld [vmem:[%s12128_s0 + $0x108] sm:$0xff] }
 0x260   :  { %v1953_v0 = vsel %vm1899_vm4, %v9879_v7, %v1683_v51 }
 0x261   :  { %v2699_v26 = vmax.f32 %v2426_v21, 0.0  ;;  %3436 = vrot.lane.b32.xlu1 %v10038_v61, %s9459_s28  ;;  %1821 = vrot.lane.b32.xlu0 %v10034_v15, %s9458_s30 }
 0x263   :  { %v2823_v34 = vpack.c.bf16 %v2699_v26, %v2699_v26  ;;  %v3423_v33 = vpop.permute.xlu0 %3422 }
 0x264   :  { %v3729_v38 = vsel %vm3721_vm7, %v3549_v32, %v3423_v33  ;;  %v9115_v32 = vld [vmem:[%s12128_s0 + $0x110] sm:$0xff] }
 0x265   :  { %v3069_v39 = vunpack.c.l.b16 %v2823_v34  ;;  %8014 = vmatmul.msk.bf16.gmra.mxu2 %vm3872_vm8, %v3729_v38 }
 0x266   :  { %7953 = vmatmul.msk.bf16.gmra.mxu1 %vm2227_vm6, %v2120_v40  ;;  %v2427_v58 = vpop.f32.mrf.mxu1 }
 0x267   :  { %v2428_v43 = vadd.f32 %v9771_v62, %v2427_v58  ;;  %v3241_v59 = vpack.c.b16 %v3069_v39, %v3068_v12 }
 0x268   :  { %7903 = vmatmul.msk.bf16.gmra.mxu0 %vm501_vm2, %v9114_v20 }
 0x269   :  { %v2700_v46 = vmax.f32 %v2428_v43, 0.0  ;;  %3313 = vrot.lane.b32.xlu1 %v3241_v59, %s9458_s30  ;;  %1696 = vrot.lane.b32.xlu0 %v1610_v17, %s9457_s27 }
 0x26b   :  { %v10056_v35 = vpack.c.bf16 %v2700_v46, %v2700_v46  ;;  %v3300_v55 = vpop.permute.xlu0 %3299  ;;  %v3427_v7 = vpop.permute.xlu2 %3426 }
 0x26c   :  { %v3552_v27 = vsel %vm2086_vm5, %v9877_v3, %v3300_v55 }
 0x26d   :  { %v3070_v60 = vunpack.c.l.b16 %v10056_v35 }
 0x26f   :  { %v10069_v44 = vpack.c.b16 %v3070_v60, %v3069_v39 }
 0x271   :  { %1823 = vrot.lane.b32.xlu1 %v10064_v22, %s9458_s30  ;;  %3438 = vrot.lane.b32.xlu2 %v10069_v44, %s9459_s28 }
 0x273   :  { %v3425_v54 = vpop.permute.xlu1 %3424  ;;  %v1810_v1 = vpop.permute.xlu0 %1809 }
 0x274   :  { %v2122_v52 = vsel %vm2086_vm5, %v1953_v0, %v1810_v1  ;;  %v3731_v2 = vsel %vm3721_vm7, %v3552_v27, %v3425_v54  ;;  %v3304_v57 = vpop.permute.xlu2 %3303  ;;  %v9116_v27 = vld [vmem:[%s12128_s0 + $0x118] sm:$0xff] }
 0x275   :  { %8015 = vmatmul.msk.bf16.gmra.mxu2 %vm3872_vm8, %v3731_v2  ;;  %v3558_v4 = vsel %vm2086_vm5, %v9917_v19, %v3304_v57  ;;  %v9117_v57 = vld [vmem:[%s12128_s0 + $0x120] sm:$0xff] }
 0x276   :  { %7954 = vmatmul.msk.bf16.gmra.mxu1 %vm2227_vm6, %v2122_v52 }
 0x278   :  { %7904 = vmatmul.msk.bf16.gmra.mxu0 %vm501_vm2, %v9115_v32 }
 0x279   :  { %1698 = vrot.lane.b32.xlu1 %v1611_v6, %s9457_s27 }
 0x27b   :  { %v3302_v8 = vpop.permute.xlu1 %3301  ;;  %v1685_v9 = vpop.permute.xlu0 %1684 }
 0x27c   :  { %v3555_v3 = vsel %vm2086_vm5, %v9891_v49, %v3302_v8  ;;  %v1956_v10 = vsel %vm1899_vm4, %v9893_v53, %v1685_v9  ;;  %v839_v49 = vpop.f32.mrf.mxu0  ;;  %v1814_v29 = vpop.permute.xlu2 %1813 }
 0x27d   :  { %v3733_v16 = vsel %vm3721_vm7, %v3555_v3, %v3427_v7 }
 0x283   :  { %v1812_v11 = vpop.permute.xlu1 %1811 }
 0x284   :  { %v2124_v12 = vsel %vm2086_vm5, %v1956_v10, %v1812_v11  ;;  %v842_v30 = vpop.f32.mrf.mxu0  ;;  %v1689_v23 = vpop.permute.xlu2 %1688 }
 0x285   :  { %8016 = vmatmul.msk.bf16.gmra.mxu2 %vm3872_vm8, %v3733_v16  ;;  %v843_v43 = vadd.f32 %v9931_v5, %v842_v30  ;;  %v1962_v31 = vsel %vm1899_vm4, %v9939_v41, %v1689_v23 }
 0x286   :  { %7955 = vmatmul.msk.bf16.gmra.mxu1 %vm2227_vm6, %v2124_v12 }
 0x288   :  { %7905 = vmatmul.msk.bf16.gmra.mxu0 %vm501_vm2, %v9116_v27 }
 0x28b   :  { %v1687_v21 = vpop.permute.xlu1 %1686 }
 0x28c   :  { %v1959_v53 = vsel %vm1899_vm4, %v9910_v14, %v1687_v21  ;;  %v840_v14 = vadd.f32 %v9931_v5, %v839_v49  ;;  %v10113_v38 = vpop.f32.mrf.mxu0 }
 0x28d   :  { %v2126_v34 = vsel %vm2086_vm5, %v1959_v53, %v1814_v29 }
 0x28e   :  { %v1075_v39 = vmax.f32 %v840_v14, 0.0 }
 0x290   :  { %v1201_v58 = vpack.c.bf16 %v1075_v39, %v1075_v39 }
 0x293   :  { %v3429_v26 = vpop.permute.xlu0 %3428 }
 0x294   :  { %v3735_v18 = vsel %vm3721_vm7, %v3558_v4, %v3429_v26  ;;  %v847_v41 = vpop.f32.mrf.mxu0 }
 0x295   :  { %8017 = vmatmul.msk.bf16.gmra.mxu2 %vm3872_vm8, %v3735_v18 }
 0x296   :  { %7956 = vmatmul.msk.bf16.gmra.mxu1 %vm2227_vm6, %v2126_v34  ;;  %v845_v34 = vadd.f32 %v9931_v5, %v10113_v38 }
 0x298   :  { %7906 = vmatmul.msk.bf16.gmra.mxu0 %vm501_vm2, %v9117_v57  ;;  %v1077_v23 = vmax.f32 %v845_v34, 0.0 }
 0x29b   :  { %v2430_v19 = vpop.f32.mrf.mxu1  ;;  %v3306_v33 = vpop.permute.xlu0 %3305 }
 0x29c   :  { %v2431_v36 = vadd.f32 %v9771_v62, %v2430_v19  ;;  %v3561_v59 = vsel %vm2086_vm5, %v9945_v63, %v3306_v33  ;;  %v1451_v63 = vunpack.c.l.b16 %v1201_v58  ;;  %v3433_v9 = vpop.permute.xlu2 %3432  ;;  %v849_v10 = vpop.f32.mrf.mxu0 }
 0x29e   :  { %v2701_v17 = vmax.f32 %v2431_v36, 0.0  ;;  %v10136_v2 = vpack.c.b16 %v1451_v63, %v1450_v50  ;;  %v10180_v36 = vld [vmem:[%s12132_s4] ss:$0 sm:$0xff] }
 0x2a0   :  { %v2825_v40 = vpack.c.bf16 %v2701_v17, %v2701_v17 }
 0x2a2   :  { %v3071_v28 = vunpack.c.l.b16 %v2825_v40 }
 0x2a3   :  { %v2432_v45 = vpop.f32.mrf.mxu1  ;;  %v3431_v46 = vpop.permute.xlu1 %3430 }
 0x2a4   :  { %v2433_v55 = vadd.f32 %v9771_v62, %v2432_v45  ;;  %v1816_v56 = vpop.permute.xlu0 %1815  ;;  %v3242_v51 = vpack.c.b16 %v3071_v28, %v3070_v60  ;;  %v3737_v0 = vsel %vm3721_vm7, %v3561_v59, %v3431_v46  ;;  %v1076_v62 = vmax.f32 %v843_v43, 0.0  ;;  %v3310_v21 = vpop.permute.xlu2 %3309 }
 0x2a5   :  { %v2128_v54 = vsel %vm2086_vm5, %v1962_v31, %v1816_v56  ;;  %8018 = vmatmul.msk.bf16.gmra.mxu2 %vm3872_vm8, %v3737_v0  ;;  %v10166_v53 = vpop.f32.mrf.mxu0  ;;  %v3567_v32 = vsel %vm2086_vm5, %v9986_v47, %v3310_v21  ;;  %v9118_v47 = vld [vmem:[%s12128_s0 + $0x128] sm:$0xff]  ;;  %v1203_v59 = vpack.c.bf16 %v1077_v23, %v1077_v23  ;;  %v848_v45 = vadd.f32 %v9931_v5, %v847_v41 }
 0x2a6   :  { %v2702_v1 = vmax.f32 %v2433_v55, 0.0  ;;  %3315 = vrot.lane.b32.xlu2 %v3242_v51, %s9458_s30  ;;  %7957 = vmatmul.msk.bf16.gmra.mxu1 %vm2227_vm6, %v2128_v54  ;;  %v10132_v52 = vpack.c.bf16 %v1076_v62, %v1076_v62  ;;  %v850_v41 = vadd.f32 %v9931_v5, %v849_v10 }
 0x2a7   :  { %v1453_v27 = vunpack.c.l.b16 %v1203_v59  ;;  %v1078_v54 = vmax.f32 %v848_v45, 0.0 }
 0x2a8   :  { %v2826_v35 = vpack.c.bf16 %v2702_v1, %v2702_v1  ;;  %v1452_v7 = vunpack.c.l.b16 %v10132_v52  ;;  %7907 = vmatmul.msk.bf16.gmra.mxu0 %vm501_vm2, %v9118_v47 }
 0x2aa   :  { %v3072_v60 = vunpack.c.l.b16 %v2826_v35  ;;  %v1612_v24 = vpack.c.b16 %v1452_v7, %v1451_v63 }
 0x2ab   :  { %v3308_v6 = vpop.permute.xlu1 %3307 }
 0x2ac   :  { %v10138_v8 = vpack.c.b16 %v3072_v60, %v3071_v28  ;;  %v1691_v3 = vpop.permute.xlu0 %1690  ;;  %v3564_v11 = vsel %vm2086_vm5, %v9963_v25, %v3308_v6  ;;  %v10160_v25 = vld [vmem:[%s12134_s6] ss:$0 sm:$0xff]  ;;  %v1820_v33 = vpop.permute.xlu2 %1819  ;;  %v1204_v6 = vpack.c.bf16 %v1078_v54, %v1078_v54 }
 0x2ad   :  { %v1965_v50 = vsel %vm1899_vm4, %v9959_v13, %v1691_v3  ;;  %v3739_v20 = vsel %vm3721_vm7, %v3564_v11, %v3433_v9  ;;  %v10184_v40 = vpop.f32.mrf.mxu0  ;;  %v10207_v11 = vpack.c.b16 %v1453_v27, %v1452_v7 }
 0x2ae   :  { %1825 = vrot.lane.b32.xlu2 %v10136_v2, %s9458_s30  ;;  %3440 = vrot.lane.b32.xlu0 %v10138_v8, %s9459_s28  ;;  %v1454_v7 = vunpack.c.l.b16 %v1204_v6 }
 0x2b3   :  { %v1818_v12 = vpop.permute.xlu1 %1817 }
 0x2b4   :  { %v2130_v16 = vsel %vm2086_vm5, %v1965_v50, %v1818_v12  ;;  %v1695_v62 = vpop.permute.xlu2 %1694 }
 0x2b5   :  { %8019 = vmatmul.msk.bf16.gmra.mxu2 %vm3872_vm8, %v3739_v20  ;;  %v10198_v0 = vpop.f32.mrf.mxu0 }
 0x2b6   :  { %1700 = vrot.lane.b32.xlu2 %v1612_v24, %s9457_s27  ;;  %7958 = vmatmul.msk.bf16.gmra.mxu1 %vm2227_vm6, %v2130_v16  ;;  %v1971_v24 = vsel %vm1899_vm4, %v10008_v37, %v1695_v62  ;;  %v1079_v37 = vmax.f32 %v850_v41, 0.0 }
 0x2b8   :  { %v4004_v13 = vpop.f32.mrf.mxu2 }
 0x2b9   :  { %v4005_v49 = vadd.f32 %v10160_v25, %v4004_v13 }
 0x2bb   :  { %v4309_v4 = vmax.f32 %v4005_v49, 0.0  ;;  %v1693_v29 = vpop.permute.xlu1 %1692 }
 0x2bc   :  { %v1968_v30 = vsel %vm1899_vm4, %v9982_v48, %v1693_v29  ;;  %v853_v29 = vadd.f32 %v9931_v5, %v10166_v53 }
 0x2bd   :  { %v4431_v26 = vpack.c.bf16 %v4309_v4, %v4309_v4  ;;  %v2132_v48 = vsel %vm2086_vm5, %v1968_v30, %v1820_v33  ;;  %v859_v49 = vpop.f32.mrf.mxu0 }
 0x2be   :  { %v1080_v47 = vmax.f32 %v853_v29, 0.0 }
 0x2bf   :  { %4554 = vst.msk [vmem:[#allocation2] sm:$0xf] %vm4553_vm9, %v4431_v26  ;;  %v1205_v26 = vpack.c.bf16 %v1079_v37, %v1079_v37 }
 0x2c0   :  { %v10169_v18 = vpop.f32.mrf.mxu2 }
 0x2c3   :  { %v2435_v14 = vpop.f32.mrf.mxu1  ;;  %v3435_v19 = vpop.permute.xlu0 %3434 }
 0x2c4   :  { %v2436_v17 = vadd.f32 %v10180_v36, %v2435_v14  ;;  %v3741_v39 = vsel %vm3721_vm7, %v3567_v32, %v3435_v19  ;;  %v1613_v19 = vpack.c.b16 %v1454_v7, %v1453_v27 }
 0x2c5   :  { %8020 = vmatmul.msk.bf16.gmra.mxu2 %vm3872_vm8, %v3741_v39  ;;  %v862_v45 = vpop.f32.mrf.mxu0 }
 0x2c6   :  { %v2703_v38 = vmax.f32 %v2436_v17, 0.0  ;;  %7959 = vmatmul.msk.bf16.gmra.mxu1 %vm2227_vm6, %v2132_v48  ;;  %v1455_v48 = vunpack.c.l.b16 %v1205_v26 }
 0x2c8   :  { %v2827_v28 = vpack.c.bf16 %v2703_v38, %v2703_v38  ;;  %v10193_v58 = vpop.f32.mrf.mxu2  ;;  %v10241_v27 = vpack.c.b16 %v1455_v48, %v1454_v7 }
 0x2ca   :  { %v3073_v43 = vunpack.c.l.b16 %v2827_v28 }
 0x2cb   :  { %v2437_v46 = vpop.f32.mrf.mxu1  ;;  %v3312_v31 = vpop.permute.xlu0 %3311 }
 0x2cc   :  { %v2438_v55 = vadd.f32 %v10180_v36, %v2437_v46  ;;  %v3243_v56 = vpack.c.b16 %v3073_v43, %v3072_v60  ;;  %v3570_v9 = vsel %vm2086_vm5, %v10012_v42, %v3312_v31  ;;  %v9119_v42 = vld [vmem:[%s12128_s0 + $0x130] sm:$0xff]  ;;  %v1206_v46 = vpack.c.bf16 %v1080_v47, %v1080_v47 }
 0x2cd   :  { %7908 = vmatmul.msk.bf16.gmra.mxu0 %vm501_vm2, %v9119_v42  ;;  %v855_v31 = vadd.f32 %v9931_v5, %v10184_v40 }
 0x2ce   :  { %v2704_v51 = vmax.f32 %v2438_v55, 0.0  ;;  %3317 = vrot.lane.b32.xlu0 %v3243_v56, %s9458_s30 }
 0x2cf   :  { %v1081_v40 = vmax.f32 %v855_v31, 0.0 }
 0x2d0   :  { %v2828_v63 = vpack.c.bf16 %v2704_v51, %v2704_v51  ;;  %v10200_v1 = vpop.f32.mrf.mxu2 }
 0x2d2   :  { %v3074_v35 = vunpack.c.l.b16 %v2828_v63 }
 0x2d3   :  { %v2440_v3 = vpop.f32.mrf.mxu1  ;;  %v3437_v60 = vpop.permute.xlu1 %3436 }
 0x2d4   :  { %v2441_v50 = vadd.f32 %v10180_v36, %v2440_v3  ;;  %v1822_v12 = vpop.permute.xlu0 %1821  ;;  %v10212_v16 = vpack.c.b16 %v3074_v35, %v3073_v43  ;;  %v3743_v20 = vsel %vm3721_vm7, %v3570_v9, %v3437_v60  ;;  %v3439_v43 = vpop.permute.xlu2 %3438  ;;  %v858_v60 = vadd.f32 %v9931_v5, %v10198_v0 }
 0x2d5   :  { %v2134_v10 = vsel %vm2086_vm5, %v1971_v24, %v1822_v12  ;;  %8021 = vmatmul.msk.bf16.gmra.mxu2 %vm3872_vm8, %v3743_v20  ;;  %v864_v3 = vpop.f32.mrf.mxu0  ;;  %v860_v0 = vadd.f32 %v9931_v5, %v859_v49 }
 0x2d6   :  { %v2705_v52 = vmax.f32 %v2441_v50, 0.0  ;;  %1827 = vrot.lane.b32.xlu0 %v10207_v11, %s9458_s30  ;;  %3442 = vrot.lane.b32.xlu1 %v10212_v16, %s9459_s28  ;;  %v1207_v50 = vpack.c.bf16 %v1081_v40, %v1081_v40 }
 0x2d7   :  { %7960 = vmatmul.msk.bf16.gmra.mxu1 %vm2227_vm6, %v2134_v10 }
 0x2d8   :  { %v2829_v57 = vpack.c.bf16 %v2705_v52, %v2705_v52  ;;  %v4014_v13 = vpop.f32.mrf.mxu2  ;;  %v1082_v52 = vmax.f32 %v858_v60, 0.0  ;;  %v1457_v37 = vunpack.c.l.b16 %v1207_v50 }
 0x2d9   :  { %v4015_v21 = vadd.f32 %v10160_v25, %v4014_v13 }
 0x2da   :  { %v3075_v4 = vunpack.c.l.b16 %v2829_v57 }
 0x2db   :  { %v4313_v30 = vmax.f32 %v4015_v21, 0.0  ;;  %v2442_v32 = vpop.f32.mrf.mxu1  ;;  %v3314_v34 = vpop.permute.xlu1 %3313  ;;  %v1208_v21 = vpack.c.bf16 %v1082_v52, %v1082_v52 }
 0x2dc   :  { %v2443_v14 = vadd.f32 %v10180_v36, %v2442_v32  ;;  %v3244_v33 = vpack.c.b16 %v3075_v4, %v3074_v35  ;;  %v1697_v23 = vpop.permute.xlu0 %1696  ;;  %v3573_v28 = vsel %vm2086_vm5, %v10038_v61, %v3314_v34 }
 0x2dd   :  { %v4435_v17 = vpack.c.bf16 %v4313_v30, %v4313_v30  ;;  %v1974_v55 = vsel %vm1899_vm4, %v10034_v15, %v1697_v23  ;;  %v3745_v61 = vsel %vm3721_vm7, %v3573_v28, %v3439_v43  ;;  %v1456_v15 = vunpack.c.l.b16 %v1206_v46  ;;  %v867_v32 = vpop.f32.mrf.mxu0 }
 0x2de   :  { %v2706_v39 = vmax.f32 %v2443_v14, 0.0  ;;  %1702 = vrot.lane.b32.xlu0 %v1613_v19, %s9457_s27  ;;  %3319 = vrot.lane.b32.xlu1 %v3244_v33, %s9458_s30  ;;  %v1458_v14 = vunpack.c.l.b16 %v1208_v21  ;;  %v1083_v19 = vmax.f32 %v860_v0, 0.0  ;;  %v863_v43 = vadd.f32 %v9931_v5, %v862_v45 }
 0x2df   :  { %4573 = vst.msk [vmem:[#allocation2 + $0x4] sm:$0xf] %vm4553_vm9, %v4435_v17  ;;  %v1614_v20 = vpack.c.b16 %v1456_v15, %v1455_v48  ;;  %v10265_v29 = vpack.c.b16 %v1457_v37, %v1456_v15  ;;  %v865_v15 = vadd.f32 %v9931_v5, %v864_v3 }
 0x2e0   :  { %v2830_v38 = vpack.c.bf16 %v2706_v39, %v2706_v39  ;;  %v10233_v53 = vpop.f32.mrf.mxu2  ;;  %v9120_v39 = vld [vmem:[%s12128_s0 + $0x138] sm:$0xff]  ;;  %v1615_v23 = vpack.c.b16 %v1458_v14, %v1457_v37  ;;  %v1209_v28 = vpack.c.bf16 %v1083_v19, %v1083_v19 }
 0x2e1   :  { %7909 = vmatmul.msk.bf16.gmra.mxu0 %vm501_vm2, %v9120_v39 }
 0x2e2   :  { %v3076_v59 = vunpack.c.l.b16 %v2830_v38 }
 0x2e3   :  { %v2445_v56 = vpop.f32.mrf.mxu1  ;;  %v1824_v51 = vpop.permute.xlu1 %1823 }
 0x2e4   :  { %v2446_v54 = vadd.f32 %v10180_v36, %v2445_v56  ;;  %v2136_v63 = vsel %vm2086_vm5, %v1974_v55, %v1824_v51  ;;  %v10245_v62 = vpack.c.b16 %v3076_v59, %v3075_v4  ;;  %v1459_v51 = vunpack.c.l.b16 %v1209_v28 }
 0x2e5   :  { %8022 = vmatmul.msk.bf16.gmra.mxu2 %vm3872_vm8, %v3745_v61  ;;  %v869_v31 = vpop.f32.mrf.mxu0 }
 0x2e6   :  { %v2707_v35 = vmax.f32 %v2446_v54, 0.0  ;;  %3444 = vrot.lane.b32.xlu2 %v10245_v62, %s9459_s28  ;;  %1829 = vrot.lane.b32.xlu1 %v10241_v27, %s9458_s30  ;;  %v1084_v54 = vmax.f32 %v863_v43, 0.0  ;;  %v10289_v60 = vpack.c.b16 %v1459_v51, %v1458_v14 }
 0x2e7   :  { %7961 = vmatmul.msk.bf16.gmra.mxu1 %vm2227_vm6, %v2136_v63 }
 0x2e8   :  { %v2831_v6 = vpack.c.bf16 %v2707_v35, %v2707_v35  ;;  %v10254_v41 = vpop.f32.mrf.mxu2 }
 0x2ea   :  { %v3077_v9 = vunpack.c.l.b16 %v2831_v6  ;;  %v1210_v6 = vpack.c.bf16 %v1084_v54, %v1084_v54 }
 0x2eb   :  { %v2447_v24 = vpop.f32.mrf.mxu1 }
 0x2ec   :  { %v2448_v12 = vadd.f32 %v10180_v36, %v2447_v24  ;;  %v3245_v10 = vpack.c.b16 %v3077_v9, %v3076_v59 }
 0x2ed   :  { %v872_v50 = vpop.f32.mrf.mxu0 }
 0x2ee   :  { %v2708_v42 = vmax.f32 %v2448_v12, 0.0  ;;  %1704 = vrot.lane.b32.xlu1 %v1614_v20, %s9457_s27  ;;  %3321 = vrot.lane.b32.xlu2 %v3245_v10, %s9458_s30  ;;  %v1699_v12 = vpop.permute.xlu1 %1698  ;;  %v1085_v20 = vmax.f32 %v865_v15, 0.0  ;;  %v10323_v15 = vld [vmem:[%s12130_s2] ss:$0 sm:$0xff] }
 0x2ef   :  { %v1977_v3 = vsel %vm1899_vm4, %v10064_v22, %v1699_v12 }
 0x2f0   :  { %v2832_v7 = vpack.c.bf16 %v2708_v42, %v2708_v42  ;;  %v10261_v57 = vpop.f32.mrf.mxu2  ;;  %v1460_v42 = vunpack.c.l.b16 %v1210_v6  ;;  %v1211_v21 = vpack.c.bf16 %v1085_v20, %v1085_v20 }
 0x2f2   :  { %v3078_v13 = vunpack.c.l.b16 %v2832_v7  ;;  %v1616_v14 = vpack.c.b16 %v1460_v42, %v1459_v51 }
 0x2f3   :  { %v2450_v4 = vpop.f32.mrf.mxu1 }
 0x2f4   :  { %v2451_v26 = vadd.f32 %v10180_v36, %v2450_v4  ;;  %v10267_v30 = vpack.c.b16 %v3078_v13, %v3077_v9 }
 0x2f6   :  { %v2709_v34 = vmax.f32 %v2451_v26, 0.0  ;;  %1831 = vrot.lane.b32.xlu2 %v10265_v29, %s9458_s30  ;;  %3446 = vrot.lane.b32.xlu0 %v10267_v30, %s9459_s28  ;;  %v868_v26 = vadd.f32 %v9931_v5, %v867_v32  ;;  %v870_v32 = vadd.f32 %v9931_v5, %v869_v31 }
 0x2f8   :  { %v2833_v33 = vpack.c.bf16 %v2709_v34, %v2709_v34  ;;  %v4024_v17 = vpop.f32.mrf.mxu2 }
 0x2f9   :  { %v4025_v49 = vadd.f32 %v10160_v25, %v4024_v17  ;;  %v874_v17 = vpop.f32.mrf.mxu0 }
 0x2fa   :  { %v3079_v48 = vunpack.c.l.b16 %v2833_v33  ;;  %v1461_v33 = vunpack.c.l.b16 %v1211_v21 }
 0x2fb   :  { %v4317_v47 = vmax.f32 %v4025_v49, 0.0  ;;  %v2452_v38 = vpop.f32.mrf.mxu1  ;;  %v1086_v49 = vmax.f32 %v868_v26, 0.0 }
 0x2fc   :  { %v2453_v59 = vadd.f32 %v10180_v36, %v2452_v38  ;;  %v3246_v46 = vpack.c.b16 %v3079_v48, %v3078_v13  ;;  %v10309_v38 = vpack.c.b16 %v1461_v33, %v1460_v42 }
 0x2fd   :  { %v4439_v55 = vpack.c.bf16 %v4317_v47, %v4317_v47  ;;  %v1212_v28 = vpack.c.bf16 %v1086_v49, %v1086_v49 }
 0x2fe   :  { %v2710_v56 = vmax.f32 %v2453_v59, 0.0  ;;  %1706 = vrot.lane.b32.xlu2 %v1615_v23, %s9457_s27  ;;  %3323 = vrot.lane.b32.xlu0 %v3246_v46, %s9458_s30 }
 0x2ff   :  { %4589 = vst.msk [vmem:[#allocation2 + $0x8] sm:$0xf] %vm4553_vm9, %v4439_v55  ;;  %v1087_v55 = vmax.f32 %v870_v32, 0.0 }
 0x300   :  { %v2834_v63 = vpack.c.bf16 %v2710_v56, %v2710_v56  ;;  %v10283_v61 = vpop.permute.xlu2 %3315  ;;  %v10285_v35 = vpop.f32.mrf.mxu2  ;;  %v1462_v56 = vunpack.c.l.b16 %v1212_v28 }
 0x302   :  { %v3080_v45 = vunpack.c.l.b16 %v2834_v63  ;;  %v877_v63 = vpop.f32.mrf.mxu0  ;;  %v1617_v20 = vpack.c.b16 %v1462_v56, %v1461_v33 }
 0x303   :  { %v2455_v40 = vpop.f32.mrf.mxu1 }
 0x304   :  { %v2456_v9 = vadd.f32 %v10180_v36, %v2455_v40  ;;  %v10291_v24 = vpack.c.b16 %v3080_v45, %v3079_v48  ;;  %v873_v40 = vadd.f32 %v10323_v15, %v872_v50  ;;  %v3576_v50 = vsel %vm2086_vm5, %v10069_v44, %v10283_v61 }
 0x306   :  { %v2711_v10 = vmax.f32 %v2456_v9, 0.0  ;;  %1833 = vrot.lane.b32.xlu0 %v10289_v60, %s9458_s30  ;;  %3448 = vrot.lane.b32.xlu1 %v10291_v24, %s9459_s28 }
 0x308   :  { %v2835_v52 = vpack.c.bf16 %v2711_v10, %v2711_v10  ;;  %v1826_v37 = vpop.permute.xlu2 %1825  ;;  %v10299_v7 = vpop.f32.mrf.mxu2 }
 0x309   :  { %v2138_v13 = vsel %vm2086_vm5, %v1977_v3, %v1826_v37  ;;  %v1088_v37 = vmax.f32 %v873_v40, 0.0 }
 0x30a   :  { %v3081_v4 = vunpack.c.l.b16 %v2835_v52  ;;  %7962 = vmatmul.msk.bf16.gmra.mxu1 %vm2227_vm6, %v2138_v13  ;;  %v879_v33 = vpop.f32.mrf.mxu0 }
 0x30b   :  { %v2457_v0 = vpop.f32.mrf.mxu1 }
 0x30c   :  { %v2458_v34 = vadd.f32 %v10180_v36, %v2457_v0  ;;  %v3247_v19 = vpack.c.b16 %v3081_v4, %v3080_v45  ;;  %v1213_v45 = vpack.c.bf16 %v1087_v55, %v1087_v55  ;;  %v878_v55 = vadd.f32 %v10323_v15, %v877_v63 }
 0x30e   :  { %v2712_v22 = vmax.f32 %v2458_v34, 0.0  ;;  %1708 = vrot.lane.b32.xlu0 %v1616_v14, %s9457_s27  ;;  %3325 = vrot.lane.b32.xlu1 %v3247_v19, %s9458_s30  ;;  %v1463_v42 = vunpack.c.l.b16 %v1213_v45  ;;  %v1214_v34 = vpack.c.bf16 %v1088_v37, %v1088_v37  ;;  %v875_v19 = vadd.f32 %v10323_v15, %v874_v17  ;;  %v9121_v17 = vld [vmem:[%s12128_s0 + $0x140] sm:$0xff] }
 0x30f   :  { %7910 = vmatmul.msk.bf16.gmra.mxu0 %vm501_vm2, %v9121_v17  ;;  %v1090_v40 = vmax.f32 %v878_v55, 0.0 }
 0x310   :  { %v2836_v39 = vpack.c.bf16 %v2712_v22, %v2712_v22  ;;  %v10307_v48 = vpop.f32.mrf.mxu2  ;;  %v10337_v14 = vpack.c.b16 %v1463_v42, %v1462_v56  ;;  %v1464_v44 = vunpack.c.l.b16 %v1214_v34 }
 0x312   :  { %v3082_v47 = vunpack.c.l.b16 %v2836_v39 }
 0x313   :  { %v2460_v23 = vpop.f32.mrf.mxu1 }
 0x314   :  { %v2461_v43 = vadd.f32 %v10180_v36, %v2460_v23  ;;  %v10313_v59 = vpack.c.b16 %v3082_v47, %v3081_v4 }
 0x316   :  { %v2713_v46 = vmax.f32 %v2461_v43, 0.0  ;;  %3450 = vrot.lane.b32.xlu2 %v10313_v59, %s9459_s28  ;;  %1835 = vrot.lane.b32.xlu1 %v10309_v38, %s9458_s30 }
 0x318   :  { %v2837_v51 = vpack.c.bf16 %v2713_v46, %v2713_v46  ;;  %v4034_v54 = vpop.f32.mrf.mxu2  ;;  %v1618_v46 = vpack.c.b16 %v1464_v44, %v1463_v42 }
 0x319   :  { %v4035_v5 = vadd.f32 %v10160_v25, %v4034_v54 }
 0x31a   :  { %v3083_v31 = vunpack.c.l.b16 %v2837_v51 }
 0x31b   :  { %v4321_v6 = vmax.f32 %v4035_v5, 0.0  ;;  %v2462_v9 = vpop.f32.mrf.mxu1  ;;  %v882_v5 = vpop.f32.mrf.mxu0 }
 0x31c   :  { %v2463_v12 = vadd.f32 %v10180_v36, %v2462_v9  ;;  %v3248_v10 = vpack.c.b16 %v3083_v31, %v3082_v47  ;;  %v1089_v47 = vmax.f32 %v875_v19, 0.0  ;;  %v9122_v19 = vld [vmem:[%s12128_s0 + $0x148] sm:$0xff] }
 0x31d   :  { %v4443_v3 = vpack.c.bf16 %v4321_v6, %v4321_v6 }
 0x31e   :  { %v2714_v52 = vmax.f32 %v2463_v12, 0.0  ;;  %1710 = vrot.lane.b32.xlu1 %v1617_v20, %s9457_s27  ;;  %3327 = vrot.lane.b32.xlu2 %v3248_v10, %s9458_s30  ;;  %v1215_v43 = vpack.c.bf16 %v1089_v47, %v1089_v47  ;;  %v1216_v20 = vpack.c.bf16 %v1090_v40, %v1090_v40  ;;  %v880_v10 = vadd.f32 %v10323_v15, %v879_v33 }
 0x31f   :  { %4605 = vst.msk [vmem:[#allocation2 + $0xc] sm:$0xf] %vm4553_vm9, %v4443_v3  ;;  %7911 = vmatmul.msk.bf16.gmra.mxu0 %vm501_vm2, %v9122_v19 }
 0x320   :  { %v2838_v13 = vpack.c.bf16 %v2714_v52, %v2714_v52  ;;  %v3441_v21 = vpop.permute.xlu0 %3440  ;;  %v10333_v4 = vpop.f32.mrf.mxu2  ;;  %v1466_v37 = vunpack.c.l.b16 %v1216_v20 }
 0x321   :  { %v3747_v0 = vsel %vm3721_vm7, %v3576_v50, %v3441_v21 }
 0x322   :  { %v3084_v26 = vunpack.c.l.b16 %v2838_v13  ;;  %8023 = vmatmul.msk.bf16.gmra.mxu2 %vm3872_vm8, %v3747_v0  ;;  %v1091_v13 = vmax.f32 %v880_v10, 0.0 }
 0x323   :  { %v2465_v22 = vpop.f32.mrf.mxu1  ;;  %v884_v21 = vpop.f32.mrf.mxu0 }
 0x324   :  { %v2466_v49 = vadd.f32 %v10180_v36, %v2465_v22  ;;  %v10341_v39 = vpack.c.b16 %v3084_v26, %v3083_v31  ;;  %v1465_v31 = vunpack.c.l.b16 %v1215_v43  ;;  %v1217_v22 = vpack.c.bf16 %v1091_v13, %v1091_v13 }
 0x326   :  { %v2715_v61 = vmax.f32 %v2466_v49, 0.0  ;;  %1837 = vrot.lane.b32.xlu2 %v10337_v14, %s9458_s30  ;;  %3452 = vrot.lane.b32.xlu0 %v10341_v39, %s9459_s28  ;;  %v10359_v63 = vpack.c.b16 %v1465_v31, %v1464_v44  ;;  %v1619_v49 = vpack.c.b16 %v1466_v37, %v1465_v31  ;;  %v883_v44 = vadd.f32 %v10323_v15, %v882_v5 }
 0x327   :  { %v1467_v43 = vunpack.c.l.b16 %v1217_v22 }
 0x328   :  { %v2839_v32 = vpack.c.bf16 %v2715_v61, %v2715_v61  ;;  %v10347_v23 = vpop.f32.mrf.mxu2  ;;  %v1092_v55 = vmax.f32 %v883_v44, 0.0 }
 0x329   :  { %v10381_v40 = vpack.c.b16 %v1467_v43, %v1466_v37 }
 0x32a   :  { %v3085_v28 = vunpack.c.l.b16 %v2839_v32 }
 0x32b   :  { %v2467_v56 = vpop.f32.mrf.mxu1 }
 0x32c   :  { %v2468_v51 = vadd.f32 %v10180_v36, %v2467_v56  ;;  %v3249_v54 = vpack.c.b16 %v3085_v28, %v3084_v26 }
 0x32e   :  { %v2716_v45 = vmax.f32 %v2468_v51, 0.0  ;;  %1712 = vrot.lane.b32.xlu2 %v1618_v46, %s9457_s27  ;;  %3329 = vrot.lane.b32.xlu0 %v3249_v54, %s9458_s30  ;;  %v887_v54 = vpop.f32.mrf.mxu0 }
 0x330   :  { %v2840_v6 = vpack.c.bf16 %v2716_v45, %v2716_v45  ;;  %v10357_v9 = vpop.f32.mrf.mxu2  ;;  %v1218_v45 = vpack.c.bf16 %v1092_v55, %v1092_v55 }
 0x332   :  { %v3086_v12 = vunpack.c.l.b16 %v2840_v6  ;;  %v885_v6 = vadd.f32 %v10323_v15, %v884_v21 }
 0x333   :  { %v2470_v3 = vpop.f32.mrf.mxu1 }
 0x334   :  { %v2471_v42 = vadd.f32 %v10180_v36, %v2470_v3  ;;  %v10363_v52 = vpack.c.b16 %v3086_v12, %v3085_v28  ;;  %v1701_v3 = vpop.permute.xlu2 %1700  ;;  %v1093_v13 = vmax.f32 %v885_v6, 0.0 }
 0x335   :  { %v1980_v37 = vsel %vm1899_vm4, %v10136_v2, %v1701_v3 }
 0x336   :  { %v2717_v50 = vmax.f32 %v2471_v42, 0.0  ;;  %1839 = vrot.lane.b32.xlu0 %v10359_v63, %s9458_s30  ;;  %3454 = vrot.lane.b32.xlu1 %v10363_v52, %s9459_s28  ;;  %v1468_v42 = vunpack.c.l.b16 %v1218_v45  ;;  %v1219_v2 = vpack.c.bf16 %v1093_v13, %v1093_v13 }
 0x338   :  { %v2841_v0 = vpack.c.bf16 %v2717_v50, %v2717_v50  ;;  %v4044_v26 = vpop.f32.mrf.mxu2 }
 0x339   :  { %v4045_v34 = vadd.f32 %v10160_v25, %v4044_v26 }
 0x33a   :  { %v3087_v33 = vunpack.c.l.b16 %v2841_v0 }
 0x33b   :  { %v4325_v61 = vmax.f32 %v4045_v34, 0.0  ;;  %v2472_v47 = vpop.f32.mrf.mxu1 }
 0x33c   :  { %v2473_v32 = vadd.f32 %v10180_v36, %v2472_v47  ;;  %v3250_v17 = vpack.c.b16 %v3087_v33, %v3086_v12  ;;  %v889_v47 = vpop.f32.mrf.mxu0 }
 0x33d   :  { %v4447_v28 = vpack.c.bf16 %v4325_v61, %v4325_v61  ;;  %v888_v61 = vadd.f32 %v10323_v15, %v887_v54  ;;  %v890_v3 = vadd.f32 %v10323_v15, %v889_v47 }
 0x33e   :  { %v2718_v46 = vmax.f32 %v2473_v32, 0.0  ;;  %1714 = vrot.lane.b32.xlu0 %v1619_v49, %s9457_s27  ;;  %3331 = vrot.lane.b32.xlu1 %v3250_v17, %s9458_s30  ;;  %v9123_v49 = vld [vmem:[%s12128_s0 + $0x150] sm:$0xff] }
 0x33f   :  { %4621 = vst.msk [vmem:[#allocation2 + $0x10] sm:$0xf] %vm4553_vm9, %v4447_v28  ;;  %7912 = vmatmul.msk.bf16.gmra.mxu0 %vm501_vm2, %v9123_v49 }
 0x340   :  { %v2842_v56 = vpack.c.bf16 %v2718_v46, %v2718_v46  ;;  %v3318_v51 = vpop.permute.xlu0 %3317  ;;  %v10379_v5 = vpop.f32.mrf.mxu2  ;;  %v1469_v46 = vunpack.c.l.b16 %v1219_v2 }
 0x341   :  { %v3579_v21 = vsel %vm2086_vm5, %v10138_v8, %v3318_v51  ;;  %v1620_v8 = vpack.c.b16 %v1468_v42, %v1467_v43 }
 0x342   :  { %v3088_v31 = vunpack.c.l.b16 %v2842_v56  ;;  %v1094_v56 = vmax.f32 %v888_v61, 0.0 }
 0x343   :  { %v2475_v12 = vpop.f32.mrf.mxu1 }
 0x344   :  { %v2476_v20 = vadd.f32 %v10180_v36, %v2475_v12  ;;  %v10385_v10 = vpack.c.b16 %v3088_v31, %v3087_v33  ;;  %v1220_v54 = vpack.c.bf16 %v1094_v56, %v1094_v56  ;;  %v10411_v12 = vpack.c.b16 %v1469_v46, %v1468_v42  ;;  %v892_v13 = vpop.f32.mrf.mxu0 }
 0x346   :  { %v2719_v50 = vmax.f32 %v2476_v20, 0.0  ;;  %3456 = vrot.lane.b32.xlu2 %v10385_v10, %s9459_s28  ;;  %1841 = vrot.lane.b32.xlu1 %v10381_v40, %s9458_s30  ;;  %v3445_v20 = vpop.permute.xlu2 %3444 }
 0x348   :  { %v2843_v0 = vpack.c.bf16 %v2719_v50, %v2719_v50  ;;  %v1828_v26 = vpop.permute.xlu0 %1827  ;;  %v3443_v34 = vpop.permute.xlu1 %3442 }
 0x349   :  { %v2140_v19 = vsel %vm2086_vm5, %v1980_v37, %v1828_v26  ;;  %v3749_v33 = vsel %vm3721_vm7, %v3579_v21, %v3443_v34  ;;  %v10397_v22 = vpop.f32.mrf.mxu2  ;;  %v1470_v26 = vunpack.c.l.b16 %v1220_v54  ;;  %v1095_v34 = vmax.f32 %v890_v3, 0.0 }
 0x34a   :  { %v3089_v44 = vunpack.c.l.b16 %v2843_v0  ;;  %7963 = vmatmul.msk.bf16.gmra.mxu1 %vm2227_vm6, %v2140_v19  ;;  %8024 = vmatmul.msk.bf16.gmra.mxu2 %vm3872_vm8, %v3749_v33 }
 0x34b   :  { %v2477_v32 = vpop.f32.mrf.mxu1  ;;  %v1621_v47 = vpack.c.b16 %v1470_v26, %v1469_v46 }
 0x34c   :  { %v2478_v17 = vadd.f32 %v10180_v36, %v2477_v32  ;;  %v3251_v28 = vpack.c.b16 %v3089_v44, %v3088_v31 }
 0x34e   :  { %v2720_v55 = vmax.f32 %v2478_v17, 0.0  ;;  %1716 = vrot.lane.b32.xlu1 %v1620_v8, %s9457_s27  ;;  %3333 = vrot.lane.b32.xlu2 %v3251_v28, %s9458_s30  ;;  %v893_v17 = vadd.f32 %v10323_v15, %v892_v13  ;;  %v3322_v56 = vpop.permute.xlu2 %3321 }
 0x350   :  { %v2844_v51 = vpack.c.bf16 %v2720_v55, %v2720_v55  ;;  %v3320_v45 = vpop.permute.xlu1 %3319  ;;  %v1703_v37 = vpop.permute.xlu0 %1702  ;;  %v1096_v46 = vmax.f32 %v893_v17, 0.0 }
 0x351   :  { %v10409_v6 = vpop.f32.mrf.mxu2  ;;  %v3582_v0 = vsel %vm2086_vm5, %v10212_v16, %v3320_v45  ;;  %v1983_v19 = vsel %vm1899_vm4, %v10207_v11, %v1703_v37  ;;  %v9124_v16 = vld [vmem:[%s12128_s0 + $0x158] sm:$0xff]  ;;  %v1221_v11 = vpack.c.bf16 %v1095_v34, %v1095_v34 }
 0x352   :  { %v3090_v43 = vunpack.c.l.b16 %v2844_v51  ;;  %v3751_v8 = vsel %vm3721_vm7, %v3582_v0, %v3445_v20  ;;  %7913 = vmatmul.msk.bf16.gmra.mxu0 %vm501_vm2, %v9124_v16  ;;  %v894_v20 = vpop.f32.mrf.mxu0  ;;  %v1222_v0 = vpack.c.bf16 %v1096_v46, %v1096_v46  ;;  %v3585_v16 = vsel %vm2086_vm5, %v10245_v62, %v3322_v56 }
 0x353   :  { %v1471_v3 = vunpack.c.l.b16 %v1221_v11  ;;  %v895_v34 = vadd.f32 %v10323_v15, %v894_v20 }
 0x354   :  { %v2480_v50 = vpop.f32.mrf.mxu1  ;;  %v10414_v31 = vpack.c.b16 %v3090_v43, %v3089_v44 }
 0x355   :  { %v2481_v21 = vadd.f32 %v10180_v36, %v2480_v50 }
 0x356   :  { %1843 = vrot.lane.b32.xlu2 %v10411_v12, %s9458_s30  ;;  %3458 = vrot.lane.b32.xlu0 %v10414_v31, %s9459_s28 }
 0x357   :  { %v2721_v42 = vmax.f32 %v2481_v21, 0.0 }
 0x358   :  { %v1830_v33 = vpop.permute.xlu1 %1829 }
 0x359   :  { %v2845_v49 = vpack.c.bf16 %v2721_v42, %v2721_v42  ;;  %v2142_v44 = vsel %vm2086_vm5, %v1983_v19, %v1830_v33  ;;  %v4054_v2 = vpop.f32.mrf.mxu2  ;;  %v10439_v42 = vpack.c.b16 %v1471_v3, %v1470_v26  ;;  %v1097_v26 = vmax.f32 %v895_v34, 0.0 }
 0x35a   :  { %v4055_v61 = vadd.f32 %v10160_v25, %v4054_v2  ;;  %7964 = vmatmul.msk.bf16.gmra.mxu1 %vm2227_vm6, %v2142_v44  ;;  %8025 = vmatmul.msk.bf16.gmra.mxu2 %vm3872_vm8, %v3751_v8  ;;  %v1832_v44 = vpop.permute.xlu2 %1831  ;;  %v1472_v2 = vunpack.c.l.b16 %v1222_v0 }
 0x35b   :  { %v3091_v32 = vunpack.c.l.b16 %v2845_v49 }
 0x35c   :  { %v4329_v28 = vmax.f32 %v4055_v61, 0.0  ;;  %v2482_v55 = vpop.f32.mrf.mxu1 }
 0x35d   :  { %v2483_v51 = vadd.f32 %v10180_v36, %v2482_v55  ;;  %v3252_v45 = vpack.c.b16 %v3091_v32, %v3090_v43  ;;  %v1622_v55 = vpack.c.b16 %v1472_v2, %v1471_v3 }
 0x35e   :  { %v4451_v54 = vpack.c.bf16 %v4329_v28, %v4329_v28  ;;  %1718 = vrot.lane.b32.xlu2 %v1621_v47, %s9457_s27  ;;  %v897_v47 = vpop.f32.mrf.mxu0  ;;  %v1223_v28 = vpack.c.bf16 %v1097_v26, %v1097_v26 }
 0x35f   :  { %v2722_v50 = vmax.f32 %v2483_v51, 0.0  ;;  %3335 = vrot.lane.b32.xlu0 %v3252_v45, %s9458_s30  ;;  %v898_v51 = vadd.f32 %v10323_v15, %v897_v47 }
 0x360   :  { %4637 = vst.msk [vmem:[#allocation2 + $0x14] sm:$0xf] %vm4553_vm9, %v4451_v54  ;;  %v1705_v21 = vpop.permute.xlu1 %1704  ;;  %v1473_v56 = vunpack.c.l.b16 %v1223_v28 }
 0x361   :  { %v2846_v13 = vpack.c.bf16 %v2722_v50, %v2722_v50  ;;  %v1986_v49 = vsel %vm1899_vm4, %v10241_v27, %v1705_v21  ;;  %v1098_v50 = vmax.f32 %v898_v51, 0.0  ;;  %v9125_v21 = vld [vmem:[%s12128_s0 + $0x160] sm:$0xff] }
 0x362   :  { %v2144_v27 = vsel %vm2086_vm5, %v1986_v49, %v1832_v44  ;;  %v10464_v34 = vpack.c.b16 %v1473_v56, %v1472_v2  ;;  %7914 = vmatmul.msk.bf16.gmra.mxu0 %vm501_vm2, %v9125_v21 }
 0x363   :  { %v3092_v37 = vunpack.c.l.b16 %v2846_v13  ;;  %v1224_v0 = vpack.c.bf16 %v1098_v50, %v1098_v50 }
 0x364   :  { %v2485_v43 = vpop.f32.mrf.mxu1 }
 0x365   :  { %v2486_v19 = vadd.f32 %v10180_v36, %v2485_v43  ;;  %v10443_v33 = vpack.c.b16 %v3092_v37, %v3091_v32 }
 0x367   :  { %v2723_v8 = vmax.f32 %v2486_v19, 0.0  ;;  %1845 = vrot.lane.b32.xlu0 %v10439_v42, %s9458_s30  ;;  %3460 = vrot.lane.b32.xlu1 %v10443_v33, %s9459_s28  ;;  %v1474_v19 = vunpack.c.l.b16 %v1224_v0 }
 0x368   :  { %v3447_v61 = vpop.permute.xlu0 %3446 }
 0x369   :  { %v2847_v32 = vpack.c.bf16 %v2723_v8, %v2723_v8  ;;  %v3753_v11 = vsel %vm3721_vm7, %v3585_v16, %v3447_v61  ;;  %v1623_v61 = vpack.c.b16 %v1474_v19, %v1473_v56  ;;  %v9126_v56 = vld [vmem:[%s12128_s0 + $0x168] sm:$0xff] }
 0x36a   :  { %7965 = vmatmul.msk.bf16.gmra.mxu1 %vm2227_vm6, %v2144_v27  ;;  %8026 = vmatmul.msk.bf16.gmra.mxu2 %vm3872_vm8, %v3753_v11 }
 0x36b   :  { %v3093_v17 = vunpack.c.l.b16 %v2847_v32  ;;  %v899_v32 = vpop.f32.mrf.mxu0 }
 0x36c   :  { %v2487_v45 = vpop.f32.mrf.mxu1  ;;  %v900_v27 = vadd.f32 %v10323_v15, %v899_v32 }
 0x36d   :  { %v2488_v54 = vadd.f32 %v10180_v36, %v2487_v45  ;;  %v3253_v62 = vpack.c.b16 %v3093_v17, %v3092_v37  ;;  %v1707_v37 = vpop.permute.xlu2 %1706  ;;  %v10488_v45 = vpop.f32.mrf.mxu2 }
 0x36e   :  { %v1989_v49 = vsel %vm1899_vm4, %v10265_v29, %v1707_v37 }
 0x36f   :  { %v2724_v20 = vmax.f32 %v2488_v54, 0.0  ;;  %1720 = vrot.lane.b32.xlu0 %v1622_v55, %s9457_s27  ;;  %3337 = vrot.lane.b32.xlu1 %v3253_v62, %s9458_s30 }
 0x370   :  { %v3324_v46 = vpop.permute.xlu0 %3323 }
 0x371   :  { %v2848_v13 = vpack.c.bf16 %v2724_v20, %v2724_v20  ;;  %v3588_v44 = vsel %vm2086_vm5, %v10267_v30, %v3324_v46  ;;  %v1099_v20 = vmax.f32 %v900_v27, 0.0 }
 0x372   :  { %7915 = vmatmul.msk.bf16.gmra.mxu0 %vm501_vm2, %v9126_v56 }
 0x373   :  { %v3094_v3 = vunpack.c.l.b16 %v2848_v13  ;;  %v1225_v13 = vpack.c.bf16 %v1099_v20, %v1099_v20 }
 0x375   :  { %v10467_v43 = vpack.c.b16 %v3094_v3, %v3093_v17  ;;  %v3451_v11 = vpop.permute.xlu2 %3450 }
 0x377   :  { %3462 = vrot.lane.b32.xlu2 %v10467_v43, %s9459_s28  ;;  %1847 = vrot.lane.b32.xlu1 %v10464_v34, %s9458_s30 }
 0x378   :  { %v1834_v2 = vpop.permute.xlu0 %1833  ;;  %v3449_v8 = vpop.permute.xlu1 %3448 }
 0x379   :  { %v2146_v26 = vsel %vm2086_vm5, %v1989_v49, %v1834_v2  ;;  %v3755_v16 = vsel %vm3721_vm7, %v3588_v44, %v3449_v8  ;;  %v1475_v2 = vunpack.c.l.b16 %v1225_v13 }
 0x37a   :  { %7966 = vmatmul.msk.bf16.gmra.mxu1 %vm2227_vm6, %v2146_v26  ;;  %8027 = vmatmul.msk.bf16.gmra.mxu2 %vm3872_vm8, %v3755_v16  ;;  %v10501_v16 = vpop.f32.mrf.mxu2 }
 0x37d   :  { %v3328_v0 = vpop.permute.xlu2 %3327 }
 0x37f   :  { %1722 = vrot.lane.b32.xlu1 %v1623_v61, %s9457_s27 }
 0x380   :  { %v3326_v47 = vpop.permute.xlu1 %3325  ;;  %v1709_v29 = vpop.permute.xlu0 %1708 }
 0x381   :  { %v3591_v30 = vsel %vm2086_vm5, %v10291_v24, %v3326_v47  ;;  %v1992_v28 = vsel %vm1899_vm4, %v10289_v60, %v1709_v29  ;;  %v902_v60 = vpop.f32.mrf.mxu0  ;;  %v10508_v29 = vpack.c.b16 %v1475_v2, %v1474_v19 }
 0x382   :  { %v3757_v62 = vsel %vm3721_vm7, %v3591_v30, %v3451_v11  ;;  %v903_v21 = vadd.f32 %v10323_v15, %v902_v60 }
 0x384   :  { %v1100_v26 = vmax.f32 %v903_v21, 0.0 }
 0x386   :  { %v10506_v11 = vpack.c.bf16 %v1100_v26, %v1100_v26 }
 0x387   :  { %v2490_v17 = vpop.f32.mrf.mxu1 }
 0x388   :  { %v2491_v55 = vadd.f32 %v10180_v36, %v2490_v17  ;;  %v1836_v51 = vpop.permute.xlu1 %1835  ;;  %v1838_v17 = vpop.permute.xlu2 %1837  ;;  %v1476_v19 = vunpack.c.l.b16 %v10506_v11 }
 0x389   :  { %v2148_v54 = vsel %vm2086_vm5, %v1992_v28, %v1836_v51 }
 0x38a   :  { %v2725_v24 = vmax.f32 %v2491_v55, 0.0  ;;  %7967 = vmatmul.msk.bf16.gmra.mxu1 %vm2227_vm6, %v2148_v54  ;;  %8028 = vmatmul.msk.bf16.gmra.mxu2 %vm3872_vm8, %v3757_v62  ;;  %v9127_v55 = vld [vmem:[%s12128_s0 + $0x170] sm:$0xff]  ;;  %v1624_v51 = vpack.c.b16 %v1476_v19, %v1475_v2  ;;  %v904_v62 = vpop.f32.mrf.mxu0 }
 0x38b   :  { %7916 = vmatmul.msk.bf16.gmra.mxu0 %vm501_vm2, %v9127_v55 }
 0x38c   :  { %v2849_v50 = vpack.c.bf16 %v2725_v24, %v2725_v24 }
 0x38e   :  { %v3095_v46 = vunpack.c.l.b16 %v2849_v50 }
 0x38f   :  { %v2492_v37 = vpop.f32.mrf.mxu1 }
 0x390   :  { %v2493_v49 = vadd.f32 %v10180_v36, %v2492_v37  ;;  %v3254_v44 = vpack.c.b16 %v3095_v46, %v3094_v3  ;;  %v1711_v47 = vpop.permute.xlu1 %1710  ;;  %v3594_v3 = vsel %vm2086_vm5, %v10313_v59, %v3328_v0  ;;  %v10531_v59 = vpop.f32.mrf.mxu2 }
 0x391   :  { %v1995_v36 = vsel %vm1899_vm4, %v10309_v38, %v1711_v47  ;;  %v1713_v56 = vpop.permute.xlu2 %1712 }
 0x392   :  { %v2726_v8 = vmax.f32 %v2493_v49, 0.0  ;;  %3339 = vrot.lane.b32.xlu2 %v3254_v44, %s9458_s30  ;;  %v2150_v38 = vsel %vm2086_vm5, %v1995_v36, %v1838_v17  ;;  %v1998_v60 = vsel %vm1899_vm4, %v10337_v14, %v1713_v56  ;;  %v9128_v49 = vld [vmem:[%s12128_s0 + $0x178] sm:$0xff]  ;;  %v907_v2 = vpop.f32.mrf.mxu0  ;;  %v905_v56 = vadd.f32 %v10323_v15, %v904_v62 }
 0x394   :  { %v10503_v61 = vpack.c.bf16 %v2726_v8, %v2726_v8 }
 0x396   :  { %v3096_v32 = vunpack.c.l.b16 %v10503_v61 }
 0x398   :  { %v3453_v30 = vpop.permute.xlu0 %3452  ;;  %v10516_v27 = vpack.c.b16 %v3096_v32, %v3095_v46 }
 0x399   :  { %v3759_v28 = vsel %vm3721_vm7, %v3594_v3, %v3453_v30  ;;  %v9129_v30 = vld [vmem:[%s12128_s0 + $0x180] sm:$0xff] }
 0x39a   :  { %1849 = vrot.lane.b32.xlu2 %v10508_v29, %s9458_s30  ;;  %3464 = vrot.lane.b32.xlu0 %v10516_v27, %s9459_s28  ;;  %v909_v14 = vpop.f32.mrf.mxu0 }
 0x39b   :  { %7968 = vmatmul.msk.bf16.gmra.mxu1 %vm2227_vm6, %v2150_v38  ;;  %8029 = vmatmul.msk.bf16.gmra.mxu2 %vm3872_vm8, %v3759_v28 }
 0x39c   :  { %7917 = vmatmul.msk.bf16.gmra.mxu0 %vm501_vm2, %v9128_v49 }
 0x3a0   :  { %v3330_v54 = vpop.permute.xlu0 %3329 }
 0x3a1   :  { %v3597_v50 = vsel %vm2086_vm5, %v10341_v39, %v3330_v54  ;;  %v3457_v39 = vpop.permute.xlu2 %3456 }
 0x3a2   :  { %1724 = vrot.lane.b32.xlu2 %v1624_v51, %s9457_s27  ;;  %v10562_v28 = vpop.f32.mrf.mxu0 }
 0x3a5   :  { %v4064_v24 = vpop.f32.mrf.mxu2 }
 0x3a6   :  { %v4065_v20 = vadd.f32 %v10160_v25, %v4064_v24  ;;  %v10574_v24 = vld [vmem:[%s12132_s4] ss:$0 sm:$0xff] }
 0x3a8   :  { %v4333_v46 = vmax.f32 %v4065_v20, 0.0  ;;  %v1840_v13 = vpop.permute.xlu0 %1839  ;;  %v3455_v21 = vpop.permute.xlu1 %3454 }
 0x3a9   :  { %v2152_v0 = vsel %vm2086_vm5, %v1998_v60, %v1840_v13  ;;  %v3761_v37 = vsel %vm3721_vm7, %v3597_v50, %v3455_v21  ;;  %v1101_v21 = vmax.f32 %v905_v56, 0.0  ;;  %v910_v56 = vadd.f32 %v10323_v15, %v909_v14  ;;  %v9131_v14 = vld [vmem:[%s12128_s0 + $0x190] sm:$0xff] }
 0x3aa   :  { %v4455_v44 = vpack.c.bf16 %v4333_v46, %v4333_v46  ;;  %v10577_v50 = vpop.f32.mrf.mxu0 }
 0x3ab   :  { %7969 = vmatmul.msk.bf16.gmra.mxu1 %vm2227_vm6, %v2152_v0  ;;  %8030 = vmatmul.msk.bf16.gmra.mxu2 %vm3872_vm8, %v3761_v37 }
 0x3ac   :  { %4653 = vst.msk [vmem:[#allocation2 + $0x18] sm:$0xf] %vm4553_vm9, %v4455_v44  ;;  %7918 = vmatmul.msk.bf16.gmra.mxu0 %vm501_vm2, %v9129_v30  ;;  %v908_v44 = vadd.f32 %v10323_v15, %v907_v2 }
 0x3ae   :  { %v1102_v30 = vmax.f32 %v908_v44, 0.0  ;;  %v10627_v44 = vld [vmem:[%s12134_s6] ss:$0 sm:$0xff] }
 0x3b0   :  { %v3332_v25 = vpop.permute.xlu1 %3331  ;;  %v1715_v8 = vpop.permute.xlu0 %1714 }
 0x3b1   :  { %v3600_v26 = vsel %vm2086_vm5, %v10363_v52, %v3332_v25  ;;  %v2001_v47 = vsel %vm1899_vm4, %v10359_v63, %v1715_v8  ;;  %v3334_v52 = vpop.permute.xlu2 %3333  ;;  %v10564_v63 = vpop.f32.mrf.mxu2 }
 0x3b2   :  { %v3763_v17 = vsel %vm3721_vm7, %v3600_v26, %v3457_v39  ;;  %v3603_v54 = vsel %vm2086_vm5, %v10385_v10, %v3334_v52  ;;  %v1227_v39 = vpack.c.bf16 %v1101_v21, %v1101_v21 }
 0x3b8   :  { %v1842_v36 = vpop.permute.xlu1 %1841 }
 0x3b9   :  { %v2154_v3 = vsel %vm2086_vm5, %v2001_v47, %v1842_v36  ;;  %v1844_v46 = vpop.permute.xlu2 %1843 }
 0x3bb   :  { %7970 = vmatmul.msk.bf16.gmra.mxu1 %vm2227_vm6, %v2154_v3  ;;  %8031 = vmatmul.msk.bf16.gmra.mxu2 %vm3872_vm8, %v3763_v17  ;;  %v1477_v17 = vunpack.c.l.b16 %v1227_v39  ;;  %v913_v39 = vadd.f32 %v10323_v15, %v10562_v28 }
 0x3bc   :  { %v10594_v3 = vpop.f32.mrf.mxu0 }
 0x3c0   :  { %v1717_v55 = vpop.permute.xlu1 %1716 }
 0x3c1   :  { %v2004_v38 = vsel %vm1899_vm4, %v10381_v40, %v1717_v55  ;;  %v9130_v40 = vld [vmem:[%s12128_s0 + $0x188] sm:$0xff] }
 0x3c2   :  { %v2156_v62 = vsel %vm2086_vm5, %v2004_v38, %v1844_v46  ;;  %7919 = vmatmul.msk.bf16.gmra.mxu0 %vm501_vm2, %v9130_v40  ;;  %v1719_v38 = vpop.permute.xlu2 %1718 }
 0x3c4   :  { %v10621_v21 = vpop.f32.mrf.mxu0 }
 0x3c7   :  { %v2495_v51 = vpop.f32.mrf.mxu1 }
 0x3c8   :  { %v2496_v20 = vadd.f32 %v10574_v24, %v2495_v51  ;;  %v3459_v60 = vpop.permute.xlu0 %3458  ;;  %v1228_v51 = vpack.c.bf16 %v1102_v30, %v1102_v30 }
 0x3c9   :  { %v3765_v13 = vsel %vm3721_vm7, %v3603_v54, %v3459_v60  ;;  %v2007_v60 = vsel %vm1899_vm4, %v10411_v12, %v1719_v38 }
 0x3ca   :  { %v2727_v10 = vmax.f32 %v2496_v20, 0.0  ;;  %v1478_v12 = vunpack.c.l.b16 %v1228_v51 }
 0x3cb   :  { %7971 = vmatmul.msk.bf16.gmra.mxu1 %vm2227_vm6, %v2156_v62  ;;  %8032 = vmatmul.msk.bf16.gmra.mxu2 %vm3872_vm8, %v3765_v13 }
 0x3cc   :  { %v2851_v0 = vpack.c.bf16 %v2727_v10, %v2727_v10 }
 0x3cd   :  { %v10587_v37 = vpop.f32.mrf.mxu2 }
 0x3ce   :  { %12144 = vst [vmem:[#allocation6_spill] sm:$0xff] %v10587_v37  ;;  %v3097_v49 = vunpack.c.l.b16 %v2851_v0 }
 0x3cf   :  { %v2497_v25 = vpop.f32.mrf.mxu1 }
 0x3d0   :  { %v2498_v8 = vadd.f32 %v10574_v24, %v2497_v25  ;;  %v3255_v26 = vpack.c.b16 %v3097_v49, %v3096_v32  ;;  %v10602_v32 = vpack.c.b16 %v1477_v17, %v1476_v19 }
 0x3d1   :  { %v3336_v47 = vpop.permute.xlu0 %3335  ;;  %v3463_v28 = vpop.permute.xlu2 %3462 }
 0x3d2   :  { %v2728_v36 = vmax.f32 %v2498_v8, 0.0  ;;  %3341 = vrot.lane.b32.xlu0 %v3255_v26, %s9458_s30  ;;  %v3606_v46 = vsel %vm2086_vm5, %v10414_v31, %v3336_v47  ;;  %v1103_v31 = vmax.f32 %v910_v56, 0.0  ;;  %7920 = vmatmul.msk.bf16.gmra.mxu0 %vm501_vm2, %v9131_v14  ;;  %v1625_v26 = vpack.c.b16 %v1478_v12, %v1477_v17 }
 0x3d3   :  { %v1104_v56 = vmax.f32 %v913_v39, 0.0  ;;  %v9132_v39 = vld [vmem:[%s12128_s0 + $0x198] sm:$0xff] }
 0x3d4   :  { %v2852_v52 = vpack.c.bf16 %v2728_v36, %v2728_v36  ;;  %v1229_v47 = vpack.c.bf16 %v1103_v31, %v1103_v31 }
 0x3d5   :  { %v10596_v55 = vpop.f32.mrf.mxu2 }
 0x3d6   :  { %v3098_v2 = vunpack.c.l.b16 %v2852_v52 }
 0x3d7   :  { %v2500_v54 = vpop.f32.mrf.mxu1 }
 0x3d8   :  { %v2501_v61 = vadd.f32 %v10574_v24, %v2500_v54  ;;  %v10604_v20 = vpack.c.b16 %v3098_v2, %v3097_v49 }
 0x3d9   :  { %v1846_v13 = vpop.permute.xlu0 %1845  ;;  %v3461_v40 = vpop.permute.xlu1 %3460 }
 0x3da   :  { %v2729_v10 = vmax.f32 %v2501_v61, 0.0  ;;  %v2158_v62 = vsel %vm2086_vm5, %v2007_v60, %v1846_v13  ;;  %v3767_v11 = vsel %vm3721_vm7, %v3606_v46, %v3461_v40  ;;  %1851 = vrot.lane.b32.xlu0 %v10602_v32, %s9458_s30  ;;  %3466 = vrot.lane.b32.xlu1 %v10604_v20, %s9459_s28  ;;  %v1479_v61 = vunpack.c.l.b16 %v1229_v47  ;;  %v10638_v40 = vpop.f32.mrf.mxu0 }
 0x3db   :  { %7972 = vmatmul.msk.bf16.gmra.mxu1 %vm2227_vm6, %v2158_v62  ;;  %8033 = vmatmul.msk.bf16.gmra.mxu2 %vm3872_vm8, %v3767_v11  ;;  %v915_v62 = vadd.f32 %v10323_v15, %v10577_v50 }
 0x3dc   :  { %v2853_v19 = vpack.c.bf16 %v2729_v10, %v2729_v10 }
 0x3dd   :  { %v4074_v0 = vpop.f32.mrf.mxu2 }
 0x3de   :  { %v3099_v49 = vunpack.c.l.b16 %v2853_v19  ;;  %v4075_v25 = vadd.f32 %v10627_v44, %v4074_v0  ;;  %v10647_v19 = vpack.c.b16 %v1479_v61, %v1478_v12  ;;  %v1105_v12 = vmax.f32 %v915_v62, 0.0 }
 0x3df   :  { %v2502_v8 = vpop.f32.mrf.mxu1 }
 0x3e0   :  { %v4337_v36 = vmax.f32 %v4075_v25, 0.0  ;;  %v2503_v30 = vadd.f32 %v10574_v24, %v2502_v8  ;;  %v3256_v52 = vpack.c.b16 %v3099_v49, %v3098_v2  ;;  %v1230_v2 = vpack.c.bf16 %v1104_v56, %v1104_v56 }
 0x3e1   :  { %v3338_v38 = vpop.permute.xlu1 %3337  ;;  %v1721_v13 = vpop.permute.xlu0 %1720 }
 0x3e2   :  { %v4459_v51 = vpack.c.bf16 %v4337_v36, %v4337_v36  ;;  %v2730_v54 = vmax.f32 %v2503_v30, 0.0  ;;  %1726 = vrot.lane.b32.xlu0 %v1625_v26, %s9457_s27  ;;  %3343 = vrot.lane.b32.xlu1 %v3256_v52, %s9458_s30  ;;  %v3609_v14 = vsel %vm2086_vm5, %v10443_v33, %v3338_v38  ;;  %v2010_v0 = vsel %vm1899_vm4, %v10439_v42, %v1721_v13  ;;  %v924_v30 = vpop.f32.mrf.mxu0 }
 0x3e3   :  { %v3769_v50 = vsel %vm3721_vm7, %v3609_v14, %v3463_v28  ;;  %v1480_v42 = vunpack.c.l.b16 %v1230_v2  ;;  %7921 = vmatmul.msk.bf16.gmra.mxu0 %vm501_vm2, %v9132_v39  ;;  %v918_v52 = vadd.f32 %v10323_v15, %v10594_v3  ;;  %v920_v3 = vadd.f32 %v10323_v15, %v10621_v21 }
 0x3e4   :  { %4669 = vst.msk [vmem:[#allocation2 + $0x1c] sm:$0xf] %vm4553_vm9, %v4459_v51  ;;  %v2854_v60 = vpack.c.bf16 %v2730_v54, %v2730_v54  ;;  %v1231_v51 = vpack.c.bf16 %v1105_v12, %v1105_v12 }
 0x3e5   :  { %v10636_v46 = vpop.f32.mrf.mxu2  ;;  %v1626_v56 = vpack.c.b16 %v1480_v42, %v1479_v61  ;;  %v1106_v13 = vmax.f32 %v918_v52, 0.0  ;;  %v1107_v52 = vmax.f32 %v920_v3, 0.0 }
 0x3e6   :  { %v3100_v17 = vunpack.c.l.b16 %v2854_v60  ;;  %v1481_v2 = vunpack.c.l.b16 %v1231_v51 }
 0x3e7   :  { %v2505_v10 = vpop.f32.mrf.mxu1 }
 0x3e8   :  { %v2506_v11 = vadd.f32 %v10574_v24, %v2505_v10  ;;  %v10645_v31 = vpack.c.b16 %v3100_v17, %v3099_v49 }
 0x3e9   :  { %v1848_v25 = vpop.permute.xlu1 %1847 }
 0x3ea   :  { %v2731_v8 = vmax.f32 %v2506_v11, 0.0  ;;  %v2160_v33 = vsel %vm2086_vm5, %v2010_v0, %v1848_v25  ;;  %3468 = vrot.lane.b32.xlu2 %v10645_v31, %s9459_s28  ;;  %1853 = vrot.lane.b32.xlu1 %v10647_v19, %s9458_s30  ;;  %v1232_v0 = vpack.c.bf16 %v1106_v13, %v1106_v13 }
 0x3eb   :  { %7973 = vmatmul.msk.bf16.gmra.mxu1 %vm2227_vm6, %v2160_v33  ;;  %8034 = vmatmul.msk.bf16.gmra.mxu2 %vm3872_vm8, %v3769_v50  ;;  %v927_v33 = vpop.f32.mrf.mxu0 }
 0x3ec   :  { %v2855_v49 = vpack.c.bf16 %v2731_v8, %v2731_v8  ;;  %v10663_v26 = vpop.permute.xlu2 %3339  ;;  %v1482_v21 = vunpack.c.l.b16 %v1232_v0 }
 0x3ed   :  { %v10665_v47 = vpop.f32.mrf.mxu2 }
 0x3ee   :  { %v3101_v36 = vunpack.c.l.b16 %v2855_v49 }
 0x3ef   :  { %v2507_v38 = vpop.f32.mrf.mxu1 }
 0x3f0   :  { %v2508_v54 = vadd.f32 %v10574_v24, %v2507_v38  ;;  %v3257_v60 = vpack.c.b16 %v3101_v36, %v3100_v17  ;;  %v10677_v17 = vpack.c.b16 %v1481_v2, %v1480_v42 }
 0x3f1   :  { %v1723_v11 = vpop.permute.xlu1 %1722 }
 0x3f2   :  { %v2732_v28 = vmax.f32 %v2508_v54, 0.0  ;;  %1728 = vrot.lane.b32.xlu1 %v1626_v56, %s9457_s27  ;;  %3345 = vrot.lane.b32.xlu2 %v3257_v60, %s9458_s30  ;;  %v2013_v50 = vsel %vm1899_vm4, %v10464_v34, %v1723_v11  ;;  %v1233_v54 = vpack.c.bf16 %v1107_v52, %v1107_v52  ;;  %v1627_v56 = vpack.c.b16 %v1482_v21, %v1481_v2 }
 0x3f3   :  { %v923_v60 = vadd.f32 %v10323_v15, %v10638_v40  ;;  %v929_v11 = vpop.f32.mrf.mxu0  ;;  %v925_v40 = vadd.f32 %v10323_v15, %v924_v30  ;;  %v3612_v30 = vsel %vm2086_vm5, %v10467_v43, %v10663_v26 }
 0x3f4   :  { %v2856_v14 = vpack.c.bf16 %v2732_v28, %v2732_v28  ;;  %v1850_v25 = vpop.permute.xlu2 %1849 }
 0x3f5   :  { %v10672_v10 = vpop.f32.mrf.mxu2  ;;  %v2162_v12 = vsel %vm2086_vm5, %v2013_v50, %v1850_v25  ;;  %v1483_v25 = vunpack.c.l.b16 %v1233_v54 }
 0x3f6   :  { %12145 = vst [vmem:[#allocation7_spill] sm:$0xff] %v10672_v10  ;;  %v3102_v62 = vunpack.c.l.b16 %v2856_v14 }
 0x3f7   :  { %v2510_v39 = vpop.f32.mrf.mxu1  ;;  %v10700_v52 = vpack.c.b16 %v1483_v25, %v1482_v21 }
 0x3f8   :  { %v2511_v61 = vadd.f32 %v10574_v24, %v2510_v39  ;;  %v10679_v8 = vpack.c.b16 %v3102_v62, %v3101_v36  ;;  %v1108_v39 = vmax.f32 %v923_v60, 0.0 }
 0x3fa   :  { %v2733_v49 = vmax.f32 %v2511_v61, 0.0  ;;  %1855 = vrot.lane.b32.xlu2 %v10677_v17, %s9458_s30  ;;  %3470 = vrot.lane.b32.xlu0 %v10679_v8, %s9459_s28 }
 0x3fb   :  { %7974 = vmatmul.msk.bf16.gmra.mxu1 %vm2227_vm6, %v2162_v12 }
 0x3fc   :  { %v2857_v42 = vpack.c.bf16 %v2733_v49, %v2733_v49  ;;  %v1234_v49 = vpack.c.bf16 %v1108_v39, %v1108_v39 }
 0x3fd   :  { %v4084_v36 = vpop.f32.mrf.mxu2 }
 0x3fe   :  { %v3103_v38 = vunpack.c.l.b16 %v2857_v42  ;;  %v4085_v51 = vadd.f32 %v10627_v44, %v4084_v36  ;;  %v932_v36 = vpop.f32.mrf.mxu0 }
 0x3ff   :  { %v2512_v34 = vpop.f32.mrf.mxu1 }
 0x400   :  { %v4341_v28 = vmax.f32 %v4085_v51, 0.0  ;;  %v2513_v13 = vadd.f32 %v10574_v24, %v2512_v34  ;;  %v3258_v14 = vpack.c.b16 %v3103_v38, %v3102_v62  ;;  %v1109_v51 = vmax.f32 %v925_v40, 0.0 }
 0x401   :  { %v1484_v34 = vunpack.c.l.b16 %v1234_v49 }
 0x402   :  { %v4463_v0 = vpack.c.bf16 %v4341_v28, %v4341_v28  ;;  %v2734_v3 = vmax.f32 %v2513_v13, 0.0  ;;  %1730 = vrot.lane.b32.xlu2 %v1627_v56, %s9457_s27  ;;  %3347 = vrot.lane.b32.xlu0 %v3258_v14, %s9458_s30  ;;  %v1235_v28 = vpack.c.bf16 %v1109_v51, %v1109_v51  ;;  %v9133_v51 = vld [vmem:[%s12128_s0 + $0x1a0] sm:$0xff] }
 0x403   :  { %v1628_v39 = vpack.c.b16 %v1484_v34, %v1483_v25  ;;  %v10729_v25 = vld [vmem:[%s12130_s2] ss:$0 sm:$0xff]  ;;  %7922 = vmatmul.msk.bf16.gmra.mxu0 %vm501_vm2, %v9133_v51 }
 0x404   :  { %4685 = vst.msk [vmem:[#allocation2 + $0x20] sm:$0xf] %vm4553_vm9, %v4463_v0  ;;  %v2858_v61 = vpack.c.bf16 %v2734_v3, %v2734_v3  ;;  %v928_v0 = vadd.f32 %v10323_v15, %v927_v33  ;;  %v1485_v43 = vunpack.c.l.b16 %v1235_v28 }
 0x405   :  { %v10696_v2 = vpop.f32.mrf.mxu2 }
 0x406   :  { %12146 = vst [vmem:[#allocation8_spill] sm:$0xff] %v10696_v2  ;;  %v3104_v50 = vunpack.c.l.b16 %v2858_v61  ;;  %v934_v40 = vpop.f32.mrf.mxu0  ;;  %v10724_v33 = vpack.c.b16 %v1485_v43, %v1484_v34 }
 0x407   :  { %v2515_v12 = vpop.f32.mrf.mxu1 }
 0x408   :  { %v2516_v62 = vadd.f32 %v10574_v24, %v2515_v12  ;;  %v10702_v42 = vpack.c.b16 %v3104_v50, %v3103_v38  ;;  %v1110_v12 = vmax.f32 %v928_v0, 0.0 }
 0x40a   :  { %v2735_v54 = vmax.f32 %v2516_v62, 0.0  ;;  %1857 = vrot.lane.b32.xlu0 %v10700_v52, %s9458_s30  ;;  %3472 = vrot.lane.b32.xlu1 %v10702_v42, %s9459_s28 }
 0x40c   :  { %v2859_v56 = vpack.c.bf16 %v2735_v54, %v2735_v54  ;;  %v3465_v60 = vpop.permute.xlu0 %3464  ;;  %v1236_v54 = vpack.c.bf16 %v1110_v12, %v1110_v12 }
 0x40d   :  { %v3771_v21 = vsel %vm3721_vm7, %v3612_v30, %v3465_v60  ;;  %v10712_v38 = vpop.f32.mrf.mxu2 }
 0x40e   :  { %12147 = vst [vmem:[#allocation9_spill] sm:$0xff] %v10712_v38  ;;  %v3105_v13 = vunpack.c.l.b16 %v2859_v56  ;;  %8035 = vmatmul.msk.bf16.gmra.mxu2 %vm3872_vm8, %v3771_v21  ;;  %v937_v21 = vpop.f32.mrf.mxu0 }
 0x40f   :  { %v2517_v14 = vpop.f32.mrf.mxu1 }
 0x410   :  { %v2518_v3 = vadd.f32 %v10574_v24, %v2517_v14  ;;  %v3259_v61 = vpack.c.b16 %v3105_v13, %v3104_v50  ;;  %v930_v50 = vadd.f32 %v10729_v25, %v929_v11  ;;  %v1486_v14 = vunpack.c.l.b16 %v1236_v54 }
 0x412   :  { %v2736_v26 = vmax.f32 %v2518_v3, 0.0  ;;  %1732 = vrot.lane.b32.xlu0 %v1628_v39, %s9457_s27  ;;  %3349 = vrot.lane.b32.xlu1 %v3259_v61, %s9458_s30  ;;  %v1111_v28 = vmax.f32 %v930_v50, 0.0 }
 0x414   :  { %v2860_v49 = vpack.c.bf16 %v2736_v26, %v2736_v26  ;;  %v1237_v61 = vpack.c.bf16 %v1111_v28, %v1111_v28  ;;  %v1629_v26 = vpack.c.b16 %v1486_v14, %v1485_v43 }
 0x415   :  { %v10719_v62 = vpop.f32.mrf.mxu2 }
 0x416   :  { %12148 = vst [vmem:[#allocation10_spill] sm:$0xff] %v10719_v62  ;;  %v3106_v15 = vunpack.c.l.b16 %v2860_v49  ;;  %v939_v62 = vpop.f32.mrf.mxu0  ;;  %v1487_v50 = vunpack.c.l.b16 %v1237_v61 }
 0x418   :  { %v2520_v30 = vpop.f32.mrf.mxu1  ;;  %v10733_v56 = vpack.c.b16 %v3106_v15, %v3105_v13  ;;  %v933_v13 = vadd.f32 %v10729_v25, %v932_v36  ;;  %v9134_v36 = vld [vmem:[%s12128_s0 + $0x1a8] sm:$0xff] }
 0x419   :  { %v2521_v60 = vadd.f32 %v10574_v24, %v2520_v30  ;;  %7923 = vmatmul.msk.bf16.gmra.mxu0 %vm501_vm2, %v9134_v36 }
 0x41a   :  { %3474 = vrot.lane.b32.xlu2 %v10733_v56, %s9459_s28  ;;  %1859 = vrot.lane.b32.xlu1 %v10724_v33, %s9458_s30 }
 0x41b   :  { %v2737_v34 = vmax.f32 %v2521_v60, 0.0 }
 0x41d   :  { %v2861_v0 = vpack.c.bf16 %v2737_v34, %v2737_v34  ;;  %v1112_v34 = vmax.f32 %v933_v13, 0.0 }
 0x41e   :  { %v4094_v11 = vpop.f32.mrf.mxu2 }
 0x41f   :  { %v3107_v3 = vunpack.c.l.b16 %v2861_v0  ;;  %v4095_v39 = vadd.f32 %v10627_v44, %v4094_v11  ;;  %v10751_v0 = vpack.c.b16 %v1487_v50, %v1486_v14  ;;  %v1238_v11 = vpack.c.bf16 %v1112_v34, %v1112_v34 }
 0x420   :  { %v2522_v12 = vpop.f32.mrf.mxu1 }
 0x421   :  { %v4345_v49 = vmax.f32 %v4095_v39, 0.0  ;;  %v2523_v51 = vadd.f32 %v10574_v24, %v2522_v12  ;;  %v3260_v30 = vpack.c.b16 %v3107_v3, %v3106_v15  ;;  %v935_v39 = vadd.f32 %v10729_v25, %v934_v40 }
 0x422   :  { %1734 = vrot.lane.b32.xlu1 %v1629_v26, %s9457_s27  ;;  %v1488_v12 = vunpack.c.l.b16 %v1238_v11  ;;  %v938_v40 = vadd.f32 %v10729_v25, %v937_v21  ;;  %v9135_v21 = vld [vmem:[%s12128_s0 + $0x1b0] sm:$0xff] }
 0x423   :  { %v4467_v60 = vpack.c.bf16 %v4345_v49, %v4345_v49  ;;  %v2738_v54 = vmax.f32 %v2523_v51, 0.0  ;;  %3351 = vrot.lane.b32.xlu2 %v3260_v30, %s9458_s30  ;;  %v1113_v14 = vmax.f32 %v935_v39, 0.0  ;;  %v942_v51 = vpop.f32.mrf.mxu0 }
 0x425   :  { %4701 = vst.msk [vmem:[#allocation2 + $0x24] sm:$0xf] %vm4553_vm9, %v4467_v60  ;;  %v2862_v28 = vpack.c.bf16 %v2738_v54, %v2738_v54  ;;  %v1630_v54 = vpack.c.b16 %v1488_v12, %v1487_v50  ;;  %v1239_v34 = vpack.c.bf16 %v1113_v14, %v1113_v14 }
 0x426   :  { %v10749_v43 = vpop.f32.mrf.mxu2 }
 0x427   :  { %12149 = vst [vmem:[#allocation11_spill] sm:$0xff] %v10749_v43  ;;  %v3108_v15 = vunpack.c.l.b16 %v2862_v28 }
 0x428   :  { %v2525_v61 = vpop.f32.mrf.mxu1 }
 0x429   :  { %v10755_v26 = vpack.c.b16 %v3108_v15, %v3107_v3  ;;  %v2526_v13 = vadd.f32 %v10574_v24, %v2525_v61  ;;  %v1114_v61 = vmax.f32 %v938_v40, 0.0  ;;  %v940_v40 = vadd.f32 %v10729_v25, %v939_v62  ;;  %7924 = vmatmul.msk.bf16.gmra.mxu0 %vm501_vm2, %v9135_v21 }
 0x42b   :  { %v2739_v49 = vmax.f32 %v2526_v13, 0.0  ;;  %1861 = vrot.lane.b32.xlu2 %v10751_v0, %s9458_s30  ;;  %3476 = vrot.lane.b32.xlu0 %v10755_v26, %s9459_s28  ;;  %v1489_v13 = vunpack.c.l.b16 %v1239_v34  ;;  %v1240_v14 = vpack.c.bf16 %v1114_v61, %v1114_v61 }
 0x42d   :  { %v2863_v30 = vpack.c.bf16 %v2739_v49, %v2739_v49  ;;  %v944_v49 = vpop.f32.mrf.mxu0 }
 0x42e   :  { %v10762_v60 = vpop.f32.mrf.mxu2 }
 0x42f   :  { %12150 = vst [vmem:[#allocation12_spill] sm:$0xff] %v10762_v60  ;;  %v3109_v3 = vunpack.c.l.b16 %v2863_v30  ;;  %v10773_v30 = vpack.c.b16 %v1489_v13, %v1488_v12  ;;  %v1115_v12 = vmax.f32 %v940_v40, 0.0 }
 0x430   :  { %v2527_v28 = vpop.f32.mrf.mxu1 }
 0x431   :  { %v3261_v36 = vpack.c.b16 %v3109_v3, %v3108_v15  ;;  %v2528_v11 = vadd.f32 %v10574_v24, %v2527_v28  ;;  %v1490_v28 = vunpack.c.l.b16 %v1240_v14 }
 0x433   :  { %v2740_v38 = vmax.f32 %v2528_v11, 0.0  ;;  %1736 = vrot.lane.b32.xlu2 %v1630_v54, %s9457_s27  ;;  %3353 = vrot.lane.b32.xlu0 %v3261_v36, %s9458_s30  ;;  %v1631_v61 = vpack.c.b16 %v1490_v28, %v1489_v13 }
 0x435   :  { %v2864_v39 = vpack.c.bf16 %v2740_v38, %v2740_v38  ;;  %v947_v43 = vpop.f32.mrf.mxu0 }
 0x436   :  { %v10771_v50 = vpop.f32.mrf.mxu2 }
 0x437   :  { %12151 = vst [vmem:[#allocation13_spill] sm:$0xff] %v10771_v50  ;;  %v3110_v15 = vunpack.c.l.b16 %v2864_v39  ;;  %v1241_v50 = vpack.c.bf16 %v1115_v12, %v1115_v12 }
 0x438   :  { %v2530_v34 = vpop.f32.mrf.mxu1 }
 0x439   :  { %v10777_v54 = vpack.c.b16 %v3110_v15, %v3109_v3  ;;  %v2531_v38 = vadd.f32 %v10574_v24, %v2530_v34  ;;  %v943_v3 = vadd.f32 %v10729_v25, %v942_v51  ;;  %v1491_v10 = vunpack.c.l.b16 %v1241_v50  ;;  %v9136_v51 = vld [vmem:[%s12128_s0 + $0x1b8] sm:$0xff] }
 0x43a   :  { %7925 = vmatmul.msk.bf16.gmra.mxu0 %vm501_vm2, %v9136_v51 }
 0x43b   :  { %v2741_v36 = vmax.f32 %v2531_v38, 0.0  ;;  %1863 = vrot.lane.b32.xlu0 %v10773_v30, %s9458_s30  ;;  %3478 = vrot.lane.b32.xlu1 %v10777_v54, %s9459_s28  ;;  %v1116_v13 = vmax.f32 %v943_v3, 0.0  ;;  %v10795_v12 = vpack.c.b16 %v1491_v10, %v1490_v28 }
 0x43d   :  { %v2865_v11 = vpack.c.bf16 %v2741_v36, %v2741_v36  ;;  %v1242_v50 = vpack.c.bf16 %v1116_v13, %v1116_v13 }
 0x43e   :  { %v4104_v39 = vpop.f32.mrf.mxu2 }
 0x43f   :  { %v3111_v62 = vunpack.c.l.b16 %v2865_v11  ;;  %v4105_v21 = vadd.f32 %v10627_v44, %v4104_v39  ;;  %v1725_v39 = vpop.permute.xlu2 %1724  ;;  %v1492_v3 = vunpack.c.l.b16 %v1242_v50 }
 0x440   :  { %v2532_v34 = vpop.f32.mrf.mxu1 }
 0x441   :  { %v3262_v14 = vpack.c.b16 %v3111_v62, %v3110_v15  ;;  %v4349_v38 = vmax.f32 %v4105_v21, 0.0  ;;  %v2533_v60 = vadd.f32 %v10574_v24, %v2532_v34 }
 0x443   :  { %v4471_v2 = vpack.c.bf16 %v4349_v38, %v4349_v38  ;;  %v2742_v37 = vmax.f32 %v2533_v60, 0.0  ;;  %1738 = vrot.lane.b32.xlu0 %v1631_v61, %s9457_s27  ;;  %3355 = vrot.lane.b32.xlu1 %v3262_v14, %s9458_s30  ;;  %v945_v60 = vadd.f32 %v10729_v25, %v944_v49  ;;  %v2016_v49 = vsel %vm1899_vm4, %v10508_v29, %v1725_v39 }
 0x444   :  { %v3342_v40 = vpop.permute.xlu0 %3341 }
 0x445   :  { %4717 = vst.msk [vmem:[#allocation2 + $0x28] sm:$0xf] %vm4553_vm9, %v4471_v2  ;;  %v2866_v36 = vpack.c.bf16 %v2742_v37, %v2742_v37  ;;  %v949_v2 = vpop.f32.mrf.mxu0  ;;  %v1117_v28 = vmax.f32 %v945_v60, 0.0  ;;  %v3615_v14 = vsel %vm2086_vm5, %v10516_v27, %v3342_v40  ;;  %v948_v60 = vadd.f32 %v10729_v25, %v947_v43 }
 0x446   :  { %v10793_v15 = vpop.f32.mrf.mxu2 }
 0x447   :  { %12152 = vst [vmem:[#allocation14_spill] sm:$0xff] %v10793_v15  ;;  %v3112_v11 = vunpack.c.l.b16 %v2866_v36  ;;  %v1243_v39 = vpack.c.bf16 %v1117_v28, %v1117_v28 }
 0x448   :  { %v2535_v61 = vpop.f32.mrf.mxu1 }
 0x449   :  { %v10799_v21 = vpack.c.b16 %v3112_v11, %v3111_v62  ;;  %v2536_v37 = vadd.f32 %v10574_v24, %v2535_v61  ;;  %v1632_v61 = vpack.c.b16 %v1492_v3, %v1491_v10  ;;  %v1493_v15 = vunpack.c.l.b16 %v1243_v39  ;;  %v9137_v10 = vld [vmem:[%s12128_s0 + $0x1c0] sm:$0xff] }
 0x44a   :  { %7926 = vmatmul.msk.bf16.gmra.mxu0 %vm501_vm2, %v9137_v10 }
 0x44b   :  { %v2743_v34 = vmax.f32 %v2536_v37, 0.0  ;;  %3480 = vrot.lane.b32.xlu2 %v10799_v21, %s9459_s28  ;;  %1865 = vrot.lane.b32.xlu1 %v10795_v12, %s9458_s30 }
 0x44c   :  { %v1852_v62 = vpop.permute.xlu0 %1851  ;;  %v3467_v38 = vpop.permute.xlu1 %3466 }
 0x44d   :  { %v2867_v13 = vpack.c.bf16 %v2743_v34, %v2743_v34  ;;  %v2164_v36 = vsel %vm2086_vm5, %v2016_v49, %v1852_v62  ;;  %v3773_v51 = vsel %vm3721_vm7, %v3615_v14, %v3467_v38  ;;  %v1118_v34 = vmax.f32 %v948_v60, 0.0  ;;  %v952_v14 = vpop.f32.mrf.mxu0 }
 0x44e   :  { %v10812_v50 = vpop.f32.mrf.mxu2  ;;  %7975 = vmatmul.msk.bf16.gmra.mxu1 %vm2227_vm6, %v2164_v36  ;;  %8036 = vmatmul.msk.bf16.gmra.mxu2 %vm3872_vm8, %v3773_v51  ;;  %v950_v36 = vadd.f32 %v10729_v25, %v949_v2  ;;  %v3469_v51 = vpop.permute.xlu2 %3468 }
 0x44f   :  { %12153 = vst [vmem:[#allocation15_spill] sm:$0xff] %v10812_v50  ;;  %v3113_v29 = vunpack.c.l.b16 %v2867_v13  ;;  %v1244_v28 = vpack.c.bf16 %v1118_v34, %v1118_v34 }
 0x450   :  { %v2537_v37 = vpop.f32.mrf.mxu1  ;;  %v1119_v2 = vmax.f32 %v950_v36, 0.0 }
 0x451   :  { %v3263_v27 = vpack.c.b16 %v3113_v29, %v3112_v11  ;;  %v2538_v40 = vadd.f32 %v10574_v24, %v2537_v37  ;;  %v10825_v11 = vpack.c.b16 %v1493_v15, %v1492_v3 }
 0x452   :  { %v1245_v36 = vpack.c.bf16 %v1119_v2, %v1119_v2 }
 0x453   :  { %v2744_v49 = vmax.f32 %v2538_v40, 0.0  ;;  %1740 = vrot.lane.b32.xlu1 %v1632_v61, %s9457_s27  ;;  %3357 = vrot.lane.b32.xlu2 %v3263_v27, %s9458_s30  ;;  %v1494_v40 = vunpack.c.l.b16 %v1244_v28 }
 0x454   :  { %v3344_v62 = vpop.permute.xlu1 %3343  ;;  %v1727_v39 = vpop.permute.xlu0 %1726 }
 0x455   :  { %v2868_v38 = vpack.c.bf16 %v2744_v49, %v2744_v49  ;;  %v3618_v27 = vsel %vm2086_vm5, %v10604_v20, %v3344_v62  ;;  %v2019_v3 = vsel %vm1899_vm4, %v10602_v32, %v1727_v39  ;;  %v1633_v20 = vpack.c.b16 %v1494_v40, %v1493_v15 }
 0x456   :  { %v10823_v43 = vpop.f32.mrf.mxu2  ;;  %v3775_v10 = vsel %vm3721_vm7, %v3618_v27, %v3469_v51  ;;  %v1495_v27 = vunpack.c.l.b16 %v1245_v36 }
 0x457   :  { %12154 = vst [vmem:[#allocation16_spill] sm:$0xff] %v10823_v43  ;;  %v3114_v13 = vunpack.c.l.b16 %v2868_v38  ;;  %v953_v43 = vadd.f32 %v10729_v25, %v952_v14 }
 0x458   :  { %v2540_v60 = vpop.f32.mrf.mxu1  ;;  %v10850_v2 = vpack.c.b16 %v1495_v27, %v1494_v40 }
 0x459   :  { %v10829_v61 = vpack.c.b16 %v3114_v13, %v3113_v29  ;;  %v2541_v37 = vadd.f32 %v10574_v24, %v2540_v60  ;;  %v954_v60 = vpop.f32.mrf.mxu0 }
 0x45b   :  { %v2745_v49 = vmax.f32 %v2541_v37, 0.0  ;;  %1867 = vrot.lane.b32.xlu2 %v10825_v11, %s9458_s30  ;;  %3482 = vrot.lane.b32.xlu0 %v10829_v61, %s9459_s28 }
 0x45c   :  { %v1854_v29 = vpop.permute.xlu1 %1853 }
 0x45d   :  { %v2869_v34 = vpack.c.bf16 %v2745_v49, %v2745_v49  ;;  %v2166_v38 = vsel %vm2086_vm5, %v2019_v3, %v1854_v29  ;;  %v3346_v29 = vpop.permute.xlu2 %3345 }
 0x45e   :  { %v4114_v62 = vpop.f32.mrf.mxu2  ;;  %7976 = vmatmul.msk.bf16.gmra.mxu1 %vm2227_vm6, %v2166_v38  ;;  %8037 = vmatmul.msk.bf16.gmra.mxu2 %vm3872_vm8, %v3775_v10  ;;  %v1120_v38 = vmax.f32 %v953_v43, 0.0 }
 0x45f   :  { %v3115_v28 = vunpack.c.l.b16 %v2869_v34  ;;  %v4115_v37 = vadd.f32 %v10627_v44, %v4114_v62  ;;  %v955_v62 = vadd.f32 %v10729_v25, %v954_v60  ;;  %v3621_v60 = vsel %vm2086_vm5, %v10645_v31, %v3346_v29 }
 0x460   :  { %v2542_v32 = vpop.f32.mrf.mxu1 }
 0x461   :  { %v3264_v39 = vpack.c.b16 %v3115_v28, %v3114_v13  ;;  %v4353_v49 = vmax.f32 %v4115_v37, 0.0  ;;  %v2543_v3 = vadd.f32 %v10574_v24, %v2542_v32  ;;  %v1246_v13 = vpack.c.bf16 %v1120_v38, %v1120_v38  ;;  %v957_v37 = vpop.f32.mrf.mxu0 }
 0x462   :  { %v1121_v40 = vmax.f32 %v955_v62, 0.0  ;;  %v958_v31 = vadd.f32 %v10729_v25, %v957_v37 }
 0x463   :  { %v4475_v51 = vpack.c.bf16 %v4353_v49, %v4353_v49  ;;  %v2746_v15 = vmax.f32 %v2543_v3, 0.0  ;;  %1742 = vrot.lane.b32.xlu2 %v1633_v20, %s9457_s27  ;;  %3359 = vrot.lane.b32.xlu0 %v3264_v39, %s9458_s30  ;;  %v1496_v43 = vunpack.c.l.b16 %v1246_v13 }
 0x464   :  { %v1729_v10 = vpop.permute.xlu1 %1728  ;;  %v1247_v13 = vpack.c.bf16 %v1121_v40, %v1121_v40 }
 0x465   :  { %4733 = vst.msk [vmem:[#allocation2 + $0x2c] sm:$0xf] %vm4553_vm9, %v4475_v51  ;;  %v2870_v34 = vpack.c.bf16 %v2746_v15, %v2746_v15  ;;  %v2022_v20 = vsel %vm1899_vm4, %v10647_v19, %v1729_v10  ;;  %v1856_v3 = vpop.permute.xlu2 %1855  ;;  %v9138_v19 = vld [vmem:[%s12128_s0 + $0x1c8] sm:$0xff] }
 0x466   :  { %v2168_v38 = vsel %vm2086_vm5, %v2022_v20, %v1856_v3  ;;  %7927 = vmatmul.msk.bf16.gmra.mxu0 %vm501_vm2, %v9138_v19  ;;  %v1497_v20 = vunpack.c.l.b16 %v1247_v13 }
 0x467   :  { %v3116_v14 = vunpack.c.l.b16 %v2870_v34  ;;  %v1634_v34 = vpack.c.b16 %v1496_v43, %v1495_v27  ;;  %v10876_v27 = vpop.f32.mrf.mxu2 }
 0x468   :  { %v2545_v32 = vpop.f32.mrf.mxu1 }
 0x469   :  { %v10853_v49 = vpack.c.b16 %v3116_v14, %v3115_v28  ;;  %v2546_v36 = vadd.f32 %v10574_v24, %v2545_v32 }
 0x46b   :  { %v2747_v39 = vmax.f32 %v2546_v36, 0.0  ;;  %1869 = vrot.lane.b32.xlu0 %v10850_v2, %s9458_s30  ;;  %3484 = vrot.lane.b32.xlu1 %v10853_v49, %s9459_s28  ;;  %v959_v36 = vpop.f32.mrf.mxu0 }
 0x46c   :  { %v3471_v28 = vpop.permute.xlu0 %3470 }
 0x46d   :  { %v2871_v51 = vpack.c.bf16 %v2747_v39, %v2747_v39  ;;  %v3777_v15 = vsel %vm3721_vm7, %v3621_v60, %v3471_v28  ;;  %v1122_v60 = vmax.f32 %v958_v31, 0.0  ;;  %v10878_v28 = vpack.c.b16 %v1497_v20, %v1496_v43 }
 0x46e   :  { %7977 = vmatmul.msk.bf16.gmra.mxu1 %vm2227_vm6, %v2168_v38  ;;  %8038 = vmatmul.msk.bf16.gmra.mxu2 %vm3872_vm8, %v3777_v15  ;;  %v1731_v38 = vpop.permute.xlu2 %1730 }
 0x46f   :  { %v3117_v10 = vunpack.c.l.b16 %v2871_v51  ;;  %v1248_v51 = vpack.c.bf16 %v1122_v60, %v1122_v60 }
 0x470   :  { %v2547_v29 = vpop.f32.mrf.mxu1 }
 0x471   :  { %v3265_v62 = vpack.c.b16 %v3117_v10, %v3116_v14  ;;  %v2548_v32 = vadd.f32 %v10574_v24, %v2547_v29  ;;  %v960_v14 = vadd.f32 %v10729_v25, %v959_v36 }
 0x473   :  { %v2748_v39 = vmax.f32 %v2548_v32, 0.0  ;;  %1744 = vrot.lane.b32.xlu0 %v1634_v34, %s9457_s27  ;;  %3361 = vrot.lane.b32.xlu1 %v3265_v62, %s9458_s30  ;;  %v1498_v34 = vunpack.c.l.b16 %v1248_v51  ;;  %v1123_v43 = vmax.f32 %v960_v14, 0.0  ;;  %v962_v31 = vpop.f32.mrf.mxu0  ;;  %v2025_v62 = vsel %vm1899_vm4, %v10677_v17, %v1731_v38  ;;  %v10896_v51 = vpop.f32.mrf.mxu2 }
 0x474   :  { %v3348_v3 = vpop.permute.xlu0 %3347  ;;  %v963_v17 = vadd.f32 %v10729_v25, %v962_v31 }
 0x475   :  { %v2872_v40 = vpack.c.bf16 %v2748_v39, %v2748_v39  ;;  %v3624_v32 = vsel %vm2086_vm5, %v10679_v8, %v3348_v3  ;;  %v1635_v14 = vpack.c.b16 %v1498_v34, %v1497_v20  ;;  %v9139_v20 = vld [vmem:[%s12128_s0 + $0x1d0] sm:$0xff] }
 0x476   :  { %7928 = vmatmul.msk.bf16.gmra.mxu0 %vm501_vm2, %v9139_v20 }
 0x477   :  { %v3118_v37 = vunpack.c.l.b16 %v2872_v40 }
 0x478   :  { %v2550_v15 = vpop.f32.mrf.mxu1 }
 0x479   :  { %v10881_v19 = vpack.c.b16 %v3118_v37, %v3117_v10  ;;  %v2551_v13 = vadd.f32 %v10574_v24, %v2550_v15 }
 0x47b   :  { %v2749_v29 = vmax.f32 %v2551_v13, 0.0  ;;  %3486 = vrot.lane.b32.xlu2 %v10881_v19, %s9459_s28  ;;  %1871 = vrot.lane.b32.xlu1 %v10878_v28, %s9458_s30  ;;  %v1249_v13 = vpack.c.bf16 %v1123_v43, %v1123_v43 }
 0x47c   :  { %v1858_v10 = vpop.permute.xlu0 %1857  ;;  %v3473_v36 = vpop.permute.xlu1 %3472 }
 0x47d   :  { %v2873_v39 = vpack.c.bf16 %v2749_v29, %v2749_v29  ;;  %v2170_v60 = vsel %vm2086_vm5, %v2025_v62, %v1858_v10  ;;  %v3779_v40 = vsel %vm3721_vm7, %v3624_v32, %v3473_v36  ;;  %v1499_v29 = vunpack.c.l.b16 %v1249_v13  ;;  %v10913_v36 = vpop.f32.mrf.mxu2 }
 0x47e   :  { %7978 = vmatmul.msk.bf16.gmra.mxu1 %vm2227_vm6, %v2170_v60  ;;  %8039 = vmatmul.msk.bf16.gmra.mxu2 %vm3872_vm8, %v3779_v40  ;;  %v1124_v62 = vmax.f32 %v963_v17, 0.0 }
 0x47f   :  { %v3119_v15 = vunpack.c.l.b16 %v2873_v39  ;;  %v10907_v43 = vpack.c.b16 %v1499_v29, %v1498_v34 }
 0x480   :  { %v2552_v38 = vpop.f32.mrf.mxu1  ;;  %v10910_v31 = vpack.c.bf16 %v1124_v62, %v1124_v62 }
 0x481   :  { %v3266_v8 = vpack.c.b16 %v3119_v15, %v3118_v37  ;;  %v2553_v3 = vadd.f32 %v10574_v24, %v2552_v38  ;;  %v3475_v24 = vpop.permute.xlu2 %3474 }
 0x482   :  { %v1500_v34 = vunpack.c.l.b16 %v10910_v31 }
 0x483   :  { %v2750_v50 = vmax.f32 %v2553_v3, 0.0  ;;  %1746 = vrot.lane.b32.xlu1 %v1635_v14, %s9457_s27  ;;  %3363 = vrot.lane.b32.xlu2 %v3266_v8, %s9458_s30 }
 0x484   :  { %v3350_v32 = vpop.permute.xlu1 %3349 }
 0x485   :  { %v10902_v10 = vpack.c.bf16 %v2750_v50, %v2750_v50  ;;  %v1733_v50 = vpop.permute.xlu0 %1732  ;;  %v3627_v60 = vsel %vm2086_vm5, %v10702_v42, %v3350_v32  ;;  %v1636_v42 = vpack.c.b16 %v1500_v34, %v1499_v29  ;;  %v9140_v32 = vld [vmem:[%s12128_s0 + $0x1d8] sm:$0xff] }
 0x486   :  { %v2028_v40 = vsel %vm1899_vm4, %v10700_v52, %v1733_v50  ;;  %v964_v52 = vpop.f32.mrf.mxu0  ;;  %7929 = vmatmul.msk.bf16.gmra.mxu0 %vm501_vm2, %v9140_v32 }
 0x487   :  { %v3120_v37 = vunpack.c.l.b16 %v10902_v10 }
 0x489   :  { %v10917_v39 = vpack.c.b16 %v3120_v37, %v3119_v15  ;;  %v3781_v15 = vsel %vm3721_vm7, %v3627_v60, %v3475_v24  ;;  %v3352_v38 = vpop.permute.xlu2 %3351 }
 0x48b   :  { %1873 = vrot.lane.b32.xlu2 %v10907_v43, %s9458_s30  ;;  %3488 = vrot.lane.b32.xlu0 %v10917_v39, %s9459_s28 }
 0x48c   :  { %v1860_v14 = vpop.permute.xlu1 %1859 }
 0x48d   :  { %v2172_v13 = vsel %vm2086_vm5, %v2028_v40, %v1860_v14 }
 0x48e   :  { %7979 = vmatmul.msk.bf16.gmra.mxu1 %vm2227_vm6, %v2172_v13  ;;  %8040 = vmatmul.msk.bf16.gmra.mxu2 %vm3872_vm8, %v3781_v15  ;;  %v967_v14 = vpop.f32.mrf.mxu0 }
 0x491   :  { %v4124_v17 = vpop.f32.mrf.mxu2  ;;  %v1862_v24 = vpop.permute.xlu2 %1861 }
 0x492   :  { %v4125_v8 = vadd.f32 %v10627_v44, %v4124_v17  ;;  %v3630_v44 = vsel %vm2086_vm5, %v10733_v56, %v3352_v38 }
 0x493   :  { %1748 = vrot.lane.b32.xlu2 %v1636_v42, %s9457_s27 }
 0x494   :  { %v4357_v3 = vmax.f32 %v4125_v8, 0.0  ;;  %v1735_v20 = vpop.permute.xlu1 %1734 }
 0x495   :  { %v2031_v29 = vsel %vm1899_vm4, %v10724_v33, %v1735_v20 }
 0x496   :  { %v4479_v62 = vpack.c.bf16 %v4357_v3, %v4357_v3  ;;  %v2174_v60 = vsel %vm2086_vm5, %v2031_v29, %v1862_v24  ;;  %v10949_v15 = vpop.f32.mrf.mxu0 }
 0x498   :  { %4749 = vst.msk [vmem:[#allocation2 + $0x30] sm:$0xf] %vm4553_vm9, %v4479_v62 }
 0x499   :  { %v1737_v42 = vpop.permute.xlu2 %1736 }
 0x49a   :  { %v2034_v33 = vsel %vm1899_vm4, %v10751_v0, %v1737_v42  ;;  %v9141_v0 = vld [vmem:[%s12128_s0 + $0x1e0] sm:$0xff] }
 0x49b   :  { %7930 = vmatmul.msk.bf16.gmra.mxu0 %vm501_vm2, %v9141_v0 }
 0x49d   :  { %v3477_v50 = vpop.permute.xlu0 %3476 }
 0x49e   :  { %v3783_v40 = vsel %vm3721_vm7, %v3630_v44, %v3477_v50  ;;  %7980 = vmatmul.msk.bf16.gmra.mxu1 %vm2227_vm6, %v2174_v60  ;;  %v10959_v62 = vpop.f32.mrf.mxu0 }
 0x49f   :  { %8041 = vmatmul.msk.bf16.gmra.mxu2 %vm3872_vm8, %v3783_v40 }
 0x4a5   :  { %v3354_v13 = vpop.permute.xlu0 %3353 }
 0x4a6   :  { %v3633_v56 = vsel %vm2086_vm5, %v10755_v26, %v3354_v13  ;;  %v3481_v26 = vpop.permute.xlu2 %3480  ;;  %v10969_v50 = vpop.f32.mrf.mxu0 }
 0x4ad   :  { %v1864_v17 = vpop.permute.xlu0 %1863  ;;  %v3479_v38 = vpop.permute.xlu1 %3478 }
 0x4ae   :  { %v2176_v8 = vsel %vm2086_vm5, %v2034_v33, %v1864_v17  ;;  %v3785_v3 = vsel %vm3721_vm7, %v3633_v56, %v3479_v38  ;;  %v3358_v13 = vpop.permute.xlu2 %3357  ;;  %v10975_v42 = vpop.f32.mrf.mxu0  ;;  %v965_v17 = vadd.f32 %v10729_v25, %v964_v52  ;;  %v10985_v38 = vld [vmem:[%s12132_s4] ss:$0 sm:$0xff] }
 0x4af   :  { %7981 = vmatmul.msk.bf16.gmra.mxu1 %vm2227_vm6, %v2176_v8  ;;  %8042 = vmatmul.msk.bf16.gmra.mxu2 %vm3872_vm8, %v3785_v3  ;;  %v10977_v56 = vpop.f32.mrf.mxu2  ;;  %v3639_v3 = vsel %vm2086_vm5, %v10799_v21, %v3358_v13  ;;  %v968_v21 = vadd.f32 %v10729_v25, %v967_v14 }
 0x4b0   :  { %v1125_v52 = vmax.f32 %v965_v17, 0.0  ;;  %v9142_v17 = vld [vmem:[%s12128_s0 + $0x1e8] sm:$0xff] }
 0x4b1   :  { %7931 = vmatmul.msk.bf16.gmra.mxu0 %vm501_vm2, %v9142_v17 }
 0x4b2   :  { %v1251_v13 = vpack.c.bf16 %v1125_v52, %v1125_v52 }
 0x4b5   :  { %v3356_v32 = vpop.permute.xlu1 %3355  ;;  %v1739_v20 = vpop.permute.xlu0 %1738 }
 0x4b6   :  { %v3636_v29 = vsel %vm2086_vm5, %v10777_v54, %v3356_v32  ;;  %v2037_v24 = vsel %vm1899_vm4, %v10773_v30, %v1739_v20  ;;  %v1868_v32 = vpop.permute.xlu2 %1867 }
 0x4b7   :  { %v3787_v40 = vsel %vm3721_vm7, %v3636_v29, %v3481_v26 }
 0x4bd   :  { %v1866_v44 = vpop.permute.xlu1 %1865 }
 0x4be   :  { %v2178_v60 = vsel %vm2086_vm5, %v2037_v24, %v1866_v44  ;;  %v10996_v44 = vpop.f32.mrf.mxu0 }
 0x4bf   :  { %7982 = vmatmul.msk.bf16.gmra.mxu1 %vm2227_vm6, %v2178_v60  ;;  %8043 = vmatmul.msk.bf16.gmra.mxu2 %vm3872_vm8, %v3787_v40 }
 0x4c5   :  { %v1741_v33 = vpop.permute.xlu1 %1740 }
 0x4c6   :  { %v2040_v30 = vsel %vm1899_vm4, %v10795_v12, %v1741_v33 }
 0x4c7   :  { %v2180_v12 = vsel %vm2086_vm5, %v2040_v30, %v1868_v32  ;;  %v1501_v32 = vunpack.c.l.b16 %v1251_v13 }
 0x4c9   :  { %v11011_v52 = vpack.c.b16 %v1501_v32, %v1500_v34 }
 0x4cb   :  { %v2555_v54 = vpop.f32.mrf.mxu1 }
 0x4cc   :  { %v2556_v8 = vadd.f32 %v10985_v38, %v2555_v54 }
 0x4cd   :  { %v3483_v0 = vpop.permute.xlu0 %3482 }
 0x4ce   :  { %v2751_v26 = vmax.f32 %v2556_v8, 0.0  ;;  %v3789_v20 = vsel %vm3721_vm7, %v3639_v3, %v3483_v0  ;;  %v1126_v3 = vmax.f32 %v968_v21, 0.0 }
 0x4cf   :  { %7983 = vmatmul.msk.bf16.gmra.mxu1 %vm2227_vm6, %v2180_v12  ;;  %8044 = vmatmul.msk.bf16.gmra.mxu2 %vm3872_vm8, %v3789_v20  ;;  %v982_v12 = vpop.f32.mrf.mxu0 }
 0x4d0   :  { %v2875_v29 = vpack.c.bf16 %v2751_v26, %v2751_v26  ;;  %v1743_v26 = vpop.permute.xlu2 %1742 }
 0x4d1   :  { %v10994_v24 = vpop.f32.mrf.mxu2  ;;  %v2043_v13 = vsel %vm1899_vm4, %v10825_v11, %v1743_v26 }
 0x4d2   :  { %12155 = vst [vmem:[#allocation17_spill] sm:$0xff] %v10994_v24  ;;  %v3121_v60 = vunpack.c.l.b16 %v2875_v29  ;;  %v970_v29 = vadd.f32 %v10729_v25, %v10949_v15 }
 0x4d3   :  { %v2557_v40 = vpop.f32.mrf.mxu1 }
 0x4d4   :  { %v3267_v33 = vpack.c.b16 %v3121_v60, %v3120_v37  ;;  %v2558_v30 = vadd.f32 %v10985_v38, %v2557_v40  ;;  %v1252_v37 = vpack.c.bf16 %v1126_v3, %v1126_v3  ;;  %v1127_v11 = vmax.f32 %v970_v29, 0.0  ;;  %v11033_v3 = vld [vmem:[%s12134_s6] ss:$0 sm:$0xff] }
 0x4d5   :  { %v3360_v54 = vpop.permute.xlu0 %3359 }
 0x4d6   :  { %v2752_v8 = vmax.f32 %v2558_v30, 0.0  ;;  %3365 = vrot.lane.b32.xlu0 %v3267_v33, %s9458_s30  ;;  %v3642_v33 = vsel %vm2086_vm5, %v10829_v61, %v3360_v54  ;;  %v1502_v15 = vunpack.c.l.b16 %v1252_v37 }
 0x4d8   :  { %v2876_v0 = vpack.c.bf16 %v2752_v8, %v2752_v8  ;;  %v1637_v26 = vpack.c.b16 %v1502_v15, %v1501_v32 }
 0x4d9   :  { %v11007_v14 = vpop.f32.mrf.mxu2 }
 0x4da   :  { %12156 = vst [vmem:[#allocation18_spill] sm:$0xff] %v11007_v14  ;;  %v3122_v10 = vunpack.c.l.b16 %v2876_v0 }
 0x4db   :  { %v2560_v20 = vpop.f32.mrf.mxu1 }
 0x4dc   :  { %v11015_v40 = vpack.c.b16 %v3122_v10, %v3121_v60  ;;  %v2561_v21 = vadd.f32 %v10985_v38, %v2560_v20  ;;  %v973_v20 = vadd.f32 %v10729_v25, %v10959_v62  ;;  %v3487_v62 = vpop.permute.xlu2 %3486 }
 0x4dd   :  { %v1870_v30 = vpop.permute.xlu0 %1869  ;;  %v3485_v8 = vpop.permute.xlu1 %3484 }
 0x4de   :  { %v2753_v17 = vmax.f32 %v2561_v21, 0.0  ;;  %v2182_v31 = vsel %vm2086_vm5, %v2043_v13, %v1870_v30  ;;  %v3791_v34 = vsel %vm3721_vm7, %v3642_v33, %v3485_v8  ;;  %1875 = vrot.lane.b32.xlu0 %v11011_v52, %s9458_s30  ;;  %3490 = vrot.lane.b32.xlu1 %v11015_v40, %s9459_s28  ;;  %v1253_v21 = vpack.c.bf16 %v1127_v11, %v1127_v11  ;;  %v984_v8 = vpop.f32.mrf.mxu0 }
 0x4df   :  { %7984 = vmatmul.msk.bf16.gmra.mxu1 %vm2227_vm6, %v2182_v31  ;;  %8045 = vmatmul.msk.bf16.gmra.mxu2 %vm3872_vm8, %v3791_v34  ;;  %v1128_v34 = vmax.f32 %v973_v20, 0.0 }
 0x4e0   :  { %v2877_v61 = vpack.c.bf16 %v2753_v17, %v2753_v17 }
 0x4e1   :  { %v4134_v60 = vpop.f32.mrf.mxu2 }
 0x4e2   :  { %v3123_v54 = vunpack.c.l.b16 %v2877_v61  ;;  %v4135_v0 = vadd.f32 %v11033_v3, %v4134_v60  ;;  %v1503_v61 = vunpack.c.l.b16 %v1253_v21  ;;  %v983_v21 = vadd.f32 %v10729_v25, %v982_v12 }
 0x4e3   :  { %v2562_v37 = vpop.f32.mrf.mxu1 }
 0x4e4   :  { %v3268_v13 = vpack.c.b16 %v3123_v54, %v3122_v10  ;;  %v4361_v33 = vmax.f32 %v4135_v0, 0.0  ;;  %v2563_v29 = vadd.f32 %v10985_v38, %v2562_v37  ;;  %v985_v0 = vadd.f32 %v10729_v25, %v984_v8 }
 0x4e5   :  { %v3362_v30 = vpop.permute.xlu1 %3361  ;;  %v1745_v11 = vpop.permute.xlu0 %1744  ;;  %v1254_v37 = vpack.c.bf16 %v1128_v34, %v1128_v34  ;;  %v11049_v20 = vpack.c.b16 %v1503_v61, %v1502_v15 }
 0x4e6   :  { %v4483_v17 = vpack.c.bf16 %v4361_v33, %v4361_v33  ;;  %v2754_v31 = vmax.f32 %v2563_v29, 0.0  ;;  %1750 = vrot.lane.b32.xlu0 %v1637_v26, %s9457_s27  ;;  %3367 = vrot.lane.b32.xlu1 %v3268_v13, %s9458_s30  ;;  %v975_v33 = vadd.f32 %v10729_v25, %v10969_v50  ;;  %v3645_v26 = vsel %vm2086_vm5, %v10853_v49, %v3362_v30 }
 0x4e7   :  { %v1133_v34 = vmax.f32 %v985_v0, 0.0  ;;  %v3793_v49 = vsel %vm3721_vm7, %v3645_v26, %v3487_v62  ;;  %v1504_v12 = vunpack.c.l.b16 %v1254_v37  ;;  %v978_v62 = vadd.f32 %v10729_v25, %v10975_v42 }
 0x4e8   :  { %4765 = vst.msk [vmem:[#allocation2 + $0x34] sm:$0xf] %vm4553_vm9, %v4483_v17  ;;  %v2878_v32 = vpack.c.bf16 %v2754_v31, %v2754_v31  ;;  %v2046_v31 = vsel %vm1899_vm4, %v10850_v2, %v1745_v11  ;;  %v1129_v15 = vmax.f32 %v975_v33, 0.0  ;;  %v987_v2 = vpop.f32.mrf.mxu0 }
 0x4e9   :  { %v11042_v60 = vpop.f32.mrf.mxu2  ;;  %v11067_v0 = vpack.c.bf16 %v1133_v34, %v1133_v34 }
 0x4ea   :  { %v3124_v10 = vunpack.c.l.b16 %v2878_v32 }
 0x4eb   :  { %v2565_v13 = vpop.f32.mrf.mxu1 }
 0x4ec   :  { %v11052_v29 = vpack.c.b16 %v3124_v10, %v3123_v54  ;;  %v2566_v17 = vadd.f32 %v10985_v38, %v2565_v13  ;;  %v1132_v54 = vmax.f32 %v983_v21, 0.0  ;;  %v980_v21 = vadd.f32 %v10729_v25, %v10996_v44 }
 0x4ed   :  { %v1872_v8 = vpop.permute.xlu1 %1871 }
 0x4ee   :  { %v2755_v32 = vmax.f32 %v2566_v17, 0.0  ;;  %v2184_v50 = vsel %vm2086_vm5, %v2046_v31, %v1872_v8  ;;  %3492 = vrot.lane.b32.xlu2 %v11052_v29, %s9459_s28  ;;  %1877 = vrot.lane.b32.xlu1 %v11049_v20, %s9458_s30  ;;  %v1638_v17 = vpack.c.b16 %v1504_v12, %v1503_v61  ;;  %v1255_v31 = vpack.c.bf16 %v1129_v15, %v1129_v15  ;;  %v3364_v8 = vpop.permute.xlu2 %3363 }
 0x4ef   :  { %7985 = vmatmul.msk.bf16.gmra.mxu1 %vm2227_vm6, %v2184_v50  ;;  %8046 = vmatmul.msk.bf16.gmra.mxu2 %vm3872_vm8, %v3793_v49  ;;  %v11071_v37 = vpack.c.bf16 %v1132_v54, %v1132_v54  ;;  %v1130_v49 = vmax.f32 %v978_v62, 0.0  ;;  %v3648_v14 = vsel %vm2086_vm5, %v10881_v19, %v3364_v8 }
 0x4f0   :  { %v2879_v30 = vpack.c.bf16 %v2755_v32, %v2755_v32  ;;  %v12141_v32 = vunpack.c.l.b16 %v11067_v0  ;;  %v989_v61 = vpop.f32.mrf.mxu0  ;;  %v1505_v50 = vunpack.c.l.b16 %v1255_v31 }
 0x4f1   :  { %v11065_v11 = vpop.f32.mrf.mxu2  ;;  %v12140_v42 = vunpack.c.l.b16 %v11071_v37 }
 0x4f2   :  { %12157 = vst [vmem:[#allocation19_spill] sm:$0xff] %v11065_v11  ;;  %v3125_v13 = vunpack.c.l.b16 %v2879_v30 }
 0x4f3   :  { %v2567_v24 = vpop.f32.mrf.mxu1 }
 0x4f4   :  { %v3269_v33 = vpack.c.b16 %v3125_v13, %v3124_v10  ;;  %v2568_v26 = vadd.f32 %v10985_v38, %v2567_v24  ;;  %v1131_v10 = vmax.f32 %v980_v21, 0.0  ;;  %v11086_v24 = vpack.c.b16 %v12141_v32, %v12140_v42 }
 0x4f5   :  { %v1747_v54 = vpop.permute.xlu1 %1746  ;;  %v988_v21 = vadd.f32 %v10729_v25, %v987_v2 }
 0x4f6   :  { %v2756_v34 = vmax.f32 %v2568_v26, 0.0  ;;  %1752 = vrot.lane.b32.xlu1 %v1638_v17, %s9457_s27  ;;  %3369 = vrot.lane.b32.xlu2 %v3269_v33, %s9458_s30  ;;  %v990_v17 = vadd.f32 %v10729_v25, %v989_v61  ;;  %v2049_v31 = vsel %vm1899_vm4, %v10878_v28, %v1747_v54  ;;  %v11091_v33 = vpack.c.b16 %v1505_v50, %v1504_v12  ;;  %v1874_v42 = vpop.permute.xlu2 %1873  ;;  %v9143_v12 = vld [vmem:[%s12128_s0 + $0x1f0] sm:$0xff] }
 0x4f7   :  { %v1256_v26 = vpack.c.bf16 %v1130_v49, %v1130_v49  ;;  %v2186_v25 = vsel %vm2086_vm5, %v2049_v31, %v1874_v42  ;;  %7932 = vmatmul.msk.bf16.gmra.mxu0 %vm501_vm2, %v9143_v12 }
 0x4f8   :  { %v2880_v15 = vpack.c.bf16 %v2756_v34, %v2756_v34  ;;  %v1135_v28 = vmax.f32 %v990_v17, 0.0  ;;  %v11116_v54 = vpop.f32.mrf.mxu0 }
 0x4f9   :  { %v11080_v30 = vpop.f32.mrf.mxu2  ;;  %v1506_v19 = vunpack.c.l.b16 %v1256_v26 }
 0x4fa   :  { %12158 = vst [vmem:[#allocation20_spill] sm:$0xff] %v11080_v30  ;;  %v3126_v44 = vunpack.c.l.b16 %v2880_v15  ;;  %v1257_v30 = vpack.c.bf16 %v1131_v10, %v1131_v10  ;;  %v11114_v49 = vpack.c.bf16 %v1135_v28, %v1135_v28 }
 0x4fb   :  { %v2570_v62 = vpop.f32.mrf.mxu1  ;;  %v1639_v10 = vpack.c.b16 %v1506_v19, %v1505_v50 }
 0x4fc   :  { %v11094_v34 = vpack.c.b16 %v3126_v44, %v3125_v13  ;;  %v2571_v15 = vadd.f32 %v10985_v38, %v2570_v62  ;;  %v1507_v2 = vunpack.c.l.b16 %v1257_v30  ;;  %v12142_v30 = vunpack.c.l.b16 %v11114_v49 }
 0x4fd   :  { %v3489_v32 = vpop.permute.xlu0 %3488 }
 0x4fe   :  { %v3795_v61 = vsel %vm3721_vm7, %v3648_v14, %v3489_v32  ;;  %1883 = vrot.lane.b32.xlu1 %v11086_v24, %s9458_s30  ;;  %1879 = vrot.lane.b32.xlu2 %v11091_v33, %s9458_s30  ;;  %v1134_v14 = vmax.f32 %v988_v21, 0.0  ;;  %v2757_v13 = vmax.f32 %v2571_v15, 0.0  ;;  %v11119_v26 = vpack.c.b16 %v1507_v2, %v1506_v19 }
 0x4ff   :  { %3494 = vrot.lane.b32.xlu0 %v11094_v34, %s9459_s28  ;;  %7986 = vmatmul.msk.bf16.gmra.mxu1 %vm2227_vm6, %v2186_v25 }
 0x500   :  { %8047 = vmatmul.msk.bf16.gmra.mxu2 %vm3872_vm8, %v3795_v61  ;;  %v1260_v17 = vpack.c.bf16 %v1134_v14, %v1134_v14  ;;  %v2881_v21 = vpack.c.bf16 %v2757_v13, %v2757_v13 }
 0x501   :  { %v4144_v8 = vpop.f32.mrf.mxu2 }
 0x502   :  { %v4145_v32 = vadd.f32 %v11033_v3, %v4144_v8  ;;  %v1510_v25 = vunpack.c.l.b16 %v1260_v17  ;;  %v3127_v28 = vunpack.c.l.b16 %v2881_v21  ;;  %v994_v8 = vpop.f32.mrf.mxu0 }
 0x503   :  { %v2572_v42 = vpop.f32.mrf.mxu1 }
 0x504   :  { %v4365_v31 = vmax.f32 %v4145_v32, 0.0  ;;  %v2573_v62 = vadd.f32 %v10985_v38, %v2572_v42  ;;  %v11130_v19 = vpack.c.b16 %v12142_v30, %v1510_v25  ;;  %v4010_v32 = vadd.f32 %v11033_v3, %v10193_v58 }
 0x505   :  { %v3270_v17 = vpack.c.b16 %v3127_v28, %v3126_v44  ;;  %v12161_v58 = vunpack.c.l.b16 %v11067_v0 }
 0x506   :  { %v4487_v61 = vpack.c.bf16 %v4365_v31, %v4365_v31  ;;  %v2758_v15 = vmax.f32 %v2573_v62, 0.0  ;;  %1754 = vrot.lane.b32.xlu2 %v1639_v10, %s9457_s27  ;;  %v4311_v31 = vmax.f32 %v4010_v32, 0.0 }
 0x507   :  { %1881 = vrot.lane.b32.xlu0 %v11119_v26, %s9458_s30 }
 0x508   :  { %4781 = vst.msk [vmem:[#allocation2 + $0x38] sm:$0xf] %vm4553_vm9, %v4487_v61  ;;  %v2882_v50 = vpack.c.bf16 %v2758_v15, %v2758_v15  ;;  %v4433_v15 = vpack.c.bf16 %v4311_v31, %v4311_v31 }
 0x509   :  { %v11126_v12 = vpop.f32.mrf.mxu2 }
 0x50a   :  { %12159 = vst [vmem:[#allocation21_spill] sm:$0xff] %v11126_v12  ;;  %v3128_v14 = vunpack.c.l.b16 %v2882_v50  ;;  %v1641_v50 = vpack.c.b16 %v1510_v25, %v12161_v58  ;;  %v997_v11 = vpop.f32.mrf.mxu0 }
 0x50b   :  { %v2575_v13 = vpop.f32.mrf.mxu1 }
 0x50c   :  { %v11134_v42 = vpack.c.b16 %v3128_v14, %v3127_v28  ;;  %v2576_v10 = vadd.f32 %v10985_v38, %v2575_v13  ;;  %v4007_v28 = vadd.f32 %v11033_v3, %v10169_v18  ;;  %v12162_v13 = vunpack.c.l.b16 %v11071_v37 }
 0x50d   :  { %v4017_v18 = vadd.f32 %v11033_v3, %v10233_v53 }
 0x50e   :  { %1885 = vrot.lane.b32.xlu2 %v11130_v19, %s9458_s30  ;;  %3496 = vrot.lane.b32.xlu1 %v11134_v42, %s9459_s28  ;;  %v2759_v62 = vmax.f32 %v2576_v10, 0.0  ;;  %v1640_v12 = vpack.c.b16 %v12162_v13, %v1507_v2  ;;  %v4310_v25 = vmax.f32 %v4007_v28, 0.0  ;;  %v11170_v13 = vld [vmem:[%s12130_s2] ss:$0 sm:$0xff]  ;;  %s9460_s2 = smov 96  }
 0x50f   :  { %3371 = vrot.lane.b32.xlu0 %v3270_v17, %s9458_s30 }
 0x510   :  { %v2883_v30 = vpack.c.bf16 %v2759_v62, %v2759_v62  ;;  %v4432_v58 = vpack.c.bf16 %v4310_v25, %v4310_v25 }
 0x511   :  { %v11142_v21 = vpop.f32.mrf.mxu2 }
 0x512   :  { %12160 = vst [vmem:[#allocation22_spill] sm:$0xff] %v11142_v21  ;;  %v3129_v32 = vunpack.c.l.b16 %v2883_v30  ;;  %v4314_v30 = vmax.f32 %v4017_v18, 0.0  ;;  %v999_v53 = vpop.f32.mrf.mxu0  ;;  %v4037_v21 = vadd.f32 %v11033_v3, %v10333_v4 }
 0x513   :  { %v2577_v61 = vpop.f32.mrf.mxu1 }
 0x514   :  { %v2578_v44 = vadd.f32 %v10985_v38, %v2577_v61  ;;  %v3271_v37 = vpack.c.b16 %v3129_v32, %v3128_v14 }
 0x516   :  { %v2760_v17 = vmax.f32 %v2578_v44, 0.0  ;;  %1758 = vrot.lane.b32.xlu1 %v1641_v50, %s9457_s27  ;;  %4562 = vrot.lane.b32.xlu2 %v4433_v15, %s9454_s22  ;;  %v4020_v15 = vadd.f32 %v11033_v3, %v10254_v41  ;;  %v1000_v41 = vadd.f32 %v11170_v13, %v999_v53 }
 0x517   :  { %1756 = vrot.lane.b32.xlu0 %v1640_v12, %s9457_s27 }
 0x518   :  { %v2884_v0 = vpack.c.bf16 %v2760_v17, %v2760_v17  ;;  %v4315_v14 = vmax.f32 %v4020_v15, 0.0  ;;  %v4012_v17 = vadd.f32 %v11033_v3, %v10200_v1 }
 0x519   :  { %v11154_v10 = vpop.f32.mrf.mxu2 }
 0x51a   :  { %12163 = vst [vmem:[#allocation23_spill] sm:$0xff] %v11154_v10  ;;  %v3130_v31 = vunpack.c.l.b16 %v2884_v0  ;;  %v4022_v0 = vadd.f32 %v11033_v3, %v10261_v57  ;;  %v4437_v15 = vpack.c.bf16 %v4315_v14, %v4315_v14  ;;  %v1139_v57 = vmax.f32 %v1000_v41, 0.0 }
 0x51b   :  { %v2580_v62 = vpop.f32.mrf.mxu1 }
 0x51c   :  { %v11158_v2 = vpack.c.b16 %v3130_v31, %v3129_v32  ;;  %v2581_v61 = vadd.f32 %v10985_v38, %v2580_v62  ;;  %v4436_v32 = vpack.c.bf16 %v4314_v30, %v4314_v30  ;;  %v993_v62 = vadd.f32 %v11170_v13, %v11116_v54 }
 0x51d   :  { %v4312_v30 = vmax.f32 %v4012_v17, 0.0  ;;  %v4316_v54 = vmax.f32 %v4022_v0, 0.0 }
 0x51e   :  { %v2761_v12 = vmax.f32 %v2581_v61, 0.0  ;;  %3373 = vrot.lane.b32.xlu1 %v3271_v37, %s9458_s30  ;;  %3498 = vrot.lane.b32.xlu2 %v11158_v2, %s9459_s28  ;;  %v998_v61 = vadd.f32 %v11170_v13, %v997_v11 }
 0x51f   :  { %4556 = vrot.lane.b32.xlu0 %v4432_v58, %s9459_s28 }
 0x520   :  { %v2885_v50 = vpack.c.bf16 %v2761_v12, %v2761_v12  ;;  %v995_v12 = vadd.f32 %v11170_v13, %v994_v8 }
 0x522   :  { %v3131_v44 = vunpack.c.l.b16 %v2885_v50  ;;  %v4154_v28 = vpop.f32.mrf.mxu2  ;;  %v1137_v10 = vmax.f32 %v995_v12, 0.0 }
 0x523   :  { %v4155_v25 = vadd.f32 %v11033_v3, %v4154_v28  ;;  %v2582_v18 = vpop.f32.mrf.mxu1  ;;  %v1138_v28 = vmax.f32 %v998_v61, 0.0 }
 0x524   :  { %v3272_v37 = vpack.c.b16 %v3131_v44, %v3130_v31  ;;  %v2583_v58 = vadd.f32 %v10985_v38, %v2582_v18  ;;  %v1136_v31 = vmax.f32 %v993_v62, 0.0  ;;  %v4438_v18 = vpack.c.bf16 %v4316_v54, %v4316_v54 }
 0x525   :  { %v4369_v53 = vmax.f32 %v4155_v25, 0.0  ;;  %v11189_v25 = vpack.c.bf16 %v1139_v57, %v1139_v57  ;;  %v1264_v41 = vpack.c.bf16 %v1138_v28, %v1138_v28  ;;  %v4027_v57 = vadd.f32 %v11033_v3, %v10285_v35 }
 0x526   :  { %v2762_v1 = vmax.f32 %v2583_v58, 0.0  ;;  %4575 = vrot.lane.b32.xlu1 %v4436_v32, %s9459_s28  ;;  %3375 = vrot.lane.b32.xlu2 %v3272_v37, %s9458_s30  ;;  %v4434_v32 = vpack.c.bf16 %v4312_v30, %v4312_v30  ;;  %v1262_v37 = vpack.c.bf16 %v1136_v31, %v1136_v31  ;;  %v12164_v30 = vunpack.c.l.b16 %v11114_v49 }
 0x527   :  { %v4491_v50 = vpack.c.bf16 %v4369_v53, %v4369_v53  ;;  %4580 = vrot.lane.b32.xlu0 %v4437_v15, %s9454_s22  ;;  %v1263_v15 = vpack.c.bf16 %v1137_v10, %v1137_v10  ;;  %v12143_v62 = vunpack.c.l.b16 %v11189_v25  ;;  %v1514_v12 = vunpack.c.l.b16 %v1264_v41 }
 0x528   :  { %v2886_v11 = vpack.c.bf16 %v2762_v1, %v2762_v1  ;;  %v1512_v61 = vunpack.c.l.b16 %v1262_v37  ;;  %v4318_v35 = vmax.f32 %v4027_v57, 0.0 }
 0x529   :  { %4797 = vst.msk [vmem:[#allocation2 + $0x3c] sm:$0xf] %vm4553_vm9, %v4491_v50  ;;  %v1513_v53 = vunpack.c.l.b16 %v1263_v15 }
 0x52a   :  { %v3132_v14 = vunpack.c.l.b16 %v2886_v11  ;;  %v11187_v8 = vpop.f32.mrf.mxu2  ;;  %v1642_v50 = vpack.c.b16 %v1512_v61, %v12164_v30  ;;  %v4440_v15 = vpack.c.bf16 %v4318_v35, %v4318_v35 }
 0x52b   :  { %v11209_v31 = vpack.c.b16 %v1513_v53, %v1512_v61  ;;  %v4040_v61 = vadd.f32 %v11033_v3, %v10347_v23 }
 0x52c   :  { %v11191_v17 = vpack.c.b16 %v3132_v14, %v3131_v44  ;;  %v2585_v58 = vpop.f32.mrf.mxu1  ;;  %v11201_v44 = vpack.c.b16 %v12143_v62, %v1514_v12  ;;  %v1643_v62 = vpack.c.b16 %v1514_v12, %v1513_v53 }
 0x52d   :  { %v2586_v0 = vadd.f32 %v10985_v38, %v2585_v58 }
 0x52e   :  { %4568 = vrot.lane.b32.xlu1 %v4434_v32, %s9460_s2  ;;  %4585 = vrot.lane.b32.xlu2 %v4438_v18, %s9460_s2  ;;  %v1002_v32 = vpop.f32.mrf.mxu0 }
 0x52f   :  { %3500 = vrot.lane.b32.xlu0 %v11191_v17, %s9459_s28  ;;  %v2763_v1 = vmax.f32 %v2586_v0, 0.0  ;;  %v4030_v0 = vadd.f32 %v11033_v3, %v10299_v7  ;;  %v1749_v7 = vpop.permute.xlu2 %1748 }
 0x531   :  { %v2887_v28 = vpack.c.bf16 %v2763_v1, %v2763_v1  ;;  %v4319_v57 = vmax.f32 %v4030_v0, 0.0 }
 0x532   :  { %v11203_v10 = vpop.f32.mrf.mxu2 }
 0x533   :  { %v3133_v37 = vunpack.c.l.b16 %v2887_v28  ;;  %v4323_v28 = vmax.f32 %v4040_v61, 0.0 }
 0x534   :  { %v2587_v54 = vpop.f32.mrf.mxu1 }
 0x535   :  { %v2588_v11 = vadd.f32 %v10985_v38, %v2587_v54  ;;  %v3273_v30 = vpack.c.b16 %v3133_v37, %v3132_v14  ;;  %v4441_v14 = vpack.c.bf16 %v4319_v57, %v4319_v57 }
 0x536   :  { %1889 = vrot.lane.b32.xlu1 %v11201_v44, %s9458_s30  ;;  %1760 = vrot.lane.b32.xlu2 %v1642_v50, %s9457_s27 }
 0x537   :  { %v2764_v18 = vmax.f32 %v2588_v11, 0.0  ;;  %1887 = vrot.lane.b32.xlu0 %v11209_v31, %s9458_s30  ;;  %v1004_v11 = vpop.f32.mrf.mxu0 }
 0x539   :  { %v2888_v49 = vpack.c.bf16 %v2764_v18, %v2764_v18 }
 0x53a   :  { %v11217_v41 = vpop.f32.mrf.mxu2 }
 0x53b   :  { %12165 = vst [vmem:[#allocation24_spill] sm:$0xff] %v11217_v41  ;;  %v3134_v58 = vunpack.c.l.b16 %v2888_v49 }
 0x53c   :  { %v2590_v1 = vpop.f32.mrf.mxu1 }
 0x53d   :  { %v11223_v50 = vpack.c.b16 %v3134_v58, %v3133_v37  ;;  %v2591_v54 = vadd.f32 %v10985_v38, %v2590_v1  ;;  %v4445_v37 = vpack.c.bf16 %v4323_v28, %v4323_v28  ;;  %v4322_v28 = vmax.f32 %v4037_v21, 0.0 }
 0x53e   :  { %4591 = vrot.lane.b32.xlu2 %v4440_v15, %s9459_s28 }
 0x53f   :  { %3502 = vrot.lane.b32.xlu1 %v11223_v50, %s9459_s28  ;;  %3377 = vrot.lane.b32.xlu0 %v3273_v30, %s9458_s30  ;;  %v2765_v18 = vmax.f32 %v2591_v54, 0.0  ;;  %v1007_v30 = vpop.f32.mrf.mxu0  ;;  %v4444_v21 = vpack.c.bf16 %v4322_v28, %v4322_v28 }
 0x541   :  { %v2889_v1 = vpack.c.bf16 %v2765_v18, %v2765_v18 }
 0x542   :  { %v4164_v35 = vpop.f32.mrf.mxu2 }
 0x543   :  { %v4165_v23 = vadd.f32 %v11033_v3, %v4164_v35  ;;  %v3135_v12 = vunpack.c.l.b16 %v2889_v1  ;;  %v1005_v35 = vadd.f32 %v11170_v13, %v1004_v11  ;;  %v4032_v1 = vadd.f32 %v11033_v3, %v10307_v48 }
 0x544   :  { %v2592_v49 = vpop.f32.mrf.mxu1 }
 0x545   :  { %v4373_v41 = vmax.f32 %v4165_v23, 0.0  ;;  %v2593_v15 = vadd.f32 %v10985_v38, %v2592_v49 }
 0x546   :  { %4612 = vrot.lane.b32.xlu2 %v4445_v37, %s9454_s22 }
 0x547   :  { %v4495_v0 = vpack.c.bf16 %v4373_v41, %v4373_v41  ;;  %v2766_v61 = vmax.f32 %v2593_v15, 0.0  ;;  %4596 = vrot.lane.b32.xlu1 %v4441_v14, %s9454_s22  ;;  %1762 = vrot.lane.b32.xlu0 %v1643_v62, %s9457_s27  ;;  %v4042_v41 = vadd.f32 %v11033_v3, %v10357_v9  ;;  %v1003_v62 = vadd.f32 %v11170_v13, %v1002_v32 }
 0x548   :  { %v3366_v54 = vpop.permute.xlu0 %3365  ;;  %v11237_v57 = vpop.permute.xlu2 %3492  ;;  %v3274_v14 = vpack.c.b16 %v3135_v12, %v3134_v58  ;;  %v1141_v15 = vmax.f32 %v1005_v35, 0.0  ;;  %v2052_v32 = vsel %vm1899_vm4, %v10907_v43, %v1749_v7  ;;  %v1008_v7 = vadd.f32 %v11170_v13, %v1007_v30 }
 0x549   :  { %4813 = vst.msk [vmem:[#allocation2 + $0x40] sm:$0xf] %vm4553_vm9, %v4495_v0  ;;  %v2890_v53 = vpack.c.bf16 %v2766_v61, %v2766_v61  ;;  %v4324_v9 = vmax.f32 %v4042_v41, 0.0  ;;  %v3651_v58 = vsel %vm2086_vm5, %v10917_v39, %v3366_v54  ;;  %v1140_v48 = vmax.f32 %v1003_v62, 0.0  ;;  %v9155_v54 = vld [vmem:[#allocation3 + $0x38] sm:$0xff] }
 0x54a   :  { %v11240_v18 = vpop.f32.mrf.mxu2  ;;  %v4320_v41 = vmax.f32 %v4032_v1, 0.0  ;;  %v1267_v43 = vpack.c.bf16 %v1141_v15, %v1141_v15  ;;  %7127 = vmatpush.bf16.msra.mxu3 %v9155_v54  ;;  %v9154_v15 = vld [vmem:[#allocation3 + $0x30] sm:$0xff] }
 0x54b   :  { %v3136_v4 = vunpack.c.l.b16 %v2890_v53 }
 0x54c   :  { %v2595_v23 = vpop.f32.mrf.mxu1  ;;  %v4442_v1 = vpack.c.bf16 %v4320_v41, %v4320_v41 }
 0x54d   :  { %v11246_v37 = vpack.c.b16 %v3136_v4, %v3135_v12  ;;  %v2596_v49 = vadd.f32 %v10985_v38, %v2595_v23  ;;  %v1009_v23 = vpop.f32.mrf.mxu0 }
 0x54e   :  { %7128 = vmatpush.bf16.msra.mxu3 %v9154_v15 }
 0x54f   :  { %v2767_v0 = vmax.f32 %v2596_v49, 0.0  ;;  %3379 = vrot.lane.b32.xlu1 %v3274_v14, %s9458_s30  ;;  %3504 = vrot.lane.b32.xlu2 %v11246_v37, %s9459_s28  ;;  %v1010_v49 = vadd.f32 %v11170_v13, %v1009_v23 }
 0x550   :  { %4607 = vrot.lane.b32.xlu0 %v4444_v21, %s9459_s28  ;;  %v1876_v11 = vpop.permute.xlu0 %1875  ;;  %v3491_v61 = vpop.permute.xlu1 %3490  ;;  %v4446_v21 = vpack.c.bf16 %v4324_v9, %v4324_v9 }
 0x551   :  { %v2891_v12 = vpack.c.bf16 %v2767_v0, %v2767_v0  ;;  %v2188_v53 = vsel %vm2086_vm5, %v2052_v32, %v1876_v11  ;;  %v3797_v28 = vsel %vm3721_vm7, %v3651_v58, %v3491_v61  ;;  %v11261_v35 = vpop.permute.xlu2 %3369  ;;  %v1266_v0 = vpack.c.bf16 %v1140_v48, %v1140_v48 }
 0x552   :  { %v11263_v14 = vpop.f32.mrf.mxu2  ;;  %7987 = vmatmul.msk.bf16.gmra.mxu1 %vm2227_vm6, %v2188_v53  ;;  %8048 = vmatmul.msk.bf16.gmra.mxu2 %vm3872_vm8, %v3797_v28  ;;  %v1517_v11 = vunpack.c.l.b16 %v1267_v43  ;;  %v1142_v61 = vmax.f32 %v1008_v7, 0.0  ;;  %v9153_v7 = vld [vmem:[#allocation3 + $0x28] sm:$0xff] }
 0x553   :  { %v3137_v39 = vunpack.c.l.b16 %v2891_v12  ;;  %v1143_v12 = vmax.f32 %v1010_v49, 0.0  ;;  %v1516_v28 = vunpack.c.l.b16 %v1266_v0  ;;  %v4047_v49 = vadd.f32 %v11033_v3, %v10379_v5  ;;  %7129 = vmatpush.bf16.msra.mxu3 %v9153_v7  ;;  %v9152_v5 = vld [vmem:[#allocation3 + $0x20] sm:$0xff] }
 0x554   :  { %v2597_v62 = vpop.f32.mrf.mxu1  ;;  %v1268_v41 = vpack.c.bf16 %v1142_v61, %v1142_v61 }
 0x555   :  { %v3275_v32 = vpack.c.b16 %v3137_v39, %v3136_v4  ;;  %v2598_v58 = vadd.f32 %v10985_v38, %v2597_v62  ;;  %v11279_v23 = vpack.c.b16 %v1517_v11, %v1516_v28  ;;  %v11282_v54 = vpack.c.bf16 %v1143_v12, %v1143_v12 }
 0x556   :  { %v4326_v12 = vmax.f32 %v4047_v49, 0.0 }
 0x557   :  { %v2768_v53 = vmax.f32 %v2598_v58, 0.0  ;;  %4617 = vrot.lane.b32.xlu1 %v4446_v21, %s9460_s2  ;;  %3381 = vrot.lane.b32.xlu2 %v3275_v32, %s9458_s30  ;;  %v12166_v21 = vunpack.c.l.b16 %v11189_v25 }
 0x558   :  { %4601 = vrot.lane.b32.xlu0 %v4442_v1, %s9460_s2  ;;  %v3368_v30 = vpop.permute.xlu1 %3367  ;;  %v1751_v58 = vpop.permute.xlu0 %1750  ;;  %7130 = vmatpush.bf16.msra.mxu3 %v9152_v5 }
 0x559   :  { %v11273_v9 = vpack.c.bf16 %v2768_v53, %v2768_v53  ;;  %v11275_v4 = vpop.permute.xlu2 %1879  ;;  %v1644_v0 = vpack.c.b16 %v1516_v28, %v12166_v21  ;;  %v3654_v1 = vsel %vm2086_vm5, %v11015_v40, %v3368_v30  ;;  %v1518_v53 = vunpack.c.l.b16 %v1268_v41  ;;  %v9151_v21 = vld [vmem:[#allocation3 + $0x18] sm:$0xff] }
 0x55a   :  { %v11277_v48 = vpop.f32.mrf.mxu2  ;;  %v2055_v25 = vsel %vm1899_vm4, %v11011_v52, %v1751_v58  ;;  %v3799_v28 = vsel %vm3721_vm7, %v3654_v1, %v11237_v57  ;;  %v4448_v58 = vpack.c.bf16 %v4326_v12, %v4326_v12  ;;  %v4057_v57 = vadd.f32 %v11033_v3, %v10488_v45 }
 0x55b   :  { %v3138_v43 = vunpack.c.l.b16 %v11273_v9  ;;  %v1645_v52 = vpack.c.b16 %v1518_v53, %v1517_v11 }
 0x55c   :  { %v2600_v62 = vpop.f32.mrf.mxu1  ;;  %7131 = vmatpush.bf16.msra.mxu3 %v9151_v21  ;;  %v9149_v21 = vld [vmem:[#allocation3 + $0x8] sm:$0xff] }
 0x55d   :  { %v11290_v32 = vpack.c.b16 %v3138_v43, %v3137_v39  ;;  %v2601_v61 = vadd.f32 %v10985_v38, %v2600_v62  ;;  %v1519_v39 = vunpack.c.l.b16 %v11282_v54 }
 0x55f   :  { %1764 = vrot.lane.b32.xlu1 %v1644_v0, %s9457_s27  ;;  %1891 = vrot.lane.b32.xlu2 %v11279_v23, %s9458_s30  ;;  %v2769_v41 = vmax.f32 %v2601_v61, 0.0  ;;  %v11313_v49 = vpack.c.b16 %v1519_v39, %v1518_v53  ;;  %v4330_v53 = vmax.f32 %v4057_v57, 0.0  ;;  %v4060_v57 = vadd.f32 %v11033_v3, %v10501_v16  ;;  %v9148_v16 = vld [vmem:[#allocation3] sm:$0xff] }
 0x560   :  { %3506 = vrot.lane.b32.xlu0 %v11290_v32, %s9459_s28  ;;  %v1878_v15 = vpop.permute.xlu1 %1877 }
 0x561   :  { %v2190_v40 = vsel %vm2086_vm5, %v2055_v25, %v1878_v15  ;;  %v11304_v30 = vpop.permute.xlu2 %1754  ;;  %v2893_v5 = vpack.c.bf16 %v2769_v41, %v2769_v41  ;;  %v1012_v25 = vpop.f32.mrf.mxu0 }
 0x562   :  { %v4174_v7 = vpop.f32.mrf.mxu2  ;;  %7988 = vmatmul.msk.bf16.gmra.mxu1 %vm2227_vm6, %v2190_v40  ;;  %8049 = vmatmul.msk.bf16.gmra.mxu2 %vm3872_vm8, %v3799_v28  ;;  %v9150_v40 = vld [vmem:[#allocation3 + $0x10] sm:$0xff] }
 0x563   :  { %v4175_v62 = vadd.f32 %v11033_v3, %v4174_v7  ;;  %7132 = vmatpush.bf16.msra.mxu3 %v9150_v40  ;;  %v3139_v28 = vunpack.c.l.b16 %v2893_v5  ;;  %v4050_v5 = vadd.f32 %v11033_v3, %v10397_v22  ;;  %v3657_v22 = vsel %vm2086_vm5, %v11052_v29, %v11261_v35 }
 0x564   :  { %v2602_v0 = vpop.f32.mrf.mxu1 }
 0x565   :  { %v4377_v1 = vmax.f32 %v4175_v62, 0.0  ;;  %v2603_v61 = vadd.f32 %v10985_v38, %v2602_v0 }
 0x567   :  { %v4499_v15 = vpack.c.bf16 %v4377_v1, %v4377_v1  ;;  %v2770_v11 = vmax.f32 %v2603_v61, 0.0  ;;  %4623 = vrot.lane.b32.xlu1 %v4448_v58, %s9459_s28  ;;  %1766 = vrot.lane.b32.xlu2 %v1645_v52, %s9457_s27  ;;  %v4052_v52 = vadd.f32 %v11033_v3, %v10409_v6  ;;  %v4452_v58 = vpack.c.bf16 %v4330_v53, %v4330_v53  ;;  %v9163_v53 = vld [vmem:[#allocation3 + $0x78] sm:$0xff] }
 0x568   :  { %1893 = vrot.lane.b32.xlu0 %v11313_v49, %s9458_s30  ;;  %v1753_v62 = vpop.permute.xlu1 %1752  ;;  %7133 = vmatpush.bf16.msra.mxu3 %v9149_v21  ;;  %v4331_v21 = vmax.f32 %v4060_v57, 0.0  ;;  %v9162_v57 = vld [vmem:[#allocation3 + $0x70] sm:$0xff] }
 0x569   :  { %4829 = vst.msk [vmem:[#allocation2 + $0x44] sm:$0xf] %vm4553_vm9, %v4499_v15  ;;  %v11323_v45 = vpack.c.bf16 %v2770_v11, %v2770_v11  ;;  %v11325_v12 = vpop.permute.xlu2 %1885  ;;  %v3276_v15 = vpack.c.b16 %v3139_v28, %v3138_v43  ;;  %v2058_v6 = vsel %vm1899_vm4, %v11049_v20, %v1753_v62  ;;  %v4328_v11 = vmax.f32 %v4052_v52, 0.0  ;;  %v1014_v40 = vpop.f32.mrf.mxu0 }
 0x56a   :  { %v11327_v41 = vpop.f32.mrf.mxu2  ;;  %v2192_v20 = vsel %vm2086_vm5, %v2058_v6, %v11275_v4  ;;  %v4327_v62 = vmax.f32 %v4050_v5, 0.0  ;;  %v1015_v29 = vadd.f32 %v11170_v13, %v1014_v40  ;;  %v1013_v4 = vadd.f32 %v11170_v13, %v1012_v25 }
 0x56b   :  { %v3140_v7 = vunpack.c.l.b16 %v11323_v45  ;;  %v4450_v35 = vpack.c.bf16 %v4328_v11, %v4328_v11  ;;  %v2061_v45 = vsel %vm1899_vm4, %v11091_v33, %v11304_v30 }
 0x56c   :  { %v2605_v0 = vpop.f32.mrf.mxu1  ;;  %7134 = vmatpush.bf16.msra.mxu3 %v9148_v16  ;;  %v4449_v6 = vpack.c.bf16 %v4327_v62, %v4327_v62  ;;  %v4062_v16 = vadd.f32 %v11033_v3, %v10531_v59  ;;  %v1145_v40 = vmax.f32 %v1015_v29, 0.0  ;;  %v1144_v25 = vmax.f32 %v1013_v4, 0.0  ;;  %v9160_v29 = vld [vmem:[#allocation3 + $0x60] sm:$0xff] }
 0x56d   :  { %v11336_v1 = vpack.c.b16 %v3140_v7, %v3139_v28  ;;  %v2606_v61 = vadd.f32 %v10985_v38, %v2605_v0 }
 0x56e   :  { %v4332_v62 = vmax.f32 %v4062_v16, 0.0 }
 0x56f   :  { %3508 = vrot.lane.b32.xlu1 %v11336_v1, %s9459_s28  ;;  %4639 = vrot.lane.b32.xlu2 %v4452_v58, %s9459_s28  ;;  %v2771_v9 = vmax.f32 %v2606_v61, 0.0  ;;  %v4453_v61 = vpack.c.bf16 %v4331_v21, %v4331_v21 }
 0x570   :  { %3383 = vrot.lane.b32.xlu0 %v3276_v15, %s9458_s30  ;;  %7140 = vmatpush.bf16.msrb.mxu3 %v9163_v53  ;;  %v11368_v11 = vpop.permute.xlu1 %1883  ;;  %v9161_v53 = vld [vmem:[#allocation3 + $0x68] sm:$0xff]  ;;  %v4454_v4 = vpack.c.bf16 %v4332_v62, %v4332_v62 }
 0x571   :  { %v3495_v43 = vpop.permute.xlu0 %3494  ;;  %v11352_v28 = vpop.permute.xlu2 %4562  ;;  %v2895_v15 = vpack.c.bf16 %v2771_v9, %v2771_v9 }
 0x572   :  { %v3801_v52 = vsel %vm3721_vm7, %v3657_v22, %v3495_v43  ;;  %v11357_v0 = vpop.f32.mrf.mxu2  ;;  %7989 = vmatmul.msk.bf16.gmra.mxu1 %vm2227_vm6, %v2192_v20 }
 0x573   :  { %8050 = vmatmul.msk.bf16.gmra.mxu2 %vm3872_vm8, %v3801_v52  ;;  %v3141_v21 = vunpack.c.l.b16 %v2895_v15 }
 0x574   :  { %v2607_v58 = vpop.f32.mrf.mxu1  ;;  %7141 = vmatpush.bf16.msrb.mxu3 %v9162_v57 }
 0x575   :  { %v2608_v5 = vadd.f32 %v10985_v38, %v2607_v58  ;;  %v11375_v58 = vpack.c.bf16 %v1145_v40, %v1145_v40  ;;  %v3277_v57 = vpack.c.b16 %v3141_v21, %v3140_v7 }
 0x577   :  { %v2772_v22 = vmax.f32 %v2608_v5, 0.0  ;;  %4644 = vrot.lane.b32.xlu1 %v4453_v61, %s9454_s22  ;;  %4633 = vrot.lane.b32.xlu2 %v4450_v35, %s9460_s2  ;;  %v1270_v61 = vpack.c.bf16 %v1144_v25, %v1144_v25 }
 0x578   :  { %4628 = vrot.lane.b32.xlu0 %v4449_v6, %s9454_s22  ;;  %7142 = vmatpush.bf16.msrb.mxu3 %v9161_v53  ;;  %v1521_v6 = vunpack.c.l.b16 %v11375_v58 }
 0x579   :  { %v2896_v9 = vpack.c.bf16 %v2772_v22, %v2772_v22  ;;  %v1882_v43 = vpop.permute.xlu0 %1881  ;;  %v11371_v20 = vpop.permute.xlu2 %3498  ;;  %v9159_v22 = vld [vmem:[#allocation3 + $0x58] sm:$0xff]  ;;  %v1520_v40 = vunpack.c.l.b16 %v1270_v61  ;;  %v9158_v61 = vld [vmem:[#allocation3 + $0x50] sm:$0xff] }
 0x57a   :  { %v11373_v59 = vpop.f32.mrf.mxu2 }
 0x57b   :  { %v3142_v52 = vunpack.c.l.b16 %v2896_v9  ;;  %v11398_v33 = vpack.c.b16 %v1521_v6, %v1520_v40 }
 0x57c   :  { %v2610_v35 = vpop.f32.mrf.mxu1  ;;  %7143 = vmatpush.bf16.msrb.mxu3 %v9160_v29 }
 0x57d   :  { %v11379_v5 = vpack.c.b16 %v3142_v52, %v3141_v21  ;;  %v2611_v15 = vadd.f32 %v10985_v38, %v2610_v35  ;;  %v2194_v38 = vsel %vm2086_vm5, %v2061_v45, %v1882_v43  ;;  %v4067_v43 = vadd.f32 %v11033_v3, %v10564_v63 }
 0x57e   :  { %v1646_v45 = vpack.c.b16 %v1520_v40, %v1519_v39  ;;  %v9156_v40 = vld [vmem:[#allocation3 + $0x40] sm:$0xff] }
 0x57f   :  { %v2773_v16 = vmax.f32 %v2611_v15, 0.0  ;;  %3385 = vrot.lane.b32.xlu1 %v3277_v57, %s9458_s30  ;;  %3510 = vrot.lane.b32.xlu2 %v11379_v5, %s9459_s28  ;;  %v4077_v15 = vadd.f32 %v11033_v3, %v10636_v46  ;;  %v4334_v46 = vmax.f32 %v4067_v43, 0.0  ;;  %v4072_v43 = vadd.f32 %v11033_v3, %v10596_v55 }
 0x580   :  { %4649 = vrot.lane.b32.xlu0 %v4454_v4, %s9460_s2  ;;  %v3497_v7 = vpop.permute.xlu1 %3496  ;;  %7144 = vmatpush.bf16.msrb.mxu3 %v9159_v22 }
 0x581   :  { %v2897_v53 = vpack.c.bf16 %v2773_v16, %v2773_v16  ;;  %v3372_v21 = vpop.permute.xlu0 %3371  ;;  %v11391_v25 = vpop.permute.xlu2 %3375  ;;  %v11413_v16 = vld [vmem:[%s12132_s4] ss:$0 sm:$0xff] }
 0x582   :  { %v3660_v9 = vsel %vm2086_vm5, %v11094_v34, %v3372_v21  ;;  %7990 = vmatmul.msk.bf16.gmra.mxu1 %vm2227_vm6, %v2194_v38  ;;  %v9399_v34 = vld [vmem:[%s12137_s9 + $0x38] sm:$0xff]  ;;  %v4338_v21 = vmax.f32 %v4077_v15, 0.0 }
 0x583   :  { %v3143_v30 = vunpack.c.l.b16 %v2897_v53  ;;  %v3803_v62 = vsel %vm3721_vm7, %v3660_v9, %v3497_v7  ;;  %v4184_v35 = vpop.f32.mrf.mxu2  ;;  %7599 = vmatpush.bf16.msrb.mxu2 %v9399_v34  ;;  %v9157_v53 = vld [vmem:[#allocation3 + $0x48] sm:$0xff] }
 0x584   :  { %v4185_v29 = vadd.f32 %v11033_v3, %v4184_v35  ;;  %v2612_v57 = vpop.f32.mrf.mxu1  ;;  %8051 = vmatmul.msk.bf16.gmra.mxu2 %vm3872_vm8, %v3803_v62  ;;  %7145 = vmatpush.bf16.msrb.mxu3 %v9158_v61  ;;  %v4456_v35 = vpack.c.bf16 %v4334_v46, %v4334_v46  ;;  %v12167_v61 = vld [vmem:[#allocation6_spill] sm:$0xff] }
 0x585   :  { %v3278_v4 = vpack.c.b16 %v3143_v30, %v3142_v52  ;;  %v2613_v63 = vadd.f32 %v11413_v16, %v2612_v57  ;;  %v4080_v57 = vadd.f32 %v11033_v3, %v10665_v47  ;;  %v4070_v15 = vadd.f32 %v11033_v3, %v12167_v61  ;;  %v1017_v47 = vpop.f32.mrf.mxu0 }
 0x586   :  { %v4381_v7 = vmax.f32 %v4185_v29, 0.0  ;;  %v4460_v29 = vpack.c.bf16 %v4338_v21, %v4338_v21 }
 0x587   :  { %v2774_v22 = vmax.f32 %v2613_v63, 0.0  ;;  %1895 = vrot.lane.b32.xlu1 %v11398_v33, %s9458_s30  ;;  %3387 = vrot.lane.b32.xlu2 %v3278_v4, %s9458_s30  ;;  %v4339_v63 = vmax.f32 %v4080_v57, 0.0 }
 0x588   :  { %v4503_v52 = vpack.c.bf16 %v4381_v7, %v4381_v7  ;;  %1768 = vrot.lane.b32.xlu0 %v1646_v45, %s9457_s27  ;;  %v1759_v38 = vpop.permute.xlu1 %1758  ;;  %7146 = vmatpush.bf16.msrb.mxu3 %v9157_v53 }
 0x589   :  { %v11422_v9 = vpack.c.bf16 %v2774_v22, %v2774_v22  ;;  %v1757_v54 = vpop.permute.xlu0 %1756  ;;  %v4586_v39 = vpop.permute.xlu2 %4585  ;;  %v4335_v22 = vmax.f32 %v4070_v15, 0.0  ;;  %v4461_v53 = vpack.c.bf16 %v4339_v63, %v4339_v63  ;;  %v2067_v15 = vsel %vm1899_vm4, %v11086_v24, %v1759_v38 }
 0x58a   :  { %4845 = vst.msk [vmem:[#allocation2 + $0x48] sm:$0xf] %vm4553_vm9, %v4503_v52  ;;  %v2064_v4 = vsel %vm1899_vm4, %v11119_v26, %v1757_v54  ;;  %v12168_v54 = vld [vmem:[#allocation7_spill] sm:$0xff] }
 0x58b   :  { %v3144_v62 = vunpack.c.l.b16 %v11422_v9  ;;  %v2196_v26 = vsel %vm2086_vm5, %v2064_v4, %v11368_v11  ;;  %v4457_v21 = vpack.c.bf16 %v4335_v22, %v4335_v22  ;;  %v11457_v11 = vld [vmem:[%s12134_s6] ss:$0 sm:$0xff]  ;;  %v9171_v22 = vld [vmem:[#allocation3 + $0xb8] sm:$0xff] }
 0x58c   :  { %7147 = vmatpush.bf16.msrb.mxu3 %v9156_v40  ;;  %v4082_v40 = vadd.f32 %v11457_v11, %v12168_v54 }
 0x58d   :  { %v11432_v34 = vpack.c.b16 %v3144_v62, %v3143_v30  ;;  %v4336_v30 = vmax.f32 %v4072_v43, 0.0 }
 0x58f   :  { %4655 = vrot.lane.b32.xlu1 %v4456_v35, %s9459_s28  ;;  %4671 = vrot.lane.b32.xlu2 %v4460_v29, %s9459_s28  ;;  %v4458_v52 = vpack.c.bf16 %v4336_v30, %v4336_v30  ;;  %v4340_v29 = vmax.f32 %v4082_v40, 0.0 }
 0x590   :  { %3512 = vrot.lane.b32.xlu0 %v11432_v34, %s9459_s28  ;;  %v3374_v55 = vpop.permute.xlu1 %3373 }
 0x591   :  { %v3663_v3 = vsel %vm2086_vm5, %v11134_v42, %v3374_v55  ;;  %v1761_v45 = vpop.permute.xlu2 %1760  ;;  %v4557_v7 = vpop.permute.xlu0 %4556  ;;  %v1018_v42 = vadd.f32 %v11170_v13, %v1017_v47  ;;  %v4462_v61 = vpack.c.bf16 %v4340_v29, %v4340_v29  ;;  %v3666_v47 = vsel %vm2086_vm5, %v11158_v2, %v11391_v25 }
 0x592   :  { %4560 = vst.msk [vmem:[#allocation2] sm:$0xf] %vm4559_vm10, %v4557_v7  ;;  %7991 = vmatmul.msk.bf16.gmra.mxu1 %vm2227_vm6, %v2196_v26  ;;  %v3805_v46 = vsel %vm3721_vm7, %v3663_v3, %v11371_v20  ;;  %v2070_v58 = vsel %vm1899_vm4, %v11130_v19, %v1761_v45 }
 0x593   :  { %4566 = vst.msk [vmem:[#allocation2] sm:$0xf] %vm4565_vm11, %v11352_v28  ;;  %v1146_v20 = vmax.f32 %v1018_v42, 0.0 }
 0x594   :  { %8052 = vmatmul.msk.bf16.gmra.mxu2 %vm3872_vm8, %v3805_v46  ;;  %v9170_v46 = vld [vmem:[#allocation3 + $0xb0] sm:$0xff] }
 0x595   :  { %v11468_v57 = vpack.c.bf16 %v1146_v20, %v1146_v20 }
 0x597   :  { %4676 = vrot.lane.b32.xlu1 %v4461_v53, %s9454_s22  ;;  %4665 = vrot.lane.b32.xlu2 %v4458_v52, %s9460_s2  ;;  %v1585_v4 = vunpack.c.l.b16 %v11468_v57 }
 0x598   :  { %4660 = vrot.lane.b32.xlu0 %v4457_v21, %s9454_s22  ;;  %v4576_v28 = vpop.permute.xlu1 %4575  ;;  %v9169_v21 = vld [vmem:[#allocation3 + $0xa8] sm:$0xff] }
 0x599   :  { %4578 = vst.msk [vmem:[#allocation2 + $0x4] sm:$0xf] %vm4559_vm10, %v4576_v28  ;;  %v4592_v35 = vpop.permute.xlu2 %4591  ;;  %v4581_v43 = vpop.permute.xlu0 %4580  ;;  %v1647_v24 = vpack.c.b16 %v1585_v4, %v1521_v6  ;;  %v9168_v28 = vld [vmem:[#allocation3 + $0xa0] sm:$0xff] }
 0x59a   :  { %4594 = vst.msk [vmem:[#allocation2 + $0x8] sm:$0xf] %vm4559_vm10, %v4592_v35 }
 0x59b   :  { %4583 = vst.msk [vmem:[#allocation2 + $0x4] sm:$0xf] %vm4565_vm11, %v4581_v43  ;;  %v9167_v43 = vld [vmem:[#allocation3 + $0x98] sm:$0xff] }
 0x59c   :  { %4588 = vst.msk [vmem:[#allocation2 + $0x4] sm:$0xf] %vm4571_vm12, %v4586_v39  ;;  %v2198_v39 = vsel %vm2086_vm5, %v2067_v15, %v11325_v12 }
 0x5a0   :  { %4681 = vrot.lane.b32.xlu0 %v4462_v61, %s9460_s2  ;;  %v4569_v55 = vpop.permute.xlu1 %4568 }
 0x5a1   :  { %4572 = vst.msk [vmem:[#allocation2] sm:$0xf] %vm4571_vm12, %v4569_v55  ;;  %v4613_v30 = vpop.permute.xlu2 %4612  ;;  %v3501_v63 = vpop.permute.xlu0 %3500 }
 0x5a2   :  { %v3807_v3 = vsel %vm3721_vm7, %v3666_v47, %v3501_v63  ;;  %7992 = vmatmul.msk.bf16.gmra.mxu1 %vm2227_vm6, %v2198_v39 }
 0x5a4   :  { %8053 = vmatmul.msk.bf16.gmra.mxu2 %vm3872_vm8, %v3807_v3  ;;  %v9165_v3 = vld [vmem:[#allocation3 + $0x88] sm:$0xff] }
 0x5a8   :  { %1770 = vrot.lane.b32.xlu0 %v1647_v24, %s9457_s27  ;;  %v1890_v2 = vpop.permute.xlu1 %1889  ;;  %v5043_v25 = vld [vmem:[#allocation2] sm:$0xff] }
 0x5a9   :  { %v3505_v38 = vpop.permute.xlu2 %3504  ;;  %v1888_v7 = vpop.permute.xlu0 %1887  ;;  %v5567_v26 = vunpack.c.l.b16 %v5043_v25  ;;  %v5568_v20 = vunpack.c.h.b16 %v5043_v25  ;;  %v9179_v25 = vld [vmem:[#allocation3 + $0xf8] sm:$0xff] }
 0x5aa   :  { %v2200_v42 = vsel %vm2086_vm5, %v2070_v58, %v1888_v7 }
 0x5ab   :  { %v5598_v12 = vpack.c.b16 %v5567_v26, %v5567_v26  ;;  %v5599_v29 = vpack.c.b16 %v5568_v20, %v5568_v20  ;;  %v9178_v26 = vld [vmem:[#allocation3 + $0xf0] sm:$0xff] }
 0x5ad   :  { %7135 = vmatmul.bf16.vlgmr.msra.gmra.mxu3 %v5598_v12 }
 0x5ae   :  { %7153 = vmatpush.bf16.msra.mxu3 %v9171_v22  ;;  %v1019_v22 = vpop.f32.mrf.mxu0 }
 0x5b1   :  { %v3503_v6 = vpop.permute.xlu1 %3502  ;;  %v3382_v52 = vpop.permute.xlu2 %3381 }
 0x5b2   :  { %v3378_v53 = vpop.permute.xlu0 %3377  ;;  %7154 = vmatpush.bf16.msra.mxu3 %v9170_v46  ;;  %7993 = vmatmul.msk.bf16.gmra.mxu1 %vm2227_vm6, %v2200_v42  ;;  %v9177_v46 = vld [vmem:[#allocation3 + $0xe8] sm:$0xff] }
 0x5b3   :  { %v3669_v54 = vsel %vm2086_vm5, %v11191_v17, %v3378_v53  ;;  %v9166_v17 = vld [vmem:[#allocation3 + $0x90] sm:$0xff]  ;;  %v3675_v53 = vsel %vm2086_vm5, %v11246_v37, %v3382_v52 }
 0x5b4   :  { %v3809_v40 = vsel %vm3721_vm7, %v3669_v54, %v3503_v6 }
 0x5b5   :  { %8054 = vmatmul.msk.bf16.gmra.mxu2 %vm3872_vm8, %v3809_v40 }
 0x5b6   :  { %7155 = vmatpush.bf16.msra.mxu3 %v9169_v21 }
 0x5b9   :  { %v4597_v19 = vpop.permute.xlu1 %4596  ;;  %v1892_v45 = vpop.permute.xlu2 %1891 }
 0x5ba   :  { %4599 = vst.msk [vmem:[#allocation2 + $0x8] sm:$0xf] %vm4565_vm11, %v4597_v19  ;;  %v1763_v35 = vpop.permute.xlu0 %1762  ;;  %7156 = vmatpush.bf16.msra.mxu3 %v9168_v28 }
 0x5bb   :  { %v2073_v61 = vsel %vm1899_vm4, %v11209_v31, %v1763_v35  ;;  %v9164_v31 = vld [vmem:[#allocation3 + $0x80] sm:$0xff] }
 0x5bc   :  { %v2202_v47 = vsel %vm2086_vm5, %v2073_v61, %v1890_v2  ;;  %v9176_v35 = vld [vmem:[#allocation3 + $0xe0] sm:$0xff] }
 0x5bd   :  { %7148 = vmatmul.bf16.vlgmr.msrb.gmra.mxu3 %v5599_v29 }
 0x5be   :  { %7157 = vmatpush.bf16.msra.mxu3 %v9167_v43 }
 0x5c1   :  { %v3380_v15 = vpop.permute.xlu1 %3379  ;;  %v11499_v55 = vpop.permute.xlu2 %1766 }
 0x5c2   :  { %v3672_v63 = vsel %vm2086_vm5, %v11223_v50, %v3380_v15  ;;  %v4608_v39 = vpop.permute.xlu0 %4607  ;;  %7158 = vmatpush.bf16.msra.mxu3 %v9166_v17  ;;  %7994 = vmatmul.msk.bf16.gmra.mxu1 %vm2227_vm6, %v2202_v47  ;;  %v9175_v15 = vld [vmem:[#allocation3 + $0xd8] sm:$0xff] }
 0x5c3   :  { %4610 = vst.msk [vmem:[#allocation2 + $0xc] sm:$0xf] %vm4559_vm10, %v4608_v39  ;;  %v3811_v24 = vsel %vm3721_vm7, %v3672_v63, %v3505_v38  ;;  %v11512_v38 = vpop.f32.mrf.mxu2 }
 0x5c4   :  { %4615 = vst.msk [vmem:[#allocation2 + $0xc] sm:$0xf] %vm4565_vm11, %v4613_v30  ;;  %v1020_v30 = vadd.f32 %v11170_v13, %v1019_v22 }
 0x5c5   :  { %8055 = vmatmul.msk.bf16.gmra.mxu2 %vm3872_vm8, %v3811_v24 }
 0x5c6   :  { %7159 = vmatpush.bf16.msra.mxu3 %v9165_v3  ;;  %v1147_v28 = vmax.f32 %v1020_v30, 0.0  ;;  %v9173_v30 = vld [vmem:[#allocation3 + $0xc8] sm:$0xff] }
 0x5c8   :  { %v1273_v61 = vpack.c.bf16 %v1147_v28, %v1147_v28  ;;  %v9172_v28 = vld [vmem:[#allocation3 + $0xc0] sm:$0xff] }
 0x5c9   :  { %v4618_v2 = vpop.permute.xlu1 %4617  ;;  %v4640_v7 = vpop.permute.xlu2 %4639 }
 0x5ca   :  { %4620 = vst.msk [vmem:[#allocation2 + $0xc] sm:$0xf] %vm4571_vm12, %v4618_v2  ;;  %v4602_v50 = vpop.permute.xlu0 %4601  ;;  %7160 = vmatpush.bf16.msra.mxu3 %v9164_v31  ;;  %v1773_v3 = vunpack.c.l.b16 %v1273_v61 }
 0x5cb   :  { %4642 = vst.msk [vmem:[#allocation2 + $0x14] sm:$0xf] %vm4559_vm10, %v4640_v7 }
 0x5cc   :  { %4604 = vst.msk [vmem:[#allocation2 + $0x8] sm:$0xf] %vm4571_vm12, %v4602_v50  ;;  %v1774_v9 = vpack.c.b16 %v1773_v3, %v1585_v4  ;;  %v12169_v50 = vld [vmem:[#allocation8_spill] sm:$0xff] }
 0x5ce   :  { %7166 = vmatpush.bf16.msrb.mxu3 %v9179_v25  ;;  %v9174_v25 = vld [vmem:[#allocation3 + $0xd0] sm:$0xff] }
 0x5cf   :  { %v2615_v12 = vpop.f32.mrf.mxu1 }
 0x5d0   :  { %v2616_v58 = vadd.f32 %v11413_v16, %v2615_v12 }
 0x5d1   :  { %v1765_v42 = vpop.permute.xlu1 %1764  ;;  %v11516_v6 = vpop.permute.xlu2 %4633 }
 0x5d2   :  { %7167 = vmatpush.bf16.msrb.mxu3 %v9178_v26  ;;  %v2775_v21 = vmax.f32 %v2616_v58, 0.0  ;;  %v2076_v54 = vsel %vm1899_vm4, %v11201_v44, %v1765_v42  ;;  %v3507_v40 = vpop.permute.xlu0 %3506  ;;  %v4087_v26 = vadd.f32 %v11457_v11, %v12169_v50 }
 0x5d3   :  { %v3813_v20 = vsel %vm3721_vm7, %v3675_v53, %v3507_v40  ;;  %v2204_v13 = vsel %vm2086_vm5, %v2076_v54, %v1892_v45  ;;  %v11524_v19 = vld [vmem:[#allocation2 + $0x8] sm:$0xff]  ;;  %v2079_v53 = vsel %vm1899_vm4, %v11279_v23, %v11499_v55  ;;  %v9187_v55 = vld [vmem:[#allocation3 + $0x138] sm:$0xff] }
 0x5d4   :  { %v2899_v43 = vpack.c.bf16 %v2775_v21, %v2775_v21  ;;  %7995 = vmatmul.msk.bf16.gmra.mxu1 %vm2227_vm6, %v2204_v13  ;;  %v5569_v29 = vunpack.c.l.b16 %v11524_v19  ;;  %v4342_v21 = vmax.f32 %v4087_v26, 0.0  ;;  %v5570_v13 = vunpack.c.h.b16 %v11524_v19  ;;  %v12171_v19 = vld [vmem:[#allocation11_spill] sm:$0xff] }
 0x5d5   :  { %8056 = vmatmul.msk.bf16.gmra.mxu2 %vm3872_vm8, %v3813_v20  ;;  %v11529_v37 = vpop.f32.mrf.mxu2  ;;  %v4097_v3 = vadd.f32 %v11457_v11, %v12171_v19  ;;  %v9185_v26 = vld [vmem:[#allocation3 + $0x128] sm:$0xff] }
 0x5d6   :  { %7168 = vmatpush.bf16.msrb.mxu3 %v9177_v46  ;;  %v3145_v44 = vunpack.c.l.b16 %v2899_v43  ;;  %v5600_v52 = vpack.c.b16 %v5569_v29, %v5569_v29 }
 0x5d7   :  { %v2617_v17 = vpop.f32.mrf.mxu1 }
 0x5d8   :  { %v3279_v45 = vpack.c.b16 %v3145_v44, %v3144_v62  ;;  %7161 = vmatmul.bf16.vlgmr.msra.gmra.mxu3 %v5600_v52  ;;  %v2618_v47 = vadd.f32 %v11413_v16, %v2617_v17  ;;  %v12170_v52 = vld [vmem:[#allocation12_spill] sm:$0xff] }
 0x5d9   :  { %v4624_v63 = vpop.permute.xlu1 %4623  ;;  %v11534_v39 = vpop.permute.xlu2 %3510 }
 0x5da   :  { %7169 = vmatpush.bf16.msrb.mxu3 %v9176_v35  ;;  %v2776_v24 = vmax.f32 %v2618_v47, 0.0  ;;  %4626 = vst.msk [vmem:[#allocation2 + $0x10] sm:$0xf] %vm4559_vm10, %v4624_v63  ;;  %v1894_v31 = vpop.permute.xlu0 %1893  ;;  %3389 = vrot.lane.b32.xlu1 %v3279_v45, %s9458_s30  ;;  %v5601_v47 = vpack.c.b16 %v5570_v13, %v5570_v13  ;;  %v9186_v63 = vld [vmem:[#allocation3 + $0x130] sm:$0xff] }
 0x5db   :  { %v2206_v54 = vsel %vm2086_vm5, %v2079_v53, %v1894_v31  ;;  %v12172_v53 = vld [vmem:[#allocation9_spill] sm:$0xff] }
 0x5dc   :  { %v2900_v2 = vpack.c.bf16 %v2776_v24, %v2776_v24 }
 0x5dd   :  { %v11538_v7 = vpop.f32.mrf.mxu2 }
 0x5de   :  { %7170 = vmatpush.bf16.msrb.mxu3 %v9175_v15  ;;  %v3146_v62 = vunpack.c.l.b16 %v2900_v2 }
 0x5df   :  { %v2620_v22 = vpop.f32.mrf.mxu1 }
 0x5e0   :  { %v11544_v12 = vpack.c.b16 %v3146_v62, %v3145_v44  ;;  %v2621_v46 = vadd.f32 %v11413_v16, %v2620_v22  ;;  %v4464_v44 = vpack.c.bf16 %v4342_v21, %v4342_v21  ;;  %v4346_v22 = vmax.f32 %v4097_v3, 0.0 }
 0x5e1   :  { %v3509_v58 = vpop.permute.xlu1 %3508  ;;  %v11547_v42 = vpop.permute.xlu2 %3387 }
 0x5e2   :  { %7171 = vmatpush.bf16.msrb.mxu3 %v9174_v25  ;;  %v2777_v57 = vmax.f32 %v2621_v46, 0.0  ;;  %v3384_v4 = vpop.permute.xlu0 %3383  ;;  %1897 = vrot.lane.b32.xlu1 %v1774_v9, %s9458_s30 }
 0x5e3   :  { %3514 = vrot.lane.b32.xlu2 %v11544_v12, %s9459_s28  ;;  %v3678_v40 = vsel %vm2086_vm5, %v11290_v32, %v3384_v4  ;;  %v4100_v32 = vadd.f32 %v11457_v11, %v12170_v52  ;;  %v9183_v52 = vld [vmem:[#allocation3 + $0x118] sm:$0xff] }
 0x5e4   :  { %v2901_v20 = vpack.c.bf16 %v2777_v57, %v2777_v57  ;;  %7996 = vmatmul.msk.bf16.gmra.mxu1 %vm2227_vm6, %v2206_v54  ;;  %v3815_v23 = vsel %vm3721_vm7, %v3678_v40, %v3509_v58  ;;  %v4090_v57 = vadd.f32 %v11457_v11, %v12172_v53  ;;  %v9184_v40 = vld [vmem:[#allocation3 + $0x120] sm:$0xff] }
 0x5e5   :  { %8057 = vmatmul.msk.bf16.gmra.mxu2 %vm3872_vm8, %v3815_v23  ;;  %v4194_v35 = vpop.f32.mrf.mxu2  ;;  %v4468_v23 = vpack.c.bf16 %v4346_v22, %v4346_v22 }
 0x5e6   :  { %7172 = vmatpush.bf16.msrb.mxu3 %v9173_v30  ;;  %v3147_v43 = vunpack.c.l.b16 %v2901_v20  ;;  %v4195_v29 = vadd.f32 %v11457_v11, %v4194_v35 }
 0x5e7   :  { %v2622_v61 = vpop.f32.mrf.mxu1 }
 0x5e8   :  { %v3280_v17 = vpack.c.b16 %v3147_v43, %v3146_v62  ;;  %v4385_v15 = vmax.f32 %v4195_v29, 0.0  ;;  %v2623_v45 = vadd.f32 %v11413_v16, %v2622_v61  ;;  %v4347_v62 = vmax.f32 %v4100_v32, 0.0 }
 0x5e9   :  { %v4645_v24 = vpop.permute.xlu1 %4644  ;;  %v4672_v31 = vpop.permute.xlu2 %4671  ;;  %v4343_v29 = vmax.f32 %v4090_v57, 0.0 }
 0x5ea   :  { %7173 = vmatpush.bf16.msrb.mxu3 %v9172_v28  ;;  %v4507_v25 = vpack.c.bf16 %v4385_v15, %v4385_v15  ;;  %v2778_v2 = vmax.f32 %v2623_v45, 0.0  ;;  %4647 = vst.msk [vmem:[#allocation2 + $0x14] sm:$0xf] %vm4565_vm11, %v4645_v24  ;;  %v4629_v9 = vpop.permute.xlu0 %4628  ;;  %4687 = vrot.lane.b32.xlu1 %v4464_v44, %s9459_s28  ;;  %v4469_v4 = vpack.c.bf16 %v4347_v62, %v4347_v62  ;;  %v12173_v28 = vld [vmem:[#allocation10_spill] sm:$0xff]  ;;  %v12174_v45 = vld [vmem:[#allocation13_spill] sm:$0xff] }
 0x5eb   :  { %4674 = vst.msk [vmem:[#allocation2 + $0x1c] sm:$0xf] %vm4559_vm10, %v4672_v31  ;;  %3391 = vrot.lane.b32.xlu2 %v3280_v17, %s9458_s30  ;;  %v4092_v20 = vadd.f32 %v11457_v11, %v12173_v28  ;;  %v4465_v15 = vpack.c.bf16 %v4343_v29, %v4343_v29  ;;  %v12175_v28 = vld [vmem:[#allocation14_spill] sm:$0xff] }
 0x5ec   :  { %4861 = vst.msk [vmem:[#allocation2 + $0x4c] sm:$0xf] %vm4553_vm9, %v4507_v25  ;;  %v2902_v50 = vpack.c.bf16 %v2778_v2, %v2778_v2 }
 0x5ed   :  { %7174 = vmatmul.bf16.vlgmr.msrb.gmra.mxu3 %v5601_v47  ;;  %4631 = vst.msk [vmem:[#allocation2 + $0x10] sm:$0xf] %vm4565_vm11, %v4629_v9  ;;  %v11574_v30 = vpop.f32.mrf.mxu2  ;;  %v4344_v32 = vmax.f32 %v4092_v20, 0.0  ;;  %v4102_v47 = vadd.f32 %v11457_v11, %v12174_v45  ;;  %v4107_v20 = vadd.f32 %v11457_v11, %v12175_v28 }
 0x5ee   :  { %7179 = vmatpush.bf16.msra.mxu3 %v9187_v55  ;;  %v3148_v46 = vunpack.c.l.b16 %v2902_v50  ;;  %4636 = vst.msk [vmem:[#allocation2 + $0x10] sm:$0xf] %vm4571_vm12, %v11516_v6 }
 0x5ef   :  { %v2625_v58 = vpop.f32.mrf.mxu1  ;;  %v4466_v3 = vpack.c.bf16 %v4344_v32, %v4344_v32  ;;  %v4348_v9 = vmax.f32 %v4102_v47, 0.0 }
 0x5f0   :  { %v11580_v21 = vpack.c.b16 %v3148_v46, %v3147_v43  ;;  %v2626_v54 = vadd.f32 %v11413_v16, %v2625_v58 }
 0x5f1   :  { %v3386_v55 = vpop.permute.xlu1 %3385  ;;  %v4470_v57 = vpack.c.bf16 %v4348_v9, %v4348_v9 }
 0x5f2   :  { %7180 = vmatpush.bf16.msra.mxu3 %v9186_v63  ;;  %v2779_v13 = vmax.f32 %v2626_v54, 0.0  ;;  %v3681_v6 = vsel %vm2086_vm5, %v11336_v1, %v3386_v55  ;;  %v4650_v35 = vpop.permute.xlu0 %4649  ;;  %4708 = vrot.lane.b32.xlu1 %v4469_v4, %s9454_s22  ;;  %v9180_v54 = vld [vmem:[#allocation3 + $0x100] sm:$0xff]  ;;  %v9195_v55 = vld [vmem:[#allocation3 + $0x178] sm:$0xff] }
 0x5f3   :  { %3516 = vrot.lane.b32.xlu0 %v11580_v21, %s9459_s28  ;;  %4652 = vst.msk [vmem:[#allocation2 + $0x14] sm:$0xf] %vm4571_vm12, %v4650_v35  ;;  %4703 = vrot.lane.b32.xlu2 %v4468_v23, %s9459_s28  ;;  %v3817_v43 = vsel %vm3721_vm7, %v3681_v6, %v11534_v39  ;;  %v9182_v39 = vld [vmem:[#allocation3 + $0x110] sm:$0xff]  ;;  %v3684_v6 = vsel %vm2086_vm5, %v11379_v5, %v11547_v42 }
 0x5f4   :  { %v2903_v44 = vpack.c.bf16 %v2779_v13, %v2779_v13  ;;  %v9194_v5 = vld [vmem:[#allocation3 + $0x170] sm:$0xff] }
 0x5f5   :  { %8058 = vmatmul.msk.bf16.gmra.mxu2 %vm3872_vm8, %v3817_v43 }
 0x5f6   :  { %7181 = vmatpush.bf16.msra.mxu3 %v9185_v26  ;;  %v3149_v1 = vunpack.c.l.b16 %v2903_v44  ;;  %v11595_v61 = vpop.f32.mrf.mxu2  ;;  %v9181_v26 = vld [vmem:[#allocation3 + $0x108] sm:$0xff] }
 0x5f7   :  { %v2627_v17 = vpop.f32.mrf.mxu1 }
 0x5f8   :  { %v3281_v63 = vpack.c.b16 %v3149_v1, %v3148_v46  ;;  %v2628_v19 = vadd.f32 %v11413_v16, %v2627_v17 }
 0x5f9   :  { %v1896_v24 = vpop.permute.xlu1 %1895 }
 0x5fa   :  { %7182 = vmatpush.bf16.msra.mxu3 %v9184_v40  ;;  %v2780_v31 = vmax.f32 %v2628_v19, 0.0  ;;  %v1769_v25 = vpop.permute.xlu0 %1768  ;;  %3393 = vrot.lane.b32.xlu1 %v3281_v63, %s9458_s30  ;;  %v11609_v58 = vld [vmem:[#allocation2 + $0x10] sm:$0xff] }
 0x5fb   :  { %4692 = vrot.lane.b32.xlu0 %v4465_v15, %s9454_s22  ;;  %v2082_v2 = vsel %vm1899_vm4, %v11313_v49, %v1769_v25  ;;  %4697 = vrot.lane.b32.xlu2 %v4466_v3, %s9460_s2  ;;  %v9398_v40 = vld [vmem:[%s12137_s9 + $0x30] sm:$0xff]  ;;  %v5571_v13 = vunpack.c.l.b16 %v11609_v58  ;;  %v4117_v15 = vadd.f32 %v11457_v11, %v10876_v27  ;;  %v4666_v27 = vpop.permute.xlu2 %4665 }
 0x5fc   :  { %v2904_v62 = vpack.c.bf16 %v2780_v31, %v2780_v31  ;;  %v2208_v50 = vsel %vm2086_vm5, %v2082_v2, %v1896_v24  ;;  %7600 = vmatpush.bf16.msrb.mxu2 %v9398_v40  ;;  %v9193_v24 = vld [vmem:[#allocation3 + $0x168] sm:$0xff]  ;;  %v12177_v40 = vld [vmem:[#allocation16_spill] sm:$0xff] }
 0x5fd   :  { %7997 = vmatmul.msk.bf16.gmra.mxu1 %vm2227_vm6, %v2208_v50  ;;  %v5602_v32 = vpack.c.b16 %v5571_v13, %v5571_v13  ;;  %v4354_v9 = vmax.f32 %v4117_v15, 0.0  ;;  %v4112_v28 = vadd.f32 %v11457_v11, %v12177_v40 }
 0x5fe   :  { %7183 = vmatpush.bf16.msra.mxu3 %v9183_v52  ;;  %v3150_v22 = vunpack.c.l.b16 %v2904_v62  ;;  %v11607_v46 = vpop.f32.mrf.mxu2  ;;  %v4350_v52 = vmax.f32 %v4107_v20, 0.0 }
 0x5ff   :  { %v2630_v53 = vpop.f32.mrf.mxu1  ;;  %v4476_v20 = vpack.c.bf16 %v4354_v9, %v4354_v9 }
 0x600   :  { %v11611_v4 = vpack.c.b16 %v3150_v22, %v3149_v1  ;;  %v2631_v49 = vadd.f32 %v11413_v16, %v2630_v53  ;;  %v4472_v19 = vpack.c.bf16 %v4350_v52, %v4350_v52  ;;  %v12176_v53 = vld [vmem:[#allocation15_spill] sm:$0xff] }
 0x601   :  { %v4656_v23 = vpop.permute.xlu1 %4655 }
 0x602   :  { %7184 = vmatpush.bf16.msra.mxu3 %v9182_v39  ;;  %v2781_v35 = vmax.f32 %v2631_v49, 0.0  ;;  %4658 = vst.msk [vmem:[#allocation2 + $0x18] sm:$0xf] %vm4559_vm10, %v4656_v23  ;;  %v3513_v43 = vpop.permute.xlu0 %3512  ;;  %v4120_v39 = vadd.f32 %v11457_v11, %v10896_v51 }
 0x603   :  { %4713 = vrot.lane.b32.xlu0 %v4470_v57, %s9460_s2  ;;  %v3819_v29 = vsel %vm3721_vm7, %v3684_v6, %v3513_v43  ;;  %3518 = vrot.lane.b32.xlu2 %v11611_v4, %s9459_s28  ;;  %v4110_v57 = vadd.f32 %v11457_v11, %v12176_v53  ;;  %v9191_v6 = vld [vmem:[#allocation3 + $0x158] sm:$0xff] }
 0x604   :  { %v2905_v44 = vpack.c.bf16 %v2781_v35, %v2781_v35  ;;  %v4355_v51 = vmax.f32 %v4120_v39, 0.0 }
 0x605   :  { %8059 = vmatmul.msk.bf16.gmra.mxu2 %vm3872_vm8, %v3819_v29  ;;  %v4351_v29 = vmax.f32 %v4110_v57, 0.0  ;;  %v9202_v57 = vld [vmem:[#allocation3 + $0x1b0] sm:$0xff] }
 0x606   :  { %7185 = vmatpush.bf16.msra.mxu3 %v9181_v26  ;;  %v3151_v42 = vunpack.c.l.b16 %v2905_v44  ;;  %v9192_v26 = vld [vmem:[#allocation3 + $0x160] sm:$0xff]  ;;  %v4477_v13 = vpack.c.bf16 %v4355_v51, %v4355_v51  ;;  %v4352_v44 = vmax.f32 %v4112_v28, 0.0  ;;  %v9201_v28 = vld [vmem:[#allocation3 + $0x1a8] sm:$0xff] }
 0x607   :  { %v4204_v1 = vpop.f32.mrf.mxu2  ;;  %v2632_v17 = vpop.f32.mrf.mxu1 }
 0x608   :  { %v3282_v45 = vpack.c.b16 %v3151_v42, %v3150_v22  ;;  %v4205_v47 = vadd.f32 %v11457_v11, %v4204_v1  ;;  %v2633_v63 = vadd.f32 %v11413_v16, %v2632_v17  ;;  %v4474_v15 = vpack.c.bf16 %v4352_v44, %v4352_v44 }
 0x609   :  { %v4677_v3 = vpop.permute.xlu1 %4676 }
 0x60a   :  { %7186 = vmatpush.bf16.msra.mxu3 %v9180_v54  ;;  %v4389_v31 = vmax.f32 %v4205_v47, 0.0  ;;  %v2782_v25 = vmax.f32 %v2633_v63, 0.0  ;;  %4679 = vst.msk [vmem:[#allocation2 + $0x1c] sm:$0xf] %vm4565_vm11, %v4677_v3  ;;  %v4661_v2 = vpop.permute.xlu0 %4660 }
 0x60b   :  { %3395 = vrot.lane.b32.xlu0 %v3282_v45, %s9458_s30  ;;  %4663 = vst.msk [vmem:[#allocation2 + $0x18] sm:$0xf] %vm4565_vm11, %v4661_v2  ;;  %4719 = vrot.lane.b32.xlu2 %v4472_v19, %s9459_s28  ;;  %v4122_v45 = vadd.f32 %v11457_v11, %v10913_v36  ;;  %v9189_v19 = vld [vmem:[#allocation3 + $0x148] sm:$0xff]  ;;  %v9203_v2 = vld [vmem:[#allocation3 + $0x1b8] sm:$0xff]  ;;  %v5572_v36 = vunpack.c.h.b16 %v11609_v58 }
 0x60c   :  { %v4511_v62 = vpack.c.bf16 %v4389_v31, %v4389_v31  ;;  %v2906_v50 = vpack.c.bf16 %v2782_v25, %v2782_v25  ;;  %4668 = vst.msk [vmem:[#allocation2 + $0x18] sm:$0xf] %vm4571_vm12, %v4666_v27  ;;  %v9188_v31 = vld [vmem:[#allocation3 + $0x140] sm:$0xff] }
 0x60d   :  { %7187 = vmatmul.bf16.vlgmr.msra.gmra.mxu3 %v5602_v32  ;;  %v9190_v32 = vld [vmem:[#allocation3 + $0x150] sm:$0xff]  ;;  %v4356_v3 = vmax.f32 %v4122_v45, 0.0  ;;  %v5603_v53 = vpack.c.b16 %v5572_v36, %v5572_v36  ;;  %v12180_v36 = vld [vmem:[#allocation17_spill] sm:$0xff] }
 0x60e   :  { %7192 = vmatpush.bf16.msrb.mxu3 %v9195_v55  ;;  %4877 = vst.msk [vmem:[#allocation2 + $0x50] sm:$0xf] %vm4553_vm9, %v4511_v62  ;;  %v3152_v22 = vunpack.c.l.b16 %v2906_v50 }
 0x60f   :  { %v11643_v49 = vpop.f32.mrf.mxu2  ;;  %v2635_v54 = vpop.f32.mrf.mxu1  ;;  %v4478_v62 = vpack.c.bf16 %v4356_v3, %v4356_v3 }
 0x610   :  { %v11647_v23 = vpack.c.b16 %v3152_v22, %v3151_v42  ;;  %v2636_v55 = vadd.f32 %v11413_v16, %v2635_v54  ;;  %v4473_v42 = vpack.c.bf16 %v4351_v29, %v4351_v29  ;;  %v12178_v29 = vld [vmem:[#allocation19_spill] sm:$0xff] }
 0x611   :  { %v4140_v44 = vadd.f32 %v11457_v11, %v12178_v29 }
 0x612   :  { %7193 = vmatpush.bf16.msrb.mxu3 %v9194_v5  ;;  %v2783_v35 = vmax.f32 %v2636_v55, 0.0  ;;  %v4682_v43 = vpop.permute.xlu0 %4681  ;;  %3520 = vrot.lane.b32.xlu1 %v11647_v23, %s9459_s28 }
 0x613   :  { %4735 = vrot.lane.b32.xlu0 %v4476_v20, %s9459_s28  ;;  %4684 = vst.msk [vmem:[#allocation2 + $0x1c] sm:$0xf] %vm4571_vm12, %v4682_v43  ;;  %4740 = vrot.lane.b32.xlu2 %v4477_v13, %s9454_s22 }
 0x614   :  { %v2907_v52 = vpack.c.bf16 %v2783_v35, %v2783_v35 }
 0x616   :  { %7194 = vmatpush.bf16.msrb.mxu3 %v9193_v24  ;;  %v3153_v5 = vunpack.c.l.b16 %v2907_v52 }
 0x617   :  { %v11655_v1 = vpop.f32.mrf.mxu2  ;;  %v2637_v17 = vpop.f32.mrf.mxu1 }
 0x618   :  { %v3283_v47 = vpack.c.b16 %v3153_v5, %v3152_v22  ;;  %v2638_v63 = vadd.f32 %v11413_v16, %v2637_v17 }
 0x61a   :  { %7195 = vmatpush.bf16.msrb.mxu3 %v9192_v26  ;;  %v2784_v39 = vmax.f32 %v2638_v63, 0.0  ;;  %4724 = vrot.lane.b32.xlu1 %v4473_v42, %s9454_s22  ;;  %v4127_v26 = vadd.f32 %v11457_v11, %v10977_v56  ;;  %v4137_v56 = vadd.f32 %v11457_v11, %v11042_v60 }
 0x61b   :  { %4729 = vrot.lane.b32.xlu0 %v4474_v15, %s9460_s2  ;;  %3397 = vrot.lane.b32.xlu2 %v3283_v47, %s9458_s30  ;;  %v4363_v15 = vmax.f32 %v4140_v44, 0.0  ;;  %v9199_v47 = vld [vmem:[#allocation3 + $0x198] sm:$0xff] }
 0x61c   :  { %v2908_v24 = vpack.c.bf16 %v2784_v39, %v2784_v39  ;;  %v4358_v54 = vmax.f32 %v4127_v26, 0.0  ;;  %v4362_v42 = vmax.f32 %v4137_v56, 0.0  ;;  %v12179_v39 = vld [vmem:[#allocation18_spill] sm:$0xff]  ;;  %v9198_v26 = vld [vmem:[#allocation3 + $0x190] sm:$0xff] }
 0x61d   :  { %v4132_v3 = vadd.f32 %v11457_v11, %v12179_v39 }
 0x61e   :  { %7196 = vmatpush.bf16.msrb.mxu3 %v9191_v6  ;;  %v3154_v25 = vunpack.c.l.b16 %v2908_v24  ;;  %v4480_v43 = vpack.c.bf16 %v4358_v54, %v4358_v54  ;;  %v4484_v24 = vpack.c.bf16 %v4362_v42, %v4362_v42  ;;  %v9197_v54 = vld [vmem:[#allocation3 + $0x188] sm:$0xff] }
 0x61f   :  { %v11664_v27 = vpop.f32.mrf.mxu2  ;;  %v2640_v9 = vpop.f32.mrf.mxu1 }
 0x620   :  { %v11666_v50 = vpack.c.b16 %v3154_v25, %v3153_v5  ;;  %v2641_v51 = vadd.f32 %v11413_v16, %v2640_v9  ;;  %v9200_v5 = vld [vmem:[#allocation3 + $0x1a0] sm:$0xff]  ;;  %v4130_v9 = vadd.f32 %v11457_v11, %v12180_v36 }
 0x622   :  { %7197 = vmatpush.bf16.msrb.mxu3 %v9190_v32  ;;  %v2785_v22 = vmax.f32 %v2641_v51, 0.0  ;;  %4745 = vrot.lane.b32.xlu1 %v4478_v62, %s9460_s2  ;;  %v4485_v62 = vpack.c.bf16 %v4363_v15, %v4363_v15 }
 0x623   :  { %3522 = vrot.lane.b32.xlu0 %v11666_v50, %s9459_s28 }
 0x624   :  { %v2909_v58 = vpack.c.bf16 %v2785_v22, %v2785_v22  ;;  %v4360_v22 = vmax.f32 %v4132_v3, 0.0  ;;  %v9210_v3 = vld [vmem:[#allocation3 + $0x1f0] sm:$0xff] }
 0x626   :  { %7198 = vmatpush.bf16.msrb.mxu3 %v9189_v19  ;;  %v3155_v40 = vunpack.c.l.b16 %v2909_v58 }
 0x627   :  { %v4214_v20 = vpop.f32.mrf.mxu2  ;;  %v2642_v55 = vpop.f32.mrf.mxu1 }
 0x628   :  { %v3284_v13 = vpack.c.b16 %v3155_v40, %v3154_v25  ;;  %v4215_v6 = vadd.f32 %v11457_v11, %v4214_v20  ;;  %v2643_v35 = vadd.f32 %v11413_v16, %v2642_v55 }
 0x62a   :  { %7199 = vmatpush.bf16.msrb.mxu3 %v9188_v31  ;;  %v4393_v52 = vmax.f32 %v4215_v6, 0.0  ;;  %v2786_v32 = vmax.f32 %v2643_v35, 0.0  ;;  %3399 = vrot.lane.b32.xlu1 %v3284_v13, %s9458_s30  ;;  %v11699_v6 = vld [vmem:[#allocation2 + $0x18] sm:$0xff] }
 0x62b   :  { %4751 = vrot.lane.b32.xlu0 %v4480_v43, %s9459_s28  ;;  %v12181_v43 = vld [vmem:[#allocation20_spill] sm:$0xff]  ;;  %v5573_v42 = vunpack.c.l.b16 %v11699_v6 }
 0x62c   :  { %v4515_v17 = vpack.c.bf16 %v4393_v52, %v4393_v52  ;;  %v2910_v60 = vpack.c.bf16 %v2786_v32, %v2786_v32  ;;  %v4142_v29 = vadd.f32 %v11457_v11, %v12181_v43  ;;  %v9196_v52 = vld [vmem:[#allocation3 + $0x180] sm:$0xff] }
 0x62d   :  { %7200 = vmatmul.bf16.vlgmr.msrb.gmra.mxu3 %v5603_v53  ;;  %v9411_v32 = vld [vmem:[%s12136_s8] ss:$0 sm:$0xff]  ;;  %v5604_v39 = vpack.c.b16 %v5573_v42, %v5573_v42 }
 0x62e   :  { %7205 = vmatpush.bf16.msra.mxu3 %v9203_v2  ;;  %4893 = vst.msk [vmem:[#allocation2 + $0x54] sm:$0xf] %vm4553_vm9, %v4515_v17  ;;  %v3156_v45 = vunpack.c.l.b16 %v2910_v60  ;;  %v4364_v15 = vmax.f32 %v4142_v29, 0.0 }
 0x62f   :  { %v11683_v63 = vpop.f32.mrf.mxu2  ;;  %v2645_v19 = vpop.f32.mrf.mxu1 }
 0x630   :  { %v11687_v31 = vpack.c.b16 %v3156_v45, %v3155_v40  ;;  %v2646_v25 = vadd.f32 %v11413_v16, %v2645_v19  ;;  %v7136_v2 = vpop.f32.mrf.mxu3 }
 0x632   :  { %7206 = vmatpush.bf16.msra.mxu3 %v9202_v57  ;;  %v2787_v51 = vmax.f32 %v2646_v25, 0.0  ;;  %4767 = vrot.lane.b32.xlu1 %v4484_v24, %s9459_s28  ;;  %v4359_v57 = vmax.f32 %v4130_v9, 0.0  ;;  %v12182_v24 = vld [vmem:[#allocation21_spill] sm:$0xff] }
 0x633   :  { %3524 = vrot.lane.b32.xlu2 %v11687_v31, %s9459_s28  ;;  %4772 = vrot.lane.b32.xlu0 %v4485_v62, %s9454_s22  ;;  %v4147_v25 = vadd.f32 %v11457_v11, %v12182_v24  ;;  %v9206_v24 = vld [vmem:[#allocation3 + $0x1d0] sm:$0xff] }
 0x634   :  { %v2911_v53 = vpack.c.bf16 %v2787_v51, %v2787_v51  ;;  %v4481_v35 = vpack.c.bf16 %v4359_v57, %v4359_v57 }
 0x635   :  { %v4366_v57 = vmax.f32 %v4147_v25, 0.0  ;;  %v12183_v25 = vld [vmem:[#allocation22_spill] sm:$0xff] }
 0x636   :  { %7207 = vmatpush.bf16.msra.mxu3 %v9201_v28  ;;  %v3157_v58 = vunpack.c.l.b16 %v2911_v53  ;;  %v4482_v28 = vpack.c.bf16 %v4360_v22, %v4360_v22 }
 0x637   :  { %v2647_v40 = vpop.f32.mrf.mxu1 }
 0x638   :  { %v3285_v20 = vpack.c.b16 %v3157_v58, %v3156_v45  ;;  %v11696_v55 = vpop.f32.mrf.mxu2  ;;  %v2648_v56 = vadd.f32 %v11413_v16, %v2647_v40  ;;  %v7138_v13 = vpop.f32.mrf.mxu3 }
 0x639   :  { %v4160_v13 = vadd.f32 %v11457_v11, %v11203_v10 }
 0x63a   :  { %7208 = vmatpush.bf16.msra.mxu3 %v9200_v5  ;;  %v2788_v44 = vmax.f32 %v2648_v56, 0.0  ;;  %4761 = vrot.lane.b32.xlu1 %v4482_v28, %s9460_s2  ;;  %v9211_v5 = vld [vmem:[#allocation3 + $0x1f8] sm:$0xff]  ;;  %v4488_v56 = vpack.c.bf16 %v4366_v57, %v4366_v57 }
 0x63b   :  { %4756 = vrot.lane.b32.xlu2 %v4481_v35, %s9454_s22  ;;  %3401 = vrot.lane.b32.xlu0 %v3285_v20, %s9458_s30  ;;  %v9208_v20 = vld [vmem:[#allocation3 + $0x1e0] sm:$0xff] }
 0x63c   :  { %v2912_v17 = vpack.c.bf16 %v2788_v44, %v2788_v44 }
 0x63d   :  { %v3515_v60 = vpop.permute.xlu2 %3514 }
 0x63e   :  { %7209 = vmatpush.bf16.msra.mxu3 %v9199_v47  ;;  %v3158_v45 = vunpack.c.l.b16 %v2912_v17  ;;  %v7137_v47 = vadd.f32 %v9411_v32, %v7136_v2  ;;  %v9209_v2 = vld [vmem:[#allocation3 + $0x1e8] sm:$0xff]  ;;  %v9207_v17 = vld [vmem:[#allocation3 + $0x1d8] sm:$0xff] }
 0x63f   :  { %v2650_v19 = vpop.f32.mrf.mxu1 }
 0x640   :  { %v11712_v36 = vpack.c.b16 %v3158_v45, %v3157_v58  ;;  %v11714_v9 = vpop.f32.mrf.mxu2  ;;  %v2651_v62 = vadd.f32 %v11413_v16, %v2650_v19  ;;  %v7149_v51 = vpop.f32.mrf.mxu3 }
 0x641   :  { %v11717_v22 = vadd.f32 %v7149_v51, %v7137_v47 }
 0x642   :  { %7210 = vmatpush.bf16.msra.mxu3 %v9198_v26  ;;  %v4486_v26 = vpack.c.bf16 %v4364_v15, %v4364_v15  ;;  %v2789_v53 = vmax.f32 %v2651_v62, 0.0  ;;  %3526 = vrot.lane.b32.xlu1 %v11712_v36, %s9459_s28  ;;  %v4371_v15 = vmax.f32 %v4160_v13, 0.0  ;;  %v4150_v62 = vadd.f32 %v11457_v11, %v12183_v25 }
 0x644   :  { %4777 = vrot.lane.b32.xlu2 %v4486_v26, %s9460_s2  ;;  %v2913_v58 = vpack.c.bf16 %v2789_v53, %v2789_v53  ;;  %v4493_v51 = vpack.c.bf16 %v4371_v15, %v4371_v15 }
 0x646   :  { %7211 = vmatpush.bf16.msra.mxu3 %v9197_v54  ;;  %v11722_v54 = vpop.permute.xlu2 %3391  ;;  %v3159_v40 = vunpack.c.l.b16 %v2913_v58  ;;  %v1771_v58 = vpop.permute.xlu0 %1770 }
 0x647   :  { %v2652_v28 = vpop.f32.mrf.mxu1  ;;  %v2085_v13 = vsel %vm1899_vm4, %v11398_v33, %v1771_v58  ;;  %v9219_v33 = vld [vmem:[#allocation3 + $0x238] sm:$0xff] }
 0x648   :  { %v3286_v35 = vpack.c.b16 %v3159_v40, %v3158_v45  ;;  %v4224_v43 = vpop.f32.mrf.mxu2  ;;  %v2653_v29 = vadd.f32 %v11413_v16, %v2652_v28  ;;  %v7151_v44 = vpop.f32.mrf.mxu3  ;;  %v11749_v28 = vld [vmem:[%s12132_s4] ss:$0 sm:$0xff] }
 0x649   :  { %v4225_v32 = vadd.f32 %v11457_v11, %v4224_v43 }
 0x64a   :  { %7212 = vmatpush.bf16.msra.mxu3 %v9196_v52  ;;  %v4157_v52 = vadd.f32 %v11457_v11, %v11187_v8  ;;  %4783 = vrot.lane.b32.xlu1 %v4488_v56, %s9459_s28  ;;  %v4367_v56 = vmax.f32 %v4150_v62, 0.0 }
 0x64b   :  { %v4397_v42 = vmax.f32 %v4225_v32, 0.0 }
 0x64c   :  { %3403 = vrot.lane.b32.xlu2 %v3286_v35, %s9458_s30  ;;  %v3390_v45 = vpop.permute.xlu1 %3389  ;;  %v4370_v47 = vmax.f32 %v4157_v52, 0.0 }
 0x64d   :  { %7213 = vmatmul.bf16.vlgmr.msra.gmra.mxu3 %v5604_v39  ;;  %v4519_v19 = vpack.c.bf16 %v4397_v42, %v4397_v42  ;;  %v3687_v16 = vsel %vm2086_vm5, %v11432_v34, %v3390_v45  ;;  %v12184_v34 = vld [vmem:[#allocation23_spill] sm:$0xff]  ;;  %v4489_v42 = vpack.c.bf16 %v4367_v56, %v4367_v56 }
 0x64e   :  { %7218 = vmatpush.bf16.msrb.mxu3 %v9211_v5  ;;  %v2790_v5 = vmax.f32 %v2653_v29, 0.0  ;;  %v4704_v39 = vpop.permute.xlu2 %4703  ;;  %v4492_v57 = vpack.c.bf16 %v4370_v47, %v4370_v47  ;;  %v5574_v47 = vunpack.c.h.b16 %v11699_v6 }
 0x64f   :  { %4706 = vst.msk [vmem:[#allocation2 + $0x24] sm:$0xf] %vm4559_vm10, %v4704_v39 }
 0x650   :  { %v2914_v10 = vpack.c.bf16 %v2790_v5, %v2790_v5  ;;  %4909 = vst.msk [vmem:[#allocation2 + $0x58] sm:$0xf] %vm4553_vm9, %v4519_v19  ;;  %v11742_v53 = vpop.f32.mrf.mxu2  ;;  %v9204_v5 = vld [vmem:[#allocation3 + $0x1c0] sm:$0xff]  ;;  %v5605_v6 = vpack.c.b16 %v5574_v47, %v5574_v47 }
 0x652   :  { %7219 = vmatpush.bf16.msrb.mxu3 %v9210_v3  ;;  %v3160_v8 = vunpack.c.l.b16 %v2914_v10  ;;  %v3821_v3 = vsel %vm3721_vm7, %v3687_v16, %v3515_v60  ;;  %v2655_v60 = vpop.f32.mrf.mxu1  ;;  %4804 = vrot.lane.b32.xlu1 %v4493_v51, %s9454_s22 }
 0x653   :  { %8060 = vmatmul.msk.bf16.gmra.mxu2 %vm3872_vm8, %v3821_v3 }
 0x654   :  { %v11740_v26 = vpack.c.b16 %v3160_v8, %v3159_v40  ;;  %4799 = vrot.lane.b32.xlu2 %v4492_v57, %s9459_s28  ;;  %v9205_v40 = vld [vmem:[#allocation3 + $0x1c8] sm:$0xff]  ;;  %v1898_v43 = vpop.permute.xlu1 %1897 }
 0x655   :  { %v2210_v44 = vsel %vm2086_vm5, %v2085_v13, %v1898_v43 }
 0x656   :  { %7220 = vmatpush.bf16.msrb.mxu3 %v9209_v2  ;;  %v4152_v2 = vadd.f32 %v11457_v11, %v12184_v34  ;;  %3528 = vrot.lane.b32.xlu0 %v11740_v26, %s9459_s28  ;;  %v11759_v52 = vpop.permute.xlu2 %4697  ;;  %v9218_v34 = vld [vmem:[#allocation3 + $0x230] sm:$0xff] }
 0x657   :  { %7998 = vmatmul.msk.bf16.gmra.mxu1 %vm2227_vm6, %v2210_v44 }
 0x658   :  { %v4368_v29 = vmax.f32 %v4152_v2, 0.0  ;;  %v11764_v45 = vpop.f32.mrf.mxu2 }
 0x65a   :  { %7221 = vmatpush.bf16.msrb.mxu3 %v9208_v20  ;;  %v2656_v20 = vadd.f32 %v11749_v28, %v2655_v60  ;;  %v4490_v19 = vpack.c.bf16 %v4368_v29, %v4368_v29  ;;  %v2657_v16 = vpop.f32.mrf.mxu1  ;;  %v3690_v29 = vsel %vm2086_vm5, %v11544_v12, %v11722_v54 }
 0x65b   :  { %v2658_v3 = vadd.f32 %v11749_v28, %v2657_v16  ;;  %v9215_v16 = vld [vmem:[#allocation3 + $0x218] sm:$0xff] }
 0x65c   :  { %v2791_v35 = vmax.f32 %v2656_v20, 0.0  ;;  %4793 = vrot.lane.b32.xlu2 %v4490_v19, %s9460_s2  ;;  %v4688_v51 = vpop.permute.xlu1 %4687  ;;  %v9217_v20 = vld [vmem:[#allocation3 + $0x228] sm:$0xff] }
 0x65d   :  { %v2792_v62 = vmax.f32 %v2658_v3, 0.0  ;;  %4690 = vst.msk [vmem:[#allocation2 + $0x20] sm:$0xf] %vm4559_vm10, %v4688_v51 }
 0x65e   :  { %7222 = vmatpush.bf16.msrb.mxu3 %v9207_v17  ;;  %v2915_v32 = vpack.c.bf16 %v2791_v35, %v2791_v35  ;;  %v12185_v17 = vld [vmem:[#allocation24_spill] sm:$0xff]  ;;  %4788 = vrot.lane.b32.xlu0 %v4489_v42, %s9454_s22 }
 0x65f   :  { %v4162_v15 = vadd.f32 %v11457_v11, %v12185_v17  ;;  %v2916_v2 = vpack.c.bf16 %v2792_v62, %v2792_v62 }
 0x660   :  { %v3161_v10 = vunpack.c.l.b16 %v2915_v32  ;;  %v11775_v60 = vpop.f32.mrf.mxu2 }
 0x661   :  { %v4372_v25 = vmax.f32 %v4162_v15, 0.0  ;;  %v3162_v58 = vunpack.c.l.b16 %v2916_v2 }
 0x662   :  { %7223 = vmatpush.bf16.msrb.mxu3 %v9206_v24  ;;  %v3287_v39 = vpack.c.b16 %v3161_v10, %v3160_v8  ;;  %v7162_v24 = vpop.f32.mrf.mxu3  ;;  %v11773_v8 = vpop.permute.xlu2 %3518 }
 0x663   :  { %v7163_v11 = vadd.f32 %v7162_v24, %v11717_v22  ;;  %v4494_v57 = vpack.c.bf16 %v4372_v25, %v4372_v25  ;;  %v11780_v22 = vld [vmem:[%s12134_s6] ss:$0 sm:$0xff]  ;;  %v2660_v56 = vpop.f32.mrf.mxu1  ;;  %v11784_v13 = vpack.c.b16 %v3162_v58, %v3161_v10 }
 0x664   :  { %3405 = vrot.lane.b32.xlu1 %v3287_v39, %s9458_s30  ;;  %v2661_v35 = vadd.f32 %v11749_v28, %v2660_v56  ;;  %v4709_v32 = vpop.permute.xlu1 %4708  ;;  %v4177_v39 = vadd.f32 %v11780_v22, %v11327_v41  ;;  %v4180_v3 = vadd.f32 %v11780_v22, %v11357_v0 }
 0x665   :  { %3530 = vrot.lane.b32.xlu2 %v11784_v13, %s9459_s28  ;;  %4711 = vst.msk [vmem:[#allocation2 + $0x24] sm:$0xf] %vm4565_vm11, %v4709_v32 }
 0x666   :  { %7224 = vmatpush.bf16.msrb.mxu3 %v9205_v40  ;;  %v4167_v40 = vadd.f32 %v11780_v22, %v11240_v18  ;;  %4809 = vrot.lane.b32.xlu0 %v4494_v57, %s9460_s2  ;;  %v2793_v44 = vmax.f32 %v2661_v35, 0.0  ;;  %v9216_v18 = vld [vmem:[#allocation3 + $0x220] sm:$0xff]  ;;  %v9214_v57 = vld [vmem:[#allocation3 + $0x210] sm:$0xff]  ;;  %v4378_v41 = vmax.f32 %v4177_v39, 0.0 }
 0x668   :  { %v4374_v42 = vmax.f32 %v4167_v40, 0.0  ;;  %v2917_v10 = vpack.c.bf16 %v2793_v44, %v2793_v44  ;;  %v4234_v54 = vpop.f32.mrf.mxu2  ;;  %v4500_v44 = vpack.c.bf16 %v4378_v41, %v4378_v41  ;;  %v4187_v41 = vadd.f32 %v11780_v22, %v11512_v38 }
 0x669   :  { %v4235_v47 = vadd.f32 %v11780_v22, %v4234_v54 }
 0x66a   :  { %7225 = vmatpush.bf16.msrb.mxu3 %v9204_v5  ;;  %v7164_v43 = vpop.f32.mrf.mxu3  ;;  %v3517_v5 = vpop.permute.xlu0 %3516  ;;  %v3163_v12 = vunpack.c.l.b16 %v2917_v10 }
 0x66b   :  { %v4720_v17 = vpop.permute.xlu2 %4719  ;;  %v3823_v15 = vsel %vm3721_vm7, %v3690_v29, %v3517_v5  ;;  %v2662_v19 = vpop.f32.mrf.mxu1  ;;  %v4401_v62 = vmax.f32 %v4235_v47, 0.0  ;;  %v4172_v43 = vadd.f32 %v11780_v22, %v11277_v48  ;;  %v9213_v29 = vld [vmem:[#allocation3 + $0x208] sm:$0xff]  ;;  %v9226_v47 = vld [vmem:[#allocation3 + $0x270] sm:$0xff] }
 0x66c   :  { %4722 = vst.msk [vmem:[#allocation2 + $0x28] sm:$0xf] %vm4559_vm10, %v4720_v17  ;;  %8061 = vmatmul.msk.bf16.gmra.mxu2 %vm3872_vm8, %v3823_v15  ;;  %v3288_v24 = vpack.c.b16 %v3163_v12, %v3162_v58  ;;  %v2663_v25 = vadd.f32 %v11749_v28, %v2662_v19  ;;  %v3394_v58 = vpop.permute.xlu1 %3393  ;;  %v9212_v17 = vld [vmem:[#allocation3 + $0x200] sm:$0xff] }
 0x66d   :  { %7226 = vmatmul.bf16.vlgmr.msrb.gmra.mxu3 %v5605_v6 }
 0x66e   :  { %7231 = vmatpush.bf16.msra.mxu3 %v9219_v33  ;;  %v4496_v33 = vpack.c.bf16 %v4374_v42, %v4374_v42  ;;  %v2794_v51 = vmax.f32 %v2663_v25, 0.0  ;;  %3407 = vrot.lane.b32.xlu0 %v3288_v24, %s9458_s30 }
 0x670   :  { %4815 = vrot.lane.b32.xlu2 %v4496_v33, %s9459_s28  ;;  %v2918_v40 = vpack.c.bf16 %v2794_v51, %v2794_v51  ;;  %v11811_v35 = vpop.f32.mrf.mxu2  ;;  %v9225_v51 = vld [vmem:[#allocation3 + $0x268] sm:$0xff] }
 0x672   :  { %7232 = vmatpush.bf16.msra.mxu3 %v9218_v34  ;;  %v4693_v6 = vpop.permute.xlu0 %4692  ;;  %v4523_v34 = vpack.c.bf16 %v4401_v62, %v4401_v62  ;;  %v7175_v2 = vpop.f32.mrf.mxu3  ;;  %v3164_v56 = vunpack.c.l.b16 %v2918_v40 }
 0x673   :  { %4695 = vst.msk [vmem:[#allocation2 + $0x20] sm:$0xf] %vm4565_vm11, %v4693_v6  ;;  %v11808_v0 = vadd.f32 %v7175_v2, %v7163_v11  ;;  %v4170_v11 = vadd.f32 %v11780_v22, %v11263_v14  ;;  %v9227_v14 = vld [vmem:[#allocation3 + $0x278] sm:$0xff] }
 0x674   :  { %4700 = vst.msk [vmem:[#allocation2 + $0x20] sm:$0xf] %vm4571_vm12, %v11759_v52  ;;  %v11815_v5 = vpack.c.b16 %v3164_v56, %v3163_v12  ;;  %v3693_v52 = vsel %vm2086_vm5, %v11580_v21, %v3394_v58  ;;  %v4376_v21 = vmax.f32 %v4172_v43, 0.0  ;;  %v9397_v12 = vld [vmem:[%s12137_s9 + $0x28] sm:$0xff]  ;;  %v9224_v58 = vld [vmem:[#allocation3 + $0x260] sm:$0xff] }
 0x675   :  { %4925 = vst.msk [vmem:[#allocation2 + $0x5c] sm:$0xf] %vm4553_vm9, %v4523_v34  ;;  %v3825_v42 = vsel %vm3721_vm7, %v3693_v52, %v11773_v8  ;;  %v4375_v15 = vmax.f32 %v4170_v11, 0.0  ;;  %v4182_v8 = vadd.f32 %v11780_v22, %v11373_v59  ;;  %7601 = vmatpush.bf16.msrb.mxu2 %v9397_v12  ;;  %v4192_v12 = vadd.f32 %v11780_v22, %v11538_v7 }
 0x676   :  { %7233 = vmatpush.bf16.msra.mxu3 %v9217_v20  ;;  %v4379_v20 = vmax.f32 %v4180_v3, 0.0  ;;  %4831 = vrot.lane.b32.xlu0 %v4500_v44, %s9459_s28  ;;  %v4498_v54 = vpack.c.bf16 %v4376_v21, %v4376_v21 }
 0x677   :  { %3532 = vrot.lane.b32.xlu1 %v11815_v5, %s9459_s28  ;;  %v4497_v19 = vpack.c.bf16 %v4375_v15, %v4375_v15  ;;  %v4380_v6 = vmax.f32 %v4182_v8, 0.0 }
 0x678   :  { %v4501_v32 = vpack.c.bf16 %v4379_v20, %v4379_v20  ;;  %v11829_v10 = vpop.f32.mrf.mxu2  ;;  %v4197_v20 = vadd.f32 %v11780_v22, %v11574_v30  ;;  %v4382_v30 = vmax.f32 %v4187_v41, 0.0 }
 0x679   :  { %v4502_v43 = vpack.c.bf16 %v4380_v6, %v4380_v6 }
 0x67a   :  { %7234 = vmatpush.bf16.msra.mxu3 %v9216_v18  ;;  %4836 = vrot.lane.b32.xlu2 %v4501_v32, %s9454_s22  ;;  %v4714_v18 = vpop.permute.xlu0 %4713  ;;  %v7177_v48 = vpop.f32.mrf.mxu3  ;;  %v4504_v15 = vpack.c.bf16 %v4382_v30, %v4382_v30 }
 0x67b   :  { %4716 = vst.msk [vmem:[#allocation2 + $0x24] sm:$0xf] %vm4571_vm12, %v4714_v18  ;;  %v2665_v33 = vpop.f32.mrf.mxu1 }
 0x67c   :  { %8062 = vmatmul.msk.bf16.gmra.mxu2 %vm3872_vm8, %v3825_v42  ;;  %v2666_v39 = vadd.f32 %v11749_v28, %v2665_v33  ;;  %v4386_v42 = vmax.f32 %v4197_v20, 0.0  ;;  %v9235_v20 = vld [vmem:[#allocation3 + $0x2b8] sm:$0xff] }
 0x67e   :  { %7235 = vmatpush.bf16.msra.mxu3 %v9215_v16  ;;  %v4741_v16 = vpop.permute.xlu2 %4740  ;;  %4825 = vrot.lane.b32.xlu0 %v4498_v54, %s9460_s2  ;;  %v2795_v25 = vmax.f32 %v2666_v39, 0.0  ;;  %v4508_v54 = vpack.c.bf16 %v4386_v42, %v4386_v42 }
 0x67f   :  { %4820 = vrot.lane.b32.xlu1 %v4497_v19, %s9454_s22  ;;  %v4200_v19 = vadd.f32 %v11780_v22, %v11595_v61 }
 0x680   :  { %v2919_v34 = vpack.c.bf16 %v2795_v25, %v2795_v25  ;;  %v11842_v59 = vpop.f32.mrf.mxu2 }
 0x681   :  { %v4387_v6 = vmax.f32 %v4200_v19, 0.0 }
 0x682   :  { %7236 = vmatpush.bf16.msra.mxu3 %v9214_v57  ;;  %v3396_v3 = vpop.permute.xlu0 %3395  ;;  %v11838_v24 = vld [vmem:[#allocation2 + $0x20] sm:$0xff]  ;;  %v3165_v57 = vunpack.c.l.b16 %v2919_v34 }
 0x683   :  { %v5575_v62 = vunpack.c.l.b16 %v11838_v24  ;;  %v2667_v40 = vpop.f32.mrf.mxu1  ;;  %v3696_v32 = vsel %vm2086_vm5, %v11611_v4, %v3396_v3  ;;  %v9223_v4 = vld [vmem:[#allocation3 + $0x258] sm:$0xff]  ;;  %v4190_v3 = vadd.f32 %v11780_v22, %v11529_v37  ;;  %v4509_v41 = vpack.c.bf16 %v4387_v6, %v4387_v6 }
 0x684   :  { %v2668_v44 = vadd.f32 %v11749_v28, %v2667_v40  ;;  %v3521_v52 = vpop.permute.xlu1 %3520  ;;  %v5576_v40 = vunpack.c.h.b16 %v11838_v24 }
 0x685   :  { %v5606_v2 = vpack.c.b16 %v5575_v62, %v5575_v62  ;;  %v3827_v38 = vsel %vm3721_vm7, %v3696_v32, %v3521_v52  ;;  %v4383_v37 = vmax.f32 %v4190_v3, 0.0  ;;  %v9230_v3 = vld [vmem:[#allocation3 + $0x290] sm:$0xff] }
 0x686   :  { %7237 = vmatpush.bf16.msra.mxu3 %v9213_v29  ;;  %v3289_v29 = vpack.c.b16 %v3165_v57, %v3164_v56  ;;  %v3398_v18 = vpop.permute.xlu2 %3397  ;;  %v2796_v48 = vmax.f32 %v2668_v44, 0.0 }
 0x687   :  { %4841 = vrot.lane.b32.xlu1 %v4502_v43, %s9460_s2  ;;  %v4202_v43 = vadd.f32 %v11780_v22, %v11607_v46  ;;  %v3699_v44 = vsel %vm2086_vm5, %v11647_v23, %v3398_v18  ;;  %v5607_v46 = vpack.c.b16 %v5576_v40, %v5576_v40  ;;  %v9233_v23 = vld [vmem:[#allocation3 + $0x2a8] sm:$0xff] }
 0x688   :  { %3409 = vrot.lane.b32.xlu2 %v3289_v29, %s9458_s30  ;;  %v11857_v56 = vpack.c.bf16 %v2796_v48, %v2796_v48 }
 0x689   :  { %v4388_v48 = vmax.f32 %v4202_v43, 0.0 }
 0x68a   :  { %7238 = vmatpush.bf16.msra.mxu3 %v9212_v17  ;;  %v4736_v11 = vpop.permute.xlu0 %4735  ;;  %v4244_v17 = vpop.f32.mrf.mxu2  ;;  %v3166_v21 = vunpack.c.l.b16 %v11857_v56 }
 0x68b   :  { %4738 = vst.msk [vmem:[#allocation2 + $0x2c] sm:$0xf] %vm4559_vm10, %v4736_v11  ;;  %v9234_v11 = vld [vmem:[#allocation3 + $0x2b0] sm:$0xff]  ;;  %v4510_v18 = vpack.c.bf16 %v4388_v48, %v4388_v48  ;;  %v9240_v48 = vld [vmem:[#allocation3 + $0x2e0] sm:$0xff] }
 0x68c   :  { %4743 = vst.msk [vmem:[#allocation2 + $0x2c] sm:$0xf] %vm4565_vm11, %v4741_v16  ;;  %8063 = vmatmul.msk.bf16.gmra.mxu2 %vm3872_vm8, %v3827_v38  ;;  %v11867_v8 = vpack.c.b16 %v3166_v21, %v3165_v57  ;;  %v4725_v25 = vpop.permute.xlu1 %4724  ;;  %v4207_v38 = vadd.f32 %v11780_v22, %v11643_v49  ;;  %v4220_v49 = vadd.f32 %v11780_v22, %v11696_v55 }
 0x68d   :  { %7239 = vmatmul.bf16.vlgmr.msra.gmra.mxu3 %v5606_v2  ;;  %4727 = vst.msk [vmem:[#allocation2 + $0x28] sm:$0xf] %vm4565_vm11, %v4725_v25  ;;  %v9220_v2 = vld [vmem:[#allocation3 + $0x240] sm:$0xff] }
 0x68e   :  { %7244 = vmatpush.bf16.msrb.mxu3 %v9227_v14  ;;  %v4245_v14 = vadd.f32 %v11780_v22, %v4244_v17  ;;  %v3525_v61 = vpop.permute.xlu2 %3524  ;;  %3534 = vrot.lane.b32.xlu0 %v11867_v8, %s9459_s28  ;;  %v9232_v17 = vld [vmem:[#allocation3 + $0x2a0] sm:$0xff]  ;;  %v4395_v55 = vmax.f32 %v4220_v49, 0.0 }
 0x68f   :  { %4847 = vrot.lane.b32.xlu1 %v4504_v15, %s9459_s28 }
 0x690   :  { %v7188_v33 = vpop.f32.mrf.mxu3  ;;  %v4405_v16 = vmax.f32 %v4245_v14, 0.0  ;;  %4863 = vrot.lane.b32.xlu2 %v4508_v54, %s9459_s28  ;;  %v4390_v14 = vmax.f32 %v4207_v38, 0.0  ;;  %v9239_v38 = vld [vmem:[#allocation3 + $0x2d8] sm:$0xff] }
 0x691   :  { %v11870_v39 = vadd.f32 %v7188_v33, %v11808_v0  ;;  %v9221_v0 = vld [vmem:[#allocation3 + $0x248] sm:$0xff] }
 0x692   :  { %7245 = vmatpush.bf16.msrb.mxu3 %v9226_v47  ;;  %v9222_v47 = vld [vmem:[#allocation3 + $0x250] sm:$0xff]  ;;  %v4730_v7 = vpop.permute.xlu0 %4729  ;;  %v4527_v62 = vpack.c.bf16 %v4405_v16, %v4405_v16  ;;  %v4512_v54 = vpack.c.bf16 %v4390_v14, %v4390_v14 }
 0x693   :  { %4732 = vst.msk [vmem:[#allocation2 + $0x28] sm:$0xf] %vm4571_vm12, %v4730_v7  ;;  %v9229_v7 = vld [vmem:[#allocation3 + $0x288] sm:$0xff] }
 0x694   :  { %4941 = vst.msk [vmem:[#allocation2 + $0x60] sm:$0xf] %vm4553_vm9, %v4527_v62  ;;  %v4746_v29 = vpop.permute.xlu1 %4745  ;;  %v4517_v62 = vpack.c.bf16 %v4395_v55, %v4395_v55 }
 0x695   :  { %4748 = vst.msk [vmem:[#allocation2 + $0x2c] sm:$0xf] %vm4571_vm12, %v4746_v29  ;;  %v9242_v29 = vld [vmem:[#allocation3 + $0x2f0] sm:$0xff] }
 0x696   :  { %7246 = vmatpush.bf16.msrb.mxu3 %v9225_v51  ;;  %v4384_v51 = vmax.f32 %v4192_v12, 0.0  ;;  %v4757_v32 = vpop.permute.xlu2 %4756  ;;  %v9231_v12 = vld [vmem:[#allocation3 + $0x298] sm:$0xff] }
 0x697   :  { %4868 = vrot.lane.b32.xlu1 %v4509_v41, %s9454_s22 }
 0x698   :  { %v7190_v34 = vpop.f32.mrf.mxu3  ;;  %v4506_v57 = vpack.c.bf16 %v4384_v51, %v4384_v51 }
 0x699   :  { %v9228_v34 = vld [vmem:[#allocation3 + $0x280] sm:$0xff] }
 0x69a   :  { %7247 = vmatpush.bf16.msrb.mxu3 %v9224_v58  ;;  %v4505_v58 = vpack.c.bf16 %v4383_v37, %v4383_v37  ;;  %4857 = vrot.lane.b32.xlu2 %v4506_v57, %s9460_s2  ;;  %v3523_v52 = vpop.permute.xlu0 %3522 }
 0x69b   :  { %v3829_v24 = vsel %vm3721_vm7, %v3699_v44, %v3523_v52 }
 0x69c   :  { %4852 = vrot.lane.b32.xlu0 %v4505_v58, %s9454_s22  ;;  %8064 = vmatmul.msk.bf16.gmra.mxu2 %vm3872_vm8, %v3829_v24  ;;  %v3400_v30 = vpop.permute.xlu1 %3399  ;;  %v11913_v6 = vld [vmem:[#allocation2 + $0x28] sm:$0xff] }
 0x69d   :  { %v3702_v15 = vsel %vm2086_vm5, %v11666_v50, %v3400_v30  ;;  %v5577_v57 = vunpack.c.l.b16 %v11913_v6  ;;  %v9241_v24 = vld [vmem:[#allocation3 + $0x2e8] sm:$0xff] }
 0x69e   :  { %7248 = vmatpush.bf16.msrb.mxu3 %v9223_v4  ;;  %v4778_v42 = vpop.permute.xlu2 %4777  ;;  %v3831_v16 = vsel %vm3721_vm7, %v3702_v15, %v3525_v61 }
 0x69f   :  { %v5608_v43 = vpack.c.b16 %v5577_v57, %v5577_v57 }
 0x6a2   :  { %7249 = vmatpush.bf16.msrb.mxu3 %v9222_v47  ;;  %v4752_v4 = vpop.permute.xlu0 %4751 }
 0x6a3   :  { %4754 = vst.msk [vmem:[#allocation2 + $0x30] sm:$0xf] %vm4559_vm10, %v4752_v4 }
 0x6a4   :  { %4873 = vrot.lane.b32.xlu0 %v4510_v18, %s9460_s2  ;;  %4759 = vst.msk [vmem:[#allocation2 + $0x30] sm:$0xf] %vm4565_vm11, %v4757_v32  ;;  %v4768_v33 = vpop.permute.xlu1 %4767 }
 0x6a5   :  { %4770 = vst.msk [vmem:[#allocation2 + $0x34] sm:$0xf] %vm4559_vm10, %v4768_v33  ;;  %v9237_v33 = vld [vmem:[#allocation3 + $0x2c8] sm:$0xff] }
 0x6a6   :  { %7250 = vmatpush.bf16.msrb.mxu3 %v9221_v0  ;;  %v11902_v47 = vpop.permute.xlu2 %3403  ;;  %v4227_v0 = vadd.f32 %v11780_v22, %v11742_v53 }
 0x6a7   :  { %v3708_v14 = vsel %vm2086_vm5, %v11712_v36, %v11902_v47  ;;  %v9251_v36 = vld [vmem:[#allocation3 + $0x338] sm:$0xff]  ;;  %v5578_v47 = vunpack.c.h.b16 %v11913_v6 }
 0x6a9   :  { %v5609_v55 = vpack.c.b16 %v5578_v47, %v5578_v47 }
 0x6aa   :  { %7251 = vmatpush.bf16.msrb.mxu3 %v9220_v2  ;;  %v4773_v19 = vpop.permute.xlu0 %4772  ;;  %v9243_v2 = vld [vmem:[#allocation3 + $0x2f8] sm:$0xff] }
 0x6ab   :  { %4775 = vst.msk [vmem:[#allocation2 + $0x34] sm:$0xf] %vm4565_vm11, %v4773_v19 }
 0x6ac   :  { %4879 = vrot.lane.b32.xlu0 %v4512_v54, %s9459_s28  ;;  %4780 = vst.msk [vmem:[#allocation2 + $0x34] sm:$0xf] %vm4571_vm12, %v4778_v42  ;;  %8065 = vmatmul.msk.bf16.gmra.mxu2 %vm3872_vm8, %v3831_v16  ;;  %v4762_v51 = vpop.permute.xlu1 %4761  ;;  %v9236_v16 = vld [vmem:[#allocation3 + $0x2c0] sm:$0xff] }
 0x6ad   :  { %7252 = vmatmul.bf16.vlgmr.msrb.gmra.mxu3 %v5607_v46  ;;  %4764 = vst.msk [vmem:[#allocation2 + $0x30] sm:$0xf] %vm4571_vm12, %v4762_v51  ;;  %v4246_v46 = vpop.f32.mrf.mxu2 }
 0x6ae   :  { %7257 = vmatpush.bf16.msra.mxu3 %v9235_v20  ;;  %v4800_v61 = vpop.permute.xlu2 %4799  ;;  %v4240_v20 = vadd.f32 %v11780_v22, %v11829_v10 }
 0x6af   :  { %4802 = vst.msk [vmem:[#allocation2 + $0x3c] sm:$0xf] %vm4559_vm10, %v4800_v61  ;;  %v9249_v61 = vld [vmem:[#allocation3 + $0x328] sm:$0xff] }
 0x6b0   :  { %v7201_v50 = vpop.f32.mrf.mxu3  ;;  %v4403_v52 = vmax.f32 %v4240_v20, 0.0 }
 0x6b1   :  { %v7202_v25 = vadd.f32 %v7201_v50, %v11870_v39  ;;  %v4398_v39 = vmax.f32 %v4227_v0, 0.0 }
 0x6b2   :  { %7258 = vmatpush.bf16.msra.mxu3 %v9234_v11  ;;  %v3402_v41 = vpop.permute.xlu0 %3401  ;;  %v4525_v10 = vpack.c.bf16 %v4403_v52, %v4403_v52  ;;  %v4247_v11 = vadd.f32 %v11780_v22, %v4246_v46 }
 0x6b3   :  { %v4520_v53 = vpack.c.bf16 %v4398_v39, %v4398_v39  ;;  %v3705_v40 = vsel %vm2086_vm5, %v11687_v31, %v3402_v41 }
 0x6b4   :  { %4900 = vrot.lane.b32.xlu0 %v4517_v62, %s9454_s22  ;;  %v3527_v58 = vpop.permute.xlu1 %3526  ;;  %v4406_v18 = vmax.f32 %v4247_v11, 0.0 }
 0x6b5   :  { %v3833_v44 = vsel %vm3721_vm7, %v3705_v40, %v3527_v58  ;;  %v9247_v58 = vld [vmem:[#allocation3 + $0x318] sm:$0xff] }
 0x6b6   :  { %7259 = vmatpush.bf16.msra.mxu3 %v9233_v23  ;;  %v4794_v32 = vpop.permute.xlu2 %4793  ;;  %v4528_v30 = vpack.c.bf16 %v4406_v18, %v4406_v18 }
 0x6b8   :  { %v7203_v37 = vpop.f32.mrf.mxu3 }
 0x6ba   :  { %7260 = vmatpush.bf16.msra.mxu3 %v9232_v17  ;;  %v9238_v17 = vld [vmem:[#allocation3 + $0x2d0] sm:$0xff] }
 0x6bc   :  { %4911 = vrot.lane.b32.xlu0 %v4520_v53, %s9459_s28  ;;  %8066 = vmatmul.msk.bf16.gmra.mxu2 %vm3872_vm8, %v3833_v44  ;;  %v4784_v31 = vpop.permute.xlu1 %4783  ;;  %v4217_v53 = vadd.f32 %v11780_v22, %v11683_v63  ;;  %v9246_v63 = vld [vmem:[#allocation3 + $0x310] sm:$0xff] }
 0x6bd   :  { %4786 = vst.msk [vmem:[#allocation2 + $0x38] sm:$0xf] %vm4559_vm10, %v4784_v31  ;;  %v4212_v31 = vadd.f32 %v11780_v22, %v11664_v27 }
 0x6be   :  { %7261 = vmatpush.bf16.msra.mxu3 %v9231_v12 }
 0x6bf   :  { %v3531_v23 = vpop.permute.xlu2 %3530  ;;  %v4392_v27 = vmax.f32 %v4212_v31, 0.0 }
 0x6c2   :  { %7262 = vmatpush.bf16.msra.mxu3 %v9230_v3 }
 0x6c4   :  { %4932 = vrot.lane.b32.xlu0 %v4525_v10, %s9454_s22  ;;  %v4805_v4 = vpop.permute.xlu1 %4804 }
 0x6c5   :  { %4807 = vst.msk [vmem:[#allocation2 + $0x3c] sm:$0xf] %vm4565_vm11, %v4805_v4 }
 0x6c6   :  { %7263 = vmatpush.bf16.msra.mxu3 %v9229_v7 }
 0x6c8   :  { %v3529_v12 = vpop.permute.xlu0 %3528 }
 0x6c9   :  { %v3835_v54 = vsel %vm3721_vm7, %v3708_v14, %v3529_v12  ;;  %v9259_v12 = vld [vmem:[#allocation3 + $0x378] sm:$0xff] }
 0x6ca   :  { %7264 = vmatpush.bf16.msra.mxu3 %v9228_v34  ;;  %v4816_v49 = vpop.permute.xlu2 %4815 }
 0x6cb   :  { %4818 = vst.msk [vmem:[#allocation2 + $0x40] sm:$0xf] %vm4559_vm10, %v4816_v49 }
 0x6cc   :  { %4943 = vrot.lane.b32.xlu0 %v4528_v30, %s9459_s28  ;;  %8067 = vmatmul.msk.bf16.gmra.mxu2 %vm3872_vm8, %v3835_v54 }
 0x6cd   :  { %7265 = vmatmul.bf16.vlgmr.msra.gmra.mxu3 %v5608_v43 }
 0x6ce   :  { %7270 = vmatpush.bf16.msrb.mxu3 %v9243_v2 }
 0x6d0   :  { %v7214_v42 = vpop.f32.mrf.mxu3  ;;  %v4789_v50 = vpop.permute.xlu0 %4788 }
 0x6d1   :  { %v7215_v15 = vadd.f32 %v7214_v42, %v7202_v25  ;;  %4791 = vst.msk [vmem:[#allocation2 + $0x38] sm:$0xf] %vm4565_vm11, %v4789_v50  ;;  %v9250_v25 = vld [vmem:[#allocation3 + $0x330] sm:$0xff]  ;;  %v4237_v50 = vadd.f32 %v11780_v22, %v11811_v35  ;;  %v9257_v35 = vld [vmem:[#allocation3 + $0x368] sm:$0xff] }
 0x6d2   :  { %7271 = vmatpush.bf16.msrb.mxu3 %v9242_v29  ;;  %4796 = vst.msk [vmem:[#allocation2 + $0x38] sm:$0xf] %vm4571_vm12, %v4794_v32  ;;  %v4394_v32 = vmax.f32 %v4217_v53, 0.0 }
 0x6d4   :  { %v2670_v62 = vpop.f32.mrf.mxu1  ;;  %v4837_v34 = vpop.permute.xlu2 %4836 }
 0x6d5   :  { %v2671_v0 = vadd.f32 %v11749_v28, %v2670_v62 }
 0x6d6   :  { %7272 = vmatpush.bf16.msrb.mxu3 %v9241_v24  ;;  %v3406_v3 = vpop.permute.xlu1 %3405  ;;  %v11944_v39 = vpop.f32.mrf.mxu2 }
 0x6d7   :  { %v3711_v7 = vsel %vm2086_vm5, %v11740_v26, %v3406_v3  ;;  %v2797_v6 = vmax.f32 %v2671_v0, 0.0  ;;  %v9248_v26 = vld [vmem:[#allocation3 + $0x320] sm:$0xff]  ;;  %v9258_v3 = vld [vmem:[#allocation3 + $0x370] sm:$0xff] }
 0x6d8   :  { %v7216_v19 = vpop.f32.mrf.mxu3  ;;  %v4810_v51 = vpop.permute.xlu0 %4809  ;;  %v3837_v37 = vsel %vm3721_vm7, %v3711_v7, %v3531_v23 }
 0x6d9   :  { %4812 = vst.msk [vmem:[#allocation2 + $0x3c] sm:$0xf] %vm4571_vm12, %v4810_v51  ;;  %v2921_v2 = vpack.c.bf16 %v2797_v6, %v2797_v6  ;;  %v4230_v51 = vadd.f32 %v11780_v22, %v11764_v45 }
 0x6da   :  { %7273 = vmatpush.bf16.msrb.mxu3 %v9240_v48  ;;  %v9245_v48 = vld [vmem:[#allocation3 + $0x308] sm:$0xff] }
 0x6db   :  { %v3229_v57 = vunpack.c.l.b16 %v2921_v2 }
 0x6dc   :  { %8068 = vmatmul.msk.bf16.gmra.mxu2 %vm3872_vm8, %v3837_v37  ;;  %v2672_v41 = vpop.f32.mrf.mxu1  ;;  %v9256_v37 = vld [vmem:[#allocation3 + $0x360] sm:$0xff] }
 0x6dd   :  { %v3290_v20 = vpack.c.b16 %v3229_v57, %v3166_v21  ;;  %v2673_v40 = vadd.f32 %v11749_v28, %v2672_v41  ;;  %v4210_v28 = vadd.f32 %v11780_v22, %v11655_v1  ;;  %v4516_v21 = vpack.c.bf16 %v4394_v32, %v4394_v32  ;;  %v11968_v1 = vld [vmem:[#allocation2 + $0x30] sm:$0xff] }
 0x6de   :  { %7274 = vmatpush.bf16.msrb.mxu3 %v9239_v38  ;;  %v11955_v24 = vpop.f32.mrf.mxu2  ;;  %v5579_v54 = vunpack.c.l.b16 %v11968_v1  ;;  %v9255_v41 = vld [vmem:[#allocation3 + $0x358] sm:$0xff]  ;;  %v9254_v32 = vld [vmem:[#allocation3 + $0x350] sm:$0xff] }
 0x6df   :  { %v2798_v43 = vmax.f32 %v2673_v40, 0.0  ;;  %3411 = vrot.lane.b32.xlu1 %v3290_v20, %s9458_s30  ;;  %v4391_v42 = vmax.f32 %v4210_v28, 0.0  ;;  %v4242_v20 = vadd.f32 %v11780_v22, %v11842_v59 }
 0x6e0   :  { %v3408_v29 = vpop.permute.xlu0 %3407  ;;  %v5610_v47 = vpack.c.b16 %v5579_v54, %v5579_v54 }
 0x6e1   :  { %v2922_v52 = vpack.c.bf16 %v2798_v43, %v2798_v43  ;;  %v3714_v18 = vsel %vm2086_vm5, %v11784_v13, %v3408_v29  ;;  %v9244_v13 = vld [vmem:[#allocation3 + $0x300] sm:$0xff]  ;;  %v4513_v49 = vpack.c.bf16 %v4391_v42, %v4391_v42  ;;  %v9267_v42 = vld [vmem:[#allocation3 + $0x3b8] sm:$0xff] }
 0x6e2   :  { %7275 = vmatpush.bf16.msrb.mxu3 %v9238_v17  ;;  %v11953_v44 = vpop.permute.xlu2 %3409 }
 0x6e3   :  { %v3414_v10 = vunpack.c.l.b16 %v2922_v52 }
 0x6e5   :  { %v3415_v11 = vpack.c.b16 %v3414_v10, %v3229_v57 }
 0x6e6   :  { %7276 = vmatpush.bf16.msrb.mxu3 %v9237_v33  ;;  %v4222_v33 = vadd.f32 %v11780_v22, %v11714_v9  ;;  %v4402_v9 = vmax.f32 %v4237_v50, 0.0 }
 0x6e7   :  { %3536 = vrot.lane.b32.xlu2 %v3415_v11, %s9459_s28  ;;  %4895 = vrot.lane.b32.xlu1 %v4516_v21, %s9459_s28  ;;  %v9253_v11 = vld [vmem:[#allocation3 + $0x348] sm:$0xff] }
 0x6e8   :  { %v4832_v23 = vpop.permute.xlu0 %4831  ;;  %v4396_v7 = vmax.f32 %v4222_v33, 0.0  ;;  %v4524_v6 = vpack.c.bf16 %v4402_v9, %v4402_v9 }
 0x6e9   :  { %v3533_v38 = vpop.permute.xlu1 %3532  ;;  %4834 = vst.msk [vmem:[#allocation2 + $0x44] sm:$0xf] %vm4559_vm10, %v4832_v23 }
 0x6ea   :  { %7277 = vmatpush.bf16.msrb.mxu3 %v9236_v16  ;;  %v4864_v30 = vpop.permute.xlu2 %4863  ;;  %v3839_v4 = vsel %vm3721_vm7, %v3714_v18, %v3533_v38  ;;  %4839 = vst.msk [vmem:[#allocation2 + $0x44] sm:$0xf] %vm4565_vm11, %v4837_v34  ;;  %v4514_v16 = vpack.c.bf16 %v4392_v27, %v4392_v27  ;;  %v4518_v0 = vpack.c.bf16 %v4396_v7, %v4396_v7  ;;  %v9396_v34 = vld [vmem:[%s12137_s9 + $0x20] sm:$0xff] }
 0x6eb   :  { %4866 = vst.msk [vmem:[#allocation2 + $0x4c] sm:$0xf] %vm4559_vm10, %v4864_v30  ;;  %7602 = vmatpush.bf16.msrb.mxu2 %v9396_v34  ;;  %v9252_v38 = vld [vmem:[#allocation3 + $0x340] sm:$0xff] }
 0x6ec   :  { %8069 = vmatmul.msk.bf16.gmra.mxu2 %vm3872_vm8, %v3839_v4  ;;  %v5580_v4 = vunpack.c.h.b16 %v11968_v1 }
 0x6ed   :  { %7278 = vmatmul.bf16.vlgmr.msrb.gmra.mxu3 %v5609_v55 }
 0x6ee   :  { %7283 = vmatpush.bf16.msra.mxu3 %v9251_v36 }
 0x6ef   :  { %v4254_v14 = vpop.f32.mrf.mxu2  ;;  %4884 = vrot.lane.b32.xlu2 %v4513_v49, %s9454_s22  ;;  %4889 = vrot.lane.b32.xlu1 %v4514_v16, %s9460_s2  ;;  %v9265_v16 = vld [vmem:[#allocation3 + $0x3a8] sm:$0xff] }
 0x6f0   :  { %v7227_v46 = vpop.f32.mrf.mxu3 }
 0x6f1   :  { %v11957_v56 = vadd.f32 %v7227_v46, %v7215_v15  ;;  %v4255_v15 = vadd.f32 %v11780_v22, %v4254_v14  ;;  %v4821_v55 = vpop.permute.xlu1 %4820  ;;  %v4404_v46 = vmax.f32 %v4242_v20, 0.0  ;;  %v9275_v20 = vld [vmem:[#allocation3 + $0x3f8] sm:$0xff] }
 0x6f2   :  { %7284 = vmatpush.bf16.msra.mxu3 %v9250_v25  ;;  %v4826_v25 = vpop.permute.xlu0 %4825  ;;  %4823 = vst.msk [vmem:[#allocation2 + $0x40] sm:$0xf] %vm4565_vm11, %v4821_v55  ;;  %v9264_v55 = vld [vmem:[#allocation3 + $0x3a0] sm:$0xff] }
 0x6f3   :  { %v4409_v19 = vmax.f32 %v4255_v15, 0.0  ;;  %4828 = vst.msk [vmem:[#allocation2 + $0x40] sm:$0xf] %vm4571_vm12, %v4826_v25  ;;  %v4526_v31 = vpack.c.bf16 %v4404_v46, %v4404_v46  ;;  %v9266_v15 = vld [vmem:[#allocation3 + $0x3b0] sm:$0xff]  ;;  %v9273_v46 = vld [vmem:[#allocation3 + $0x3e8] sm:$0xff] }
 0x6f4   :  { %v4858_v14 = vpop.permute.xlu2 %4857 }
 0x6f5   :  { %v4531_v36 = vpack.c.bf16 %v4409_v19, %v4409_v19 }
 0x6f6   :  { %7285 = vmatpush.bf16.msra.mxu3 %v9249_v61  ;;  %v4232_v61 = vadd.f32 %v11780_v22, %v11775_v60 }
 0x6f7   :  { %4957 = vst.msk [vmem:[#allocation2 + $0x64] sm:$0xf] %vm4553_vm9, %v4531_v36  ;;  %v4256_v62 = vpop.f32.mrf.mxu2  ;;  %4905 = vrot.lane.b32.xlu2 %v4518_v0, %s9460_s2  ;;  %4927 = vrot.lane.b32.xlu1 %v4524_v6, %s9459_s28 }
 0x6f8   :  { %v7229_v17 = vpop.f32.mrf.mxu3  ;;  %v4400_v45 = vmax.f32 %v4232_v61, 0.0  ;;  %v4257_v43 = vadd.f32 %v11780_v22, %v4256_v62  ;;  %v9263_v62 = vld [vmem:[#allocation3 + $0x398] sm:$0xff]  ;;  %v9262_v61 = vld [vmem:[#allocation3 + $0x390] sm:$0xff] }
 0x6f9   :  { %v4842_v2 = vpop.permute.xlu1 %4841 }
 0x6fa   :  { %7286 = vmatpush.bf16.msra.mxu3 %v9248_v26  ;;  %v4399_v26 = vmax.f32 %v4230_v51, 0.0  ;;  %4844 = vst.msk [vmem:[#allocation2 + $0x44] sm:$0xf] %vm4571_vm12, %v4842_v2  ;;  %v4410_v10 = vmax.f32 %v4257_v43, 0.0 }
 0x6fc   :  { %v4521_v53 = vpack.c.bf16 %v4399_v26, %v4399_v26  ;;  %v9261_v26 = vld [vmem:[#allocation3 + $0x388] sm:$0xff] }
 0x6fe   :  { %7287 = vmatpush.bf16.msra.mxu3 %v9247_v58  ;;  %v4522_v58 = vpack.c.bf16 %v4400_v45, %v4400_v45 }
 0x6ff   :  { %v4259_v57 = vpop.f32.mrf.mxu2  ;;  %4916 = vrot.lane.b32.xlu2 %v4521_v53, %s9454_s22 }
 0x700   :  { %v4260_v60 = vadd.f32 %v11780_v22, %v4259_v57  ;;  %4921 = vrot.lane.b32.xlu1 %v4522_v58, %s9460_s2  ;;  %v3535_v59 = vpop.permute.xlu0 %3534  ;;  %v5050_v57 = vld [vmem:[#allocation2 + $0x38] sm:$0xff] }
 0x701   :  { %v4848_v52 = vpop.permute.xlu1 %4847 }
 0x702   :  { %7288 = vmatpush.bf16.msra.mxu3 %v9246_v63  ;;  %v4411_v40 = vmax.f32 %v4260_v60, 0.0  ;;  %v3717_v63 = vsel %vm2086_vm5, %v11815_v5, %v11953_v44  ;;  %4850 = vst.msk [vmem:[#allocation2 + $0x48] sm:$0xf] %vm4559_vm10, %v4848_v52  ;;  %v4252_v5 = vadd.f32 %v11780_v22, %v11955_v24  ;;  %v4532_v44 = vpack.c.bf16 %v4410_v10, %v4410_v10 }
 0x703   :  { %v3841_v28 = vsel %vm3721_vm7, %v3717_v63, %v3535_v59 }
 0x704   :  { %v4533_v29 = vpack.c.bf16 %v4411_v40, %v4411_v40  ;;  %8070 = vmatmul.msk.bf16.gmra.mxu2 %vm3872_vm8, %v3841_v28  ;;  %v4408_v17 = vmax.f32 %v4252_v5, 0.0  ;;  %v5581_v40 = vunpack.c.l.b16 %v5050_v57  ;;  %v9272_v28 = vld [vmem:[#allocation3 + $0x3e0] sm:$0xff] }
 0x706   :  { %7289 = vmatpush.bf16.msra.mxu3 %v9245_v48  ;;  %4964 = vrot.lane.b32.xlu0 %v4533_v29, %s9454_s22  ;;  %v4250_v48 = vadd.f32 %v11780_v22, %v11944_v39  ;;  %v4530_v33 = vpack.c.bf16 %v4408_v17, %v4408_v17  ;;  %v5612_v43 = vpack.c.b16 %v5581_v40, %v5581_v40  ;;  %v9274_v29 = vld [vmem:[#allocation3 + $0x3f0] sm:$0xff] }
 0x707   :  { %v4261_v21 = vpop.f32.mrf.mxu2  ;;  %4937 = vrot.lane.b32.xlu2 %v4526_v31, %s9460_s2  ;;  %v9271_v31 = vld [vmem:[#allocation3 + $0x3d8] sm:$0xff] }
 0x708   :  { %4959 = vrot.lane.b32.xlu1 %v4532_v44, %s9459_s28  ;;  %v4407_v27 = vmax.f32 %v4250_v48, 0.0  ;;  %v4262_v1 = vadd.f32 %v11780_v22, %v4261_v21 }
 0x709   :  { %v4869_v30 = vpop.permute.xlu1 %4868 }
 0x70a   :  { %7290 = vmatpush.bf16.msra.mxu3 %v9244_v13  ;;  %4871 = vst.msk [vmem:[#allocation2 + $0x4c] sm:$0xf] %vm4565_vm11, %v4869_v30  ;;  %v5611_v13 = vpack.c.b16 %v5580_v4, %v5580_v4  ;;  %v4412_v50 = vmax.f32 %v4262_v1, 0.0  ;;  %v5582_v1 = vunpack.c.h.b16 %v5050_v57 }
 0x70c   :  { %v4534_v25 = vpack.c.bf16 %v4412_v50, %v4412_v50 }
 0x70d   :  { %7291 = vmatmul.bf16.vlgmr.msra.gmra.mxu3 %v5610_v47 }
 0x70e   :  { %7296 = vmatpush.bf16.msrb.mxu3 %v9259_v12  ;;  %v4853_v39 = vpop.permute.xlu0 %4852  ;;  %v4529_v12 = vpack.c.bf16 %v4407_v27, %v4407_v27  ;;  %v12045_v27 = vld [vmem:[%s12134_s6] ss:$0 sm:$0xff] }
 0x70f   :  { %4855 = vst.msk [vmem:[#allocation2 + $0x48] sm:$0xf] %vm4565_vm11, %v4853_v39  ;;  %v4264_v24 = vpop.f32.mrf.mxu2 }
 0x710   :  { %v7240_v23 = vpop.f32.mrf.mxu3  ;;  %4860 = vst.msk [vmem:[#allocation2 + $0x48] sm:$0xf] %vm4571_vm12, %v4858_v14  ;;  %4948 = vrot.lane.b32.xlu2 %v4529_v12, %s9454_s22  ;;  %4953 = vrot.lane.b32.xlu1 %v4530_v33, %s9460_s2  ;;  %v9283_v12 = vld [vmem:[#allocation3 + $0x438] sm:$0xff] }
 0x711   :  { %v7241_v18 = vadd.f32 %v7240_v23, %v11957_v56  ;;  %v4265_v56 = vadd.f32 %v11780_v22, %v4264_v24 }
 0x712   :  { %7297 = vmatpush.bf16.msrb.mxu3 %v9258_v3 }
 0x713   :  { %v4413_v54 = vmax.f32 %v4265_v56, 0.0 }
 0x715   :  { %v4535_v19 = vpack.c.bf16 %v4413_v54, %v4413_v54 }
 0x716   :  { %7298 = vmatpush.bf16.msrb.mxu3 %v9257_v35  ;;  %v4874_v36 = vpop.permute.xlu0 %4873 }
 0x717   :  { %4973 = vst.msk [vmem:[#allocation2 + $0x68] sm:$0xf] %vm4553_vm9, %v4535_v19  ;;  %v4266_v47 = vpop.f32.mrf.mxu2  ;;  %v5613_v19 = vpack.c.b16 %v5582_v1, %v5582_v1 }
 0x718   :  { %v7242_v49 = vpop.f32.mrf.mxu3  ;;  %4876 = vst.msk [vmem:[#allocation2 + $0x4c] sm:$0xf] %vm4571_vm12, %v4874_v36  ;;  %v4267_v3 = vadd.f32 %v11780_v22, %v4266_v47  ;;  %4969 = vrot.lane.b32.xlu2 %v4534_v25, %s9460_s2  ;;  %v9281_v47 = vld [vmem:[#allocation3 + $0x428] sm:$0xff] }
 0x71a   :  { %7299 = vmatpush.bf16.msrb.mxu3 %v9256_v37  ;;  %v4414_v7 = vmax.f32 %v4267_v3, 0.0 }
 0x71c   :  { %v4536_v9 = vpack.c.bf16 %v4414_v7, %v4414_v7  ;;  %v9280_v7 = vld [vmem:[#allocation3 + $0x420] sm:$0xff] }
 0x71e   :  { %7300 = vmatpush.bf16.msrb.mxu3 %v9255_v41  ;;  %v4880_v35 = vpop.permute.xlu0 %4879  ;;  %4975 = vrot.lane.b32.xlu0 %v4536_v9, %s9459_s28  ;;  %v9260_v41 = vld [vmem:[#allocation3 + $0x380] sm:$0xff] }
 0x71f   :  { %4882 = vst.msk [vmem:[#allocation2 + $0x50] sm:$0xf] %vm4559_vm10, %v4880_v35  ;;  %v4269_v0 = vpop.f32.mrf.mxu2 }
 0x720   :  { %v4270_v51 = vadd.f32 %v11780_v22, %v4269_v0 }
 0x722   :  { %7301 = vmatpush.bf16.msrb.mxu3 %v9254_v32  ;;  %v4415_v37 = vmax.f32 %v4270_v51, 0.0  ;;  %v9279_v51 = vld [vmem:[#allocation3 + $0x418] sm:$0xff] }
 0x724   :  { %v4537_v2 = vpack.c.bf16 %v4415_v37, %v4415_v37 }
 0x726   :  { %7302 = vmatpush.bf16.msrb.mxu3 %v9253_v11  ;;  %v12030_v45 = vpop.permute.xlu0 %4900  ;;  %4980 = vrot.lane.b32.xlu2 %v4537_v2, %s9454_s22  ;;  %v9278_v2 = vld [vmem:[#allocation3 + $0x410] sm:$0xff] }
 0x727   :  { %v4271_v60 = vpop.f32.mrf.mxu2 }
 0x728   :  { %v4272_v23 = vadd.f32 %v11780_v22, %v4271_v60 }
 0x72a   :  { %7303 = vmatpush.bf16.msrb.mxu3 %v9252_v38  ;;  %v4416_v4 = vmax.f32 %v4272_v23, 0.0 }
 0x72c   :  { %v4538_v14 = vpack.c.bf16 %v4416_v4, %v4416_v4 }
 0x72d   :  { %7304 = vmatmul.bf16.vlgmr.msrb.gmra.mxu3 %v5611_v13  ;;  %v9268_v13 = vld [vmem:[#allocation3 + $0x3c0] sm:$0xff] }
 0x72e   :  { %7309 = vmatpush.bf16.msra.mxu3 %v9267_v42  ;;  %v4912_v58 = vpop.permute.xlu0 %4911 }
 0x72f   :  { %4914 = vst.msk [vmem:[#allocation2 + $0x58] sm:$0xf] %vm4559_vm10, %v4912_v58  ;;  %v4274_v32 = vpop.f32.mrf.mxu2  ;;  %v12066_v58 = vld [vmem:[#allocation2 + $0x40] sm:$0xff] }
 0x730   :  { %v7253_v6 = vpop.f32.mrf.mxu3  ;;  %v4275_v52 = vadd.f32 %v11780_v22, %v4274_v32 }
 0x731   :  { %v7254_v34 = vadd.f32 %v7253_v6, %v7241_v18  ;;  %v9270_v18 = vld [vmem:[#allocation3 + $0x3d0] sm:$0xff] }
 0x732   :  { %7310 = vmatpush.bf16.msra.mxu3 %v9266_v15  ;;  %v4417_v63 = vmax.f32 %v4275_v52, 0.0  ;;  %v9291_v52 = vld [vmem:[#allocation3 + $0x478] sm:$0xff] }
 0x734   :  { %v4539_v59 = vpack.c.bf16 %v4417_v63, %v4417_v63 }
 0x736   :  { %7311 = vmatpush.bf16.msra.mxu3 %v9265_v16  ;;  %v12035_v10 = vpop.permute.xlu0 %4932  ;;  %4989 = vst.msk [vmem:[#allocation2 + $0x6c] sm:$0xf] %vm4553_vm9, %v4539_v59  ;;  %v9282_v16 = vld [vmem:[#allocation3 + $0x430] sm:$0xff] }
 0x737   :  { %v4276_v21 = vpop.f32.mrf.mxu2 }
 0x738   :  { %v7255_v53 = vpop.f32.mrf.mxu3  ;;  %v4277_v11 = vadd.f32 %v11780_v22, %v4276_v21  ;;  %v9269_v22 = vld [vmem:[#allocation3 + $0x3c8] sm:$0xff] }
 0x73a   :  { %7312 = vmatpush.bf16.msra.mxu3 %v9264_v55  ;;  %v4418_v48 = vmax.f32 %v4277_v11, 0.0  ;;  %v9290_v11 = vld [vmem:[#allocation3 + $0x470] sm:$0xff] }
 0x73c   :  { %v4540_v5 = vpack.c.bf16 %v4418_v48, %v4418_v48 }
 0x73e   :  { %7313 = vmatpush.bf16.msra.mxu3 %v9263_v62  ;;  %v4944_v44 = vpop.permute.xlu0 %4943  ;;  %4991 = vrot.lane.b32.xlu1 %v4540_v5, %s9459_s28  ;;  %v9288_v5 = vld [vmem:[#allocation3 + $0x460] sm:$0xff] }
 0x73f   :  { %4946 = vst.msk [vmem:[#allocation2 + $0x60] sm:$0xf] %vm4559_vm10, %v4944_v44  ;;  %v4279_v42 = vpop.f32.mrf.mxu2 }
 0x740   :  { %v4280_v39 = vadd.f32 %v12045_v27, %v4279_v42 }
 0x741   :  { %v3537_v56 = vpop.permute.xlu2 %3536 }
 0x742   :  { %7314 = vmatpush.bf16.msra.mxu3 %v9262_v61  ;;  %v4419_v17 = vmax.f32 %v4280_v39, 0.0  ;;  %v9286_v39 = vld [vmem:[#allocation3 + $0x450] sm:$0xff] }
 0x744   :  { %v4541_v24 = vpack.c.bf16 %v4419_v17, %v4419_v17 }
 0x746   :  { %7315 = vmatpush.bf16.msra.mxu3 %v9261_v26  ;;  %4985 = vrot.lane.b32.xlu1 %v4538_v14, %s9460_s2 }
 0x747   :  { %4996 = vrot.lane.b32.xlu0 %v4541_v24, %s9454_s22  ;;  %v4281_v54 = vpop.f32.mrf.mxu2 }
 0x748   :  { %v4282_v49 = vadd.f32 %v12045_v27, %v4281_v54 }
 0x749   :  { %v4885_v36 = vpop.permute.xlu2 %4884 }
 0x74a   :  { %7316 = vmatpush.bf16.msra.mxu3 %v9260_v41  ;;  %v4420_v33 = vmax.f32 %v4282_v49, 0.0  ;;  %4887 = vst.msk [vmem:[#allocation2 + $0x50] sm:$0xf] %vm4565_vm11, %v4885_v36  ;;  %v9284_v49 = vld [vmem:[#allocation3 + $0x440] sm:$0xff] }
 0x74c   :  { %v4542_v50 = vpack.c.bf16 %v4420_v33, %v4420_v33 }
 0x74d   :  { %7317 = vmatmul.bf16.vlgmr.msra.gmra.mxu3 %v5612_v43 }
 0x74e   :  { %7322 = vmatpush.bf16.msrb.mxu3 %v9275_v20  ;;  %5001 = vrot.lane.b32.xlu2 %v4542_v50, %s9460_s2  ;;  %v5584_v50 = vunpack.c.h.b16 %v12066_v58 }
 0x74f   :  { %v4284_v3 = vpop.f32.mrf.mxu2 }
 0x750   :  { %v7266_v38 = vpop.f32.mrf.mxu3  ;;  %v4285_v55 = vadd.f32 %v12045_v27, %v4284_v3  ;;  %v9298_v3 = vld [vmem:[#allocation3 + $0x4b0] sm:$0xff] }
 0x751   :  { %v7267_v30 = vadd.f32 %v7266_v38, %v7254_v34  ;;  %v4906_v62 = vpop.permute.xlu2 %4905  ;;  %v3412_v35 = vpop.permute.xlu1 %3411  ;;  %v9287_v38 = vld [vmem:[#allocation3 + $0x458] sm:$0xff] }
 0x752   :  { %7323 = vmatpush.bf16.msrb.mxu3 %v9274_v29  ;;  %v4421_v25 = vmax.f32 %v4285_v55, 0.0  ;;  %v3720_v0 = vsel %vm2086_vm5, %v11867_v8, %v3412_v35  ;;  %v9277_v8 = vld [vmem:[#allocation3 + $0x408] sm:$0xff]  ;;  %v9276_v29 = vld [vmem:[#allocation3 + $0x400] sm:$0xff] }
 0x753   :  { %v3843_v6 = vsel %vm3721_vm7, %v3720_v0, %v3537_v56  ;;  %v9285_v56 = vld [vmem:[#allocation3 + $0x448] sm:$0xff]  ;;  %v9296_v35 = vld [vmem:[#allocation3 + $0x4a0] sm:$0xff] }
 0x754   :  { %v4543_v9 = vpack.c.bf16 %v4421_v25, %v4421_v25  ;;  %8071 = vmatmul.msk.bf16.gmra.mxu2 %vm3872_vm8, %v3843_v6 }
 0x756   :  { %7324 = vmatpush.bf16.msrb.mxu3 %v9273_v46  ;;  %5005 = vst.msk [vmem:[#allocation2 + $0x70] sm:$0xf] %vm4553_vm9, %v4543_v9  ;;  %v5583_v46 = vunpack.c.l.b16 %v12066_v58 }
 0x757   :  { %v4286_v61 = vpop.f32.mrf.mxu2 }
 0x758   :  { %v7268_v15 = vpop.f32.mrf.mxu3  ;;  %v4287_v37 = vadd.f32 %v12045_v27, %v4286_v61  ;;  %v5614_v21 = vpack.c.b16 %v5583_v46, %v5583_v46  ;;  %v9305_v46 = vld [vmem:[#allocation3 + $0x4e8] sm:$0xff] }
 0x759   :  { %v4917_v41 = vpop.permute.xlu2 %4916  ;;  %v4896_v53 = vpop.permute.xlu1 %4895 }
 0x75a   :  { %7325 = vmatpush.bf16.msrb.mxu3 %v9272_v28  ;;  %v4422_v34 = vmax.f32 %v4287_v37, 0.0  ;;  %4919 = vst.msk [vmem:[#allocation2 + $0x58] sm:$0xf] %vm4565_vm11, %v4917_v41  ;;  %v9295_v37 = vld [vmem:[#allocation3 + $0x498] sm:$0xff] }
 0x75b   :  { %4898 = vst.msk [vmem:[#allocation2 + $0x54] sm:$0xf] %vm4559_vm10, %v4896_v53 }
 0x75c   :  { %v4544_v57 = vpack.c.bf16 %v4422_v34, %v4422_v34  ;;  %4903 = vst.msk [vmem:[#allocation2 + $0x54] sm:$0xf] %vm4565_vm11, %v12030_v45 }
 0x75d   :  { %4908 = vst.msk [vmem:[#allocation2 + $0x54] sm:$0xf] %vm4571_vm12, %v4906_v62 }
 0x75e   :  { %7326 = vmatpush.bf16.msrb.mxu3 %v9271_v31  ;;  %5007 = vrot.lane.b32.xlu0 %v4544_v57, %s9459_s28  ;;  %v9289_v31 = vld [vmem:[#allocation3 + $0x468] sm:$0xff] }
 0x75f   :  { %v4289_v20 = vpop.f32.mrf.mxu2 }
 0x760   :  { %v4290_v40 = vadd.f32 %v12045_v27, %v4289_v20  ;;  %v5052_v20 = vld [vmem:[#allocation2 + $0x48] sm:$0xff] }
 0x761   :  { %v4938_v59 = vpop.permute.xlu2 %4937  ;;  %v4890_v28 = vpop.permute.xlu1 %4889 }
 0x762   :  { %7327 = vmatpush.bf16.msrb.mxu3 %v9270_v18  ;;  %v4423_v43 = vmax.f32 %v4290_v40, 0.0  ;;  %4892 = vst.msk [vmem:[#allocation2 + $0x50] sm:$0xf] %vm4571_vm12, %v4890_v28  ;;  %v9292_v40 = vld [vmem:[#allocation3 + $0x480] sm:$0xff] }
 0x764   :  { %v4545_v63 = vpack.c.bf16 %v4423_v43, %v4423_v43  ;;  %v9307_v43 = vld [vmem:[#allocation3 + $0x4f8] sm:$0xff] }
 0x766   :  { %7328 = vmatpush.bf16.msrb.mxu3 %v9269_v22  ;;  %5012 = vrot.lane.b32.xlu2 %v4545_v63, %s9454_s22  ;;  %v9395_v22 = vld [vmem:[%s12137_s9 + $0x18] sm:$0xff] }
 0x767   :  { %v4291_v45 = vpop.f32.mrf.mxu2  ;;  %7603 = vmatpush.bf16.msrb.mxu2 %v9395_v22  ;;  %v9304_v63 = vld [vmem:[#allocation3 + $0x4e0] sm:$0xff] }
 0x768   :  { %v4292_v15 = vadd.f32 %v12045_v27, %v4291_v45  ;;  %v9302_v45 = vld [vmem:[#allocation3 + $0x4d0] sm:$0xff]  ;;  %v9312_v22 = vld [vmem:[#allocation3 + $0x520] sm:$0xff] }
 0x769   :  { %v4928_v23 = vpop.permute.xlu1 %4927 }
 0x76a   :  { %7329 = vmatpush.bf16.msrb.mxu3 %v9268_v13  ;;  %v4949_v48 = vpop.permute.xlu2 %4948  ;;  %4930 = vst.msk [vmem:[#allocation2 + $0x5c] sm:$0xf] %vm4559_vm10, %v4928_v23  ;;  %v4424_v36 = vmax.f32 %v4292_v15, 0.0  ;;  %v9309_v15 = vld [vmem:[#allocation3 + $0x508] sm:$0xff] }
 0x76b   :  { %4951 = vst.msk [vmem:[#allocation2 + $0x60] sm:$0xf] %vm4565_vm11, %v4949_v48 }
 0x76c   :  { %4935 = vst.msk [vmem:[#allocation2 + $0x5c] sm:$0xf] %vm4565_vm11, %v12035_v10  ;;  %v4546_v55 = vpack.c.bf16 %v4424_v36, %v4424_v36 }
 0x76d   :  { %7330 = vmatmul.bf16.vlgmr.msrb.gmra.mxu3 %v5613_v19  ;;  %4940 = vst.msk [vmem:[#allocation2 + $0x5c] sm:$0xf] %vm4571_vm12, %v4938_v59  ;;  %v9303_v59 = vld [vmem:[#allocation3 + $0x4d8] sm:$0xff] }
 0x76e   :  { %7335 = vmatpush.bf16.msra.mxu3 %v9283_v12 }
 0x76f   :  { %v4294_v44 = vpop.f32.mrf.mxu2 }
 0x770   :  { %v7279_v26 = vpop.f32.mrf.mxu3  ;;  %v4295_v18 = vadd.f32 %v12045_v27, %v4294_v44 }
 0x771   :  { %v7280_v60 = vadd.f32 %v7279_v26, %v7267_v30  ;;  %v9294_v26 = vld [vmem:[#allocation3 + $0x490] sm:$0xff] }
 0x772   :  { %7336 = vmatpush.bf16.msra.mxu3 %v9282_v16  ;;  %v4425_v30 = vmax.f32 %v4295_v18, 0.0  ;;  %v4922_v4 = vpop.permute.xlu1 %4921  ;;  %v4970_v33 = vpop.permute.xlu2 %4969  ;;  %v9299_v16 = vld [vmem:[#allocation3 + $0x4b8] sm:$0xff] }
 0x773   :  { %4924 = vst.msk [vmem:[#allocation2 + $0x58] sm:$0xf] %vm4571_vm12, %v4922_v4  ;;  %v9314_v4 = vld [vmem:[#allocation3 + $0x530] sm:$0xff] }
 0x774   :  { %v4547_v42 = vpack.c.bf16 %v4425_v30, %v4425_v30  ;;  %v5586_v30 = vunpack.c.h.b16 %v5052_v20 }
 0x776   :  { %7337 = vmatpush.bf16.msra.mxu3 %v9281_v47  ;;  %5021 = vst.msk [vmem:[#allocation2 + $0x74] sm:$0xf] %vm4553_vm9, %v4547_v42  ;;  %v5615_v47 = vpack.c.b16 %v5584_v50, %v5584_v50  ;;  %v5617_v42 = vpack.c.b16 %v5586_v30, %v5586_v30  ;;  %v9322_v50 = vld [vmem:[#allocation3 + $0x570] sm:$0xff] }
 0x777   :  { %v4296_v14 = vpop.f32.mrf.mxu2 }
 0x778   :  { %v7281_v32 = vpop.f32.mrf.mxu3  ;;  %v4297_v24 = vadd.f32 %v12045_v27, %v4296_v14  ;;  %v4965_v54 = vpop.permute.xlu0 %4964 }
 0x77a   :  { %7338 = vmatpush.bf16.msra.mxu3 %v9280_v7  ;;  %v4426_v13 = vmax.f32 %v4297_v24, 0.0  ;;  %v4960_v1 = vpop.permute.xlu1 %4959  ;;  %v9297_v7 = vld [vmem:[#allocation3 + $0x4a8] sm:$0xff] }
 0x77b   :  { %4962 = vst.msk [vmem:[#allocation2 + $0x64] sm:$0xf] %vm4559_vm10, %v4960_v1  ;;  %v9308_v1 = vld [vmem:[#allocation3 + $0x500] sm:$0xff] }
 0x77c   :  { %v4548_v12 = vpack.c.bf16 %v4426_v13, %v4426_v13  ;;  %4967 = vst.msk [vmem:[#allocation2 + $0x64] sm:$0xf] %vm4565_vm11, %v4965_v54 }
 0x77d   :  { %4972 = vst.msk [vmem:[#allocation2 + $0x64] sm:$0xf] %vm4571_vm12, %v4970_v33 }
 0x77e   :  { %7339 = vmatpush.bf16.msra.mxu3 %v9279_v51  ;;  %5023 = vrot.lane.b32.xlu1 %v4548_v12, %s9459_s28  ;;  %v5053_v12 = vld [vmem:[#allocation2 + $0x50] sm:$0xff] }
 0x77f   :  { %v5587_v33 = vunpack.c.l.b16 %v5053_v12 }
 0x780   :  { %v4981_v6 = vpop.permute.xlu2 %4980 }
 0x782   :  { %7340 = vmatpush.bf16.msra.mxu3 %v9278_v2  ;;  %v4954_v25 = vpop.permute.xlu1 %4953 }
 0x783   :  { %4956 = vst.msk [vmem:[#allocation2 + $0x60] sm:$0xf] %vm4571_vm12, %v4954_v25 }
 0x786   :  { %7341 = vmatpush.bf16.msra.mxu3 %v9277_v8  ;;  %5017 = vrot.lane.b32.xlu1 %v4546_v55, %s9460_s2  ;;  %v9293_v8 = vld [vmem:[#allocation3 + $0x488] sm:$0xff] }
 0x787   :  { %v4299_v9 = vpop.f32.mrf.mxu2 }
 0x788   :  { %v4300_v62 = vadd.f32 %v12045_v27, %v4299_v9 }
 0x78a   :  { %7342 = vmatpush.bf16.msra.mxu3 %v9276_v29  ;;  %v4427_v0 = vmax.f32 %v4300_v62, 0.0  ;;  %v5585_v29 = vunpack.c.l.b16 %v5052_v20  ;;  %v9329_v20 = vld [vmem:[#allocation3 + $0x5a8] sm:$0xff] }
 0x78c   :  { %v4549_v51 = vpack.c.bf16 %v4427_v0, %v4427_v0  ;;  %v5616_v32 = vpack.c.b16 %v5585_v29, %v5585_v29  ;;  %v9327_v29 = vld [vmem:[#allocation3 + $0x598] sm:$0xff] }
 0x78d   :  { %7343 = vmatmul.bf16.vlgmr.msra.gmra.mxu3 %v5614_v21 }
 0x78e   :  { %7348 = vmatpush.bf16.msrb.mxu3 %v9291_v52  ;;  %5028 = vrot.lane.b32.xlu0 %v4549_v51, %s9454_s22  ;;  %v9306_v52 = vld [vmem:[#allocation3 + $0x4f0] sm:$0xff] }
 0x78f   :  { %v4301_v34 = vpop.f32.mrf.mxu2  ;;  %v9318_v51 = vld [vmem:[#allocation3 + $0x550] sm:$0xff] }
 0x790   :  { %v7292_v10 = vpop.f32.mrf.mxu3  ;;  %v4976_v61 = vpop.permute.xlu0 %4975  ;;  %v4302_v2 = vadd.f32 %v12045_v27, %v4301_v34  ;;  %v9317_v34 = vld [vmem:[#allocation3 + $0x548] sm:$0xff] }
 0x791   :  { %v7293_v17 = vadd.f32 %v7292_v10, %v7280_v60  ;;  %4978 = vst.msk [vmem:[#allocation2 + $0x68] sm:$0xf] %vm4559_vm10, %v4976_v61  ;;  %v9311_v10 = vld [vmem:[#allocation3 + $0x518] sm:$0xff] }
 0x792   :  { %7349 = vmatpush.bf16.msrb.mxu3 %v9290_v11  ;;  %4983 = vst.msk [vmem:[#allocation2 + $0x68] sm:$0xf] %vm4565_vm11, %v4981_v6  ;;  %v4428_v57 = vmax.f32 %v4302_v2, 0.0  ;;  %v9394_v6 = vld [vmem:[%s12137_s9 + $0x10] sm:$0xff] }
 0x793   :  { %7604 = vmatpush.bf16.msrb.mxu2 %v9394_v6 }
 0x794   :  { %v4550_v53 = vpack.c.bf16 %v4428_v57, %v4428_v57  ;;  %v9331_v57 = vld [vmem:[#allocation3 + $0x5b8] sm:$0xff] }
 0x796   :  { %7350 = vmatpush.bf16.msrb.mxu3 %v9289_v31  ;;  %5033 = vrot.lane.b32.xlu2 %v4550_v53, %s9460_s2  ;;  %v9301_v31 = vld [vmem:[#allocation3 + $0x4c8] sm:$0xff]  ;;  %v9330_v53 = vld [vmem:[#allocation3 + $0x5b0] sm:$0xff] }
 0x798   :  { %v7294_v19 = vpop.f32.mrf.mxu3 }
 0x79a   :  { %7351 = vmatpush.bf16.msrb.mxu3 %v9288_v5  ;;  %v9300_v5 = vld [vmem:[#allocation3 + $0x4c0] sm:$0xff] }
 0x79e   :  { %7352 = vmatpush.bf16.msrb.mxu3 %v9287_v38  ;;  %v9315_v38 = vld [vmem:[#allocation3 + $0x538] sm:$0xff] }
 0x7a2   :  { %7353 = vmatpush.bf16.msrb.mxu3 %v9286_v39  ;;  %v9313_v39 = vld [vmem:[#allocation3 + $0x528] sm:$0xff] }
 0x7a6   :  { %7354 = vmatpush.bf16.msrb.mxu3 %v9285_v56 }
 0x7a8   :  { %v5002_v44 = vpop.permute.xlu2 %5001 }
 0x7aa   :  { %7355 = vmatpush.bf16.msrb.mxu3 %v9284_v49  ;;  %v9323_v49 = vld [vmem:[#allocation3 + $0x578] sm:$0xff] }
 0x7ad   :  { %7356 = vmatmul.bf16.vlgmr.msrb.gmra.mxu3 %v5615_v47 }
 0x7ae   :  { %7361 = vmatpush.bf16.msra.mxu3 %v9299_v16  ;;  %v5618_v16 = vpack.c.b16 %v5587_v33, %v5587_v33  ;;  %v9340_v33 = vld [vmem:[#allocation3 + $0x600] sm:$0xff] }
 0x7b0   :  { %v7305_v60 = vpop.f32.mrf.mxu3  ;;  %v4992_v28 = vpop.permute.xlu1 %4991 }
 0x7b1   :  { %v7306_v41 = vadd.f32 %v7305_v60, %v7293_v17  ;;  %4994 = vst.msk [vmem:[#allocation2 + $0x6c] sm:$0xf] %vm4559_vm10, %v4992_v28  ;;  %v9310_v17 = vld [vmem:[#allocation3 + $0x510] sm:$0xff]  ;;  %v5588_v60 = vunpack.c.h.b16 %v5053_v12  ;;  %v9324_v28 = vld [vmem:[#allocation3 + $0x580] sm:$0xff] }
 0x7b2   :  { %7362 = vmatpush.bf16.msra.mxu3 %v9298_v3  ;;  %v9321_v3 = vld [vmem:[#allocation3 + $0x568] sm:$0xff] }
 0x7b6   :  { %7363 = vmatpush.bf16.msra.mxu3 %v9297_v7  ;;  %v9320_v7 = vld [vmem:[#allocation3 + $0x560] sm:$0xff] }
 0x7b8   :  { %v7307_v58 = vpop.f32.mrf.mxu3  ;;  %v4986_v48 = vpop.permute.xlu1 %4985 }
 0x7b9   :  { %v4997_v23 = vpop.permute.xlu0 %4996  ;;  %4988 = vst.msk [vmem:[#allocation2 + $0x68] sm:$0xf] %vm4571_vm12, %v4986_v48  ;;  %v9338_v48 = vld [vmem:[#allocation3 + $0x5f0] sm:$0xff] }
 0x7ba   :  { %7364 = vmatpush.bf16.msra.mxu3 %v9296_v35  ;;  %4999 = vst.msk [vmem:[#allocation2 + $0x6c] sm:$0xf] %vm4565_vm11, %v4997_v23  ;;  %v9319_v35 = vld [vmem:[#allocation3 + $0x558] sm:$0xff]  ;;  %v9337_v23 = vld [vmem:[#allocation3 + $0x5e8] sm:$0xff] }
 0x7bb   :  { %5004 = vst.msk [vmem:[#allocation2 + $0x6c] sm:$0xf] %vm4571_vm12, %v5002_v44  ;;  %v9335_v44 = vld [vmem:[#allocation3 + $0x5d8] sm:$0xff] }
 0x7be   :  { %7365 = vmatpush.bf16.msra.mxu3 %v9295_v37 }
 0x7c0   :  { %v5013_v13 = vpop.permute.xlu2 %5012 }
 0x7c2   :  { %7366 = vmatpush.bf16.msra.mxu3 %v9294_v26 }
 0x7c6   :  { %7367 = vmatpush.bf16.msra.mxu3 %v9293_v8 }
 0x7ca   :  { %7368 = vmatpush.bf16.msra.mxu3 %v9292_v40  ;;  %v9328_v40 = vld [vmem:[#allocation3 + $0x5a0] sm:$0xff] }
 0x7cd   :  { %7369 = vmatmul.bf16.vlgmr.msra.gmra.mxu3 %v5616_v32  ;;  %v9326_v32 = vld [vmem:[#allocation3 + $0x590] sm:$0xff] }
 0x7ce   :  { %7374 = vmatpush.bf16.msrb.mxu3 %v9307_v43 }
 0x7d0   :  { %v7318_v21 = vpop.f32.mrf.mxu3  ;;  %v5008_v56 = vpop.permute.xlu0 %5007 }
 0x7d1   :  { %v7319_v11 = vadd.f32 %v7318_v21, %v7306_v41  ;;  %5010 = vst.msk [vmem:[#allocation2 + $0x70] sm:$0xf] %vm4559_vm10, %v5008_v56  ;;  %v5619_v41 = vpack.c.b16 %v5588_v60, %v5588_v60  ;;  %v9339_v21 = vld [vmem:[#allocation3 + $0x5f8] sm:$0xff]  ;;  %v9344_v56 = vld [vmem:[#allocation3 + $0x620] sm:$0xff] }
 0x7d2   :  { %7375 = vmatpush.bf16.msrb.mxu3 %v9306_v52  ;;  %5015 = vst.msk [vmem:[#allocation2 + $0x70] sm:$0xf] %vm4565_vm11, %v5013_v13  ;;  %v9343_v13 = vld [vmem:[#allocation3 + $0x618] sm:$0xff] }
 0x7d3   :  { %v9359_v60 = vld [vmem:[#allocation3 + $0x698] sm:$0xff] }
 0x7d6   :  { %7376 = vmatpush.bf16.msrb.mxu3 %v9305_v46 }
 0x7d7   :  { %v4304_v19 = vpop.f32.mrf.mxu2 }
 0x7d8   :  { %v7320_v18 = vpop.f32.mrf.mxu3  ;;  %v4305_v36 = vadd.f32 %v12045_v27, %v4304_v19 }
 0x7d9   :  { %v9334_v18 = vld [vmem:[#allocation3 + $0x5d0] sm:$0xff] }
 0x7da   :  { %7377 = vmatpush.bf16.msrb.mxu3 %v9304_v63  ;;  %v4429_v47 = vmax.f32 %v4305_v36, 0.0  ;;  %v9325_v63 = vld [vmem:[#allocation3 + $0x588] sm:$0xff] }
 0x7dc   :  { %v4551_v55 = vpack.c.bf16 %v4429_v47, %v4429_v47  ;;  %v9354_v47 = vld [vmem:[#allocation3 + $0x670] sm:$0xff] }
 0x7de   :  { %7378 = vmatpush.bf16.msrb.mxu3 %v9303_v59  ;;  %5037 = vst.msk [vmem:[#allocation2 + $0x78] sm:$0xf] %vm4553_vm9, %v4551_v55  ;;  %v5054_v59 = vld [vmem:[#allocation2 + $0x58] sm:$0xff] }
 0x7df   :  { %v4306_v25 = vpop.f32.mrf.mxu2  ;;  %v9352_v55 = vld [vmem:[#allocation3 + $0x660] sm:$0xff] }
 0x7e0   :  { %v4307_v9 = vadd.f32 %v12045_v27, %v4306_v25  ;;  %v9316_v27 = vld [vmem:[#allocation3 + $0x540] sm:$0xff]  ;;  %v9351_v25 = vld [vmem:[#allocation3 + $0x658] sm:$0xff] }
 0x7e2   :  { %7379 = vmatpush.bf16.msrb.mxu3 %v9302_v45  ;;  %v4430_v62 = vmax.f32 %v4307_v9, 0.0  ;;  %v9350_v9 = vld [vmem:[#allocation3 + $0x650] sm:$0xff] }
 0x7e4   :  { %v4552_v0 = vpack.c.bf16 %v4430_v62, %v4430_v62 }
 0x7e6   :  { %7380 = vmatpush.bf16.msrb.mxu3 %v9301_v31  ;;  %5039 = vrot.lane.b32.xlu0 %v4552_v0, %s9459_s28  ;;  %v9349_v0 = vld [vmem:[#allocation3 + $0x648] sm:$0xff] }
 0x7ea   :  { %7381 = vmatpush.bf16.msrb.mxu3 %v9300_v5  ;;  %v9336_v5 = vld [vmem:[#allocation3 + $0x5e0] sm:$0xff] }
 0x7ed   :  { %7382 = vmatmul.bf16.vlgmr.msrb.gmra.mxu3 %v5617_v42  ;;  %v9333_v42 = vld [vmem:[#allocation3 + $0x5c8] sm:$0xff] }
 0x7ee   :  { %7387 = vmatpush.bf16.msra.mxu3 %v9315_v38 }
 0x7f0   :  { %v7331_v14 = vpop.f32.mrf.mxu3  ;;  %v5024_v2 = vpop.permute.xlu1 %5023 }
 0x7f1   :  { %v7332_v24 = vadd.f32 %v7331_v14, %v7319_v11  ;;  %5026 = vst.msk [vmem:[#allocation2 + $0x74] sm:$0xf] %vm4559_vm10, %v5024_v2  ;;  %v5034_v43 = vpop.permute.xlu2 %5033  ;;  %v5589_v11 = vunpack.c.l.b16 %v5054_v59  ;;  %v9346_v14 = vld [vmem:[#allocation3 + $0x630] sm:$0xff] }
 0x7f2   :  { %7388 = vmatpush.bf16.msra.mxu3 %v9314_v4  ;;  %v9332_v4 = vld [vmem:[#allocation3 + $0x5c0] sm:$0xff] }
 0x7f3   :  { %v5620_v31 = vpack.c.b16 %v5589_v11, %v5589_v11 }
 0x7f6   :  { %7389 = vmatpush.bf16.msra.mxu3 %v9313_v39 }
 0x7f8   :  { %v7333_v54 = vpop.f32.mrf.mxu3  ;;  %v5018_v8 = vpop.permute.xlu1 %5017 }
 0x7f9   :  { %5020 = vst.msk [vmem:[#allocation2 + $0x70] sm:$0xf] %vm4571_vm12, %v5018_v8  ;;  %v9341_v54 = vld [vmem:[#allocation3 + $0x608] sm:$0xff] }
 0x7fa   :  { %7390 = vmatpush.bf16.msra.mxu3 %v9312_v22  ;;  %v9347_v22 = vld [vmem:[#allocation3 + $0x638] sm:$0xff] }
 0x7fe   :  { %7391 = vmatpush.bf16.msra.mxu3 %v9311_v10  ;;  %v5590_v10 = vunpack.c.h.b16 %v5054_v59  ;;  %v9368_v59 = vld [vmem:[#allocation3 + $0x6e0] sm:$0xff] }
 0x800   :  { %v5029_v58 = vpop.permute.xlu0 %5028 }
 0x801   :  { %5031 = vst.msk [vmem:[#allocation2 + $0x74] sm:$0xf] %vm4565_vm11, %v5029_v58  ;;  %v9356_v58 = vld [vmem:[#allocation3 + $0x680] sm:$0xff] }
 0x802   :  { %7392 = vmatpush.bf16.msra.mxu3 %v9310_v17  ;;  %5036 = vst.msk [vmem:[#allocation2 + $0x74] sm:$0xf] %vm4571_vm12, %v5034_v43  ;;  %v5621_v17 = vpack.c.b16 %v5590_v10, %v5590_v10 }
 0x806   :  { %7393 = vmatpush.bf16.msra.mxu3 %v9309_v15  ;;  %v9342_v15 = vld [vmem:[#allocation3 + $0x610] sm:$0xff] }
 0x80a   :  { %7394 = vmatpush.bf16.msra.mxu3 %v9308_v1 }
 0x80d   :  { %7395 = vmatmul.bf16.vlgmr.msra.gmra.mxu3 %v5618_v16  ;;  %v9355_v16 = vld [vmem:[#allocation3 + $0x678] sm:$0xff] }
 0x80e   :  { %7400 = vmatpush.bf16.msrb.mxu3 %v9323_v49  ;;  %v5055_v49 = vld [vmem:[#allocation2 + $0x60] sm:$0xff] }
 0x810   :  { %v7344_v61 = vpop.f32.mrf.mxu3 }
 0x811   :  { %v7345_v37 = vadd.f32 %v7344_v61, %v7332_v24  ;;  %v9345_v24 = vld [vmem:[#allocation3 + $0x628] sm:$0xff]  ;;  %v9348_v61 = vld [vmem:[#allocation3 + $0x640] sm:$0xff] }
 0x812   :  { %7401 = vmatpush.bf16.msrb.mxu3 %v9322_v50  ;;  %v5591_v50 = vunpack.c.l.b16 %v5055_v49 }
 0x814   :  { %v5622_v36 = vpack.c.b16 %v5591_v50, %v5591_v50 }
 0x816   :  { %7402 = vmatpush.bf16.msrb.mxu3 %v9321_v3  ;;  %v9353_v3 = vld [vmem:[#allocation3 + $0x668] sm:$0xff] }
 0x818   :  { %v7346_v26 = vpop.f32.mrf.mxu3 }
 0x819   :  { %v9361_v26 = vld [vmem:[#allocation3 + $0x6a8] sm:$0xff] }
 0x81a   :  { %7403 = vmatpush.bf16.msrb.mxu3 %v9320_v7 }
 0x81e   :  { %7404 = vmatpush.bf16.msrb.mxu3 %v9319_v35 }
 0x822   :  { %7405 = vmatpush.bf16.msrb.mxu3 %v9318_v51  ;;  %v9393_v51 = vld [vmem:[%s12137_s9 + $0x8] sm:$0xff] }
 0x823   :  { %7605 = vmatpush.bf16.msrb.mxu2 %v9393_v51 }
 0x826   :  { %7406 = vmatpush.bf16.msrb.mxu3 %v9317_v34  ;;  %v5592_v34 = vunpack.c.h.b16 %v5055_v49  ;;  %v9384_v49 = vld [vmem:[#allocation3 + $0x760] sm:$0xff] }
 0x828   :  { %v5623_v2 = vpack.c.b16 %v5592_v34, %v5592_v34 }
 0x82a   :  { %7407 = vmatpush.bf16.msrb.mxu3 %v9316_v27  ;;  %v9362_v27 = vld [vmem:[#allocation3 + $0x6b0] sm:$0xff] }
 0x82d   :  { %7408 = vmatmul.bf16.vlgmr.msrb.gmra.mxu3 %v5619_v41  ;;  %v9358_v41 = vld [vmem:[#allocation3 + $0x690] sm:$0xff] }
 0x82e   :  { %7413 = vmatpush.bf16.msra.mxu3 %v9331_v57  ;;  %v9360_v57 = vld [vmem:[#allocation3 + $0x6a0] sm:$0xff] }
 0x830   :  { %v7357_v52 = vpop.f32.mrf.mxu3 }
 0x831   :  { %v7358_v46 = vadd.f32 %v7357_v52, %v7345_v37  ;;  %v9363_v37 = vld [vmem:[#allocation3 + $0x6b8] sm:$0xff] }
 0x832   :  { %7414 = vmatpush.bf16.msra.mxu3 %v9330_v53 }
 0x836   :  { %7415 = vmatpush.bf16.msra.mxu3 %v9329_v20  ;;  %v9357_v20 = vld [vmem:[#allocation3 + $0x688] sm:$0xff] }
 0x838   :  { %v7359_v45 = vpop.f32.mrf.mxu3 }
 0x839   :  { %v9366_v45 = vld [vmem:[#allocation3 + $0x6d0] sm:$0xff] }
 0x83a   :  { %7416 = vmatpush.bf16.msra.mxu3 %v9328_v40  ;;  %v5056_v40 = vld [vmem:[#allocation2 + $0x68] sm:$0xff] }
 0x83e   :  { %7417 = vmatpush.bf16.msra.mxu3 %v9327_v29  ;;  %v9371_v29 = vld [vmem:[#allocation3 + $0x6f8] sm:$0xff] }
 0x842   :  { %7418 = vmatpush.bf16.msra.mxu3 %v9326_v32  ;;  %v5593_v32 = vunpack.c.l.b16 %v5056_v40 }
 0x844   :  { %v5624_v52 = vpack.c.b16 %v5593_v32, %v5593_v32 }
 0x846   :  { %7419 = vmatpush.bf16.msra.mxu3 %v9325_v63  ;;  %v9369_v63 = vld [vmem:[#allocation3 + $0x6e8] sm:$0xff] }
 0x84a   :  { %7420 = vmatpush.bf16.msra.mxu3 %v9324_v28  ;;  %v9367_v28 = vld [vmem:[#allocation3 + $0x6d8] sm:$0xff] }
 0x84d   :  { %7421 = vmatmul.bf16.vlgmr.msra.gmra.mxu3 %v5620_v31  ;;  %v9365_v31 = vld [vmem:[#allocation3 + $0x6c8] sm:$0xff] }
 0x84e   :  { %7426 = vmatpush.bf16.msrb.mxu3 %v9339_v21 }
 0x850   :  { %v7370_v38 = vpop.f32.mrf.mxu3 }
 0x851   :  { %v7371_v30 = vadd.f32 %v7370_v38, %v7358_v46  ;;  %v9370_v46 = vld [vmem:[#allocation3 + $0x6f0] sm:$0xff] }
 0x852   :  { %7427 = vmatpush.bf16.msrb.mxu3 %v9338_v48  ;;  %v9364_v48 = vld [vmem:[#allocation3 + $0x6c0] sm:$0xff]  ;;  %v9378_v38 = vld [vmem:[#allocation3 + $0x730] sm:$0xff] }
 0x856   :  { %7428 = vmatpush.bf16.msrb.mxu3 %v9337_v23 }
 0x858   :  { %v7372_v39 = vpop.f32.mrf.mxu3  ;;  %v5040_v7 = vpop.permute.xlu0 %5039 }
 0x859   :  { %5042 = vst.msk [vmem:[#allocation2 + $0x78] sm:$0xf] %vm4559_vm10, %v5040_v7  ;;  %v9374_v39 = vld [vmem:[#allocation3 + $0x710] sm:$0xff]  ;;  %v9391_v7 = vld [vmem:[#allocation3 + $0x798] sm:$0xff] }
 0x85a   :  { %7429 = vmatpush.bf16.msrb.mxu3 %v9336_v5  ;;  %v9379_v5 = vld [vmem:[#allocation3 + $0x738] sm:$0xff] }
 0x85e   :  { %7430 = vmatpush.bf16.msrb.mxu3 %v9335_v44  ;;  %v5594_v44 = vunpack.c.h.b16 %v5056_v40 }
 0x860   :  { %v5058_v51 = vld [vmem:[#allocation2 + $0x78] sm:$0xf] }
 0x862   :  { %7431 = vmatpush.bf16.msrb.mxu3 %v9334_v18  ;;  %v5625_v18 = vpack.c.b16 %v5594_v44, %v5594_v44 }
 0x866   :  { %7432 = vmatpush.bf16.msrb.mxu3 %v9333_v42  ;;  %v9376_v42 = vld [vmem:[#allocation3 + $0x720] sm:$0xff] }
 0x86a   :  { %7433 = vmatpush.bf16.msrb.mxu3 %v9332_v4  ;;  %v9375_v4 = vld [vmem:[#allocation3 + $0x718] sm:$0xff] }
 0x86d   :  { %7434 = vmatmul.bf16.vlgmr.msrb.gmra.mxu3 %v5621_v17  ;;  %v9373_v17 = vld [vmem:[#allocation3 + $0x708] sm:$0xff] }
 0x86e   :  { %7439 = vmatpush.bf16.msra.mxu3 %v9347_v22 }
 0x870   :  { %v7383_v12 = vpop.f32.mrf.mxu3 }
 0x871   :  { %v7384_v1 = vadd.f32 %v7383_v12, %v7371_v30  ;;  %v9377_v30 = vld [vmem:[#allocation3 + $0x728] sm:$0xff] }
 0x872   :  { %7440 = vmatpush.bf16.msra.mxu3 %v9346_v14  ;;  %v5057_v14 = vld [vmem:[#allocation2 + $0x70] sm:$0xff] }
 0x876   :  { %7441 = vmatpush.bf16.msra.mxu3 %v9345_v24  ;;  %v9372_v24 = vld [vmem:[#allocation3 + $0x700] sm:$0xff] }
 0x878   :  { %v7385_v19 = vpop.f32.mrf.mxu3 }
 0x879   :  { %v9382_v19 = vld [vmem:[#allocation3 + $0x750] sm:$0xff] }
 0x87a   :  { %7442 = vmatpush.bf16.msra.mxu3 %v9344_v56 }
 0x87e   :  { %7443 = vmatpush.bf16.msra.mxu3 %v9343_v13  ;;  %v9387_v13 = vld [vmem:[#allocation3 + $0x778] sm:$0xff] }
 0x882   :  { %7444 = vmatpush.bf16.msra.mxu3 %v9342_v15  ;;  %v5595_v15 = vunpack.c.l.b16 %v5057_v14 }
 0x884   :  { %v5626_v12 = vpack.c.b16 %v5595_v15, %v5595_v15 }
 0x886   :  { %7445 = vmatpush.bf16.msra.mxu3 %v9341_v54  ;;  %v9385_v54 = vld [vmem:[#allocation3 + $0x768] sm:$0xff] }
 0x88a   :  { %7446 = vmatpush.bf16.msra.mxu3 %v9340_v33  ;;  %v9383_v33 = vld [vmem:[#allocation3 + $0x758] sm:$0xff] }
 0x88d   :  { %7447 = vmatmul.bf16.vlgmr.msra.gmra.mxu3 %v5622_v36  ;;  %v9381_v36 = vld [vmem:[#allocation3 + $0x748] sm:$0xff] }
 0x88e   :  { %7452 = vmatpush.bf16.msrb.mxu3 %v9355_v16 }
 0x890   :  { %v7396_v62 = vpop.f32.mrf.mxu3 }
 0x891   :  { %v7397_v35 = vadd.f32 %v7396_v62, %v7384_v1  ;;  %v9386_v1 = vld [vmem:[#allocation3 + $0x770] sm:$0xff] }
 0x892   :  { %7453 = vmatpush.bf16.msrb.mxu3 %v9354_v47  ;;  %v9392_v47 = vld [vmem:[%s12137_s9] sm:$0xff]  ;;  %v9390_v62 = vld [vmem:[#allocation3 + $0x790] sm:$0xff] }
 0x893   :  { %7606 = vmatpush.bf16.msrb.mxu2 %v9392_v47 }
 0x896   :  { %7454 = vmatpush.bf16.msrb.mxu3 %v9353_v3  ;;  %v9380_v3 = vld [vmem:[#allocation3 + $0x740] sm:$0xff] }
 0x898   :  { %v7398_v6 = vpop.f32.mrf.mxu3 }
 0x89a   :  { %7455 = vmatpush.bf16.msrb.mxu3 %v9352_v55 }
 0x89e   :  { %7456 = vmatpush.bf16.msrb.mxu3 %v9351_v25  ;;  %v5596_v25 = vunpack.c.h.b16 %v5057_v14 }
 0x8a2   :  { %7457 = vmatpush.bf16.msrb.mxu3 %v9350_v9  ;;  %v5627_v9 = vpack.c.b16 %v5596_v25, %v5596_v25 }
 0x8a6   :  { %7458 = vmatpush.bf16.msrb.mxu3 %v9349_v0  ;;  %v9388_v0 = vld [vmem:[#allocation3 + $0x780] sm:$0xff] }
 0x8aa   :  { %7459 = vmatpush.bf16.msrb.mxu3 %v9348_v61  ;;  %v5597_v61 = vunpack.c.l.b16 %v5058_v51 }
 0x8ac   :  { %v5628_v6 = vpack.c.b16 %v5597_v61, %v5597_v61 }
 0x8ad   :  { %7460 = vmatmul.bf16.vlgmr.msrb.gmra.mxu3 %v5623_v2 }
 0x8ae   :  { %7465 = vmatpush.bf16.msra.mxu3 %v9363_v37 }
 0x8b0   :  { %v7409_v53 = vpop.f32.mrf.mxu3 }
 0x8b1   :  { %v7410_v8 = vadd.f32 %v7409_v53, %v7397_v35  ;;  %v9389_v35 = vld [vmem:[#allocation3 + $0x788] sm:$0xff] }
 0x8b2   :  { %7466 = vmatpush.bf16.msra.mxu3 %v9362_v27 }
 0x8b6   :  { %7467 = vmatpush.bf16.msra.mxu3 %v9361_v26 }
 0x8b8   :  { %v7411_v43 = vpop.f32.mrf.mxu3 }
 0x8ba   :  { %7468 = vmatpush.bf16.msra.mxu3 %v9360_v57 }
 0x8be   :  { %7469 = vmatpush.bf16.msra.mxu3 %v9359_v60 }
 0x8c2   :  { %7470 = vmatpush.bf16.msra.mxu3 %v9358_v41 }
 0x8c6   :  { %7471 = vmatpush.bf16.msra.mxu3 %v9357_v20 }
 0x8ca   :  { %7472 = vmatpush.bf16.msra.mxu3 %v9356_v58 }
 0x8cd   :  { %7473 = vmatmul.bf16.vlgmr.msra.gmra.mxu3 %v5624_v52 }
 0x8ce   :  { %7478 = vmatpush.bf16.msrb.mxu3 %v9371_v29 }
 0x8d0   :  { %v7422_v21 = vpop.f32.mrf.mxu3 }
 0x8d1   :  { %v7423_v11 = vadd.f32 %v7422_v21, %v7410_v8 }
 0x8d2   :  { %7479 = vmatpush.bf16.msrb.mxu3 %v9370_v46 }
 0x8d6   :  { %7480 = vmatpush.bf16.msrb.mxu3 %v9369_v63 }
 0x8d8   :  { %v7424_v23 = vpop.f32.mrf.mxu3 }
 0x8da   :  { %7481 = vmatpush.bf16.msrb.mxu3 %v9368_v59  ;;  %v9412_v59 = vld [vmem:[%s12138_s10] ss:$0 sm:$0xff] }
 0x8de   :  { %7482 = vmatpush.bf16.msrb.mxu3 %v9367_v28 }
 0x8e2   :  { %7483 = vmatpush.bf16.msrb.mxu3 %v9366_v45 }
 0x8e6   :  { %7484 = vmatpush.bf16.msrb.mxu3 %v9365_v31 }
 0x8ea   :  { %7485 = vmatpush.bf16.msrb.mxu3 %v9364_v48 }
 0x8ed   :  { %7486 = vmatmul.bf16.vlgmr.msrb.gmra.mxu3 %v5625_v18 }
 0x8ee   :  { %7491 = vmatpush.bf16.msra.mxu3 %v9379_v5 }
 0x8f0   :  { %v7435_v22 = vpop.f32.mrf.mxu3 }
 0x8f1   :  { %v7436_v10 = vadd.f32 %v7435_v22, %v7423_v11 }
 0x8f2   :  { %7492 = vmatpush.bf16.msra.mxu3 %v9378_v38 }
 0x8f6   :  { %7493 = vmatpush.bf16.msra.mxu3 %v9377_v30 }
 0x8f8   :  { %v7437_v56 = vpop.f32.mrf.mxu3 }
 0x8fa   :  { %7494 = vmatpush.bf16.msra.mxu3 %v9376_v42 }
 0x8fe   :  { %7495 = vmatpush.bf16.msra.mxu3 %v9375_v4 }
 0x902   :  { %7496 = vmatpush.bf16.msra.mxu3 %v9374_v39 }
 0x906   :  { %7497 = vmatpush.bf16.msra.mxu3 %v9373_v17 }
 0x90a   :  { %7498 = vmatpush.bf16.msra.mxu3 %v9372_v24 }
 0x90d   :  { %7499 = vmatmul.bf16.vlgmr.msra.gmra.mxu3 %v5626_v12 }
 0x90e   :  { %7504 = vmatpush.bf16.msrb.mxu3 %v9387_v13 }
 0x910   :  { %v7448_v16 = vpop.f32.mrf.mxu3 }
 0x911   :  { %v7449_v50 = vadd.f32 %v7448_v16, %v7436_v10 }
 0x912   :  { %7505 = vmatpush.bf16.msrb.mxu3 %v9386_v1 }
 0x916   :  { %7506 = vmatpush.bf16.msrb.mxu3 %v9385_v54 }
 0x918   :  { %v7450_v55 = vpop.f32.mrf.mxu3 }
 0x91a   :  { %7507 = vmatpush.bf16.msrb.mxu3 %v9384_v49 }
 0x91e   :  { %7508 = vmatpush.bf16.msrb.mxu3 %v9383_v33 }
 0x922   :  { %7509 = vmatpush.bf16.msrb.mxu3 %v9382_v19 }
 0x926   :  { %7510 = vmatpush.bf16.msrb.mxu3 %v9381_v36 }
 0x92a   :  { %7511 = vmatpush.bf16.msrb.mxu3 %v9380_v3 }
 0x92d   :  { %7512 = vmatmul.bf16.vlgmr.msrb.gmra.mxu3 %v5627_v9 }
 0x92e   :  { %7521 = vmatpush.bf16.msra.mxu3 %v9391_v7 }
 0x930   :  { %v7461_v37 = vpop.f32.mrf.mxu3 }
 0x931   :  { %v7462_v34 = vadd.f32 %v7461_v37, %v7449_v50 }
 0x932   :  { %7522 = vmatpush.bf16.msra.mxu3 %v9390_v62 }
 0x936   :  { %7523 = vmatpush.bf16.msra.mxu3 %v9389_v35 }
 0x938   :  { %v7463_v2 = vpop.f32.mrf.mxu3 }
 0x93a   :  { %7524 = vmatpush.bf16.msra.mxu3 %v9388_v0 }
 0x93d   :  { %9048 = vmatmul.msk.bf16.vlgmr.msra.gmra.mxu3 %vm7123_vm13, %v5628_v6 }
 0x950   :  { %v7474_v27 = vpop.f32.mrf.mxu3 }
 0x951   :  { %v7475_v26 = vadd.f32 %v7474_v27, %v7462_v34 }
 0x958   :  { %v7476_v57 = vpop.f32.mrf.mxu3 }
 0x970   :  { %v7487_v60 = vpop.f32.mrf.mxu3 }
 0x971   :  { %v7488_v41 = vadd.f32 %v7487_v60, %v7475_v26 }
 0x978   :  { %v7489_v53 = vpop.f32.mrf.mxu3 }
 0x990   :  { %v7500_v8 = vpop.f32.mrf.mxu3 }
 0x991   :  { %v7501_v43 = vadd.f32 %v7500_v8, %v7488_v41 }
 0x998   :  { %v7502_v20 = vpop.f32.mrf.mxu3 }
 0x9b0   :  { %v7513_v40 = vpop.f32.mrf.mxu3 }
 0x9b1   :  { %v7514_v29 = vadd.f32 %v7513_v40, %v7501_v43 }
 0x9b8   :  { %v7515_v58 = vpop.f32.mrf.mxu3 }
 0x9c0   :  { %v7526_v32 = vpop.f32.mrf.mxu3 }
 0x9c1   :  { %v7527_v52 = vadd.f32 %v7526_v32, %v7514_v29 }
 0x9c3   :  { %v7530_v46 = vpack.c.bf16 %v7527_v52, %v7527_v52 }
 0x9c5   :  { %7607 = vmatmul.bf16.vlgmr.msrb.gmra.mxu2 %v7530_v46 }
 0x9c8   :  { %v7528_v63 = vpop.f32.mrf.mxu3 }
 0xa48   :  { %v7608_v28 = vpop.f32.mrf.mxu2 }
 0xa49   :  { %v7609_v45 = vadd.f32 %v9412_v59, %v7608_v28 }
 0xa4b   :  { %7612 = vst [vmem:[%s12139_s11] sm:$0xff] %v7609_v45 }
 0xa50   :  { %v7610_v21 = vpop.f32.mrf.mxu2 }
 0xa51   :  { %7617 = vsyncpa [#allocation4], 1 }

</bundles_post_ra>
